<compile_context>
chip_gen: v6e
topology: v6e:2x2x1
jax: 0.10.0
libtpu: 0.0.40
codegen_flags: <defaults>
</compile_context>

<pallas_src>
import math
import functools

import jax
import jax.numpy as jnp
from jax.experimental import pallas as pl
from jax.experimental.pallas import tpu as pltpu

_VMEM_LIMIT = 48 * 1024 * 1024    # explicit scoped-VMEM budget (< v7x 64 MiB)
_BN_EPS = 1e-5


# ---------------------------------------------------------------------------
# helpers
# ---------------------------------------------------------------------------
def _largest_tile(n, target, mult):
    """Largest divisor of n that is <= target and a multiple of `mult`; else n."""
    if n <= target:
        return n
    start = target - (target % mult)
    for t in range(start, mult - 1, -mult):
        if n % t == 0:
            return t
    return n


def _vmem_specs(n):
    return [pl.BlockSpec(memory_space=pltpu.MemorySpace.VMEM) for _ in range(n)]


def _batch_bn(y, gamma, beta, eps=_BN_EPS):
    """BatchNorm1d (training-mode batch stats) over a (rows, C) slab."""
    m = jnp.mean(y, axis=0, keepdims=True)
    v = jnp.mean(jnp.square(y - m), axis=0, keepdims=True)
    return (y - m) * jax.lax.rsqrt(v + eps) * gamma + beta


# ---------------------------------------------------------------------------
# Pallas kernels
# ---------------------------------------------------------------------------
def _mel_log_center_kernel(spec_ref, fb_ref, o_ref):
    """Per-batch block: mel = spec @ fbank; log(mel+1e-6); subtract time mean.

    Padded mel columns give a constant log(1e-6) over time, so mean-centering
    makes them exactly zero (and layer1's weights for them are zero anyway).
    """
    mel = jnp.dot(spec_ref[...], fb_ref[...], preferred_element_type=jnp.float32)
    xl = jnp.log(mel + 1e-6)
    o_ref[...] = xl - jnp.mean(xl, axis=0, keepdims=True)


def _conv_relu_bn_kernel(x_ref, w_ref, g_ref, b_ref, o_ref, *, B, T, K, d):
    """Dilated Conv1d (K taps im2col'ed) -> ReLU -> BatchNorm1d, batch-vectorized.

    x_ref: (B, Tp, Ci) zero-padded input (f32); w_ref: (K*Ci, Co) bf16.
    """
    x = x_ref[...]
    Ci = x.shape[-1]
    cols = jnp.concatenate([x[:, j * d:j * d + T, :] for j in range(K)], axis=-1)
    xc = cols.reshape(B * T, K * Ci).astype(jnp.bfloat16)
    y = jnp.dot(xc, w_ref[...], preferred_element_type=jnp.float32)
    y = _batch_bn(jnp.maximum(y, 0.0), g_ref[...], b_ref[...])
    o_ref[...] = y.reshape(B, T, -1)


def _se_res2_block_kernel(*refs, B, T, C, scale, dilation, n_add):
    """Fused SE_Res2Block:
       x = sum(residual inputs) -> conv1(1x1)+ReLU+BN -> chained Res2 dilated
       group convs (im2col taps, lane-dense packed output) -> conv2(1x1)+ReLU+BN
       -> SE (batched (B,C) dots) -> scale -> + x.  One HBM write."""
    a_refs = refs[:n_add]
    (c1w, c1g, c1b, r2w, r2g, r2b,
     c2w, c2g, c2b, w1, b1, w2, b2, o_ref) = refs[n_add:]

    bf16, f32 = jnp.bfloat16, jnp.float32
    d = dilation
    width = C // scale
    nums = scale - 1

    # Fused residual sum (replaces standalone XLA adds over full tensors).
    x = a_refs[0][...]
    for r in a_refs[1:]:
        x = x + r[...]

    # conv1 (1x1) + ReLU + BN
    h = jnp.dot(x.reshape(B * T, C).astype(bf16), c1w[...],
                preferred_element_type=f32)
    h = _batch_bn(jnp.maximum(h, 0.0), c1g[...], c1b[...])
    h3 = h.reshape(B, T, C)

    # Res2: chained dilated group convs; the K=3 taps are concatenated along
    # the contraction dim (im2col) and group outputs are packed lane-dense.
    zpad = jnp.zeros((B, d, width), f32)
    group_outs = []
    sp = None
    for i in range(nums):
        g_in = h3[:, :, i * width:(i + 1) * width]
        sp = g_in if i == 0 else sp + g_in
        spp = jnp.concatenate([zpad, sp, zpad], axis=1)            # (B, T+2d, w)
        cols = jnp.concatenate(
            [spp[:, j * d:j * d + T, :] for j in range(3)], axis=-1)  # (B, T, 3w)
        y = jnp.dot(cols.reshape(B * T, 3 * width).astype(bf16), r2w[i],
                    preferred_element_type=f32)
        y = _batch_bn(jnp.maximum(y, 0.0), r2g[i], r2b[i])
        group_outs.append(y)
        sp = y.reshape(B, T, width)
    group_outs.append(h3[:, :, nums * width:].reshape(B * T, width))
    r2_out = jnp.concatenate(group_outs, axis=-1)                  # (B*T, C)

    # conv2 (1x1) + ReLU + BN
    f = jnp.dot(r2_out.astype(bf16), c2w[...], preferred_element_type=f32)
    f = _batch_bn(jnp.maximum(f, 0.0), c2g[...], c2b[...])
    f3 = f.reshape(B, T, C)

    # SE: all B per-batch time means gathered into one (B, C) matrix -> 2 dots.
    m = jnp.mean(f3, axis=1)                                       # (B, C)
    hs = jnp.maximum(
        jnp.dot(m.astype(bf16), w1[...], preferred_element_type=f32) + b1[...],
        0.0)
    s = jax.nn.sigmoid(
        jnp.dot(hs.astype(bf16), w2[...], preferred_element_type=f32) + b2[...])

    o_ref[...] = f3 * s[:, None, :] + x                            # scale + residual


def _final_concat_conv_kernel(x2_ref, x3_ref, x4_ref, w2_ref, w3_ref, w4_ref,
                              b_ref, o_ref):
    """Fused concat([out2,out3,out4]) @ W + bias -> ReLU as 3 partial matmuls."""
    bf16, f32 = jnp.bfloat16, jnp.float32
    acc = jnp.dot(x2_ref[...].astype(bf16), w2_ref[...], preferred_element_type=f32)
    acc = acc + jnp.dot(x3_ref[...].astype(bf16), w3_ref[...],
                        preferred_element_type=f32)
    acc = acc + jnp.dot(x4_ref[...].astype(bf16), w4_ref[...],
                        preferred_element_type=f32)
    o_ref[...] = jnp.maximum(acc + b_ref[...], 0.0)


# ---------------------------------------------------------------------------
# wrappers
# ---------------------------------------------------------------------------
def conv1d_relu_bn(x, p, *, K, dilation, padding):
    B, T, Ci = x.shape
    xp = jnp.pad(x, ((0, 0), (padding, padding), (0, 0)))
    Co = p['gamma'].shape[-1]
    kern = functools.partial(_conv_relu_bn_kernel, B=B, T=T, K=K, d=dilation)
    return pl.pallas_call(
        kern,
        out_shape=jax.ShapeDtypeStruct((B, T, Co), jnp.float32),
        in_specs=_vmem_specs(4),
        out_specs=pl.BlockSpec(memory_space=pltpu.MemorySpace.VMEM),
        compiler_params=pltpu.CompilerParams(vmem_limit_bytes=_VMEM_LIMIT),
    )(xp, p['w'].astype(jnp.bfloat16), p['gamma'], p['beta'])


def se_res2_block(addends, p, *, dilation, scale):
    """Returns block(sum(addends)) + sum(addends) in one pallas_call."""
    B, T, C = addends[0].shape
    bf = jnp.bfloat16
    args = list(addends) + [
        p['c1_w'].astype(bf), p['c1_g'], p['c1_b'],
        p['r2_w'].astype(bf), p['r2_g'], p['r2_b'],
        p['c2_w'].astype(bf), p['c2_g'], p['c2_b'],
        p['se_w1'].astype(bf), p['se_b1'], p['se_w2'].astype(bf), p['se_b2'],
    ]
    kern = functools.partial(_se_res2_block_kernel, B=B, T=T, C=C,
                             scale=scale, dilation=dilation, n_add=len(addends))
    return pl.pallas_call(
        kern,
        out_shape=jax.ShapeDtypeStruct((B, T, C), jnp.float32),
        in_specs=_vmem_specs(len(args)),
        out_specs=pl.BlockSpec(memory_space=pltpu.MemorySpace.VMEM),
        compiler_params=pltpu.CompilerParams(vmem_limit_bytes=_VMEM_LIMIT),
    )(*args)


def final_concat_conv(out2, out3, out4, w, b):
    B, T, C = out2.shape
    Co = w.shape[-1]
    BT = B * T
    TM = _largest_tile(BT, 256, 8)       # row tile (B*T axis)
    TN = _largest_tile(Co, 512, 128)     # lane-dense output tile
    wbf = w.astype(jnp.bfloat16)
    x2 = out2.reshape(BT, C)
    x3 = out3.reshape(BT, C)
    x4 = out4.reshape(BT, C)
    row_spec = pl.BlockSpec((TM, C), lambda i, j: (i, 0))
    w_spec = pl.BlockSpec((C, TN), lambda i, j: (0, j))
    out = pl.pallas_call(
        _final_concat_conv_kernel,
        grid=(BT // TM, Co // TN),
        in_specs=[row_spec, row_spec, row_spec, w_spec, w_spec, w_spec,
                  pl.BlockSpec((1, TN), lambda i, j: (0, j))],
        out_specs=pl.BlockSpec((TM, TN), lambda i, j: (i, j)),
        out_shape=jax.ShapeDtypeStruct((BT, Co), jnp.float32),
        compiler_params=pltpu.CompilerParams(
            dimension_semantics=("parallel", "parallel"),
            vmem_limit_bytes=_VMEM_LIMIT),
    )(x2, x3, x4, wbf[:C], wbf[C:2 * C], wbf[2 * C:], b)
    return out.reshape(B, T, Co)


# ---------------------------------------------------------------------------
# Fbank front-end (torch.no_grad() section) — framing / rfft in plain JAX
# ---------------------------------------------------------------------------
def pre_emphasis(x, coef=0.97):
    # reflect-pad 1 sample on the left, then FIR [-coef, 1]
    xpad = jnp.concatenate([x[:, 1:2], x], axis=1)
    return xpad[:, 1:] - coef * xpad[:, :-1]


def power_spectrogram(x, n_fft=256, hop=128):
    # torch.stft(center=True, pad_mode='reflect', periodic Hann, onesided, |.|^2)
    pad = n_fft // 2
    xp = jnp.pad(x, ((0, 0), (pad, pad)), mode='reflect')
    n_frames = 1 + (xp.shape[1] - n_fft) // hop
    idx = jnp.arange(n_frames)[:, None] * hop + jnp.arange(n_fft)[None, :]
    frames = xp[:, idx]                                       # (B, n_frames, n_fft)
    window = 0.5 - 0.5 * jnp.cos(2.0 * jnp.pi * jnp.arange(n_fft) / n_fft)
    spec = jnp.fft.rfft(frames * window, axis=-1)
    return (jnp.abs(spec) ** 2).astype(jnp.float32)           # (B, n_frames, n_fft//2+1)


def mel_filterbank(n_freqs, n_mels, sample_rate, f_min=0.0, f_max=None):
    # torchaudio.functional.melscale_fbanks with mel_scale='htk', norm=None
    f_max = sample_rate / 2.0 if f_max is None else f_max
    all_freqs = jnp.linspace(0.0, sample_rate / 2.0, n_freqs)
    hz_to_mel = lambda f: 2595.0 * jnp.log10(1.0 + f / 700.0)
    mel_to_hz = lambda m: 700.0 * (10.0 ** (m / 2595.0) - 1.0)
    m_pts = jnp.linspace(hz_to_mel(f_min), hz_to_mel(f_max), n_mels + 2)
    f_pts = mel_to_hz(m_pts)
    f_diff = f_pts[1:] - f_pts[:-1]
    slopes = f_pts[None, :] - all_freqs[:, None]
    down = (-1.0 * slopes[:, :-2]) / f_diff[:-1]
    up = slopes[:, 2:] / f_diff[1:]
    return jnp.maximum(0.0, jnp.minimum(down, up)).astype(jnp.float32)   # (n_freqs, n_mels)


# ---------------------------------------------------------------------------
# Full Encode forward
# ---------------------------------------------------------------------------
def encode_forward(signal, params, *, n_mels, channels, scale=8, n_fft=256, hop=128):
    B, S = signal.shape
    # TODO(synk): torchaudio's MelSpectrogram rfft has no Pallas primitive;
    # pre-emphasis / framing / FFT stay in plain JAX, everything else is Pallas.
    x = pre_emphasis(signal.astype(jnp.float32))
    spec = power_spectrogram(x, n_fft=n_fft, hop=hop)          # (B, T, n_freqs)
    _, T, F = spec.shape
    Mpad = ((n_mels + 127) // 128) * 128                       # lane-dense mel dim
    fb = mel_filterbank(F, n_mels, sample_rate=1000)           # sample_rate per module spec
    fb = jnp.pad(fb, ((0, 0), (0, Mpad - n_mels)))             # zero-padded mel columns

    feats = pl.pallas_call(
        _mel_log_center_kernel,
        grid=(B,),
        in_specs=[pl.BlockSpec((None, T, F), lambda b: (b, 0, 0)),
                  pl.BlockSpec((F, Mpad), lambda b: (0, 0))],
        out_specs=pl.BlockSpec((None, T, Mpad), lambda b: (b, 0, 0)),
        out_shape=jax.ShapeDtypeStruct((B, T, Mpad), jnp.float32),
        compiler_params=pltpu.CompilerParams(
            dimension_semantics=("parallel",), vmem_limit_bytes=_VMEM_LIMIT),
    )(spec, fb)
    # FbankAug (specaug) is only applied when an 'aug' kwarg is passed -> skipped.

    out1 = conv1d_relu_bn(feats, params['layer1'], K=5, dilation=1, padding=2)
    out2 = se_res2_block([out1], params['layer2'], dilation=2, scale=scale)
    out3 = se_res2_block([out1, out2], params['layer3'], dilation=3, scale=scale)
    out4 = se_res2_block([out1, out2, out3], params['layer4'], dilation=4, scale=scale)

    # fused concat + 1x1 conv + ReLU, tiled over (rows, N)
    return final_concat_conv(out2, out3, out4, params['conv_w'], params['conv_b'])
    # PyTorch equivalent output would be (B, 1536, T); ours is (B, T, 1536).


# ---------------------------------------------------------------------------
# Deterministic parameter init (shapes mirror the module's __init__)
# ---------------------------------------------------------------------------
def _init_conv_bn_im2col(key, K, ci, co, ci_pad=None):
    ci_pad = ci if ci_pad is None else ci_pad
    w = jax.random.normal(key, (K, ci, co), jnp.float32) * (1.0 / math.sqrt(K * ci))
    w = jnp.pad(w, ((0, 0), (0, ci_pad - ci), (0, 0))).reshape(K * ci_pad, co)
    return dict(w=w,
                gamma=jnp.ones((1, co), jnp.float32),
                beta=jnp.zeros((1, co), jnp.float32))


def _init_block(key, c, scale=8):
    width = c // scale
    nums = scale - 1
    keys = jax.random.split(key, 7)
    r2keys = jax.random.split(keys[1], nums)
    r2_w = jnp.stack([jax.random.normal(r2keys[i], (3 * width, width), jnp.float32)
                      / math.sqrt(3 * width) for i in range(nums)])
    return dict(
        c1_w=jax.random.normal(keys[0], (c, c), jnp.float32) / math.sqrt(c),
        c1_g=jnp.ones((1, c), jnp.float32),
        c1_b=jnp.zeros((1, c), jnp.float32),
        r2_w=r2_w,                                    # (nums, 3*width, width) im2col
        r2_g=jnp.ones((nums, 1, width), jnp.float32),
        r2_b=jnp.zeros((nums, 1, width), jnp.float32),
        c2_w=jax.random.normal(keys[2], (c, c), jnp.float32) / math.sqrt(c),
        c2_g=jnp.ones((1, c), jnp.float32),
        c2_b=jnp.zeros((1, c), jnp.float32),
        se_w1=jax.random.normal(keys[3], (c, c // 2), jnp.float32) / math.sqrt(c),
        se_b1=0.01 * jax.random.normal(keys[4], (1, c // 2), jnp.float32),
        se_w2=jax.random.normal(keys[5], (c // 2, c), jnp.float32) / math.sqrt(c // 2),
        se_b2=0.01 * jax.random.normal(keys[6], (1, c), jnp.float32),
    )


def init_params(key, n_mels, channels, conv_out, scale=8):
    k1, k2, k3, k4, k5, k6 = jax.random.split(key, 6)
    Mpad = ((n_mels + 127) // 128) * 128
    return dict(
        layer1=_init_conv_bn_im2col(k1, 5, n_mels, channels, ci_pad=Mpad),
        layer2=_init_block(k2, channels, scale),
        layer3=_init_block(k3, channels, scale),
        layer4=_init_block(k4, channels, scale),
        conv_w=jax.random.normal(k5, (3 * channels, conv_out), jnp.float32)
        / math.sqrt(3 * channels),
        conv_b=0.01 * jax.random.normal(k6, (1, conv_out), jnp.float32),
    )


# ---------------------------------------------------------------------------
if __name__ == "__main__":
    B, S = 2, 1920                      # 1920 samples -> 16 STFT frames (n_fft=256, hop=128)
    n_mels, channels, conv_out, scale = 120, 64, 1536, 8   # small `channels` for the demo

    key = jax.random.PRNGKey(0)
    k_sig, k_par = jax.random.split(key)
    signal = jax.random.normal(k_sig, (B, S), jnp.float32)   # raw waveform (B, S)
    params = init_params(k_par, n_mels, channels, conv_out, scale)

    fwd = jax.jit(functools.partial(encode_forward,
                                    n_mels=n_mels, channels=channels, scale=scale))
    out = fwd(signal, params)
    out = jax.block_until_ready(out)

    T = 1 + S // 128
    assert out.shape == (B, T, conv_out), out.shape
    assert bool(jnp.all(jnp.isfinite(out)))
    print("KERNEL_OK")
</pallas_src>

<mosaic_0001>
module attributes {stable_mosaic.version = 11 : i64} {
  func.func @_mel_log_center_kernel(%arg0: i32, %arg1: memref<1x16x129xf32, #tpu.memory_space<vmem>>, %arg2: memref<129x128xf32, #tpu.memory_space<vmem>>, %arg3: memref<1x16x128xf32, #tpu.memory_space<vmem>>) attributes {dimension_semantics = [#tpu.dimension_semantics<parallel>], iteration_bounds = array<i64: 2>, scalar_prefetch = 0 : i64, scratch_operands = 0 : i64, tpu.core_type = #tpu.core_type<tc>, window_params = [{transform_indices = @transform_0, window_bounds = array<i64: 1, 16, 129>}, {pipeline_mode = #tpu.pipeline_mode<synchronous>, transform_indices = @transform_1, window_bounds = array<i64: 129, 128>}, {transform_indices = @transform_2, window_bounds = array<i64: 1, 16, 128>}]} {
    %c0 = arith.constant 0 : index
    %c0_0 = arith.constant 0 : index
    %c0_1 = arith.constant 0 : index
    %0 = vector.load %arg1[%c0, %c0_0, %c0_1] : memref<1x16x129xf32, #tpu.memory_space<vmem>>, vector<1x16x129xf32>
    %1 = vector.shape_cast %0 : vector<1x16x129xf32> to vector<16x129xf32>
    %c0_2 = arith.constant 0 : index
    %c0_3 = arith.constant 0 : index
    %2 = vector.load %arg2[%c0_2, %c0_3] : memref<129x128xf32, #tpu.memory_space<vmem>>, vector<129x128xf32>
    %cst = arith.constant dense<0.000000e+00> : vector<16x128xf32>
    %3 = tpu.matmul %1, %2, %cst {dimension_numbers = #tpu.dot_dimension_numbers<[1], [0], [0], [1], [0, 0, 1, 1], [], []>} : vector<16x129xf32>, vector<129x128xf32>, vector<16x128xf32> -> vector<16x128xf32>
    %cst_4 = arith.constant 9.99999997E-7 : f32
    %4 = vector.broadcast %cst_4 : f32 to vector<16x128xf32>
    %5 = arith.addf %3, %4 : vector<16x128xf32>
    %6 = math.log %5 : vector<16x128xf32>
    %cst_5 = arith.constant dense<0.000000e+00> : vector<128xf32>
    %7 = vector.multi_reduction <add>, %6, %cst_5 [0] : vector<16x128xf32> to vector<128xf32>
    %8 = vector.shape_cast %7 : vector<128xf32> to vector<1x128xf32>
    %cst_6 = arith.constant 1.600000e+01 : f32
    %9 = vector.broadcast %cst_6 : f32 to vector<1x128xf32>
    %10 = arith.divf %8, %9 : vector<1x128xf32>
    %11 = vector.broadcast %10 : vector<1x128xf32> to vector<16x128xf32>
    %12 = arith.subf %6, %11 : vector<16x128xf32>
    %c0_7 = arith.constant 0 : index
    %c0_8 = arith.constant 0 : index
    %c0_9 = arith.constant 0 : index
    %13 = vector.load %arg3[%c0_7, %c0_8, %c0_9] : memref<1x16x128xf32, #tpu.memory_space<vmem>>, vector<1x16x128xf32>
    %14 = vector.shape_cast %13 : vector<1x16x128xf32> to vector<16x128xf32>
    %15 = vector.shape_cast %12 : vector<16x128xf32> to vector<1x16x128xf32>
    tpu.vector_store %arg3[%c0_7, %c0_8, %c0_9], %15 {strides = array<i32>} : memref<1x16x128xf32, #tpu.memory_space<vmem>>, vector<1x16x128xf32>,
    return
  }
  func.func @transform_0(%arg0: i32) -> (i32, i32, i32) {
    %c0_i32 = arith.constant 0 : i32
    %c0_i32_0 = arith.constant 0 : i32
    %c0_i32_1 = arith.constant 0 : i32
    return %arg0, %c0_i32, %c0_i32_0 : i32, i32, i32
  }
  func.func @transform_1(%arg0: i32) -> (i32, i32) {
    %c0_i32 = arith.constant 0 : i32
    %c0_i32_0 = arith.constant 0 : i32
    %c0_i32_1 = arith.constant 0 : i32
    return %c0_i32, %c0_i32_0 : i32, i32
  }
  func.func @transform_2(%arg0: i32) -> (i32, i32, i32) {
    %c0_i32 = arith.constant 0 : i32
    %c0_i32_0 = arith.constant 0 : i32
    %c0_i32_1 = arith.constant 0 : i32
    return %arg0, %c0_i32, %c0_i32_0 : i32, i32, i32
  }
}

module attributes {stable_mosaic.version = 11 : i64} {
  func.func @_conv_relu_bn_kernel(%arg0: memref<2x20x128xf32, #tpu.memory_space<vmem>>, %arg1: memref<640x64xbf16, #tpu.memory_space<vmem>>, %arg2: memref<1x64xf32, #tpu.memory_space<vmem>>, %arg3: memref<1x64xf32, #tpu.memory_space<vmem>>, %arg4: memref<2x16x64xf32, #tpu.memory_space<vmem>>) attributes {dimension_semantics = [], scalar_prefetch = 0 : i64, scratch_operands = 0 : i64, tpu.core_type = #tpu.core_type<tc>} {
    %c0 = arith.constant 0 : index
    %c0_0 = arith.constant 0 : index
    %c0_1 = arith.constant 0 : index
    %0 = vector.load %arg0[%c0, %c0_0, %c0_1] : memref<2x20x128xf32, #tpu.memory_space<vmem>>, vector<2x20x128xf32>
    %1 = vector.extract_strided_slice %0 {offsets = [0, 0, 0], sizes = [2, 16, 128], strides = [1, 1, 1]} : vector<2x20x128xf32> to vector<2x16x128xf32>
    %2 = vector.extract_strided_slice %0 {offsets = [0, 1, 0], sizes = [2, 16, 128], strides = [1, 1, 1]} : vector<2x20x128xf32> to vector<2x16x128xf32>
    %3 = vector.extract_strided_slice %0 {offsets = [0, 2, 0], sizes = [2, 16, 128], strides = [1, 1, 1]} : vector<2x20x128xf32> to vector<2x16x128xf32>
    %4 = vector.extract_strided_slice %0 {offsets = [0, 3, 0], sizes = [2, 16, 128], strides = [1, 1, 1]} : vector<2x20x128xf32> to vector<2x16x128xf32>
    %5 = vector.extract_strided_slice %0 {offsets = [0, 4, 0], sizes = [2, 16, 128], strides = [1, 1, 1]} : vector<2x20x128xf32> to vector<2x16x128xf32>
    %6 = tpu.concatenate %1, %2, %3, %4, %5 in 2 : vector<2x16x128xf32>, vector<2x16x128xf32>, vector<2x16x128xf32>, vector<2x16x128xf32>, vector<2x16x128xf32> -> vector<2x16x640xf32>
    %7 = vector.shape_cast %6 : vector<2x16x640xf32> to vector<32x640xf32>
    %8 = arith.truncf %7 : vector<32x640xf32> to vector<32x640xbf16>
    %c0_2 = arith.constant 0 : index
    %c0_3 = arith.constant 0 : index
    %9 = vector.load %arg1[%c0_2, %c0_3] : memref<640x64xbf16, #tpu.memory_space<vmem>>, vector<640x64xbf16>
    %cst = arith.constant dense<0.000000e+00> : vector<32x64xf32>
    %10 = tpu.matmul %8, %9, %cst {dimension_numbers = #tpu.dot_dimension_numbers<[1], [0], [0], [1], [0, 0, 1, 1], [], []>} : vector<32x640xbf16>, vector<640x64xbf16>, vector<32x64xf32> -> vector<32x64xf32>
    %cst_4 = arith.constant 0.000000e+00 : f32
    %11 = vector.broadcast %cst_4 : f32 to vector<32x64xf32>
    %12 = arith.maximumf %10, %11 : vector<32x64xf32>
    %c0_5 = arith.constant 0 : index
    %c0_6 = arith.constant 0 : index
    %13 = vector.load %arg2[%c0_5, %c0_6] : memref<1x64xf32, #tpu.memory_space<vmem>>, vector<1x64xf32>
    %c0_7 = arith.constant 0 : index
    %c0_8 = arith.constant 0 : index
    %14 = vector.load %arg3[%c0_7, %c0_8] : memref<1x64xf32, #tpu.memory_space<vmem>>, vector<1x64xf32>
    %cst_9 = arith.constant dense<0.000000e+00> : vector<64xf32>
    %15 = vector.multi_reduction <add>, %12, %cst_9 [0] : vector<32x64xf32> to vector<64xf32>
    %16 = vector.shape_cast %15 : vector<64xf32> to vector<1x64xf32>
    %cst_10 = arith.constant 3.200000e+01 : f32
    %17 = vector.broadcast %cst_10 : f32 to vector<1x64xf32>
    %18 = arith.divf %16, %17 : vector<1x64xf32>
    %19 = vector.broadcast %18 : vector<1x64xf32> to vector<32x64xf32>
    %20 = arith.subf %12, %19 : vector<32x64xf32>
    %21 = arith.mulf %20, %20 : vector<32x64xf32>
    %cst_11 = arith.constant dense<0.000000e+00> : vector<64xf32>
    %22 = vector.multi_reduction <add>, %21, %cst_11 [0] : vector<32x64xf32> to vector<64xf32>
    %23 = vector.shape_cast %22 : vector<64xf32> to vector<1x64xf32>
    %cst_12 = arith.constant 3.200000e+01 : f32
    %24 = vector.broadcast %cst_12 : f32 to vector<1x64xf32>
    %25 = arith.divf %23, %24 : vector<1x64xf32>
    %26 = vector.broadcast %18 : vector<1x64xf32> to vector<32x64xf32>
    %27 = arith.subf %12, %26 : vector<32x64xf32>
    %cst_13 = arith.constant 9.99999974E-6 : f32
    %28 = vector.broadcast %cst_13 : f32 to vector<1x64xf32>
    %29 = arith.addf %25, %28 : vector<1x64xf32>
    %30 = math.rsqrt %29 : vector<1x64xf32>
    %31 = vector.broadcast %30 : vector<1x64xf32> to vector<32x64xf32>
    %32 = arith.mulf %27, %31 : vector<32x64xf32>
    %33 = vector.broadcast %13 : vector<1x64xf32> to vector<32x64xf32>
    %34 = arith.mulf %32, %33 : vector<32x64xf32>
    %35 = vector.broadcast %14 : vector<1x64xf32> to vector<32x64xf32>
    %36 = arith.addf %34, %35 : vector<32x64xf32>
    %37 = vector.shape_cast %36 : vector<32x64xf32> to vector<2x16x64xf32>
    %c0_14 = arith.constant 0 : index
    %c0_15 = arith.constant 0 : index
    %c0_16 = arith.constant 0 : index
    %38 = vector.load %arg4[%c0_14, %c0_15, %c0_16] : memref<2x16x64xf32, #tpu.memory_space<vmem>>, vector<2x16x64xf32>
    tpu.vector_store %arg4[%c0_14, %c0_15, %c0_16], %37 {strides = array<i32>} : memref<2x16x64xf32, #tpu.memory_space<vmem>>, vector<2x16x64xf32>,
    return
  }
}

module attributes {stable_mosaic.version = 11 : i64} {
  func.func @_se_res2_block_kernel(%arg0: memref<2x16x64xf32, #tpu.memory_space<vmem>>, %arg1: memref<2x16x64xf32, #tpu.memory_space<vmem>>, %arg2: memref<64x64xbf16, #tpu.memory_space<vmem>>, %arg3: memref<1x64xf32, #tpu.memory_space<vmem>>, %arg4: memref<1x64xf32, #tpu.memory_space<vmem>>, %arg5: memref<7x24x8xbf16, #tpu.memory_space<vmem>>, %arg6: memref<7x1x8xf32, #tpu.memory_space<vmem>>, %arg7: memref<7x1x8xf32, #tpu.memory_space<vmem>>, %arg8: memref<64x64xbf16, #tpu.memory_space<vmem>>, %arg9: memref<1x64xf32, #tpu.memory_space<vmem>>, %arg10: memref<1x64xf32, #tpu.memory_space<vmem>>, %arg11: memref<64x32xbf16, #tpu.memory_space<vmem>>, %arg12: memref<1x32xf32, #tpu.memory_space<vmem>>, %arg13: memref<32x64xbf16, #tpu.memory_space<vmem>>, %arg14: memref<1x64xf32, #tpu.memory_space<vmem>>, %arg15: memref<2x16x64xf32, #tpu.memory_space<vmem>>) attributes {dimension_semantics = [], scalar_prefetch = 0 : i64, scratch_operands = 0 : i64, tpu.core_type = #tpu.core_type<tc>} {
    %c0 = arith.constant 0 : index
    %c0_0 = arith.constant 0 : index
    %c0_1 = arith.constant 0 : index
    %0 = vector.load %arg0[%c0, %c0_0, %c0_1] : memref<2x16x64xf32, #tpu.memory_space<vmem>>, vector<2x16x64xf32>
    %c0_2 = arith.constant 0 : index
    %c0_3 = arith.constant 0 : index
    %c0_4 = arith.constant 0 : index
    %1 = vector.load %arg1[%c0_2, %c0_3, %c0_4] : memref<2x16x64xf32, #tpu.memory_space<vmem>>, vector<2x16x64xf32>
    %2 = arith.addf %0, %1 : vector<2x16x64xf32>
    %3 = vector.shape_cast %2 : vector<2x16x64xf32> to vector<32x64xf32>
    %4 = arith.truncf %3 : vector<32x64xf32> to vector<32x64xbf16>
    %c0_5 = arith.constant 0 : index
    %c0_6 = arith.constant 0 : index
    %5 = vector.load %arg2[%c0_5, %c0_6] : memref<64x64xbf16, #tpu.memory_space<vmem>>, vector<64x64xbf16>
    %cst = arith.constant dense<0.000000e+00> : vector<32x64xf32>
    %6 = tpu.matmul %4, %5, %cst {dimension_numbers = #tpu.dot_dimension_numbers<[1], [0], [0], [1], [0, 0, 1, 1], [], []>} : vector<32x64xbf16>, vector<64x64xbf16>, vector<32x64xf32> -> vector<32x64xf32>
    %cst_7 = arith.constant 0.000000e+00 : f32
    %7 = vector.broadcast %cst_7 : f32 to vector<32x64xf32>
    %8 = arith.maximumf %6, %7 : vector<32x64xf32>
    %c0_8 = arith.constant 0 : index
    %c0_9 = arith.constant 0 : index
    %9 = vector.load %arg3[%c0_8, %c0_9] : memref<1x64xf32, #tpu.memory_space<vmem>>, vector<1x64xf32>
    %c0_10 = arith.constant 0 : index
    %c0_11 = arith.constant 0 : index
    %10 = vector.load %arg4[%c0_10, %c0_11] : memref<1x64xf32, #tpu.memory_space<vmem>>, vector<1x64xf32>
    %cst_12 = arith.constant dense<0.000000e+00> : vector<64xf32>
    %11 = vector.multi_reduction <add>, %8, %cst_12 [0] : vector<32x64xf32> to vector<64xf32>
    %12 = vector.shape_cast %11 : vector<64xf32> to vector<1x64xf32>
    %cst_13 = arith.constant 3.200000e+01 : f32
    %13 = vector.broadcast %cst_13 : f32 to vector<1x64xf32>
    %14 = arith.divf %12, %13 : vector<1x64xf32>
    %15 = vector.broadcast %14 : vector<1x64xf32> to vector<32x64xf32>
    %16 = arith.subf %8, %15 : vector<32x64xf32>
    %17 = arith.mulf %16, %16 : vector<32x64xf32>
    %cst_14 = arith.constant dense<0.000000e+00> : vector<64xf32>
    %18 = vector.multi_reduction <add>, %17, %cst_14 [0] : vector<32x64xf32> to vector<64xf32>
    %19 = vector.shape_cast %18 : vector<64xf32> to vector<1x64xf32>
    %cst_15 = arith.constant 3.200000e+01 : f32
    %20 = vector.broadcast %cst_15 : f32 to vector<1x64xf32>
    %21 = arith.divf %19, %20 : vector<1x64xf32>
    %22 = vector.broadcast %14 : vector<1x64xf32> to vector<32x64xf32>
    %23 = arith.subf %8, %22 : vector<32x64xf32>
    %cst_16 = arith.constant 9.99999974E-6 : f32
    %24 = vector.broadcast %cst_16 : f32 to vector<1x64xf32>
    %25 = arith.addf %21, %24 : vector<1x64xf32>
    %26 = math.rsqrt %25 : vector<1x64xf32>
    %27 = vector.broadcast %26 : vector<1x64xf32> to vector<32x64xf32>
    %28 = arith.mulf %23, %27 : vector<32x64xf32>
    %29 = vector.broadcast %9 : vector<1x64xf32> to vector<32x64xf32>
    %30 = arith.mulf %28, %29 : vector<32x64xf32>
    %31 = vector.broadcast %10 : vector<1x64xf32> to vector<32x64xf32>
    %32 = arith.addf %30, %31 : vector<32x64xf32>
    %33 = vector.shape_cast %32 : vector<32x64xf32> to vector<2x16x64xf32>
    %cst_17 = arith.constant 0.000000e+00 : f32
    %34 = vector.broadcast %cst_17 : f32 to vector<2x3x8xf32>
    %35 = vector.extract_strided_slice %33 {offsets = [0, 0, 0], sizes = [2, 16, 8], strides = [1, 1, 1]} : vector<2x16x64xf32> to vector<2x16x8xf32>
    %36 = tpu.concatenate %34, %35, %34 in 1 : vector<2x3x8xf32>, vector<2x16x8xf32>, vector<2x3x8xf32> -> vector<2x22x8xf32>
    %37 = vector.extract_strided_slice %36 {offsets = [0, 0, 0], sizes = [2, 16, 8], strides = [1, 1, 1]} : vector<2x22x8xf32> to vector<2x16x8xf32>
    %38 = vector.extract_strided_slice %36 {offsets = [0, 3, 0], sizes = [2, 16, 8], strides = [1, 1, 1]} : vector<2x22x8xf32> to vector<2x16x8xf32>
    %39 = vector.extract_strided_slice %36 {offsets = [0, 6, 0], sizes = [2, 16, 8], strides = [1, 1, 1]} : vector<2x22x8xf32> to vector<2x16x8xf32>
    %40 = tpu.concatenate %37, %38, %39 in 2 : vector<2x16x8xf32>, vector<2x16x8xf32>, vector<2x16x8xf32> -> vector<2x16x24xf32>
    %41 = vector.shape_cast %40 : vector<2x16x24xf32> to vector<32x24xf32>
    %42 = arith.truncf %41 : vector<32x24xf32> to vector<32x24xbf16>
    %c0_18 = arith.constant 0 : index
    %c0_19 = arith.constant 0 : index
    %c0_20 = arith.constant 0 : index
    %43 = vector.load %arg5[%c0_18, %c0_19, %c0_20] : memref<7x24x8xbf16, #tpu.memory_space<vmem>>, vector<1x24x8xbf16>
    %44 = vector.shape_cast %43 : vector<1x24x8xbf16> to vector<24x8xbf16>
    %cst_21 = arith.constant dense<0.000000e+00> : vector<32x8xf32>
    %45 = tpu.matmul %42, %44, %cst_21 {dimension_numbers = #tpu.dot_dimension_numbers<[1], [0], [0], [1], [0, 0, 1, 1], [], []>} : vector<32x24xbf16>, vector<24x8xbf16>, vector<32x8xf32> -> vector<32x8xf32>
    %cst_22 = arith.constant 0.000000e+00 : f32
    %46 = vector.broadcast %cst_22 : f32 to vector<32x8xf32>
    %47 = arith.maximumf %45, %46 : vector<32x8xf32>
    %c0_23 = arith.constant 0 : index
    %c0_24 = arith.constant 0 : index
    %c0_25 = arith.constant 0 : index
    %48 = vector.load %arg6[%c0_23, %c0_24, %c0_25] : memref<7x1x8xf32, #tpu.memory_space<vmem>>, vector<1x1x8xf32>
    %49 = vector.shape_cast %48 : vector<1x1x8xf32> to vector<1x8xf32>
    %c0_26 = arith.constant 0 : index
    %c0_27 = arith.constant 0 : index
    %c0_28 = arith.constant 0 : index
    %50 = vector.load %arg7[%c0_26, %c0_27, %c0_28] : memref<7x1x8xf32, #tpu.memory_space<vmem>>, vector<1x1x8xf32>
    %51 = vector.shape_cast %50 : vector<1x1x8xf32> to vector<1x8xf32>
    %cst_29 = arith.constant dense<0.000000e+00> : vector<8xf32>
    %52 = vector.multi_reduction <add>, %47, %cst_29 [0] : vector<32x8xf32> to vector<8xf32>
    %53 = vector.shape_cast %52 : vector<8xf32> to vector<1x8xf32>
    %cst_30 = arith.constant 3.200000e+01 : f32
    %54 = vector.broadcast %cst_30 : f32 to vector<1x8xf32>
    %55 = arith.divf %53, %54 : vector<1x8xf32>
    %56 = vector.broadcast %55 : vector<1x8xf32> to vector<32x8xf32>
    %57 = arith.subf %47, %56 : vector<32x8xf32>
    %58 = arith.mulf %57, %57 : vector<32x8xf32>
    %cst_31 = arith.constant dense<0.000000e+00> : vector<8xf32>
    %59 = vector.multi_reduction <add>, %58, %cst_31 [0] : vector<32x8xf32> to vector<8xf32>
    %60 = vector.shape_cast %59 : vector<8xf32> to vector<1x8xf32>
    %cst_32 = arith.constant 3.200000e+01 : f32
    %61 = vector.broadcast %cst_32 : f32 to vector<1x8xf32>
    %62 = arith.divf %60, %61 : vector<1x8xf32>
    %63 = vector.broadcast %55 : vector<1x8xf32> to vector<32x8xf32>
    %64 = arith.subf %47, %63 : vector<32x8xf32>
    %cst_33 = arith.constant 9.99999974E-6 : f32
    %65 = vector.broadcast %cst_33 : f32 to vector<1x8xf32>
    %66 = arith.addf %62, %65 : vector<1x8xf32>
    %67 = math.rsqrt %66 : vector<1x8xf32>
    %68 = vector.broadcast %67 : vector<1x8xf32> to vector<32x8xf32>
    %69 = arith.mulf %64, %68 : vector<32x8xf32>
    %70 = vector.broadcast %49 : vector<1x8xf32> to vector<32x8xf32>
    %71 = arith.mulf %69, %70 : vector<32x8xf32>
    %72 = vector.broadcast %51 : vector<1x8xf32> to vector<32x8xf32>
    %73 = arith.addf %71, %72 : vector<32x8xf32>
    %74 = vector.shape_cast %73 : vector<32x8xf32> to vector<2x16x8xf32>
    %75 = vector.extract_strided_slice %33 {offsets = [0, 0, 8], sizes = [2, 16, 8], strides = [1, 1, 1]} : vector<2x16x64xf32> to vector<2x16x8xf32>
    %76 = arith.addf %74, %75 : vector<2x16x8xf32>
    %77 = tpu.concatenate %34, %76, %34 in 1 : vector<2x3x8xf32>, vector<2x16x8xf32>, vector<2x3x8xf32> -> vector<2x22x8xf32>
    %78 = vector.extract_strided_slice %77 {offsets = [0, 0, 0], sizes = [2, 16, 8], strides = [1, 1, 1]} : vector<2x22x8xf32> to vector<2x16x8xf32>
    %79 = vector.extract_strided_slice %77 {offsets = [0, 3, 0], sizes = [2, 16, 8], strides = [1, 1, 1]} : vector<2x22x8xf32> to vector<2x16x8xf32>
    %80 = vector.extract_strided_slice %77 {offsets = [0, 6, 0], sizes = [2, 16, 8], strides = [1, 1, 1]} : vector<2x22x8xf32> to vector<2x16x8xf32>
    %81 = tpu.concatenate %78, %79, %80 in 2 : vector<2x16x8xf32>, vector<2x16x8xf32>, vector<2x16x8xf32> -> vector<2x16x24xf32>
    %82 = vector.shape_cast %81 : vector<2x16x24xf32> to vector<32x24xf32>
    %83 = arith.truncf %82 : vector<32x24xf32> to vector<32x24xbf16>
    %c1 = arith.constant 1 : index
    %c0_34 = arith.constant 0 : index
    %c0_35 = arith.constant 0 : index
    %84 = vector.load %arg5[%c1, %c0_34, %c0_35] : memref<7x24x8xbf16, #tpu.memory_space<vmem>>, vector<1x24x8xbf16>
    %85 = vector.shape_cast %84 : vector<1x24x8xbf16> to vector<24x8xbf16>
    %cst_36 = arith.constant dense<0.000000e+00> : vector<32x8xf32>
    %86 = tpu.matmul %83, %85, %cst_36 {dimension_numbers = #tpu.dot_dimension_numbers<[1], [0], [0], [1], [0, 0, 1, 1], [], []>} : vector<32x24xbf16>, vector<24x8xbf16>, vector<32x8xf32> -> vector<32x8xf32>
    %cst_37 = arith.constant 0.000000e+00 : f32
    %87 = vector.broadcast %cst_37 : f32 to vector<32x8xf32>
    %88 = arith.maximumf %86, %87 : vector<32x8xf32>
    %c1_38 = arith.constant 1 : index
    %c0_39 = arith.constant 0 : index
    %c0_40 = arith.constant 0 : index
    %89 = vector.load %arg6[%c1_38, %c0_39, %c0_40] : memref<7x1x8xf32, #tpu.memory_space<vmem>>, vector<1x1x8xf32>
    %90 = vector.shape_cast %89 : vector<1x1x8xf32> to vector<1x8xf32>
    %c1_41 = arith.constant 1 : index
    %c0_42 = arith.constant 0 : index
    %c0_43 = arith.constant 0 : index
    %91 = vector.load %arg7[%c1_41, %c0_42, %c0_43] : memref<7x1x8xf32, #tpu.memory_space<vmem>>, vector<1x1x8xf32>
    %92 = vector.shape_cast %91 : vector<1x1x8xf32> to vector<1x8xf32>
    %cst_44 = arith.constant dense<0.000000e+00> : vector<8xf32>
    %93 = vector.multi_reduction <add>, %88, %cst_44 [0] : vector<32x8xf32> to vector<8xf32>
    %94 = vector.shape_cast %93 : vector<8xf32> to vector<1x8xf32>
    %cst_45 = arith.constant 3.200000e+01 : f32
    %95 = vector.broadcast %cst_45 : f32 to vector<1x8xf32>
    %96 = arith.divf %94, %95 : vector<1x8xf32>
    %97 = vector.broadcast %96 : vector<1x8xf32> to vector<32x8xf32>
    %98 = arith.subf %88, %97 : vector<32x8xf32>
    %99 = arith.mulf %98, %98 : vector<32x8xf32>
    %cst_46 = arith.constant dense<0.000000e+00> : vector<8xf32>
    %100 = vector.multi_reduction <add>, %99, %cst_46 [0] : vector<32x8xf32> to vector<8xf32>
    %101 = vector.shape_cast %100 : vector<8xf32> to vector<1x8xf32>
    %cst_47 = arith.constant 3.200000e+01 : f32
    %102 = vector.broadcast %cst_47 : f32 to vector<1x8xf32>
    %103 = arith.divf %101, %102 : vector<1x8xf32>
    %104 = vector.broadcast %96 : vector<1x8xf32> to vector<32x8xf32>
    %105 = arith.subf %88, %104 : vector<32x8xf32>
    %cst_48 = arith.constant 9.99999974E-6 : f32
    %106 = vector.broadcast %cst_48 : f32 to vector<1x8xf32>
    %107 = arith.addf %103, %106 : vector<1x8xf32>
    %108 = math.rsqrt %107 : vector<1x8xf32>
    %109 = vector.broadcast %108 : vector<1x8xf32> to vector<32x8xf32>
    %110 = arith.mulf %105, %109 : vector<32x8xf32>
    %111 = vector.broadcast %90 : vector<1x8xf32> to vector<32x8xf32>
    %112 = arith.mulf %110, %111 : vector<32x8xf32>
    %113 = vector.broadcast %92 : vector<1x8xf32> to vector<32x8xf32>
    %114 = arith.addf %112, %113 : vector<32x8xf32>
    %115 = vector.shape_cast %114 : vector<32x8xf32> to vector<2x16x8xf32>
    %116 = vector.extract_strided_slice %33 {offsets = [0, 0, 16], sizes = [2, 16, 8], strides = [1, 1, 1]} : vector<2x16x64xf32> to vector<2x16x8xf32>
    %117 = arith.addf %115, %116 : vector<2x16x8xf32>
    %118 = tpu.concatenate %34, %117, %34 in 1 : vector<2x3x8xf32>, vector<2x16x8xf32>, vector<2x3x8xf32> -> vector<2x22x8xf32>
    %119 = vector.extract_strided_slice %118 {offsets = [0, 0, 0], sizes = [2, 16, 8], strides = [1, 1, 1]} : vector<2x22x8xf32> to vector<2x16x8xf32>
    %120 = vector.extract_strided_slice %118 {offsets = [0, 3, 0], sizes = [2, 16, 8], strides = [1, 1, 1]} : vector<2x22x8xf32> to vector<2x16x8xf32>
    %121 = vector.extract_strided_slice %118 {offsets = [0, 6, 0], sizes = [2, 16, 8], strides = [1, 1, 1]} : vector<2x22x8xf32> to vector<2x16x8xf32>
    %122 = tpu.concatenate %119, %120, %121 in 2 : vector<2x16x8xf32>, vector<2x16x8xf32>, vector<2x16x8xf32> -> vector<2x16x24xf32>
    %123 = vector.shape_cast %122 : vector<2x16x24xf32> to vector<32x24xf32>
    %124 = arith.truncf %123 : vector<32x24xf32> to vector<32x24xbf16>
    %c2 = arith.constant 2 : index
    %c0_49 = arith.constant 0 : index
    %c0_50 = arith.constant 0 : index
    %125 = vector.load %arg5[%c2, %c0_49, %c0_50] : memref<7x24x8xbf16, #tpu.memory_space<vmem>>, vector<1x24x8xbf16>
    %126 = vector.shape_cast %125 : vector<1x24x8xbf16> to vector<24x8xbf16>
    %cst_51 = arith.constant dense<0.000000e+00> : vector<32x8xf32>
    %127 = tpu.matmul %124, %126, %cst_51 {dimension_numbers = #tpu.dot_dimension_numbers<[1], [0], [0], [1], [0, 0, 1, 1], [], []>} : vector<32x24xbf16>, vector<24x8xbf16>, vector<32x8xf32> -> vector<32x8xf32>
    %cst_52 = arith.constant 0.000000e+00 : f32
    %128 = vector.broadcast %cst_52 : f32 to vector<32x8xf32>
    %129 = arith.maximumf %127, %128 : vector<32x8xf32>
    %c2_53 = arith.constant 2 : index
    %c0_54 = arith.constant 0 : index
    %c0_55 = arith.constant 0 : index
    %130 = vector.load %arg6[%c2_53, %c0_54, %c0_55] : memref<7x1x8xf32, #tpu.memory_space<vmem>>, vector<1x1x8xf32>
    %131 = vector.shape_cast %130 : vector<1x1x8xf32> to vector<1x8xf32>
    %c2_56 = arith.constant 2 : index
    %c0_57 = arith.constant 0 : index
    %c0_58 = arith.constant 0 : index
    %132 = vector.load %arg7[%c2_56, %c0_57, %c0_58] : memref<7x1x8xf32, #tpu.memory_space<vmem>>, vector<1x1x8xf32>
    %133 = vector.shape_cast %132 : vector<1x1x8xf32> to vector<1x8xf32>
    %cst_59 = arith.constant dense<0.000000e+00> : vector<8xf32>
    %134 = vector.multi_reduction <add>, %129, %cst_59 [0] : vector<32x8xf32> to vector<8xf32>
    %135 = vector.shape_cast %134 : vector<8xf32> to vector<1x8xf32>
    %cst_60 = arith.constant 3.200000e+01 : f32
    %136 = vector.broadcast %cst_60 : f32 to vector<1x8xf32>
    %137 = arith.divf %135, %136 : vector<1x8xf32>
    %138 = vector.broadcast %137 : vector<1x8xf32> to vector<32x8xf32>
    %139 = arith.subf %129, %138 : vector<32x8xf32>
    %140 = arith.mulf %139, %139 : vector<32x8xf32>
    %cst_61 = arith.constant dense<0.000000e+00> : vector<8xf32>
    %141 = vector.multi_reduction <add>, %140, %cst_61 [0] : vector<32x8xf32> to vector<8xf32>
    %142 = vector.shape_cast %141 : vector<8xf32> to vector<1x8xf32>
    %cst_62 = arith.constant 3.200000e+01 : f32
    %143 = vector.broadcast %cst_62 : f32 to vector<1x8xf32>
    %144 = arith.divf %142, %143 : vector<1x8xf32>
    %145 = vector.broadcast %137 : vector<1x8xf32> to vector<32x8xf32>
    %146 = arith.subf %129, %145 : vector<32x8xf32>
    %cst_63 = arith.constant 9.99999974E-6 : f32
    %147 = vector.broadcast %cst_63 : f32 to vector<1x8xf32>
    %148 = arith.addf %144, %147 : vector<1x8xf32>
    %149 = math.rsqrt %148 : vector<1x8xf32>
    %150 = vector.broadcast %149 : vector<1x8xf32> to vector<32x8xf32>
    %151 = arith.mulf %146, %150 : vector<32x8xf32>
    %152 = vector.broadcast %131 : vector<1x8xf32> to vector<32x8xf32>
    %153 = arith.mulf %151, %152 : vector<32x8xf32>
    %154 = vector.broadcast %133 : vector<1x8xf32> to vector<32x8xf32>
    %155 = arith.addf %153, %154 : vector<32x8xf32>
    %156 = vector.shape_cast %155 : vector<32x8xf32> to vector<2x16x8xf32>
    %157 = vector.extract_strided_slice %33 {offsets = [0, 0, 24], sizes = [2, 16, 8], strides = [1, 1, 1]} : vector<2x16x64xf32> to vector<2x16x8xf32>
    %158 = arith.addf %156, %157 : vector<2x16x8xf32>
    %159 = tpu.concatenate %34, %158, %34 in 1 : vector<2x3x8xf32>, vector<2x16x8xf32>, vector<2x3x8xf32> -> vector<2x22x8xf32>
    %160 = vector.extract_strided_slice %159 {offsets = [0, 0, 0], sizes = [2, 16, 8], strides = [1, 1, 1]} : vector<2x22x8xf32> to vector<2x16x8xf32>
    %161 = vector.extract_strided_slice %159 {offsets = [0, 3, 0], sizes = [2, 16, 8], strides = [1, 1, 1]} : vector<2x22x8xf32> to vector<2x16x8xf32>
    %162 = vector.extract_strided_slice %159 {offsets = [0, 6, 0], sizes = [2, 16, 8], strides = [1, 1, 1]} : vector<2x22x8xf32> to vector<2x16x8xf32>
    %163 = tpu.concatenate %160, %161, %162 in 2 : vector<2x16x8xf32>, vector<2x16x8xf32>, vector<2x16x8xf32> -> vector<2x16x24xf32>
    %164 = vector.shape_cast %163 : vector<2x16x24xf32> to vector<32x24xf32>
    %165 = arith.truncf %164 : vector<32x24xf32> to vector<32x24xbf16>
    %c3 = arith.constant 3 : index
    %c0_64 = arith.constant 0 : index
    %c0_65 = arith.constant 0 : index
    %166 = vector.load %arg5[%c3, %c0_64, %c0_65] : memref<7x24x8xbf16, #tpu.memory_space<vmem>>, vector<1x24x8xbf16>
    %167 = vector.shape_cast %166 : vector<1x24x8xbf16> to vector<24x8xbf16>
    %cst_66 = arith.constant dense<0.000000e+00> : vector<32x8xf32>
    %168 = tpu.matmul %165, %167, %cst_66 {dimension_numbers = #tpu.dot_dimension_numbers<[1], [0], [0], [1], [0, 0, 1, 1], [], []>} : vector<32x24xbf16>, vector<24x8xbf16>, vector<32x8xf32> -> vector<32x8xf32>
    %cst_67 = arith.constant 0.000000e+00 : f32
    %169 = vector.broadcast %cst_67 : f32 to vector<32x8xf32>
    %170 = arith.maximumf %168, %169 : vector<32x8xf32>
    %c3_68 = arith.constant 3 : index
    %c0_69 = arith.constant 0 : index
    %c0_70 = arith.constant 0 : index
    %171 = vector.load %arg6[%c3_68, %c0_69, %c0_70] : memref<7x1x8xf32, #tpu.memory_space<vmem>>, vector<1x1x8xf32>
    %172 = vector.shape_cast %171 : vector<1x1x8xf32> to vector<1x8xf32>
    %c3_71 = arith.constant 3 : index
    %c0_72 = arith.constant 0 : index
    %c0_73 = arith.constant 0 : index
    %173 = vector.load %arg7[%c3_71, %c0_72, %c0_73] : memref<7x1x8xf32, #tpu.memory_space<vmem>>, vector<1x1x8xf32>
    %174 = vector.shape_cast %173 : vector<1x1x8xf32> to vector<1x8xf32>
    %cst_74 = arith.constant dense<0.000000e+00> : vector<8xf32>
    %175 = vector.multi_reduction <add>, %170, %cst_74 [0] : vector<32x8xf32> to vector<8xf32>
    %176 = vector.shape_cast %175 : vector<8xf32> to vector<1x8xf32>
    %cst_75 = arith.constant 3.200000e+01 : f32
    %177 = vector.broadcast %cst_75 : f32 to vector<1x8xf32>
    %178 = arith.divf %176, %177 : vector<1x8xf32>
    %179 = vector.broadcast %178 : vector<1x8xf32> to vector<32x8xf32>
    %180 = arith.subf %170, %179 : vector<32x8xf32>
    %181 = arith.mulf %180, %180 : vector<32x8xf32>
    %cst_76 = arith.constant dense<0.000000e+00> : vector<8xf32>
    %182 = vector.multi_reduction <add>, %181, %cst_76 [0] : vector<32x8xf32> to vector<8xf32>
    %183 = vector.shape_cast %182 : vector<8xf32> to vector<1x8xf32>
    %cst_77 = arith.constant 3.200000e+01 : f32
    %184 = vector.broadcast %cst_77 : f32 to vector<1x8xf32>
    %185 = arith.divf %183, %184 : vector<1x8xf32>
    %186 = vector.broadcast %178 : vector<1x8xf32> to vector<32x8xf32>
    %187 = arith.subf %170, %186 : vector<32x8xf32>
    %cst_78 = arith.constant 9.99999974E-6 : f32
    %188 = vector.broadcast %cst_78 : f32 to vector<1x8xf32>
    %189 = arith.addf %185, %188 : vector<1x8xf32>
    %190 = math.rsqrt %189 : vector<1x8xf32>
    %191 = vector.broadcast %190 : vector<1x8xf32> to vector<32x8xf32>
    %192 = arith.mulf %187, %191 : vector<32x8xf32>
    %193 = vector.broadcast %172 : vector<1x8xf32> to vector<32x8xf32>
    %194 = arith.mulf %192, %193 : vector<32x8xf32>
    %195 = vector.broadcast %174 : vector<1x8xf32> to vector<32x8xf32>
    %196 = arith.addf %194, %195 : vector<32x8xf32>
    %197 = vector.shape_cast %196 : vector<32x8xf32> to vector<2x16x8xf32>
    %198 = vector.extract_strided_slice %33 {offsets = [0, 0, 32], sizes = [2, 16, 8], strides = [1, 1, 1]} : vector<2x16x64xf32> to vector<2x16x8xf32>
    %199 = arith.addf %197, %198 : vector<2x16x8xf32>
    %200 = tpu.concatenate %34, %199, %34 in 1 : vector<2x3x8xf32>, vector<2x16x8xf32>, vector<2x3x8xf32> -> vector<2x22x8xf32>
    %201 = vector.extract_strided_slice %200 {offsets = [0, 0, 0], sizes = [2, 16, 8], strides = [1, 1, 1]} : vector<2x22x8xf32> to vector<2x16x8xf32>
    %202 = vector.extract_strided_slice %200 {offsets = [0, 3, 0], sizes = [2, 16, 8], strides = [1, 1, 1]} : vector<2x22x8xf32> to vector<2x16x8xf32>
    %203 = vector.extract_strided_slice %200 {offsets = [0, 6, 0], sizes = [2, 16, 8], strides = [1, 1, 1]} : vector<2x22x8xf32> to vector<2x16x8xf32>
    %204 = tpu.concatenate %201, %202, %203 in 2 : vector<2x16x8xf32>, vector<2x16x8xf32>, vector<2x16x8xf32> -> vector<2x16x24xf32>
    %205 = vector.shape_cast %204 : vector<2x16x24xf32> to vector<32x24xf32>
    %206 = arith.truncf %205 : vector<32x24xf32> to vector<32x24xbf16>
    %c4 = arith.constant 4 : index
    %c0_79 = arith.constant 0 : index
    %c0_80 = arith.constant 0 : index
    %207 = vector.load %arg5[%c4, %c0_79, %c0_80] : memref<7x24x8xbf16, #tpu.memory_space<vmem>>, vector<1x24x8xbf16>
    %208 = vector.shape_cast %207 : vector<1x24x8xbf16> to vector<24x8xbf16>
    %cst_81 = arith.constant dense<0.000000e+00> : vector<32x8xf32>
    %209 = tpu.matmul %206, %208, %cst_81 {dimension_numbers = #tpu.dot_dimension_numbers<[1], [0], [0], [1], [0, 0, 1, 1], [], []>} : vector<32x24xbf16>, vector<24x8xbf16>, vector<32x8xf32> -> vector<32x8xf32>
    %cst_82 = arith.constant 0.000000e+00 : f32
    %210 = vector.broadcast %cst_82 : f32 to vector<32x8xf32>
    %211 = arith.maximumf %209, %210 : vector<32x8xf32>
    %c4_83 = arith.constant 4 : index
    %c0_84 = arith.constant 0 : index
    %c0_85 = arith.constant 0 : index
    %212 = vector.load %arg6[%c4_83, %c0_84, %c0_85] : memref<7x1x8xf32, #tpu.memory_space<vmem>>, vector<1x1x8xf32>
    %213 = vector.shape_cast %212 : vector<1x1x8xf32> to vector<1x8xf32>
    %c4_86 = arith.constant 4 : index
    %c0_87 = arith.constant 0 : index
    %c0_88 = arith.constant 0 : index
    %214 = vector.load %arg7[%c4_86, %c0_87, %c0_88] : memref<7x1x8xf32, #tpu.memory_space<vmem>>, vector<1x1x8xf32>
    %215 = vector.shape_cast %214 : vector<1x1x8xf32> to vector<1x8xf32>
    %cst_89 = arith.constant dense<0.000000e+00> : vector<8xf32>
    %216 = vector.multi_reduction <add>, %211, %cst_89 [0] : vector<32x8xf32> to vector<8xf32>
    %217 = vector.shape_cast %216 : vector<8xf32> to vector<1x8xf32>
    %cst_90 = arith.constant 3.200000e+01 : f32
    %218 = vector.broadcast %cst_90 : f32 to vector<1x8xf32>
    %219 = arith.divf %217, %218 : vector<1x8xf32>
    %220 = vector.broadcast %219 : vector<1x8xf32> to vector<32x8xf32>
    %221 = arith.subf %211, %220 : vector<32x8xf32>
    %222 = arith.mulf %221, %221 : vector<32x8xf32>
    %cst_91 = arith.constant dense<0.000000e+00> : vector<8xf32>
    %223 = vector.multi_reduction <add>, %222, %cst_91 [0] : vector<32x8xf32> to vector<8xf32>
    %224 = vector.shape_cast %223 : vector<8xf32> to vector<1x8xf32>
    %cst_92 = arith.constant 3.200000e+01 : f32
    %225 = vector.broadcast %cst_92 : f32 to vector<1x8xf32>
    %226 = arith.divf %224, %225 : vector<1x8xf32>
    %227 = vector.broadcast %219 : vector<1x8xf32> to vector<32x8xf32>
    %228 = arith.subf %211, %227 : vector<32x8xf32>
    %cst_93 = arith.constant 9.99999974E-6 : f32
    %229 = vector.broadcast %cst_93 : f32 to vector<1x8xf32>
    %230 = arith.addf %226, %229 : vector<1x8xf32>
    %231 = math.rsqrt %230 : vector<1x8xf32>
    %232 = vector.broadcast %231 : vector<1x8xf32> to vector<32x8xf32>
    %233 = arith.mulf %228, %232 : vector<32x8xf32>
    %234 = vector.broadcast %213 : vector<1x8xf32> to vector<32x8xf32>
    %235 = arith.mulf %233, %234 : vector<32x8xf32>
    %236 = vector.broadcast %215 : vector<1x8xf32> to vector<32x8xf32>
    %237 = arith.addf %235, %236 : vector<32x8xf32>
    %238 = vector.shape_cast %237 : vector<32x8xf32> to vector<2x16x8xf32>
    %239 = vector.extract_strided_slice %33 {offsets = [0, 0, 40], sizes = [2, 16, 8], strides = [1, 1, 1]} : vector<2x16x64xf32> to vector<2x16x8xf32>
    %240 = arith.addf %238, %239 : vector<2x16x8xf32>
    %241 = tpu.concatenate %34, %240, %34 in 1 : vector<2x3x8xf32>, vector<2x16x8xf32>, vector<2x3x8xf32> -> vector<2x22x8xf32>
    %242 = vector.extract_strided_slice %241 {offsets = [0, 0, 0], sizes = [2, 16, 8], strides = [1, 1, 1]} : vector<2x22x8xf32> to vector<2x16x8xf32>
    %243 = vector.extract_strided_slice %241 {offsets = [0, 3, 0], sizes = [2, 16, 8], strides = [1, 1, 1]} : vector<2x22x8xf32> to vector<2x16x8xf32>
    %244 = vector.extract_strided_slice %241 {offsets = [0, 6, 0], sizes = [2, 16, 8], strides = [1, 1, 1]} : vector<2x22x8xf32> to vector<2x16x8xf32>
    %245 = tpu.concatenate %242, %243, %244 in 2 : vector<2x16x8xf32>, vector<2x16x8xf32>, vector<2x16x8xf32> -> vector<2x16x24xf32>
    %246 = vector.shape_cast %245 : vector<2x16x24xf32> to vector<32x24xf32>
    %247 = arith.truncf %246 : vector<32x24xf32> to vector<32x24xbf16>
    %c5 = arith.constant 5 : index
    %c0_94 = arith.constant 0 : index
    %c0_95 = arith.constant 0 : index
    %248 = vector.load %arg5[%c5, %c0_94, %c0_95] : memref<7x24x8xbf16, #tpu.memory_space<vmem>>, vector<1x24x8xbf16>
    %249 = vector.shape_cast %248 : vector<1x24x8xbf16> to vector<24x8xbf16>
    %cst_96 = arith.constant dense<0.000000e+00> : vector<32x8xf32>
    %250 = tpu.matmul %247, %249, %cst_96 {dimension_numbers = #tpu.dot_dimension_numbers<[1], [0], [0], [1], [0, 0, 1, 1], [], []>} : vector<32x24xbf16>, vector<24x8xbf16>, vector<32x8xf32> -> vector<32x8xf32>
    %cst_97 = arith.constant 0.000000e+00 : f32
    %251 = vector.broadcast %cst_97 : f32 to vector<32x8xf32>
    %252 = arith.maximumf %250, %251 : vector<32x8xf32>
    %c5_98 = arith.constant 5 : index
    %c0_99 = arith.constant 0 : index
    %c0_100 = arith.constant 0 : index
    %253 = vector.load %arg6[%c5_98, %c0_99, %c0_100] : memref<7x1x8xf32, #tpu.memory_space<vmem>>, vector<1x1x8xf32>
    %254 = vector.shape_cast %253 : vector<1x1x8xf32> to vector<1x8xf32>
    %c5_101 = arith.constant 5 : index
    %c0_102 = arith.constant 0 : index
    %c0_103 = arith.constant 0 : index
    %255 = vector.load %arg7[%c5_101, %c0_102, %c0_103] : memref<7x1x8xf32, #tpu.memory_space<vmem>>, vector<1x1x8xf32>
    %256 = vector.shape_cast %255 : vector<1x1x8xf32> to vector<1x8xf32>
    %cst_104 = arith.constant dense<0.000000e+00> : vector<8xf32>
    %257 = vector.multi_reduction <add>, %252, %cst_104 [0] : vector<32x8xf32> to vector<8xf32>
    %258 = vector.shape_cast %257 : vector<8xf32> to vector<1x8xf32>
    %cst_105 = arith.constant 3.200000e+01 : f32
    %259 = vector.broadcast %cst_105 : f32 to vector<1x8xf32>
    %260 = arith.divf %258, %259 : vector<1x8xf32>
    %261 = vector.broadcast %260 : vector<1x8xf32> to vector<32x8xf32>
    %262 = arith.subf %252, %261 : vector<32x8xf32>
    %263 = arith.mulf %262, %262 : vector<32x8xf32>
    %cst_106 = arith.constant dense<0.000000e+00> : vector<8xf32>
    %264 = vector.multi_reduction <add>, %263, %cst_106 [0] : vector<32x8xf32> to vector<8xf32>
    %265 = vector.shape_cast %264 : vector<8xf32> to vector<1x8xf32>
    %cst_107 = arith.constant 3.200000e+01 : f32
    %266 = vector.broadcast %cst_107 : f32 to vector<1x8xf32>
    %267 = arith.divf %265, %266 : vector<1x8xf32>
    %268 = vector.broadcast %260 : vector<1x8xf32> to vector<32x8xf32>
    %269 = arith.subf %252, %268 : vector<32x8xf32>
    %cst_108 = arith.constant 9.99999974E-6 : f32
    %270 = vector.broadcast %cst_108 : f32 to vector<1x8xf32>
    %271 = arith.addf %267, %270 : vector<1x8xf32>
    %272 = math.rsqrt %271 : vector<1x8xf32>
    %273 = vector.broadcast %272 : vector<1x8xf32> to vector<32x8xf32>
    %274 = arith.mulf %269, %273 : vector<32x8xf32>
    %275 = vector.broadcast %254 : vector<1x8xf32> to vector<32x8xf32>
    %276 = arith.mulf %274, %275 : vector<32x8xf32>
    %277 = vector.broadcast %256 : vector<1x8xf32> to vector<32x8xf32>
    %278 = arith.addf %276, %277 : vector<32x8xf32>
    %279 = vector.shape_cast %278 : vector<32x8xf32> to vector<2x16x8xf32>
    %280 = vector.extract_strided_slice %33 {offsets = [0, 0, 48], sizes = [2, 16, 8], strides = [1, 1, 1]} : vector<2x16x64xf32> to vector<2x16x8xf32>
    %281 = arith.addf %279, %280 : vector<2x16x8xf32>
    %282 = tpu.concatenate %34, %281, %34 in 1 : vector<2x3x8xf32>, vector<2x16x8xf32>, vector<2x3x8xf32> -> vector<2x22x8xf32>
    %283 = vector.extract_strided_slice %282 {offsets = [0, 0, 0], sizes = [2, 16, 8], strides = [1, 1, 1]} : vector<2x22x8xf32> to vector<2x16x8xf32>
    %284 = vector.extract_strided_slice %282 {offsets = [0, 3, 0], sizes = [2, 16, 8], strides = [1, 1, 1]} : vector<2x22x8xf32> to vector<2x16x8xf32>
    %285 = vector.extract_strided_slice %282 {offsets = [0, 6, 0], sizes = [2, 16, 8], strides = [1, 1, 1]} : vector<2x22x8xf32> to vector<2x16x8xf32>
    %286 = tpu.concatenate %283, %284, %285 in 2 : vector<2x16x8xf32>, vector<2x16x8xf32>, vector<2x16x8xf32> -> vector<2x16x24xf32>
    %287 = vector.shape_cast %286 : vector<2x16x24xf32> to vector<32x24xf32>
    %288 = arith.truncf %287 : vector<32x24xf32> to vector<32x24xbf16>
    %c6 = arith.constant 6 : index
    %c0_109 = arith.constant 0 : index
    %c0_110 = arith.constant 0 : index
    %289 = vector.load %arg5[%c6, %c0_109, %c0_110] : memref<7x24x8xbf16, #tpu.memory_space<vmem>>, vector<1x24x8xbf16>
    %290 = vector.shape_cast %289 : vector<1x24x8xbf16> to vector<24x8xbf16>
    %cst_111 = arith.constant dense<0.000000e+00> : vector<32x8xf32>
    %291 = tpu.matmul %288, %290, %cst_111 {dimension_numbers = #tpu.dot_dimension_numbers<[1], [0], [0], [1], [0, 0, 1, 1], [], []>} : vector<32x24xbf16>, vector<24x8xbf16>, vector<32x8xf32> -> vector<32x8xf32>
    %cst_112 = arith.constant 0.000000e+00 : f32
    %292 = vector.broadcast %cst_112 : f32 to vector<32x8xf32>
    %293 = arith.maximumf %291, %292 : vector<32x8xf32>
    %c6_113 = arith.constant 6 : index
    %c0_114 = arith.constant 0 : index
    %c0_115 = arith.constant 0 : index
    %294 = vector.load %arg6[%c6_113, %c0_114, %c0_115] : memref<7x1x8xf32, #tpu.memory_space<vmem>>, vector<1x1x8xf32>
    %295 = vector.shape_cast %294 : vector<1x1x8xf32> to vector<1x8xf32>
    %c6_116 = arith.constant 6 : index
    %c0_117 = arith.constant 0 : index
    %c0_118 = arith.constant 0 : index
    %296 = vector.load %arg7[%c6_116, %c0_117, %c0_118] : memref<7x1x8xf32, #tpu.memory_space<vmem>>, vector<1x1x8xf32>
    %297 = vector.shape_cast %296 : vector<1x1x8xf32> to vector<1x8xf32>
    %cst_119 = arith.constant dense<0.000000e+00> : vector<8xf32>
    %298 = vector.multi_reduction <add>, %293, %cst_119 [0] : vector<32x8xf32> to vector<8xf32>
    %299 = vector.shape_cast %298 : vector<8xf32> to vector<1x8xf32>
    %cst_120 = arith.constant 3.200000e+01 : f32
    %300 = vector.broadcast %cst_120 : f32 to vector<1x8xf32>
    %301 = arith.divf %299, %300 : vector<1x8xf32>
    %302 = vector.broadcast %301 : vector<1x8xf32> to vector<32x8xf32>
    %303 = arith.subf %293, %302 : vector<32x8xf32>
    %304 = arith.mulf %303, %303 : vector<32x8xf32>
    %cst_121 = arith.constant dense<0.000000e+00> : vector<8xf32>
    %305 = vector.multi_reduction <add>, %304, %cst_121 [0] : vector<32x8xf32> to vector<8xf32>
    %306 = vector.shape_cast %305 : vector<8xf32> to vector<1x8xf32>
    %cst_122 = arith.constant 3.200000e+01 : f32
    %307 = vector.broadcast %cst_122 : f32 to vector<1x8xf32>
    %308 = arith.divf %306, %307 : vector<1x8xf32>
    %309 = vector.broadcast %301 : vector<1x8xf32> to vector<32x8xf32>
    %310 = arith.subf %293, %309 : vector<32x8xf32>
    %cst_123 = arith.constant 9.99999974E-6 : f32
    %311 = vector.broadcast %cst_123 : f32 to vector<1x8xf32>
    %312 = arith.addf %308, %311 : vector<1x8xf32>
    %313 = math.rsqrt %312 : vector<1x8xf32>
    %314 = vector.broadcast %313 : vector<1x8xf32> to vector<32x8xf32>
    %315 = arith.mulf %310, %314 : vector<32x8xf32>
    %316 = vector.broadcast %295 : vector<1x8xf32> to vector<32x8xf32>
    %317 = arith.mulf %315, %316 : vector<32x8xf32>
    %318 = vector.broadcast %297 : vector<1x8xf32> to vector<32x8xf32>
    %319 = arith.addf %317, %318 : vector<32x8xf32>
    %320 = vector.extract_strided_slice %33 {offsets = [0, 0, 56], sizes = [2, 16, 8], strides = [1, 1, 1]} : vector<2x16x64xf32> to vector<2x16x8xf32>
    %321 = vector.shape_cast %320 : vector<2x16x8xf32> to vector<32x8xf32>
    %322 = tpu.concatenate %73, %114, %155, %196, %237, %278, %319, %321 in 1 : vector<32x8xf32>, vector<32x8xf32>, vector<32x8xf32>, vector<32x8xf32>, vector<32x8xf32>, vector<32x8xf32>, vector<32x8xf32>, vector<32x8xf32> -> vector<32x64xf32>
    %323 = arith.truncf %322 : vector<32x64xf32> to vector<32x64xbf16>
    %c0_124 = arith.constant 0 : index
    %c0_125 = arith.constant 0 : index
    %324 = vector.load %arg8[%c0_124, %c0_125] : memref<64x64xbf16, #tpu.memory_space<vmem>>, vector<64x64xbf16>
    %cst_126 = arith.constant dense<0.000000e+00> : vector<32x64xf32>
    %325 = tpu.matmul %323, %324, %cst_126 {dimension_numbers = #tpu.dot_dimension_numbers<[1], [0], [0], [1], [0, 0, 1, 1], [], []>} : vector<32x64xbf16>, vector<64x64xbf16>, vector<32x64xf32> -> vector<32x64xf32>
    %cst_127 = arith.constant 0.000000e+00 : f32
    %326 = vector.broadcast %cst_127 : f32 to vector<32x64xf32>
    %327 = arith.maximumf %325, %326 : vector<32x64xf32>
    %c0_128 = arith.constant 0 : index
    %c0_129 = arith.constant 0 : index
    %328 = vector.load %arg9[%c0_128, %c0_129] : memref<1x64xf32, #tpu.memory_space<vmem>>, vector<1x64xf32>
    %c0_130 = arith.constant 0 : index
    %c0_131 = arith.constant 0 : index
    %329 = vector.load %arg10[%c0_130, %c0_131] : memref<1x64xf32, #tpu.memory_space<vmem>>, vector<1x64xf32>
    %cst_132 = arith.constant dense<0.000000e+00> : vector<64xf32>
    %330 = vector.multi_reduction <add>, %327, %cst_132 [0] : vector<32x64xf32> to vector<64xf32>
    %331 = vector.shape_cast %330 : vector<64xf32> to vector<1x64xf32>
    %cst_133 = arith.constant 3.200000e+01 : f32
    %332 = vector.broadcast %cst_133 : f32 to vector<1x64xf32>
    %333 = arith.divf %331, %332 : vector<1x64xf32>
    %334 = vector.broadcast %333 : vector<1x64xf32> to vector<32x64xf32>
    %335 = arith.subf %327, %334 : vector<32x64xf32>
    %336 = arith.mulf %335, %335 : vector<32x64xf32>
    %cst_134 = arith.constant dense<0.000000e+00> : vector<64xf32>
    %337 = vector.multi_reduction <add>, %336, %cst_134 [0] : vector<32x64xf32> to vector<64xf32>
    %338 = vector.shape_cast %337 : vector<64xf32> to vector<1x64xf32>
    %cst_135 = arith.constant 3.200000e+01 : f32
    %339 = vector.broadcast %cst_135 : f32 to vector<1x64xf32>
    %340 = arith.divf %338, %339 : vector<1x64xf32>
    %341 = vector.broadcast %333 : vector<1x64xf32> to vector<32x64xf32>
    %342 = arith.subf %327, %341 : vector<32x64xf32>
    %cst_136 = arith.constant 9.99999974E-6 : f32
    %343 = vector.broadcast %cst_136 : f32 to vector<1x64xf32>
    %344 = arith.addf %340, %343 : vector<1x64xf32>
    %345 = math.rsqrt %344 : vector<1x64xf32>
    %346 = vector.broadcast %345 : vector<1x64xf32> to vector<32x64xf32>
    %347 = arith.mulf %342, %346 : vector<32x64xf32>
    %348 = vector.broadcast %328 : vector<1x64xf32> to vector<32x64xf32>
    %349 = arith.mulf %347, %348 : vector<32x64xf32>
    %350 = vector.broadcast %329 : vector<1x64xf32> to vector<32x64xf32>
    %351 = arith.addf %349, %350 : vector<32x64xf32>
    %352 = vector.shape_cast %351 : vector<32x64xf32> to vector<2x16x64xf32>
    %cst_137 = arith.constant dense<0.000000e+00> : vector<2x64xf32>
    %353 = vector.multi_reduction <add>, %352, %cst_137 [1] : vector<2x16x64xf32> to vector<2x64xf32>
    %cst_138 = arith.constant 1.600000e+01 : f32
    %354 = vector.broadcast %cst_138 : f32 to vector<2x64xf32>
    %355 = arith.divf %353, %354 : vector<2x64xf32>
    %356 = arith.truncf %355 : vector<2x64xf32> to vector<2x64xbf16>
    %c0_139 = arith.constant 0 : index
    %c0_140 = arith.constant 0 : index
    %357 = vector.load %arg11[%c0_139, %c0_140] : memref<64x32xbf16, #tpu.memory_space<vmem>>, vector<64x32xbf16>
    %cst_141 = arith.constant dense<0.000000e+00> : vector<2x32xf32>
    %358 = tpu.matmul %356, %357, %cst_141 {dimension_numbers = #tpu.dot_dimension_numbers<[1], [0], [0], [1], [0, 0, 1, 1], [], []>} : vector<2x64xbf16>, vector<64x32xbf16>, vector<2x32xf32> -> vector<2x32xf32>
    %c0_142 = arith.constant 0 : index
    %c0_143 = arith.constant 0 : index
    %359 = vector.load %arg12[%c0_142, %c0_143] : memref<1x32xf32, #tpu.memory_space<vmem>>, vector<1x32xf32>
    %360 = vector.broadcast %359 : vector<1x32xf32> to vector<2x32xf32>
    %361 = arith.addf %358, %360 : vector<2x32xf32>
    %cst_144 = arith.constant 0.000000e+00 : f32
    %362 = vector.broadcast %cst_144 : f32 to vector<2x32xf32>
    %363 = arith.maximumf %361, %362 : vector<2x32xf32>
    %364 = arith.truncf %363 : vector<2x32xf32> to vector<2x32xbf16>
    %c0_145 = arith.constant 0 : index
    %c0_146 = arith.constant 0 : index
    %365 = vector.load %arg13[%c0_145, %c0_146] : memref<32x64xbf16, #tpu.memory_space<vmem>>, vector<32x64xbf16>
    %cst_147 = arith.constant dense<0.000000e+00> : vector<2x64xf32>
    %366 = tpu.matmul %364, %365, %cst_147 {dimension_numbers = #tpu.dot_dimension_numbers<[1], [0], [0], [1], [0, 0, 1, 1], [], []>} : vector<2x32xbf16>, vector<32x64xbf16>, vector<2x64xf32> -> vector<2x64xf32>
    %c0_148 = arith.constant 0 : index
    %c0_149 = arith.constant 0 : index
    %367 = vector.load %arg14[%c0_148, %c0_149] : memref<1x64xf32, #tpu.memory_space<vmem>>, vector<1x64xf32>
    %368 = vector.broadcast %367 : vector<1x64xf32> to vector<2x64xf32>
    %369 = arith.addf %366, %368 : vector<2x64xf32>
    %370 = arith.negf %369 : vector<2x64xf32>
    %371 = math.exp %370 : vector<2x64xf32>
    %cst_150 = arith.constant 1.000000e+00 : f32
    %372 = vector.broadcast %cst_150 : f32 to vector<2x64xf32>
    %373 = arith.addf %372, %371 : vector<2x64xf32>
    %374 = arith.divf %372, %373 : vector<2x64xf32>
    %375 = vector.shape_cast %374 : vector<2x64xf32> to vector<2x1x64xf32>
    %376 = vector.broadcast %375 : vector<2x1x64xf32> to vector<2x16x64xf32>
    %377 = arith.mulf %352, %376 : vector<2x16x64xf32>
    %378 = arith.addf %377, %2 : vector<2x16x64xf32>
    %c0_151 = arith.constant 0 : index
    %c0_152 = arith.constant 0 : index
    %c0_153 = arith.constant 0 : index
    %379 = vector.load %arg15[%c0_151, %c0_152, %c0_153] : memref<2x16x64xf32, #tpu.memory_space<vmem>>, vector<2x16x64xf32>
    tpu.vector_store %arg15[%c0_151, %c0_152, %c0_153], %378 {strides = array<i32>} : memref<2x16x64xf32, #tpu.memory_space<vmem>>, vector<2x16x64xf32>,
    return
  }
}

module attributes {stable_mosaic.version = 11 : i64} {
  func.func @_se_res2_block_kernel(%arg0: memref<2x16x64xf32, #tpu.memory_space<vmem>>, %arg1: memref<64x64xbf16, #tpu.memory_space<vmem>>, %arg2: memref<1x64xf32, #tpu.memory_space<vmem>>, %arg3: memref<1x64xf32, #tpu.memory_space<vmem>>, %arg4: memref<7x24x8xbf16, #tpu.memory_space<vmem>>, %arg5: memref<7x1x8xf32, #tpu.memory_space<vmem>>, %arg6: memref<7x1x8xf32, #tpu.memory_space<vmem>>, %arg7: memref<64x64xbf16, #tpu.memory_space<vmem>>, %arg8: memref<1x64xf32, #tpu.memory_space<vmem>>, %arg9: memref<1x64xf32, #tpu.memory_space<vmem>>, %arg10: memref<64x32xbf16, #tpu.memory_space<vmem>>, %arg11: memref<1x32xf32, #tpu.memory_space<vmem>>, %arg12: memref<32x64xbf16, #tpu.memory_space<vmem>>, %arg13: memref<1x64xf32, #tpu.memory_space<vmem>>, %arg14: memref<2x16x64xf32, #tpu.memory_space<vmem>>) attributes {dimension_semantics = [], scalar_prefetch = 0 : i64, scratch_operands = 0 : i64, tpu.core_type = #tpu.core_type<tc>} {
    %c0 = arith.constant 0 : index
    %c0_0 = arith.constant 0 : index
    %c0_1 = arith.constant 0 : index
    %0 = vector.load %arg0[%c0, %c0_0, %c0_1] : memref<2x16x64xf32, #tpu.memory_space<vmem>>, vector<2x16x64xf32>
    %1 = vector.shape_cast %0 : vector<2x16x64xf32> to vector<32x64xf32>
    %2 = arith.truncf %1 : vector<32x64xf32> to vector<32x64xbf16>
    %c0_2 = arith.constant 0 : index
    %c0_3 = arith.constant 0 : index
    %3 = vector.load %arg1[%c0_2, %c0_3] : memref<64x64xbf16, #tpu.memory_space<vmem>>, vector<64x64xbf16>
    %cst = arith.constant dense<0.000000e+00> : vector<32x64xf32>
    %4 = tpu.matmul %2, %3, %cst {dimension_numbers = #tpu.dot_dimension_numbers<[1], [0], [0], [1], [0, 0, 1, 1], [], []>} : vector<32x64xbf16>, vector<64x64xbf16>, vector<32x64xf32> -> vector<32x64xf32>
    %cst_4 = arith.constant 0.000000e+00 : f32
    %5 = vector.broadcast %cst_4 : f32 to vector<32x64xf32>
    %6 = arith.maximumf %4, %5 : vector<32x64xf32>
    %c0_5 = arith.constant 0 : index
    %c0_6 = arith.constant 0 : index
    %7 = vector.load %arg2[%c0_5, %c0_6] : memref<1x64xf32, #tpu.memory_space<vmem>>, vector<1x64xf32>
    %c0_7 = arith.constant 0 : index
    %c0_8 = arith.constant 0 : index
    %8 = vector.load %arg3[%c0_7, %c0_8] : memref<1x64xf32, #tpu.memory_space<vmem>>, vector<1x64xf32>
    %cst_9 = arith.constant dense<0.000000e+00> : vector<64xf32>
    %9 = vector.multi_reduction <add>, %6, %cst_9 [0] : vector<32x64xf32> to vector<64xf32>
    %10 = vector.shape_cast %9 : vector<64xf32> to vector<1x64xf32>
    %cst_10 = arith.constant 3.200000e+01 : f32
    %11 = vector.broadcast %cst_10 : f32 to vector<1x64xf32>
    %12 = arith.divf %10, %11 : vector<1x64xf32>
    %13 = vector.broadcast %12 : vector<1x64xf32> to vector<32x64xf32>
    %14 = arith.subf %6, %13 : vector<32x64xf32>
    %15 = arith.mulf %14, %14 : vector<32x64xf32>
    %cst_11 = arith.constant dense<0.000000e+00> : vector<64xf32>
    %16 = vector.multi_reduction <add>, %15, %cst_11 [0] : vector<32x64xf32> to vector<64xf32>
    %17 = vector.shape_cast %16 : vector<64xf32> to vector<1x64xf32>
    %cst_12 = arith.constant 3.200000e+01 : f32
    %18 = vector.broadcast %cst_12 : f32 to vector<1x64xf32>
    %19 = arith.divf %17, %18 : vector<1x64xf32>
    %20 = vector.broadcast %12 : vector<1x64xf32> to vector<32x64xf32>
    %21 = arith.subf %6, %20 : vector<32x64xf32>
    %cst_13 = arith.constant 9.99999974E-6 : f32
    %22 = vector.broadcast %cst_13 : f32 to vector<1x64xf32>
    %23 = arith.addf %19, %22 : vector<1x64xf32>
    %24 = math.rsqrt %23 : vector<1x64xf32>
    %25 = vector.broadcast %24 : vector<1x64xf32> to vector<32x64xf32>
    %26 = arith.mulf %21, %25 : vector<32x64xf32>
    %27 = vector.broadcast %7 : vector<1x64xf32> to vector<32x64xf32>
    %28 = arith.mulf %26, %27 : vector<32x64xf32>
    %29 = vector.broadcast %8 : vector<1x64xf32> to vector<32x64xf32>
    %30 = arith.addf %28, %29 : vector<32x64xf32>
    %31 = vector.shape_cast %30 : vector<32x64xf32> to vector<2x16x64xf32>
    %cst_14 = arith.constant 0.000000e+00 : f32
    %32 = vector.broadcast %cst_14 : f32 to vector<2x2x8xf32>
    %33 = vector.extract_strided_slice %31 {offsets = [0, 0, 0], sizes = [2, 16, 8], strides = [1, 1, 1]} : vector<2x16x64xf32> to vector<2x16x8xf32>
    %34 = tpu.concatenate %32, %33, %32 in 1 : vector<2x2x8xf32>, vector<2x16x8xf32>, vector<2x2x8xf32> -> vector<2x20x8xf32>
    %35 = vector.extract_strided_slice %34 {offsets = [0, 0, 0], sizes = [2, 16, 8], strides = [1, 1, 1]} : vector<2x20x8xf32> to vector<2x16x8xf32>
    %36 = vector.extract_strided_slice %34 {offsets = [0, 2, 0], sizes = [2, 16, 8], strides = [1, 1, 1]} : vector<2x20x8xf32> to vector<2x16x8xf32>
    %37 = vector.extract_strided_slice %34 {offsets = [0, 4, 0], sizes = [2, 16, 8], strides = [1, 1, 1]} : vector<2x20x8xf32> to vector<2x16x8xf32>
    %38 = tpu.concatenate %35, %36, %37 in 2 : vector<2x16x8xf32>, vector<2x16x8xf32>, vector<2x16x8xf32> -> vector<2x16x24xf32>
    %39 = vector.shape_cast %38 : vector<2x16x24xf32> to vector<32x24xf32>
    %40 = arith.truncf %39 : vector<32x24xf32> to vector<32x24xbf16>
    %c0_15 = arith.constant 0 : index
    %c0_16 = arith.constant 0 : index
    %c0_17 = arith.constant 0 : index
    %41 = vector.load %arg4[%c0_15, %c0_16, %c0_17] : memref<7x24x8xbf16, #tpu.memory_space<vmem>>, vector<1x24x8xbf16>
    %42 = vector.shape_cast %41 : vector<1x24x8xbf16> to vector<24x8xbf16>
    %cst_18 = arith.constant dense<0.000000e+00> : vector<32x8xf32>
    %43 = tpu.matmul %40, %42, %cst_18 {dimension_numbers = #tpu.dot_dimension_numbers<[1], [0], [0], [1], [0, 0, 1, 1], [], []>} : vector<32x24xbf16>, vector<24x8xbf16>, vector<32x8xf32> -> vector<32x8xf32>
    %cst_19 = arith.constant 0.000000e+00 : f32
    %44 = vector.broadcast %cst_19 : f32 to vector<32x8xf32>
    %45 = arith.maximumf %43, %44 : vector<32x8xf32>
    %c0_20 = arith.constant 0 : index
    %c0_21 = arith.constant 0 : index
    %c0_22 = arith.constant 0 : index
    %46 = vector.load %arg5[%c0_20, %c0_21, %c0_22] : memref<7x1x8xf32, #tpu.memory_space<vmem>>, vector<1x1x8xf32>
    %47 = vector.shape_cast %46 : vector<1x1x8xf32> to vector<1x8xf32>
    %c0_23 = arith.constant 0 : index
    %c0_24 = arith.constant 0 : index
    %c0_25 = arith.constant 0 : index
    %48 = vector.load %arg6[%c0_23, %c0_24, %c0_25] : memref<7x1x8xf32, #tpu.memory_space<vmem>>, vector<1x1x8xf32>
    %49 = vector.shape_cast %48 : vector<1x1x8xf32> to vector<1x8xf32>
    %cst_26 = arith.constant dense<0.000000e+00> : vector<8xf32>
    %50 = vector.multi_reduction <add>, %45, %cst_26 [0] : vector<32x8xf32> to vector<8xf32>
    %51 = vector.shape_cast %50 : vector<8xf32> to vector<1x8xf32>
    %cst_27 = arith.constant 3.200000e+01 : f32
    %52 = vector.broadcast %cst_27 : f32 to vector<1x8xf32>
    %53 = arith.divf %51, %52 : vector<1x8xf32>
    %54 = vector.broadcast %53 : vector<1x8xf32> to vector<32x8xf32>
    %55 = arith.subf %45, %54 : vector<32x8xf32>
    %56 = arith.mulf %55, %55 : vector<32x8xf32>
    %cst_28 = arith.constant dense<0.000000e+00> : vector<8xf32>
    %57 = vector.multi_reduction <add>, %56, %cst_28 [0] : vector<32x8xf32> to vector<8xf32>
    %58 = vector.shape_cast %57 : vector<8xf32> to vector<1x8xf32>
    %cst_29 = arith.constant 3.200000e+01 : f32
    %59 = vector.broadcast %cst_29 : f32 to vector<1x8xf32>
    %60 = arith.divf %58, %59 : vector<1x8xf32>
    %61 = vector.broadcast %53 : vector<1x8xf32> to vector<32x8xf32>
    %62 = arith.subf %45, %61 : vector<32x8xf32>
    %cst_30 = arith.constant 9.99999974E-6 : f32
    %63 = vector.broadcast %cst_30 : f32 to vector<1x8xf32>
    %64 = arith.addf %60, %63 : vector<1x8xf32>
    %65 = math.rsqrt %64 : vector<1x8xf32>
    %66 = vector.broadcast %65 : vector<1x8xf32> to vector<32x8xf32>
    %67 = arith.mulf %62, %66 : vector<32x8xf32>
    %68 = vector.broadcast %47 : vector<1x8xf32> to vector<32x8xf32>
    %69 = arith.mulf %67, %68 : vector<32x8xf32>
    %70 = vector.broadcast %49 : vector<1x8xf32> to vector<32x8xf32>
    %71 = arith.addf %69, %70 : vector<32x8xf32>
    %72 = vector.shape_cast %71 : vector<32x8xf32> to vector<2x16x8xf32>
    %73 = vector.extract_strided_slice %31 {offsets = [0, 0, 8], sizes = [2, 16, 8], strides = [1, 1, 1]} : vector<2x16x64xf32> to vector<2x16x8xf32>
    %74 = arith.addf %72, %73 : vector<2x16x8xf32>
    %75 = tpu.concatenate %32, %74, %32 in 1 : vector<2x2x8xf32>, vector<2x16x8xf32>, vector<2x2x8xf32> -> vector<2x20x8xf32>
    %76 = vector.extract_strided_slice %75 {offsets = [0, 0, 0], sizes = [2, 16, 8], strides = [1, 1, 1]} : vector<2x20x8xf32> to vector<2x16x8xf32>
    %77 = vector.extract_strided_slice %75 {offsets = [0, 2, 0], sizes = [2, 16, 8], strides = [1, 1, 1]} : vector<2x20x8xf32> to vector<2x16x8xf32>
    %78 = vector.extract_strided_slice %75 {offsets = [0, 4, 0], sizes = [2, 16, 8], strides = [1, 1, 1]} : vector<2x20x8xf32> to vector<2x16x8xf32>
    %79 = tpu.concatenate %76, %77, %78 in 2 : vector<2x16x8xf32>, vector<2x16x8xf32>, vector<2x16x8xf32> -> vector<2x16x24xf32>
    %80 = vector.shape_cast %79 : vector<2x16x24xf32> to vector<32x24xf32>
    %81 = arith.truncf %80 : vector<32x24xf32> to vector<32x24xbf16>
    %c1 = arith.constant 1 : index
    %c0_31 = arith.constant 0 : index
    %c0_32 = arith.constant 0 : index
    %82 = vector.load %arg4[%c1, %c0_31, %c0_32] : memref<7x24x8xbf16, #tpu.memory_space<vmem>>, vector<1x24x8xbf16>
    %83 = vector.shape_cast %82 : vector<1x24x8xbf16> to vector<24x8xbf16>
    %cst_33 = arith.constant dense<0.000000e+00> : vector<32x8xf32>
    %84 = tpu.matmul %81, %83, %cst_33 {dimension_numbers = #tpu.dot_dimension_numbers<[1], [0], [0], [1], [0, 0, 1, 1], [], []>} : vector<32x24xbf16>, vector<24x8xbf16>, vector<32x8xf32> -> vector<32x8xf32>
    %cst_34 = arith.constant 0.000000e+00 : f32
    %85 = vector.broadcast %cst_34 : f32 to vector<32x8xf32>
    %86 = arith.maximumf %84, %85 : vector<32x8xf32>
    %c1_35 = arith.constant 1 : index
    %c0_36 = arith.constant 0 : index
    %c0_37 = arith.constant 0 : index
    %87 = vector.load %arg5[%c1_35, %c0_36, %c0_37] : memref<7x1x8xf32, #tpu.memory_space<vmem>>, vector<1x1x8xf32>
    %88 = vector.shape_cast %87 : vector<1x1x8xf32> to vector<1x8xf32>
    %c1_38 = arith.constant 1 : index
    %c0_39 = arith.constant 0 : index
    %c0_40 = arith.constant 0 : index
    %89 = vector.load %arg6[%c1_38, %c0_39, %c0_40] : memref<7x1x8xf32, #tpu.memory_space<vmem>>, vector<1x1x8xf32>
    %90 = vector.shape_cast %89 : vector<1x1x8xf32> to vector<1x8xf32>
    %cst_41 = arith.constant dense<0.000000e+00> : vector<8xf32>
    %91 = vector.multi_reduction <add>, %86, %cst_41 [0] : vector<32x8xf32> to vector<8xf32>
    %92 = vector.shape_cast %91 : vector<8xf32> to vector<1x8xf32>
    %cst_42 = arith.constant 3.200000e+01 : f32
    %93 = vector.broadcast %cst_42 : f32 to vector<1x8xf32>
    %94 = arith.divf %92, %93 : vector<1x8xf32>
    %95 = vector.broadcast %94 : vector<1x8xf32> to vector<32x8xf32>
    %96 = arith.subf %86, %95 : vector<32x8xf32>
    %97 = arith.mulf %96, %96 : vector<32x8xf32>
    %cst_43 = arith.constant dense<0.000000e+00> : vector<8xf32>
    %98 = vector.multi_reduction <add>, %97, %cst_43 [0] : vector<32x8xf32> to vector<8xf32>
    %99 = vector.shape_cast %98 : vector<8xf32> to vector<1x8xf32>
    %cst_44 = arith.constant 3.200000e+01 : f32
    %100 = vector.broadcast %cst_44 : f32 to vector<1x8xf32>
    %101 = arith.divf %99, %100 : vector<1x8xf32>
    %102 = vector.broadcast %94 : vector<1x8xf32> to vector<32x8xf32>
    %103 = arith.subf %86, %102 : vector<32x8xf32>
    %cst_45 = arith.constant 9.99999974E-6 : f32
    %104 = vector.broadcast %cst_45 : f32 to vector<1x8xf32>
    %105 = arith.addf %101, %104 : vector<1x8xf32>
    %106 = math.rsqrt %105 : vector<1x8xf32>
    %107 = vector.broadcast %106 : vector<1x8xf32> to vector<32x8xf32>
    %108 = arith.mulf %103, %107 : vector<32x8xf32>
    %109 = vector.broadcast %88 : vector<1x8xf32> to vector<32x8xf32>
    %110 = arith.mulf %108, %109 : vector<32x8xf32>
    %111 = vector.broadcast %90 : vector<1x8xf32> to vector<32x8xf32>
    %112 = arith.addf %110, %111 : vector<32x8xf32>
    %113 = vector.shape_cast %112 : vector<32x8xf32> to vector<2x16x8xf32>
    %114 = vector.extract_strided_slice %31 {offsets = [0, 0, 16], sizes = [2, 16, 8], strides = [1, 1, 1]} : vector<2x16x64xf32> to vector<2x16x8xf32>
    %115 = arith.addf %113, %114 : vector<2x16x8xf32>
    %116 = tpu.concatenate %32, %115, %32 in 1 : vector<2x2x8xf32>, vector<2x16x8xf32>, vector<2x2x8xf32> -> vector<2x20x8xf32>
    %117 = vector.extract_strided_slice %116 {offsets = [0, 0, 0], sizes = [2, 16, 8], strides = [1, 1, 1]} : vector<2x20x8xf32> to vector<2x16x8xf32>
    %118 = vector.extract_strided_slice %116 {offsets = [0, 2, 0], sizes = [2, 16, 8], strides = [1, 1, 1]} : vector<2x20x8xf32> to vector<2x16x8xf32>
    %119 = vector.extract_strided_slice %116 {offsets = [0, 4, 0], sizes = [2, 16, 8], strides = [1, 1, 1]} : vector<2x20x8xf32> to vector<2x16x8xf32>
    %120 = tpu.concatenate %117, %118, %119 in 2 : vector<2x16x8xf32>, vector<2x16x8xf32>, vector<2x16x8xf32> -> vector<2x16x24xf32>
    %121 = vector.shape_cast %120 : vector<2x16x24xf32> to vector<32x24xf32>
    %122 = arith.truncf %121 : vector<32x24xf32> to vector<32x24xbf16>
    %c2 = arith.constant 2 : index
    %c0_46 = arith.constant 0 : index
    %c0_47 = arith.constant 0 : index
    %123 = vector.load %arg4[%c2, %c0_46, %c0_47] : memref<7x24x8xbf16, #tpu.memory_space<vmem>>, vector<1x24x8xbf16>
    %124 = vector.shape_cast %123 : vector<1x24x8xbf16> to vector<24x8xbf16>
    %cst_48 = arith.constant dense<0.000000e+00> : vector<32x8xf32>
    %125 = tpu.matmul %122, %124, %cst_48 {dimension_numbers = #tpu.dot_dimension_numbers<[1], [0], [0], [1], [0, 0, 1, 1], [], []>} : vector<32x24xbf16>, vector<24x8xbf16>, vector<32x8xf32> -> vector<32x8xf32>
    %cst_49 = arith.constant 0.000000e+00 : f32
    %126 = vector.broadcast %cst_49 : f32 to vector<32x8xf32>
    %127 = arith.maximumf %125, %126 : vector<32x8xf32>
    %c2_50 = arith.constant 2 : index
    %c0_51 = arith.constant 0 : index
    %c0_52 = arith.constant 0 : index
    %128 = vector.load %arg5[%c2_50, %c0_51, %c0_52] : memref<7x1x8xf32, #tpu.memory_space<vmem>>, vector<1x1x8xf32>
    %129 = vector.shape_cast %128 : vector<1x1x8xf32> to vector<1x8xf32>
    %c2_53 = arith.constant 2 : index
    %c0_54 = arith.constant 0 : index
    %c0_55 = arith.constant 0 : index
    %130 = vector.load %arg6[%c2_53, %c0_54, %c0_55] : memref<7x1x8xf32, #tpu.memory_space<vmem>>, vector<1x1x8xf32>
    %131 = vector.shape_cast %130 : vector<1x1x8xf32> to vector<1x8xf32>
    %cst_56 = arith.constant dense<0.000000e+00> : vector<8xf32>
    %132 = vector.multi_reduction <add>, %127, %cst_56 [0] : vector<32x8xf32> to vector<8xf32>
    %133 = vector.shape_cast %132 : vector<8xf32> to vector<1x8xf32>
    %cst_57 = arith.constant 3.200000e+01 : f32
    %134 = vector.broadcast %cst_57 : f32 to vector<1x8xf32>
    %135 = arith.divf %133, %134 : vector<1x8xf32>
    %136 = vector.broadcast %135 : vector<1x8xf32> to vector<32x8xf32>
    %137 = arith.subf %127, %136 : vector<32x8xf32>
    %138 = arith.mulf %137, %137 : vector<32x8xf32>
    %cst_58 = arith.constant dense<0.000000e+00> : vector<8xf32>
    %139 = vector.multi_reduction <add>, %138, %cst_58 [0] : vector<32x8xf32> to vector<8xf32>
    %140 = vector.shape_cast %139 : vector<8xf32> to vector<1x8xf32>
    %cst_59 = arith.constant 3.200000e+01 : f32
    %141 = vector.broadcast %cst_59 : f32 to vector<1x8xf32>
    %142 = arith.divf %140, %141 : vector<1x8xf32>
    %143 = vector.broadcast %135 : vector<1x8xf32> to vector<32x8xf32>
    %144 = arith.subf %127, %143 : vector<32x8xf32>
    %cst_60 = arith.constant 9.99999974E-6 : f32
    %145 = vector.broadcast %cst_60 : f32 to vector<1x8xf32>
    %146 = arith.addf %142, %145 : vector<1x8xf32>
    %147 = math.rsqrt %146 : vector<1x8xf32>
    %148 = vector.broadcast %147 : vector<1x8xf32> to vector<32x8xf32>
    %149 = arith.mulf %144, %148 : vector<32x8xf32>
    %150 = vector.broadcast %129 : vector<1x8xf32> to vector<32x8xf32>
    %151 = arith.mulf %149, %150 : vector<32x8xf32>
    %152 = vector.broadcast %131 : vector<1x8xf32> to vector<32x8xf32>
    %153 = arith.addf %151, %152 : vector<32x8xf32>
    %154 = vector.shape_cast %153 : vector<32x8xf32> to vector<2x16x8xf32>
    %155 = vector.extract_strided_slice %31 {offsets = [0, 0, 24], sizes = [2, 16, 8], strides = [1, 1, 1]} : vector<2x16x64xf32> to vector<2x16x8xf32>
    %156 = arith.addf %154, %155 : vector<2x16x8xf32>
    %157 = tpu.concatenate %32, %156, %32 in 1 : vector<2x2x8xf32>, vector<2x16x8xf32>, vector<2x2x8xf32> -> vector<2x20x8xf32>
    %158 = vector.extract_strided_slice %157 {offsets = [0, 0, 0], sizes = [2, 16, 8], strides = [1, 1, 1]} : vector<2x20x8xf32> to vector<2x16x8xf32>
    %159 = vector.extract_strided_slice %157 {offsets = [0, 2, 0], sizes = [2, 16, 8], strides = [1, 1, 1]} : vector<2x20x8xf32> to vector<2x16x8xf32>
    %160 = vector.extract_strided_slice %157 {offsets = [0, 4, 0], sizes = [2, 16, 8], strides = [1, 1, 1]} : vector<2x20x8xf32> to vector<2x16x8xf32>
    %161 = tpu.concatenate %158, %159, %160 in 2 : vector<2x16x8xf32>, vector<2x16x8xf32>, vector<2x16x8xf32> -> vector<2x16x24xf32>
    %162 = vector.shape_cast %161 : vector<2x16x24xf32> to vector<32x24xf32>
    %163 = arith.truncf %162 : vector<32x24xf32> to vector<32x24xbf16>
    %c3 = arith.constant 3 : index
    %c0_61 = arith.constant 0 : index
    %c0_62 = arith.constant 0 : index
    %164 = vector.load %arg4[%c3, %c0_61, %c0_62] : memref<7x24x8xbf16, #tpu.memory_space<vmem>>, vector<1x24x8xbf16>
    %165 = vector.shape_cast %164 : vector<1x24x8xbf16> to vector<24x8xbf16>
    %cst_63 = arith.constant dense<0.000000e+00> : vector<32x8xf32>
    %166 = tpu.matmul %163, %165, %cst_63 {dimension_numbers = #tpu.dot_dimension_numbers<[1], [0], [0], [1], [0, 0, 1, 1], [], []>} : vector<32x24xbf16>, vector<24x8xbf16>, vector<32x8xf32> -> vector<32x8xf32>
    %cst_64 = arith.constant 0.000000e+00 : f32
    %167 = vector.broadcast %cst_64 : f32 to vector<32x8xf32>
    %168 = arith.maximumf %166, %167 : vector<32x8xf32>
    %c3_65 = arith.constant 3 : index
    %c0_66 = arith.constant 0 : index
    %c0_67 = arith.constant 0 : index
    %169 = vector.load %arg5[%c3_65, %c0_66, %c0_67] : memref<7x1x8xf32, #tpu.memory_space<vmem>>, vector<1x1x8xf32>
    %170 = vector.shape_cast %169 : vector<1x1x8xf32> to vector<1x8xf32>
    %c3_68 = arith.constant 3 : index
    %c0_69 = arith.constant 0 : index
    %c0_70 = arith.constant 0 : index
    %171 = vector.load %arg6[%c3_68, %c0_69, %c0_70] : memref<7x1x8xf32, #tpu.memory_space<vmem>>, vector<1x1x8xf32>
    %172 = vector.shape_cast %171 : vector<1x1x8xf32> to vector<1x8xf32>
    %cst_71 = arith.constant dense<0.000000e+00> : vector<8xf32>
    %173 = vector.multi_reduction <add>, %168, %cst_71 [0] : vector<32x8xf32> to vector<8xf32>
    %174 = vector.shape_cast %173 : vector<8xf32> to vector<1x8xf32>
    %cst_72 = arith.constant 3.200000e+01 : f32
    %175 = vector.broadcast %cst_72 : f32 to vector<1x8xf32>
    %176 = arith.divf %174, %175 : vector<1x8xf32>
    %177 = vector.broadcast %176 : vector<1x8xf32> to vector<32x8xf32>
    %178 = arith.subf %168, %177 : vector<32x8xf32>
    %179 = arith.mulf %178, %178 : vector<32x8xf32>
    %cst_73 = arith.constant dense<0.000000e+00> : vector<8xf32>
    %180 = vector.multi_reduction <add>, %179, %cst_73 [0] : vector<32x8xf32> to vector<8xf32>
    %181 = vector.shape_cast %180 : vector<8xf32> to vector<1x8xf32>
    %cst_74 = arith.constant 3.200000e+01 : f32
    %182 = vector.broadcast %cst_74 : f32 to vector<1x8xf32>
    %183 = arith.divf %181, %182 : vector<1x8xf32>
    %184 = vector.broadcast %176 : vector<1x8xf32> to vector<32x8xf32>
    %185 = arith.subf %168, %184 : vector<32x8xf32>
    %cst_75 = arith.constant 9.99999974E-6 : f32
    %186 = vector.broadcast %cst_75 : f32 to vector<1x8xf32>
    %187 = arith.addf %183, %186 : vector<1x8xf32>
    %188 = math.rsqrt %187 : vector<1x8xf32>
    %189 = vector.broadcast %188 : vector<1x8xf32> to vector<32x8xf32>
    %190 = arith.mulf %185, %189 : vector<32x8xf32>
    %191 = vector.broadcast %170 : vector<1x8xf32> to vector<32x8xf32>
    %192 = arith.mulf %190, %191 : vector<32x8xf32>
    %193 = vector.broadcast %172 : vector<1x8xf32> to vector<32x8xf32>
    %194 = arith.addf %192, %193 : vector<32x8xf32>
    %195 = vector.shape_cast %194 : vector<32x8xf32> to vector<2x16x8xf32>
    %196 = vector.extract_strided_slice %31 {offsets = [0, 0, 32], sizes = [2, 16, 8], strides = [1, 1, 1]} : vector<2x16x64xf32> to vector<2x16x8xf32>
    %197 = arith.addf %195, %196 : vector<2x16x8xf32>
    %198 = tpu.concatenate %32, %197, %32 in 1 : vector<2x2x8xf32>, vector<2x16x8xf32>, vector<2x2x8xf32> -> vector<2x20x8xf32>
    %199 = vector.extract_strided_slice %198 {offsets = [0, 0, 0], sizes = [2, 16, 8], strides = [1, 1, 1]} : vector<2x20x8xf32> to vector<2x16x8xf32>
    %200 = vector.extract_strided_slice %198 {offsets = [0, 2, 0], sizes = [2, 16, 8], strides = [1, 1, 1]} : vector<2x20x8xf32> to vector<2x16x8xf32>
    %201 = vector.extract_strided_slice %198 {offsets = [0, 4, 0], sizes = [2, 16, 8], strides = [1, 1, 1]} : vector<2x20x8xf32> to vector<2x16x8xf32>
    %202 = tpu.concatenate %199, %200, %201 in 2 : vector<2x16x8xf32>, vector<2x16x8xf32>, vector<2x16x8xf32> -> vector<2x16x24xf32>
    %203 = vector.shape_cast %202 : vector<2x16x24xf32> to vector<32x24xf32>
    %204 = arith.truncf %203 : vector<32x24xf32> to vector<32x24xbf16>
    %c4 = arith.constant 4 : index
    %c0_76 = arith.constant 0 : index
    %c0_77 = arith.constant 0 : index
    %205 = vector.load %arg4[%c4, %c0_76, %c0_77] : memref<7x24x8xbf16, #tpu.memory_space<vmem>>, vector<1x24x8xbf16>
    %206 = vector.shape_cast %205 : vector<1x24x8xbf16> to vector<24x8xbf16>
    %cst_78 = arith.constant dense<0.000000e+00> : vector<32x8xf32>
    %207 = tpu.matmul %204, %206, %cst_78 {dimension_numbers = #tpu.dot_dimension_numbers<[1], [0], [0], [1], [0, 0, 1, 1], [], []>} : vector<32x24xbf16>, vector<24x8xbf16>, vector<32x8xf32> -> vector<32x8xf32>
    %cst_79 = arith.constant 0.000000e+00 : f32
    %208 = vector.broadcast %cst_79 : f32 to vector<32x8xf32>
    %209 = arith.maximumf %207, %208 : vector<32x8xf32>
    %c4_80 = arith.constant 4 : index
    %c0_81 = arith.constant 0 : index
    %c0_82 = arith.constant 0 : index
    %210 = vector.load %arg5[%c4_80, %c0_81, %c0_82] : memref<7x1x8xf32, #tpu.memory_space<vmem>>, vector<1x1x8xf32>
    %211 = vector.shape_cast %210 : vector<1x1x8xf32> to vector<1x8xf32>
    %c4_83 = arith.constant 4 : index
    %c0_84 = arith.constant 0 : index
    %c0_85 = arith.constant 0 : index
    %212 = vector.load %arg6[%c4_83, %c0_84, %c0_85] : memref<7x1x8xf32, #tpu.memory_space<vmem>>, vector<1x1x8xf32>
    %213 = vector.shape_cast %212 : vector<1x1x8xf32> to vector<1x8xf32>
    %cst_86 = arith.constant dense<0.000000e+00> : vector<8xf32>
    %214 = vector.multi_reduction <add>, %209, %cst_86 [0] : vector<32x8xf32> to vector<8xf32>
    %215 = vector.shape_cast %214 : vector<8xf32> to vector<1x8xf32>
    %cst_87 = arith.constant 3.200000e+01 : f32
    %216 = vector.broadcast %cst_87 : f32 to vector<1x8xf32>
    %217 = arith.divf %215, %216 : vector<1x8xf32>
    %218 = vector.broadcast %217 : vector<1x8xf32> to vector<32x8xf32>
    %219 = arith.subf %209, %218 : vector<32x8xf32>
    %220 = arith.mulf %219, %219 : vector<32x8xf32>
    %cst_88 = arith.constant dense<0.000000e+00> : vector<8xf32>
    %221 = vector.multi_reduction <add>, %220, %cst_88 [0] : vector<32x8xf32> to vector<8xf32>
    %222 = vector.shape_cast %221 : vector<8xf32> to vector<1x8xf32>
    %cst_89 = arith.constant 3.200000e+01 : f32
    %223 = vector.broadcast %cst_89 : f32 to vector<1x8xf32>
    %224 = arith.divf %222, %223 : vector<1x8xf32>
    %225 = vector.broadcast %217 : vector<1x8xf32> to vector<32x8xf32>
    %226 = arith.subf %209, %225 : vector<32x8xf32>
    %cst_90 = arith.constant 9.99999974E-6 : f32
    %227 = vector.broadcast %cst_90 : f32 to vector<1x8xf32>
    %228 = arith.addf %224, %227 : vector<1x8xf32>
    %229 = math.rsqrt %228 : vector<1x8xf32>
    %230 = vector.broadcast %229 : vector<1x8xf32> to vector<32x8xf32>
    %231 = arith.mulf %226, %230 : vector<32x8xf32>
    %232 = vector.broadcast %211 : vector<1x8xf32> to vector<32x8xf32>
    %233 = arith.mulf %231, %232 : vector<32x8xf32>
    %234 = vector.broadcast %213 : vector<1x8xf32> to vector<32x8xf32>
    %235 = arith.addf %233, %234 : vector<32x8xf32>
    %236 = vector.shape_cast %235 : vector<32x8xf32> to vector<2x16x8xf32>
    %237 = vector.extract_strided_slice %31 {offsets = [0, 0, 40], sizes = [2, 16, 8], strides = [1, 1, 1]} : vector<2x16x64xf32> to vector<2x16x8xf32>
    %238 = arith.addf %236, %237 : vector<2x16x8xf32>
    %239 = tpu.concatenate %32, %238, %32 in 1 : vector<2x2x8xf32>, vector<2x16x8xf32>, vector<2x2x8xf32> -> vector<2x20x8xf32>
    %240 = vector.extract_strided_slice %239 {offsets = [0, 0, 0], sizes = [2, 16, 8], strides = [1, 1, 1]} : vector<2x20x8xf32> to vector<2x16x8xf32>
    %241 = vector.extract_strided_slice %239 {offsets = [0, 2, 0], sizes = [2, 16, 8], strides = [1, 1, 1]} : vector<2x20x8xf32> to vector<2x16x8xf32>
    %242 = vector.extract_strided_slice %239 {offsets = [0, 4, 0], sizes = [2, 16, 8], strides = [1, 1, 1]} : vector<2x20x8xf32> to vector<2x16x8xf32>
    %243 = tpu.concatenate %240, %241, %242 in 2 : vector<2x16x8xf32>, vector<2x16x8xf32>, vector<2x16x8xf32> -> vector<2x16x24xf32>
    %244 = vector.shape_cast %243 : vector<2x16x24xf32> to vector<32x24xf32>
    %245 = arith.truncf %244 : vector<32x24xf32> to vector<32x24xbf16>
    %c5 = arith.constant 5 : index
    %c0_91 = arith.constant 0 : index
    %c0_92 = arith.constant 0 : index
    %246 = vector.load %arg4[%c5, %c0_91, %c0_92] : memref<7x24x8xbf16, #tpu.memory_space<vmem>>, vector<1x24x8xbf16>
    %247 = vector.shape_cast %246 : vector<1x24x8xbf16> to vector<24x8xbf16>
    %cst_93 = arith.constant dense<0.000000e+00> : vector<32x8xf32>
    %248 = tpu.matmul %245, %247, %cst_93 {dimension_numbers = #tpu.dot_dimension_numbers<[1], [0], [0], [1], [0, 0, 1, 1], [], []>} : vector<32x24xbf16>, vector<24x8xbf16>, vector<32x8xf32> -> vector<32x8xf32>
    %cst_94 = arith.constant 0.000000e+00 : f32
    %249 = vector.broadcast %cst_94 : f32 to vector<32x8xf32>
    %250 = arith.maximumf %248, %249 : vector<32x8xf32>
    %c5_95 = arith.constant 5 : index
    %c0_96 = arith.constant 0 : index
    %c0_97 = arith.constant 0 : index
    %251 = vector.load %arg5[%c5_95, %c0_96, %c0_97] : memref<7x1x8xf32, #tpu.memory_space<vmem>>, vector<1x1x8xf32>
    %252 = vector.shape_cast %251 : vector<1x1x8xf32> to vector<1x8xf32>
    %c5_98 = arith.constant 5 : index
    %c0_99 = arith.constant 0 : index
    %c0_100 = arith.constant 0 : index
    %253 = vector.load %arg6[%c5_98, %c0_99, %c0_100] : memref<7x1x8xf32, #tpu.memory_space<vmem>>, vector<1x1x8xf32>
    %254 = vector.shape_cast %253 : vector<1x1x8xf32> to vector<1x8xf32>
    %cst_101 = arith.constant dense<0.000000e+00> : vector<8xf32>
    %255 = vector.multi_reduction <add>, %250, %cst_101 [0] : vector<32x8xf32> to vector<8xf32>
    %256 = vector.shape_cast %255 : vector<8xf32> to vector<1x8xf32>
    %cst_102 = arith.constant 3.200000e+01 : f32
    %257 = vector.broadcast %cst_102 : f32 to vector<1x8xf32>
    %258 = arith.divf %256, %257 : vector<1x8xf32>
    %259 = vector.broadcast %258 : vector<1x8xf32> to vector<32x8xf32>
    %260 = arith.subf %250, %259 : vector<32x8xf32>
    %261 = arith.mulf %260, %260 : vector<32x8xf32>
    %cst_103 = arith.constant dense<0.000000e+00> : vector<8xf32>
    %262 = vector.multi_reduction <add>, %261, %cst_103 [0] : vector<32x8xf32> to vector<8xf32>
    %263 = vector.shape_cast %262 : vector<8xf32> to vector<1x8xf32>
    %cst_104 = arith.constant 3.200000e+01 : f32
    %264 = vector.broadcast %cst_104 : f32 to vector<1x8xf32>
    %265 = arith.divf %263, %264 : vector<1x8xf32>
    %266 = vector.broadcast %258 : vector<1x8xf32> to vector<32x8xf32>
    %267 = arith.subf %250, %266 : vector<32x8xf32>
    %cst_105 = arith.constant 9.99999974E-6 : f32
    %268 = vector.broadcast %cst_105 : f32 to vector<1x8xf32>
    %269 = arith.addf %265, %268 : vector<1x8xf32>
    %270 = math.rsqrt %269 : vector<1x8xf32>
    %271 = vector.broadcast %270 : vector<1x8xf32> to vector<32x8xf32>
    %272 = arith.mulf %267, %271 : vector<32x8xf32>
    %273 = vector.broadcast %252 : vector<1x8xf32> to vector<32x8xf32>
    %274 = arith.mulf %272, %273 : vector<32x8xf32>
    %275 = vector.broadcast %254 : vector<1x8xf32> to vector<32x8xf32>
    %276 = arith.addf %274, %275 : vector<32x8xf32>
    %277 = vector.shape_cast %276 : vector<32x8xf32> to vector<2x16x8xf32>
    %278 = vector.extract_strided_slice %31 {offsets = [0, 0, 48], sizes = [2, 16, 8], strides = [1, 1, 1]} : vector<2x16x64xf32> to vector<2x16x8xf32>
    %279 = arith.addf %277, %278 : vector<2x16x8xf32>
    %280 = tpu.concatenate %32, %279, %32 in 1 : vector<2x2x8xf32>, vector<2x16x8xf32>, vector<2x2x8xf32> -> vector<2x20x8xf32>
    %281 = vector.extract_strided_slice %280 {offsets = [0, 0, 0], sizes = [2, 16, 8], strides = [1, 1, 1]} : vector<2x20x8xf32> to vector<2x16x8xf32>
    %282 = vector.extract_strided_slice %280 {offsets = [0, 2, 0], sizes = [2, 16, 8], strides = [1, 1, 1]} : vector<2x20x8xf32> to vector<2x16x8xf32>
    %283 = vector.extract_strided_slice %280 {offsets = [0, 4, 0], sizes = [2, 16, 8], strides = [1, 1, 1]} : vector<2x20x8xf32> to vector<2x16x8xf32>
    %284 = tpu.concatenate %281, %282, %283 in 2 : vector<2x16x8xf32>, vector<2x16x8xf32>, vector<2x16x8xf32> -> vector<2x16x24xf32>
    %285 = vector.shape_cast %284 : vector<2x16x24xf32> to vector<32x24xf32>
    %286 = arith.truncf %285 : vector<32x24xf32> to vector<32x24xbf16>
    %c6 = arith.constant 6 : index
    %c0_106 = arith.constant 0 : index
    %c0_107 = arith.constant 0 : index
    %287 = vector.load %arg4[%c6, %c0_106, %c0_107] : memref<7x24x8xbf16, #tpu.memory_space<vmem>>, vector<1x24x8xbf16>
    %288 = vector.shape_cast %287 : vector<1x24x8xbf16> to vector<24x8xbf16>
    %cst_108 = arith.constant dense<0.000000e+00> : vector<32x8xf32>
    %289 = tpu.matmul %286, %288, %cst_108 {dimension_numbers = #tpu.dot_dimension_numbers<[1], [0], [0], [1], [0, 0, 1, 1], [], []>} : vector<32x24xbf16>, vector<24x8xbf16>, vector<32x8xf32> -> vector<32x8xf32>
    %cst_109 = arith.constant 0.000000e+00 : f32
    %290 = vector.broadcast %cst_109 : f32 to vector<32x8xf32>
    %291 = arith.maximumf %289, %290 : vector<32x8xf32>
    %c6_110 = arith.constant 6 : index
    %c0_111 = arith.constant 0 : index
    %c0_112 = arith.constant 0 : index
    %292 = vector.load %arg5[%c6_110, %c0_111, %c0_112] : memref<7x1x8xf32, #tpu.memory_space<vmem>>, vector<1x1x8xf32>
    %293 = vector.shape_cast %292 : vector<1x1x8xf32> to vector<1x8xf32>
    %c6_113 = arith.constant 6 : index
    %c0_114 = arith.constant 0 : index
    %c0_115 = arith.constant 0 : index
    %294 = vector.load %arg6[%c6_113, %c0_114, %c0_115] : memref<7x1x8xf32, #tpu.memory_space<vmem>>, vector<1x1x8xf32>
    %295 = vector.shape_cast %294 : vector<1x1x8xf32> to vector<1x8xf32>
    %cst_116 = arith.constant dense<0.000000e+00> : vector<8xf32>
    %296 = vector.multi_reduction <add>, %291, %cst_116 [0] : vector<32x8xf32> to vector<8xf32>
    %297 = vector.shape_cast %296 : vector<8xf32> to vector<1x8xf32>
    %cst_117 = arith.constant 3.200000e+01 : f32
    %298 = vector.broadcast %cst_117 : f32 to vector<1x8xf32>
    %299 = arith.divf %297, %298 : vector<1x8xf32>
    %300 = vector.broadcast %299 : vector<1x8xf32> to vector<32x8xf32>
    %301 = arith.subf %291, %300 : vector<32x8xf32>
    %302 = arith.mulf %301, %301 : vector<32x8xf32>
    %cst_118 = arith.constant dense<0.000000e+00> : vector<8xf32>
    %303 = vector.multi_reduction <add>, %302, %cst_118 [0] : vector<32x8xf32> to vector<8xf32>
    %304 = vector.shape_cast %303 : vector<8xf32> to vector<1x8xf32>
    %cst_119 = arith.constant 3.200000e+01 : f32
    %305 = vector.broadcast %cst_119 : f32 to vector<1x8xf32>
    %306 = arith.divf %304, %305 : vector<1x8xf32>
    %307 = vector.broadcast %299 : vector<1x8xf32> to vector<32x8xf32>
    %308 = arith.subf %291, %307 : vector<32x8xf32>
    %cst_120 = arith.constant 9.99999974E-6 : f32
    %309 = vector.broadcast %cst_120 : f32 to vector<1x8xf32>
    %310 = arith.addf %306, %309 : vector<1x8xf32>
    %311 = math.rsqrt %310 : vector<1x8xf32>
    %312 = vector.broadcast %311 : vector<1x8xf32> to vector<32x8xf32>
    %313 = arith.mulf %308, %312 : vector<32x8xf32>
    %314 = vector.broadcast %293 : vector<1x8xf32> to vector<32x8xf32>
    %315 = arith.mulf %313, %314 : vector<32x8xf32>
    %316 = vector.broadcast %295 : vector<1x8xf32> to vector<32x8xf32>
    %317 = arith.addf %315, %316 : vector<32x8xf32>
    %318 = vector.extract_strided_slice %31 {offsets = [0, 0, 56], sizes = [2, 16, 8], strides = [1, 1, 1]} : vector<2x16x64xf32> to vector<2x16x8xf32>
    %319 = vector.shape_cast %318 : vector<2x16x8xf32> to vector<32x8xf32>
    %320 = tpu.concatenate %71, %112, %153, %194, %235, %276, %317, %319 in 1 : vector<32x8xf32>, vector<32x8xf32>, vector<32x8xf32>, vector<32x8xf32>, vector<32x8xf32>, vector<32x8xf32>, vector<32x8xf32>, vector<32x8xf32> -> vector<32x64xf32>
    %321 = arith.truncf %320 : vector<32x64xf32> to vector<32x64xbf16>
    %c0_121 = arith.constant 0 : index
    %c0_122 = arith.constant 0 : index
    %322 = vector.load %arg7[%c0_121, %c0_122] : memref<64x64xbf16, #tpu.memory_space<vmem>>, vector<64x64xbf16>
    %cst_123 = arith.constant dense<0.000000e+00> : vector<32x64xf32>
    %323 = tpu.matmul %321, %322, %cst_123 {dimension_numbers = #tpu.dot_dimension_numbers<[1], [0], [0], [1], [0, 0, 1, 1], [], []>} : vector<32x64xbf16>, vector<64x64xbf16>, vector<32x64xf32> -> vector<32x64xf32>
    %cst_124 = arith.constant 0.000000e+00 : f32
    %324 = vector.broadcast %cst_124 : f32 to vector<32x64xf32>
    %325 = arith.maximumf %323, %324 : vector<32x64xf32>
    %c0_125 = arith.constant 0 : index
    %c0_126 = arith.constant 0 : index
    %326 = vector.load %arg8[%c0_125, %c0_126] : memref<1x64xf32, #tpu.memory_space<vmem>>, vector<1x64xf32>
    %c0_127 = arith.constant 0 : index
    %c0_128 = arith.constant 0 : index
    %327 = vector.load %arg9[%c0_127, %c0_128] : memref<1x64xf32, #tpu.memory_space<vmem>>, vector<1x64xf32>
    %cst_129 = arith.constant dense<0.000000e+00> : vector<64xf32>
    %328 = vector.multi_reduction <add>, %325, %cst_129 [0] : vector<32x64xf32> to vector<64xf32>
    %329 = vector.shape_cast %328 : vector<64xf32> to vector<1x64xf32>
    %cst_130 = arith.constant 3.200000e+01 : f32
    %330 = vector.broadcast %cst_130 : f32 to vector<1x64xf32>
    %331 = arith.divf %329, %330 : vector<1x64xf32>
    %332 = vector.broadcast %331 : vector<1x64xf32> to vector<32x64xf32>
    %333 = arith.subf %325, %332 : vector<32x64xf32>
    %334 = arith.mulf %333, %333 : vector<32x64xf32>
    %cst_131 = arith.constant dense<0.000000e+00> : vector<64xf32>
    %335 = vector.multi_reduction <add>, %334, %cst_131 [0] : vector<32x64xf32> to vector<64xf32>
    %336 = vector.shape_cast %335 : vector<64xf32> to vector<1x64xf32>
    %cst_132 = arith.constant 3.200000e+01 : f32
    %337 = vector.broadcast %cst_132 : f32 to vector<1x64xf32>
    %338 = arith.divf %336, %337 : vector<1x64xf32>
    %339 = vector.broadcast %331 : vector<1x64xf32> to vector<32x64xf32>
    %340 = arith.subf %325, %339 : vector<32x64xf32>
    %cst_133 = arith.constant 9.99999974E-6 : f32
    %341 = vector.broadcast %cst_133 : f32 to vector<1x64xf32>
    %342 = arith.addf %338, %341 : vector<1x64xf32>
    %343 = math.rsqrt %342 : vector<1x64xf32>
    %344 = vector.broadcast %343 : vector<1x64xf32> to vector<32x64xf32>
    %345 = arith.mulf %340, %344 : vector<32x64xf32>
    %346 = vector.broadcast %326 : vector<1x64xf32> to vector<32x64xf32>
    %347 = arith.mulf %345, %346 : vector<32x64xf32>
    %348 = vector.broadcast %327 : vector<1x64xf32> to vector<32x64xf32>
    %349 = arith.addf %347, %348 : vector<32x64xf32>
    %350 = vector.shape_cast %349 : vector<32x64xf32> to vector<2x16x64xf32>
    %cst_134 = arith.constant dense<0.000000e+00> : vector<2x64xf32>
    %351 = vector.multi_reduction <add>, %350, %cst_134 [1] : vector<2x16x64xf32> to vector<2x64xf32>
    %cst_135 = arith.constant 1.600000e+01 : f32
    %352 = vector.broadcast %cst_135 : f32 to vector<2x64xf32>
    %353 = arith.divf %351, %352 : vector<2x64xf32>
    %354 = arith.truncf %353 : vector<2x64xf32> to vector<2x64xbf16>
    %c0_136 = arith.constant 0 : index
    %c0_137 = arith.constant 0 : index
    %355 = vector.load %arg10[%c0_136, %c0_137] : memref<64x32xbf16, #tpu.memory_space<vmem>>, vector<64x32xbf16>
    %cst_138 = arith.constant dense<0.000000e+00> : vector<2x32xf32>
    %356 = tpu.matmul %354, %355, %cst_138 {dimension_numbers = #tpu.dot_dimension_numbers<[1], [0], [0], [1], [0, 0, 1, 1], [], []>} : vector<2x64xbf16>, vector<64x32xbf16>, vector<2x32xf32> -> vector<2x32xf32>
    %c0_139 = arith.constant 0 : index
    %c0_140 = arith.constant 0 : index
    %357 = vector.load %arg11[%c0_139, %c0_140] : memref<1x32xf32, #tpu.memory_space<vmem>>, vector<1x32xf32>
    %358 = vector.broadcast %357 : vector<1x32xf32> to vector<2x32xf32>
    %359 = arith.addf %356, %358 : vector<2x32xf32>
    %cst_141 = arith.constant 0.000000e+00 : f32
    %360 = vector.broadcast %cst_141 : f32 to vector<2x32xf32>
    %361 = arith.maximumf %359, %360 : vector<2x32xf32>
    %362 = arith.truncf %361 : vector<2x32xf32> to vector<2x32xbf16>
    %c0_142 = arith.constant 0 : index
    %c0_143 = arith.constant 0 : index
    %363 = vector.load %arg12[%c0_142, %c0_143] : memref<32x64xbf16, #tpu.memory_space<vmem>>, vector<32x64xbf16>
    %cst_144 = arith.constant dense<0.000000e+00> : vector<2x64xf32>
    %364 = tpu.matmul %362, %363, %cst_144 {dimension_numbers = #tpu.dot_dimension_numbers<[1], [0], [0], [1], [0, 0, 1, 1], [], []>} : vector<2x32xbf16>, vector<32x64xbf16>, vector<2x64xf32> -> vector<2x64xf32>
    %c0_145 = arith.constant 0 : index
    %c0_146 = arith.constant 0 : index
    %365 = vector.load %arg13[%c0_145, %c0_146] : memref<1x64xf32, #tpu.memory_space<vmem>>, vector<1x64xf32>
    %366 = vector.broadcast %365 : vector<1x64xf32> to vector<2x64xf32>
    %367 = arith.addf %364, %366 : vector<2x64xf32>
    %368 = arith.negf %367 : vector<2x64xf32>
    %369 = math.exp %368 : vector<2x64xf32>
    %cst_147 = arith.constant 1.000000e+00 : f32
    %370 = vector.broadcast %cst_147 : f32 to vector<2x64xf32>
    %371 = arith.addf %370, %369 : vector<2x64xf32>
    %372 = arith.divf %370, %371 : vector<2x64xf32>
    %373 = vector.shape_cast %372 : vector<2x64xf32> to vector<2x1x64xf32>
    %374 = vector.broadcast %373 : vector<2x1x64xf32> to vector<2x16x64xf32>
    %375 = arith.mulf %350, %374 : vector<2x16x64xf32>
    %376 = arith.addf %375, %0 : vector<2x16x64xf32>
    %c0_148 = arith.constant 0 : index
    %c0_149 = arith.constant 0 : index
    %c0_150 = arith.constant 0 : index
    %377 = vector.load %arg14[%c0_148, %c0_149, %c0_150] : memref<2x16x64xf32, #tpu.memory_space<vmem>>, vector<2x16x64xf32>
    tpu.vector_store %arg14[%c0_148, %c0_149, %c0_150], %376 {strides = array<i32>} : memref<2x16x64xf32, #tpu.memory_space<vmem>>, vector<2x16x64xf32>,
    return
  }
}

module attributes {stable_mosaic.version = 11 : i64} {
  func.func @_se_res2_block_kernel(%arg0: memref<2x16x64xf32, #tpu.memory_space<vmem>>, %arg1: memref<2x16x64xf32, #tpu.memory_space<vmem>>, %arg2: memref<2x16x64xf32, #tpu.memory_space<vmem>>, %arg3: memref<64x64xbf16, #tpu.memory_space<vmem>>, %arg4: memref<1x64xf32, #tpu.memory_space<vmem>>, %arg5: memref<1x64xf32, #tpu.memory_space<vmem>>, %arg6: memref<7x24x8xbf16, #tpu.memory_space<vmem>>, %arg7: memref<7x1x8xf32, #tpu.memory_space<vmem>>, %arg8: memref<7x1x8xf32, #tpu.memory_space<vmem>>, %arg9: memref<64x64xbf16, #tpu.memory_space<vmem>>, %arg10: memref<1x64xf32, #tpu.memory_space<vmem>>, %arg11: memref<1x64xf32, #tpu.memory_space<vmem>>, %arg12: memref<64x32xbf16, #tpu.memory_space<vmem>>, %arg13: memref<1x32xf32, #tpu.memory_space<vmem>>, %arg14: memref<32x64xbf16, #tpu.memory_space<vmem>>, %arg15: memref<1x64xf32, #tpu.memory_space<vmem>>, %arg16: memref<2x16x64xf32, #tpu.memory_space<vmem>>) attributes {dimension_semantics = [], scalar_prefetch = 0 : i64, scratch_operands = 0 : i64, tpu.core_type = #tpu.core_type<tc>} {
    %c0 = arith.constant 0 : index
    %c0_0 = arith.constant 0 : index
    %c0_1 = arith.constant 0 : index
    %0 = vector.load %arg0[%c0, %c0_0, %c0_1] : memref<2x16x64xf32, #tpu.memory_space<vmem>>, vector<2x16x64xf32>
    %c0_2 = arith.constant 0 : index
    %c0_3 = arith.constant 0 : index
    %c0_4 = arith.constant 0 : index
    %1 = vector.load %arg1[%c0_2, %c0_3, %c0_4] : memref<2x16x64xf32, #tpu.memory_space<vmem>>, vector<2x16x64xf32>
    %2 = arith.addf %0, %1 : vector<2x16x64xf32>
    %c0_5 = arith.constant 0 : index
    %c0_6 = arith.constant 0 : index
    %c0_7 = arith.constant 0 : index
    %3 = vector.load %arg2[%c0_5, %c0_6, %c0_7] : memref<2x16x64xf32, #tpu.memory_space<vmem>>, vector<2x16x64xf32>
    %4 = arith.addf %2, %3 : vector<2x16x64xf32>
    %5 = vector.shape_cast %4 : vector<2x16x64xf32> to vector<32x64xf32>
    %6 = arith.truncf %5 : vector<32x64xf32> to vector<32x64xbf16>
    %c0_8 = arith.constant 0 : index
    %c0_9 = arith.constant 0 : index
    %7 = vector.load %arg3[%c0_8, %c0_9] : memref<64x64xbf16, #tpu.memory_space<vmem>>, vector<64x64xbf16>
    %cst = arith.constant dense<0.000000e+00> : vector<32x64xf32>
    %8 = tpu.matmul %6, %7, %cst {dimension_numbers = #tpu.dot_dimension_numbers<[1], [0], [0], [1], [0, 0, 1, 1], [], []>} : vector<32x64xbf16>, vector<64x64xbf16>, vector<32x64xf32> -> vector<32x64xf32>
    %cst_10 = arith.constant 0.000000e+00 : f32
    %9 = vector.broadcast %cst_10 : f32 to vector<32x64xf32>
    %10 = arith.maximumf %8, %9 : vector<32x64xf32>
    %c0_11 = arith.constant 0 : index
    %c0_12 = arith.constant 0 : index
    %11 = vector.load %arg4[%c0_11, %c0_12] : memref<1x64xf32, #tpu.memory_space<vmem>>, vector<1x64xf32>
    %c0_13 = arith.constant 0 : index
    %c0_14 = arith.constant 0 : index
    %12 = vector.load %arg5[%c0_13, %c0_14] : memref<1x64xf32, #tpu.memory_space<vmem>>, vector<1x64xf32>
    %cst_15 = arith.constant dense<0.000000e+00> : vector<64xf32>
    %13 = vector.multi_reduction <add>, %10, %cst_15 [0] : vector<32x64xf32> to vector<64xf32>
    %14 = vector.shape_cast %13 : vector<64xf32> to vector<1x64xf32>
    %cst_16 = arith.constant 3.200000e+01 : f32
    %15 = vector.broadcast %cst_16 : f32 to vector<1x64xf32>
    %16 = arith.divf %14, %15 : vector<1x64xf32>
    %17 = vector.broadcast %16 : vector<1x64xf32> to vector<32x64xf32>
    %18 = arith.subf %10, %17 : vector<32x64xf32>
    %19 = arith.mulf %18, %18 : vector<32x64xf32>
    %cst_17 = arith.constant dense<0.000000e+00> : vector<64xf32>
    %20 = vector.multi_reduction <add>, %19, %cst_17 [0] : vector<32x64xf32> to vector<64xf32>
    %21 = vector.shape_cast %20 : vector<64xf32> to vector<1x64xf32>
    %cst_18 = arith.constant 3.200000e+01 : f32
    %22 = vector.broadcast %cst_18 : f32 to vector<1x64xf32>
    %23 = arith.divf %21, %22 : vector<1x64xf32>
    %24 = vector.broadcast %16 : vector<1x64xf32> to vector<32x64xf32>
    %25 = arith.subf %10, %24 : vector<32x64xf32>
    %cst_19 = arith.constant 9.99999974E-6 : f32
    %26 = vector.broadcast %cst_19 : f32 to vector<1x64xf32>
    %27 = arith.addf %23, %26 : vector<1x64xf32>
    %28 = math.rsqrt %27 : vector<1x64xf32>
    %29 = vector.broadcast %28 : vector<1x64xf32> to vector<32x64xf32>
    %30 = arith.mulf %25, %29 : vector<32x64xf32>
    %31 = vector.broadcast %11 : vector<1x64xf32> to vector<32x64xf32>
    %32 = arith.mulf %30, %31 : vector<32x64xf32>
    %33 = vector.broadcast %12 : vector<1x64xf32> to vector<32x64xf32>
    %34 = arith.addf %32, %33 : vector<32x64xf32>
    %35 = vector.shape_cast %34 : vector<32x64xf32> to vector<2x16x64xf32>
    %cst_20 = arith.constant 0.000000e+00 : f32
    %36 = vector.broadcast %cst_20 : f32 to vector<2x4x8xf32>
    %37 = vector.extract_strided_slice %35 {offsets = [0, 0, 0], sizes = [2, 16, 8], strides = [1, 1, 1]} : vector<2x16x64xf32> to vector<2x16x8xf32>
    %38 = tpu.concatenate %36, %37, %36 in 1 : vector<2x4x8xf32>, vector<2x16x8xf32>, vector<2x4x8xf32> -> vector<2x24x8xf32>
    %39 = vector.extract_strided_slice %38 {offsets = [0, 0, 0], sizes = [2, 16, 8], strides = [1, 1, 1]} : vector<2x24x8xf32> to vector<2x16x8xf32>
    %40 = vector.extract_strided_slice %38 {offsets = [0, 4, 0], sizes = [2, 16, 8], strides = [1, 1, 1]} : vector<2x24x8xf32> to vector<2x16x8xf32>
    %41 = vector.extract_strided_slice %38 {offsets = [0, 8, 0], sizes = [2, 16, 8], strides = [1, 1, 1]} : vector<2x24x8xf32> to vector<2x16x8xf32>
    %42 = tpu.concatenate %39, %40, %41 in 2 : vector<2x16x8xf32>, vector<2x16x8xf32>, vector<2x16x8xf32> -> vector<2x16x24xf32>
    %43 = vector.shape_cast %42 : vector<2x16x24xf32> to vector<32x24xf32>
    %44 = arith.truncf %43 : vector<32x24xf32> to vector<32x24xbf16>
    %c0_21 = arith.constant 0 : index
    %c0_22 = arith.constant 0 : index
    %c0_23 = arith.constant 0 : index
    %45 = vector.load %arg6[%c0_21, %c0_22, %c0_23] : memref<7x24x8xbf16, #tpu.memory_space<vmem>>, vector<1x24x8xbf16>
    %46 = vector.shape_cast %45 : vector<1x24x8xbf16> to vector<24x8xbf16>
    %cst_24 = arith.constant dense<0.000000e+00> : vector<32x8xf32>
    %47 = tpu.matmul %44, %46, %cst_24 {dimension_numbers = #tpu.dot_dimension_numbers<[1], [0], [0], [1], [0, 0, 1, 1], [], []>} : vector<32x24xbf16>, vector<24x8xbf16>, vector<32x8xf32> -> vector<32x8xf32>
    %cst_25 = arith.constant 0.000000e+00 : f32
    %48 = vector.broadcast %cst_25 : f32 to vector<32x8xf32>
    %49 = arith.maximumf %47, %48 : vector<32x8xf32>
    %c0_26 = arith.constant 0 : index
    %c0_27 = arith.constant 0 : index
    %c0_28 = arith.constant 0 : index
    %50 = vector.load %arg7[%c0_26, %c0_27, %c0_28] : memref<7x1x8xf32, #tpu.memory_space<vmem>>, vector<1x1x8xf32>
    %51 = vector.shape_cast %50 : vector<1x1x8xf32> to vector<1x8xf32>
    %c0_29 = arith.constant 0 : index
    %c0_30 = arith.constant 0 : index
    %c0_31 = arith.constant 0 : index
    %52 = vector.load %arg8[%c0_29, %c0_30, %c0_31] : memref<7x1x8xf32, #tpu.memory_space<vmem>>, vector<1x1x8xf32>
    %53 = vector.shape_cast %52 : vector<1x1x8xf32> to vector<1x8xf32>
    %cst_32 = arith.constant dense<0.000000e+00> : vector<8xf32>
    %54 = vector.multi_reduction <add>, %49, %cst_32 [0] : vector<32x8xf32> to vector<8xf32>
    %55 = vector.shape_cast %54 : vector<8xf32> to vector<1x8xf32>
    %cst_33 = arith.constant 3.200000e+01 : f32
    %56 = vector.broadcast %cst_33 : f32 to vector<1x8xf32>
    %57 = arith.divf %55, %56 : vector<1x8xf32>
    %58 = vector.broadcast %57 : vector<1x8xf32> to vector<32x8xf32>
    %59 = arith.subf %49, %58 : vector<32x8xf32>
    %60 = arith.mulf %59, %59 : vector<32x8xf32>
    %cst_34 = arith.constant dense<0.000000e+00> : vector<8xf32>
    %61 = vector.multi_reduction <add>, %60, %cst_34 [0] : vector<32x8xf32> to vector<8xf32>
    %62 = vector.shape_cast %61 : vector<8xf32> to vector<1x8xf32>
    %cst_35 = arith.constant 3.200000e+01 : f32
    %63 = vector.broadcast %cst_35 : f32 to vector<1x8xf32>
    %64 = arith.divf %62, %63 : vector<1x8xf32>
    %65 = vector.broadcast %57 : vector<1x8xf32> to vector<32x8xf32>
    %66 = arith.subf %49, %65 : vector<32x8xf32>
    %cst_36 = arith.constant 9.99999974E-6 : f32
    %67 = vector.broadcast %cst_36 : f32 to vector<1x8xf32>
    %68 = arith.addf %64, %67 : vector<1x8xf32>
    %69 = math.rsqrt %68 : vector<1x8xf32>
    %70 = vector.broadcast %69 : vector<1x8xf32> to vector<32x8xf32>
    %71 = arith.mulf %66, %70 : vector<32x8xf32>
    %72 = vector.broadcast %51 : vector<1x8xf32> to vector<32x8xf32>
    %73 = arith.mulf %71, %72 : vector<32x8xf32>
    %74 = vector.broadcast %53 : vector<1x8xf32> to vector<32x8xf32>
    %75 = arith.addf %73, %74 : vector<32x8xf32>
    %76 = vector.shape_cast %75 : vector<32x8xf32> to vector<2x16x8xf32>
    %77 = vector.extract_strided_slice %35 {offsets = [0, 0, 8], sizes = [2, 16, 8], strides = [1, 1, 1]} : vector<2x16x64xf32> to vector<2x16x8xf32>
    %78 = arith.addf %76, %77 : vector<2x16x8xf32>
    %79 = tpu.concatenate %36, %78, %36 in 1 : vector<2x4x8xf32>, vector<2x16x8xf32>, vector<2x4x8xf32> -> vector<2x24x8xf32>
    %80 = vector.extract_strided_slice %79 {offsets = [0, 0, 0], sizes = [2, 16, 8], strides = [1, 1, 1]} : vector<2x24x8xf32> to vector<2x16x8xf32>
    %81 = vector.extract_strided_slice %79 {offsets = [0, 4, 0], sizes = [2, 16, 8], strides = [1, 1, 1]} : vector<2x24x8xf32> to vector<2x16x8xf32>
    %82 = vector.extract_strided_slice %79 {offsets = [0, 8, 0], sizes = [2, 16, 8], strides = [1, 1, 1]} : vector<2x24x8xf32> to vector<2x16x8xf32>
    %83 = tpu.concatenate %80, %81, %82 in 2 : vector<2x16x8xf32>, vector<2x16x8xf32>, vector<2x16x8xf32> -> vector<2x16x24xf32>
    %84 = vector.shape_cast %83 : vector<2x16x24xf32> to vector<32x24xf32>
    %85 = arith.truncf %84 : vector<32x24xf32> to vector<32x24xbf16>
    %c1 = arith.constant 1 : index
    %c0_37 = arith.constant 0 : index
    %c0_38 = arith.constant 0 : index
    %86 = vector.load %arg6[%c1, %c0_37, %c0_38] : memref<7x24x8xbf16, #tpu.memory_space<vmem>>, vector<1x24x8xbf16>
    %87 = vector.shape_cast %86 : vector<1x24x8xbf16> to vector<24x8xbf16>
    %cst_39 = arith.constant dense<0.000000e+00> : vector<32x8xf32>
    %88 = tpu.matmul %85, %87, %cst_39 {dimension_numbers = #tpu.dot_dimension_numbers<[1], [0], [0], [1], [0, 0, 1, 1], [], []>} : vector<32x24xbf16>, vector<24x8xbf16>, vector<32x8xf32> -> vector<32x8xf32>
    %cst_40 = arith.constant 0.000000e+00 : f32
    %89 = vector.broadcast %cst_40 : f32 to vector<32x8xf32>
    %90 = arith.maximumf %88, %89 : vector<32x8xf32>
    %c1_41 = arith.constant 1 : index
    %c0_42 = arith.constant 0 : index
    %c0_43 = arith.constant 0 : index
    %91 = vector.load %arg7[%c1_41, %c0_42, %c0_43] : memref<7x1x8xf32, #tpu.memory_space<vmem>>, vector<1x1x8xf32>
    %92 = vector.shape_cast %91 : vector<1x1x8xf32> to vector<1x8xf32>
    %c1_44 = arith.constant 1 : index
    %c0_45 = arith.constant 0 : index
    %c0_46 = arith.constant 0 : index
    %93 = vector.load %arg8[%c1_44, %c0_45, %c0_46] : memref<7x1x8xf32, #tpu.memory_space<vmem>>, vector<1x1x8xf32>
    %94 = vector.shape_cast %93 : vector<1x1x8xf32> to vector<1x8xf32>
    %cst_47 = arith.constant dense<0.000000e+00> : vector<8xf32>
    %95 = vector.multi_reduction <add>, %90, %cst_47 [0] : vector<32x8xf32> to vector<8xf32>
    %96 = vector.shape_cast %95 : vector<8xf32> to vector<1x8xf32>
    %cst_48 = arith.constant 3.200000e+01 : f32
    %97 = vector.broadcast %cst_48 : f32 to vector<1x8xf32>
    %98 = arith.divf %96, %97 : vector<1x8xf32>
    %99 = vector.broadcast %98 : vector<1x8xf32> to vector<32x8xf32>
    %100 = arith.subf %90, %99 : vector<32x8xf32>
    %101 = arith.mulf %100, %100 : vector<32x8xf32>
    %cst_49 = arith.constant dense<0.000000e+00> : vector<8xf32>
    %102 = vector.multi_reduction <add>, %101, %cst_49 [0] : vector<32x8xf32> to vector<8xf32>
    %103 = vector.shape_cast %102 : vector<8xf32> to vector<1x8xf32>
    %cst_50 = arith.constant 3.200000e+01 : f32
    %104 = vector.broadcast %cst_50 : f32 to vector<1x8xf32>
    %105 = arith.divf %103, %104 : vector<1x8xf32>
    %106 = vector.broadcast %98 : vector<1x8xf32> to vector<32x8xf32>
    %107 = arith.subf %90, %106 : vector<32x8xf32>
    %cst_51 = arith.constant 9.99999974E-6 : f32
    %108 = vector.broadcast %cst_51 : f32 to vector<1x8xf32>
    %109 = arith.addf %105, %108 : vector<1x8xf32>
    %110 = math.rsqrt %109 : vector<1x8xf32>
    %111 = vector.broadcast %110 : vector<1x8xf32> to vector<32x8xf32>
    %112 = arith.mulf %107, %111 : vector<32x8xf32>
    %113 = vector.broadcast %92 : vector<1x8xf32> to vector<32x8xf32>
    %114 = arith.mulf %112, %113 : vector<32x8xf32>
    %115 = vector.broadcast %94 : vector<1x8xf32> to vector<32x8xf32>
    %116 = arith.addf %114, %115 : vector<32x8xf32>
    %117 = vector.shape_cast %116 : vector<32x8xf32> to vector<2x16x8xf32>
    %118 = vector.extract_strided_slice %35 {offsets = [0, 0, 16], sizes = [2, 16, 8], strides = [1, 1, 1]} : vector<2x16x64xf32> to vector<2x16x8xf32>
    %119 = arith.addf %117, %118 : vector<2x16x8xf32>
    %120 = tpu.concatenate %36, %119, %36 in 1 : vector<2x4x8xf32>, vector<2x16x8xf32>, vector<2x4x8xf32> -> vector<2x24x8xf32>
    %121 = vector.extract_strided_slice %120 {offsets = [0, 0, 0], sizes = [2, 16, 8], strides = [1, 1, 1]} : vector<2x24x8xf32> to vector<2x16x8xf32>
    %122 = vector.extract_strided_slice %120 {offsets = [0, 4, 0], sizes = [2, 16, 8], strides = [1, 1, 1]} : vector<2x24x8xf32> to vector<2x16x8xf32>
    %123 = vector.extract_strided_slice %120 {offsets = [0, 8, 0], sizes = [2, 16, 8], strides = [1, 1, 1]} : vector<2x24x8xf32> to vector<2x16x8xf32>
    %124 = tpu.concatenate %121, %122, %123 in 2 : vector<2x16x8xf32>, vector<2x16x8xf32>, vector<2x16x8xf32> -> vector<2x16x24xf32>
    %125 = vector.shape_cast %124 : vector<2x16x24xf32> to vector<32x24xf32>
    %126 = arith.truncf %125 : vector<32x24xf32> to vector<32x24xbf16>
    %c2 = arith.constant 2 : index
    %c0_52 = arith.constant 0 : index
    %c0_53 = arith.constant 0 : index
    %127 = vector.load %arg6[%c2, %c0_52, %c0_53] : memref<7x24x8xbf16, #tpu.memory_space<vmem>>, vector<1x24x8xbf16>
    %128 = vector.shape_cast %127 : vector<1x24x8xbf16> to vector<24x8xbf16>
    %cst_54 = arith.constant dense<0.000000e+00> : vector<32x8xf32>
    %129 = tpu.matmul %126, %128, %cst_54 {dimension_numbers = #tpu.dot_dimension_numbers<[1], [0], [0], [1], [0, 0, 1, 1], [], []>} : vector<32x24xbf16>, vector<24x8xbf16>, vector<32x8xf32> -> vector<32x8xf32>
    %cst_55 = arith.constant 0.000000e+00 : f32
    %130 = vector.broadcast %cst_55 : f32 to vector<32x8xf32>
    %131 = arith.maximumf %129, %130 : vector<32x8xf32>
    %c2_56 = arith.constant 2 : index
    %c0_57 = arith.constant 0 : index
    %c0_58 = arith.constant 0 : index
    %132 = vector.load %arg7[%c2_56, %c0_57, %c0_58] : memref<7x1x8xf32, #tpu.memory_space<vmem>>, vector<1x1x8xf32>
    %133 = vector.shape_cast %132 : vector<1x1x8xf32> to vector<1x8xf32>
    %c2_59 = arith.constant 2 : index
    %c0_60 = arith.constant 0 : index
    %c0_61 = arith.constant 0 : index
    %134 = vector.load %arg8[%c2_59, %c0_60, %c0_61] : memref<7x1x8xf32, #tpu.memory_space<vmem>>, vector<1x1x8xf32>
    %135 = vector.shape_cast %134 : vector<1x1x8xf32> to vector<1x8xf32>
    %cst_62 = arith.constant dense<0.000000e+00> : vector<8xf32>
    %136 = vector.multi_reduction <add>, %131, %cst_62 [0] : vector<32x8xf32> to vector<8xf32>
    %137 = vector.shape_cast %136 : vector<8xf32> to vector<1x8xf32>
    %cst_63 = arith.constant 3.200000e+01 : f32
    %138 = vector.broadcast %cst_63 : f32 to vector<1x8xf32>
    %139 = arith.divf %137, %138 : vector<1x8xf32>
    %140 = vector.broadcast %139 : vector<1x8xf32> to vector<32x8xf32>
    %141 = arith.subf %131, %140 : vector<32x8xf32>
    %142 = arith.mulf %141, %141 : vector<32x8xf32>
    %cst_64 = arith.constant dense<0.000000e+00> : vector<8xf32>
    %143 = vector.multi_reduction <add>, %142, %cst_64 [0] : vector<32x8xf32> to vector<8xf32>
    %144 = vector.shape_cast %143 : vector<8xf32> to vector<1x8xf32>
    %cst_65 = arith.constant 3.200000e+01 : f32
    %145 = vector.broadcast %cst_65 : f32 to vector<1x8xf32>
    %146 = arith.divf %144, %145 : vector<1x8xf32>
    %147 = vector.broadcast %139 : vector<1x8xf32> to vector<32x8xf32>
    %148 = arith.subf %131, %147 : vector<32x8xf32>
    %cst_66 = arith.constant 9.99999974E-6 : f32
    %149 = vector.broadcast %cst_66 : f32 to vector<1x8xf32>
    %150 = arith.addf %146, %149 : vector<1x8xf32>
    %151 = math.rsqrt %150 : vector<1x8xf32>
    %152 = vector.broadcast %151 : vector<1x8xf32> to vector<32x8xf32>
    %153 = arith.mulf %148, %152 : vector<32x8xf32>
    %154 = vector.broadcast %133 : vector<1x8xf32> to vector<32x8xf32>
    %155 = arith.mulf %153, %154 : vector<32x8xf32>
    %156 = vector.broadcast %135 : vector<1x8xf32> to vector<32x8xf32>
    %157 = arith.addf %155, %156 : vector<32x8xf32>
    %158 = vector.shape_cast %157 : vector<32x8xf32> to vector<2x16x8xf32>
    %159 = vector.extract_strided_slice %35 {offsets = [0, 0, 24], sizes = [2, 16, 8], strides = [1, 1, 1]} : vector<2x16x64xf32> to vector<2x16x8xf32>
    %160 = arith.addf %158, %159 : vector<2x16x8xf32>
    %161 = tpu.concatenate %36, %160, %36 in 1 : vector<2x4x8xf32>, vector<2x16x8xf32>, vector<2x4x8xf32> -> vector<2x24x8xf32>
    %162 = vector.extract_strided_slice %161 {offsets = [0, 0, 0], sizes = [2, 16, 8], strides = [1, 1, 1]} : vector<2x24x8xf32> to vector<2x16x8xf32>
    %163 = vector.extract_strided_slice %161 {offsets = [0, 4, 0], sizes = [2, 16, 8], strides = [1, 1, 1]} : vector<2x24x8xf32> to vector<2x16x8xf32>
    %164 = vector.extract_strided_slice %161 {offsets = [0, 8, 0], sizes = [2, 16, 8], strides = [1, 1, 1]} : vector<2x24x8xf32> to vector<2x16x8xf32>
    %165 = tpu.concatenate %162, %163, %164 in 2 : vector<2x16x8xf32>, vector<2x16x8xf32>, vector<2x16x8xf32> -> vector<2x16x24xf32>
    %166 = vector.shape_cast %165 : vector<2x16x24xf32> to vector<32x24xf32>
    %167 = arith.truncf %166 : vector<32x24xf32> to vector<32x24xbf16>
    %c3 = arith.constant 3 : index
    %c0_67 = arith.constant 0 : index
    %c0_68 = arith.constant 0 : index
    %168 = vector.load %arg6[%c3, %c0_67, %c0_68] : memref<7x24x8xbf16, #tpu.memory_space<vmem>>, vector<1x24x8xbf16>
    %169 = vector.shape_cast %168 : vector<1x24x8xbf16> to vector<24x8xbf16>
    %cst_69 = arith.constant dense<0.000000e+00> : vector<32x8xf32>
    %170 = tpu.matmul %167, %169, %cst_69 {dimension_numbers = #tpu.dot_dimension_numbers<[1], [0], [0], [1], [0, 0, 1, 1], [], []>} : vector<32x24xbf16>, vector<24x8xbf16>, vector<32x8xf32> -> vector<32x8xf32>
    %cst_70 = arith.constant 0.000000e+00 : f32
    %171 = vector.broadcast %cst_70 : f32 to vector<32x8xf32>
    %172 = arith.maximumf %170, %171 : vector<32x8xf32>
    %c3_71 = arith.constant 3 : index
    %c0_72 = arith.constant 0 : index
    %c0_73 = arith.constant 0 : index
    %173 = vector.load %arg7[%c3_71, %c0_72, %c0_73] : memref<7x1x8xf32, #tpu.memory_space<vmem>>, vector<1x1x8xf32>
    %174 = vector.shape_cast %173 : vector<1x1x8xf32> to vector<1x8xf32>
    %c3_74 = arith.constant 3 : index
    %c0_75 = arith.constant 0 : index
    %c0_76 = arith.constant 0 : index
    %175 = vector.load %arg8[%c3_74, %c0_75, %c0_76] : memref<7x1x8xf32, #tpu.memory_space<vmem>>, vector<1x1x8xf32>
    %176 = vector.shape_cast %175 : vector<1x1x8xf32> to vector<1x8xf32>
    %cst_77 = arith.constant dense<0.000000e+00> : vector<8xf32>
    %177 = vector.multi_reduction <add>, %172, %cst_77 [0] : vector<32x8xf32> to vector<8xf32>
    %178 = vector.shape_cast %177 : vector<8xf32> to vector<1x8xf32>
    %cst_78 = arith.constant 3.200000e+01 : f32
    %179 = vector.broadcast %cst_78 : f32 to vector<1x8xf32>
    %180 = arith.divf %178, %179 : vector<1x8xf32>
    %181 = vector.broadcast %180 : vector<1x8xf32> to vector<32x8xf32>
    %182 = arith.subf %172, %181 : vector<32x8xf32>
    %183 = arith.mulf %182, %182 : vector<32x8xf32>
    %cst_79 = arith.constant dense<0.000000e+00> : vector<8xf32>
    %184 = vector.multi_reduction <add>, %183, %cst_79 [0] : vector<32x8xf32> to vector<8xf32>
    %185 = vector.shape_cast %184 : vector<8xf32> to vector<1x8xf32>
    %cst_80 = arith.constant 3.200000e+01 : f32
    %186 = vector.broadcast %cst_80 : f32 to vector<1x8xf32>
    %187 = arith.divf %185, %186 : vector<1x8xf32>
    %188 = vector.broadcast %180 : vector<1x8xf32> to vector<32x8xf32>
    %189 = arith.subf %172, %188 : vector<32x8xf32>
    %cst_81 = arith.constant 9.99999974E-6 : f32
    %190 = vector.broadcast %cst_81 : f32 to vector<1x8xf32>
    %191 = arith.addf %187, %190 : vector<1x8xf32>
    %192 = math.rsqrt %191 : vector<1x8xf32>
    %193 = vector.broadcast %192 : vector<1x8xf32> to vector<32x8xf32>
    %194 = arith.mulf %189, %193 : vector<32x8xf32>
    %195 = vector.broadcast %174 : vector<1x8xf32> to vector<32x8xf32>
    %196 = arith.mulf %194, %195 : vector<32x8xf32>
    %197 = vector.broadcast %176 : vector<1x8xf32> to vector<32x8xf32>
    %198 = arith.addf %196, %197 : vector<32x8xf32>
    %199 = vector.shape_cast %198 : vector<32x8xf32> to vector<2x16x8xf32>
    %200 = vector.extract_strided_slice %35 {offsets = [0, 0, 32], sizes = [2, 16, 8], strides = [1, 1, 1]} : vector<2x16x64xf32> to vector<2x16x8xf32>
    %201 = arith.addf %199, %200 : vector<2x16x8xf32>
    %202 = tpu.concatenate %36, %201, %36 in 1 : vector<2x4x8xf32>, vector<2x16x8xf32>, vector<2x4x8xf32> -> vector<2x24x8xf32>
    %203 = vector.extract_strided_slice %202 {offsets = [0, 0, 0], sizes = [2, 16, 8], strides = [1, 1, 1]} : vector<2x24x8xf32> to vector<2x16x8xf32>
    %204 = vector.extract_strided_slice %202 {offsets = [0, 4, 0], sizes = [2, 16, 8], strides = [1, 1, 1]} : vector<2x24x8xf32> to vector<2x16x8xf32>
    %205 = vector.extract_strided_slice %202 {offsets = [0, 8, 0], sizes = [2, 16, 8], strides = [1, 1, 1]} : vector<2x24x8xf32> to vector<2x16x8xf32>
    %206 = tpu.concatenate %203, %204, %205 in 2 : vector<2x16x8xf32>, vector<2x16x8xf32>, vector<2x16x8xf32> -> vector<2x16x24xf32>
    %207 = vector.shape_cast %206 : vector<2x16x24xf32> to vector<32x24xf32>
    %208 = arith.truncf %207 : vector<32x24xf32> to vector<32x24xbf16>
    %c4 = arith.constant 4 : index
    %c0_82 = arith.constant 0 : index
    %c0_83 = arith.constant 0 : index
    %209 = vector.load %arg6[%c4, %c0_82, %c0_83] : memref<7x24x8xbf16, #tpu.memory_space<vmem>>, vector<1x24x8xbf16>
    %210 = vector.shape_cast %209 : vector<1x24x8xbf16> to vector<24x8xbf16>
    %cst_84 = arith.constant dense<0.000000e+00> : vector<32x8xf32>
    %211 = tpu.matmul %208, %210, %cst_84 {dimension_numbers = #tpu.dot_dimension_numbers<[1], [0], [0], [1], [0, 0, 1, 1], [], []>} : vector<32x24xbf16>, vector<24x8xbf16>, vector<32x8xf32> -> vector<32x8xf32>
    %cst_85 = arith.constant 0.000000e+00 : f32
    %212 = vector.broadcast %cst_85 : f32 to vector<32x8xf32>
    %213 = arith.maximumf %211, %212 : vector<32x8xf32>
    %c4_86 = arith.constant 4 : index
    %c0_87 = arith.constant 0 : index
    %c0_88 = arith.constant 0 : index
    %214 = vector.load %arg7[%c4_86, %c0_87, %c0_88] : memref<7x1x8xf32, #tpu.memory_space<vmem>>, vector<1x1x8xf32>
    %215 = vector.shape_cast %214 : vector<1x1x8xf32> to vector<1x8xf32>
    %c4_89 = arith.constant 4 : index
    %c0_90 = arith.constant 0 : index
    %c0_91 = arith.constant 0 : index
    %216 = vector.load %arg8[%c4_89, %c0_90, %c0_91] : memref<7x1x8xf32, #tpu.memory_space<vmem>>, vector<1x1x8xf32>
    %217 = vector.shape_cast %216 : vector<1x1x8xf32> to vector<1x8xf32>
    %cst_92 = arith.constant dense<0.000000e+00> : vector<8xf32>
    %218 = vector.multi_reduction <add>, %213, %cst_92 [0] : vector<32x8xf32> to vector<8xf32>
    %219 = vector.shape_cast %218 : vector<8xf32> to vector<1x8xf32>
    %cst_93 = arith.constant 3.200000e+01 : f32
    %220 = vector.broadcast %cst_93 : f32 to vector<1x8xf32>
    %221 = arith.divf %219, %220 : vector<1x8xf32>
    %222 = vector.broadcast %221 : vector<1x8xf32> to vector<32x8xf32>
    %223 = arith.subf %213, %222 : vector<32x8xf32>
    %224 = arith.mulf %223, %223 : vector<32x8xf32>
    %cst_94 = arith.constant dense<0.000000e+00> : vector<8xf32>
    %225 = vector.multi_reduction <add>, %224, %cst_94 [0] : vector<32x8xf32> to vector<8xf32>
    %226 = vector.shape_cast %225 : vector<8xf32> to vector<1x8xf32>
    %cst_95 = arith.constant 3.200000e+01 : f32
    %227 = vector.broadcast %cst_95 : f32 to vector<1x8xf32>
    %228 = arith.divf %226, %227 : vector<1x8xf32>
    %229 = vector.broadcast %221 : vector<1x8xf32> to vector<32x8xf32>
    %230 = arith.subf %213, %229 : vector<32x8xf32>
    %cst_96 = arith.constant 9.99999974E-6 : f32
    %231 = vector.broadcast %cst_96 : f32 to vector<1x8xf32>
    %232 = arith.addf %228, %231 : vector<1x8xf32>
    %233 = math.rsqrt %232 : vector<1x8xf32>
    %234 = vector.broadcast %233 : vector<1x8xf32> to vector<32x8xf32>
    %235 = arith.mulf %230, %234 : vector<32x8xf32>
    %236 = vector.broadcast %215 : vector<1x8xf32> to vector<32x8xf32>
    %237 = arith.mulf %235, %236 : vector<32x8xf32>
    %238 = vector.broadcast %217 : vector<1x8xf32> to vector<32x8xf32>
    %239 = arith.addf %237, %238 : vector<32x8xf32>
    %240 = vector.shape_cast %239 : vector<32x8xf32> to vector<2x16x8xf32>
    %241 = vector.extract_strided_slice %35 {offsets = [0, 0, 40], sizes = [2, 16, 8], strides = [1, 1, 1]} : vector<2x16x64xf32> to vector<2x16x8xf32>
    %242 = arith.addf %240, %241 : vector<2x16x8xf32>
    %243 = tpu.concatenate %36, %242, %36 in 1 : vector<2x4x8xf32>, vector<2x16x8xf32>, vector<2x4x8xf32> -> vector<2x24x8xf32>
    %244 = vector.extract_strided_slice %243 {offsets = [0, 0, 0], sizes = [2, 16, 8], strides = [1, 1, 1]} : vector<2x24x8xf32> to vector<2x16x8xf32>
    %245 = vector.extract_strided_slice %243 {offsets = [0, 4, 0], sizes = [2, 16, 8], strides = [1, 1, 1]} : vector<2x24x8xf32> to vector<2x16x8xf32>
    %246 = vector.extract_strided_slice %243 {offsets = [0, 8, 0], sizes = [2, 16, 8], strides = [1, 1, 1]} : vector<2x24x8xf32> to vector<2x16x8xf32>
    %247 = tpu.concatenate %244, %245, %246 in 2 : vector<2x16x8xf32>, vector<2x16x8xf32>, vector<2x16x8xf32> -> vector<2x16x24xf32>
    %248 = vector.shape_cast %247 : vector<2x16x24xf32> to vector<32x24xf32>
    %249 = arith.truncf %248 : vector<32x24xf32> to vector<32x24xbf16>
    %c5 = arith.constant 5 : index
    %c0_97 = arith.constant 0 : index
    %c0_98 = arith.constant 0 : index
    %250 = vector.load %arg6[%c5, %c0_97, %c0_98] : memref<7x24x8xbf16, #tpu.memory_space<vmem>>, vector<1x24x8xbf16>
    %251 = vector.shape_cast %250 : vector<1x24x8xbf16> to vector<24x8xbf16>
    %cst_99 = arith.constant dense<0.000000e+00> : vector<32x8xf32>
    %252 = tpu.matmul %249, %251, %cst_99 {dimension_numbers = #tpu.dot_dimension_numbers<[1], [0], [0], [1], [0, 0, 1, 1], [], []>} : vector<32x24xbf16>, vector<24x8xbf16>, vector<32x8xf32> -> vector<32x8xf32>
    %cst_100 = arith.constant 0.000000e+00 : f32
    %253 = vector.broadcast %cst_100 : f32 to vector<32x8xf32>
    %254 = arith.maximumf %252, %253 : vector<32x8xf32>
    %c5_101 = arith.constant 5 : index
    %c0_102 = arith.constant 0 : index
    %c0_103 = arith.constant 0 : index
    %255 = vector.load %arg7[%c5_101, %c0_102, %c0_103] : memref<7x1x8xf32, #tpu.memory_space<vmem>>, vector<1x1x8xf32>
    %256 = vector.shape_cast %255 : vector<1x1x8xf32> to vector<1x8xf32>
    %c5_104 = arith.constant 5 : index
    %c0_105 = arith.constant 0 : index
    %c0_106 = arith.constant 0 : index
    %257 = vector.load %arg8[%c5_104, %c0_105, %c0_106] : memref<7x1x8xf32, #tpu.memory_space<vmem>>, vector<1x1x8xf32>
    %258 = vector.shape_cast %257 : vector<1x1x8xf32> to vector<1x8xf32>
    %cst_107 = arith.constant dense<0.000000e+00> : vector<8xf32>
    %259 = vector.multi_reduction <add>, %254, %cst_107 [0] : vector<32x8xf32> to vector<8xf32>
    %260 = vector.shape_cast %259 : vector<8xf32> to vector<1x8xf32>
    %cst_108 = arith.constant 3.200000e+01 : f32
    %261 = vector.broadcast %cst_108 : f32 to vector<1x8xf32>
    %262 = arith.divf %260, %261 : vector<1x8xf32>
    %263 = vector.broadcast %262 : vector<1x8xf32> to vector<32x8xf32>
    %264 = arith.subf %254, %263 : vector<32x8xf32>
    %265 = arith.mulf %264, %264 : vector<32x8xf32>
    %cst_109 = arith.constant dense<0.000000e+00> : vector<8xf32>
    %266 = vector.multi_reduction <add>, %265, %cst_109 [0] : vector<32x8xf32> to vector<8xf32>
    %267 = vector.shape_cast %266 : vector<8xf32> to vector<1x8xf32>
    %cst_110 = arith.constant 3.200000e+01 : f32
    %268 = vector.broadcast %cst_110 : f32 to vector<1x8xf32>
    %269 = arith.divf %267, %268 : vector<1x8xf32>
    %270 = vector.broadcast %262 : vector<1x8xf32> to vector<32x8xf32>
    %271 = arith.subf %254, %270 : vector<32x8xf32>
    %cst_111 = arith.constant 9.99999974E-6 : f32
    %272 = vector.broadcast %cst_111 : f32 to vector<1x8xf32>
    %273 = arith.addf %269, %272 : vector<1x8xf32>
    %274 = math.rsqrt %273 : vector<1x8xf32>
    %275 = vector.broadcast %274 : vector<1x8xf32> to vector<32x8xf32>
    %276 = arith.mulf %271, %275 : vector<32x8xf32>
    %277 = vector.broadcast %256 : vector<1x8xf32> to vector<32x8xf32>
    %278 = arith.mulf %276, %277 : vector<32x8xf32>
    %279 = vector.broadcast %258 : vector<1x8xf32> to vector<32x8xf32>
    %280 = arith.addf %278, %279 : vector<32x8xf32>
    %281 = vector.shape_cast %280 : vector<32x8xf32> to vector<2x16x8xf32>
    %282 = vector.extract_strided_slice %35 {offsets = [0, 0, 48], sizes = [2, 16, 8], strides = [1, 1, 1]} : vector<2x16x64xf32> to vector<2x16x8xf32>
    %283 = arith.addf %281, %282 : vector<2x16x8xf32>
    %284 = tpu.concatenate %36, %283, %36 in 1 : vector<2x4x8xf32>, vector<2x16x8xf32>, vector<2x4x8xf32> -> vector<2x24x8xf32>
    %285 = vector.extract_strided_slice %284 {offsets = [0, 0, 0], sizes = [2, 16, 8], strides = [1, 1, 1]} : vector<2x24x8xf32> to vector<2x16x8xf32>
    %286 = vector.extract_strided_slice %284 {offsets = [0, 4, 0], sizes = [2, 16, 8], strides = [1, 1, 1]} : vector<2x24x8xf32> to vector<2x16x8xf32>
    %287 = vector.extract_strided_slice %284 {offsets = [0, 8, 0], sizes = [2, 16, 8], strides = [1, 1, 1]} : vector<2x24x8xf32> to vector<2x16x8xf32>
    %288 = tpu.concatenate %285, %286, %287 in 2 : vector<2x16x8xf32>, vector<2x16x8xf32>, vector<2x16x8xf32> -> vector<2x16x24xf32>
    %289 = vector.shape_cast %288 : vector<2x16x24xf32> to vector<32x24xf32>
    %290 = arith.truncf %289 : vector<32x24xf32> to vector<32x24xbf16>
    %c6 = arith.constant 6 : index
    %c0_112 = arith.constant 0 : index
    %c0_113 = arith.constant 0 : index
    %291 = vector.load %arg6[%c6, %c0_112, %c0_113] : memref<7x24x8xbf16, #tpu.memory_space<vmem>>, vector<1x24x8xbf16>
    %292 = vector.shape_cast %291 : vector<1x24x8xbf16> to vector<24x8xbf16>
    %cst_114 = arith.constant dense<0.000000e+00> : vector<32x8xf32>
    %293 = tpu.matmul %290, %292, %cst_114 {dimension_numbers = #tpu.dot_dimension_numbers<[1], [0], [0], [1], [0, 0, 1, 1], [], []>} : vector<32x24xbf16>, vector<24x8xbf16>, vector<32x8xf32> -> vector<32x8xf32>
    %cst_115 = arith.constant 0.000000e+00 : f32
    %294 = vector.broadcast %cst_115 : f32 to vector<32x8xf32>
    %295 = arith.maximumf %293, %294 : vector<32x8xf32>
    %c6_116 = arith.constant 6 : index
    %c0_117 = arith.constant 0 : index
    %c0_118 = arith.constant 0 : index
    %296 = vector.load %arg7[%c6_116, %c0_117, %c0_118] : memref<7x1x8xf32, #tpu.memory_space<vmem>>, vector<1x1x8xf32>
    %297 = vector.shape_cast %296 : vector<1x1x8xf32> to vector<1x8xf32>
    %c6_119 = arith.constant 6 : index
    %c0_120 = arith.constant 0 : index
    %c0_121 = arith.constant 0 : index
    %298 = vector.load %arg8[%c6_119, %c0_120, %c0_121] : memref<7x1x8xf32, #tpu.memory_space<vmem>>, vector<1x1x8xf32>
    %299 = vector.shape_cast %298 : vector<1x1x8xf32> to vector<1x8xf32>
    %cst_122 = arith.constant dense<0.000000e+00> : vector<8xf32>
    %300 = vector.multi_reduction <add>, %295, %cst_122 [0] : vector<32x8xf32> to vector<8xf32>
    %301 = vector.shape_cast %300 : vector<8xf32> to vector<1x8xf32>
    %cst_123 = arith.constant 3.200000e+01 : f32
    %302 = vector.broadcast %cst_123 : f32 to vector<1x8xf32>
    %303 = arith.divf %301, %302 : vector<1x8xf32>
    %304 = vector.broadcast %303 : vector<1x8xf32> to vector<32x8xf32>
    %305 = arith.subf %295, %304 : vector<32x8xf32>
    %306 = arith.mulf %305, %305 : vector<32x8xf32>
    %cst_124 = arith.constant dense<0.000000e+00> : vector<8xf32>
    %307 = vector.multi_reduction <add>, %306, %cst_124 [0] : vector<32x8xf32> to vector<8xf32>
    %308 = vector.shape_cast %307 : vector<8xf32> to vector<1x8xf32>
    %cst_125 = arith.constant 3.200000e+01 : f32
    %309 = vector.broadcast %cst_125 : f32 to vector<1x8xf32>
    %310 = arith.divf %308, %309 : vector<1x8xf32>
    %311 = vector.broadcast %303 : vector<1x8xf32> to vector<32x8xf32>
    %312 = arith.subf %295, %311 : vector<32x8xf32>
    %cst_126 = arith.constant 9.99999974E-6 : f32
    %313 = vector.broadcast %cst_126 : f32 to vector<1x8xf32>
    %314 = arith.addf %310, %313 : vector<1x8xf32>
    %315 = math.rsqrt %314 : vector<1x8xf32>
    %316 = vector.broadcast %315 : vector<1x8xf32> to vector<32x8xf32>
    %317 = arith.mulf %312, %316 : vector<32x8xf32>
    %318 = vector.broadcast %297 : vector<1x8xf32> to vector<32x8xf32>
    %319 = arith.mulf %317, %318 : vector<32x8xf32>
    %320 = vector.broadcast %299 : vector<1x8xf32> to vector<32x8xf32>
    %321 = arith.addf %319, %320 : vector<32x8xf32>
    %322 = vector.extract_strided_slice %35 {offsets = [0, 0, 56], sizes = [2, 16, 8], strides = [1, 1, 1]} : vector<2x16x64xf32> to vector<2x16x8xf32>
    %323 = vector.shape_cast %322 : vector<2x16x8xf32> to vector<32x8xf32>
    %324 = tpu.concatenate %75, %116, %157, %198, %239, %280, %321, %323 in 1 : vector<32x8xf32>, vector<32x8xf32>, vector<32x8xf32>, vector<32x8xf32>, vector<32x8xf32>, vector<32x8xf32>, vector<32x8xf32>, vector<32x8xf32> -> vector<32x64xf32>
    %325 = arith.truncf %324 : vector<32x64xf32> to vector<32x64xbf16>
    %c0_127 = arith.constant 0 : index
    %c0_128 = arith.constant 0 : index
    %326 = vector.load %arg9[%c0_127, %c0_128] : memref<64x64xbf16, #tpu.memory_space<vmem>>, vector<64x64xbf16>
    %cst_129 = arith.constant dense<0.000000e+00> : vector<32x64xf32>
    %327 = tpu.matmul %325, %326, %cst_129 {dimension_numbers = #tpu.dot_dimension_numbers<[1], [0], [0], [1], [0, 0, 1, 1], [], []>} : vector<32x64xbf16>, vector<64x64xbf16>, vector<32x64xf32> -> vector<32x64xf32>
    %cst_130 = arith.constant 0.000000e+00 : f32
    %328 = vector.broadcast %cst_130 : f32 to vector<32x64xf32>
    %329 = arith.maximumf %327, %328 : vector<32x64xf32>
    %c0_131 = arith.constant 0 : index
    %c0_132 = arith.constant 0 : index
    %330 = vector.load %arg10[%c0_131, %c0_132] : memref<1x64xf32, #tpu.memory_space<vmem>>, vector<1x64xf32>
    %c0_133 = arith.constant 0 : index
    %c0_134 = arith.constant 0 : index
    %331 = vector.load %arg11[%c0_133, %c0_134] : memref<1x64xf32, #tpu.memory_space<vmem>>, vector<1x64xf32>
    %cst_135 = arith.constant dense<0.000000e+00> : vector<64xf32>
    %332 = vector.multi_reduction <add>, %329, %cst_135 [0] : vector<32x64xf32> to vector<64xf32>
    %333 = vector.shape_cast %332 : vector<64xf32> to vector<1x64xf32>
    %cst_136 = arith.constant 3.200000e+01 : f32
    %334 = vector.broadcast %cst_136 : f32 to vector<1x64xf32>
    %335 = arith.divf %333, %334 : vector<1x64xf32>
    %336 = vector.broadcast %335 : vector<1x64xf32> to vector<32x64xf32>
    %337 = arith.subf %329, %336 : vector<32x64xf32>
    %338 = arith.mulf %337, %337 : vector<32x64xf32>
    %cst_137 = arith.constant dense<0.000000e+00> : vector<64xf32>
    %339 = vector.multi_reduction <add>, %338, %cst_137 [0] : vector<32x64xf32> to vector<64xf32>
    %340 = vector.shape_cast %339 : vector<64xf32> to vector<1x64xf32>
    %cst_138 = arith.constant 3.200000e+01 : f32
    %341 = vector.broadcast %cst_138 : f32 to vector<1x64xf32>
    %342 = arith.divf %340, %341 : vector<1x64xf32>
    %343 = vector.broadcast %335 : vector<1x64xf32> to vector<32x64xf32>
    %344 = arith.subf %329, %343 : vector<32x64xf32>
    %cst_139 = arith.constant 9.99999974E-6 : f32
    %345 = vector.broadcast %cst_139 : f32 to vector<1x64xf32>
    %346 = arith.addf %342, %345 : vector<1x64xf32>
    %347 = math.rsqrt %346 : vector<1x64xf32>
    %348 = vector.broadcast %347 : vector<1x64xf32> to vector<32x64xf32>
    %349 = arith.mulf %344, %348 : vector<32x64xf32>
    %350 = vector.broadcast %330 : vector<1x64xf32> to vector<32x64xf32>
    %351 = arith.mulf %349, %350 : vector<32x64xf32>
    %352 = vector.broadcast %331 : vector<1x64xf32> to vector<32x64xf32>
    %353 = arith.addf %351, %352 : vector<32x64xf32>
    %354 = vector.shape_cast %353 : vector<32x64xf32> to vector<2x16x64xf32>
    %cst_140 = arith.constant dense<0.000000e+00> : vector<2x64xf32>
    %355 = vector.multi_reduction <add>, %354, %cst_140 [1] : vector<2x16x64xf32> to vector<2x64xf32>
    %cst_141 = arith.constant 1.600000e+01 : f32
    %356 = vector.broadcast %cst_141 : f32 to vector<2x64xf32>
    %357 = arith.divf %355, %356 : vector<2x64xf32>
    %358 = arith.truncf %357 : vector<2x64xf32> to vector<2x64xbf16>
    %c0_142 = arith.constant 0 : index
    %c0_143 = arith.constant 0 : index
    %359 = vector.load %arg12[%c0_142, %c0_143] : memref<64x32xbf16, #tpu.memory_space<vmem>>, vector<64x32xbf16>
    %cst_144 = arith.constant dense<0.000000e+00> : vector<2x32xf32>
    %360 = tpu.matmul %358, %359, %cst_144 {dimension_numbers = #tpu.dot_dimension_numbers<[1], [0], [0], [1], [0, 0, 1, 1], [], []>} : vector<2x64xbf16>, vector<64x32xbf16>, vector<2x32xf32> -> vector<2x32xf32>
    %c0_145 = arith.constant 0 : index
    %c0_146 = arith.constant 0 : index
    %361 = vector.load %arg13[%c0_145, %c0_146] : memref<1x32xf32, #tpu.memory_space<vmem>>, vector<1x32xf32>
    %362 = vector.broadcast %361 : vector<1x32xf32> to vector<2x32xf32>
    %363 = arith.addf %360, %362 : vector<2x32xf32>
    %cst_147 = arith.constant 0.000000e+00 : f32
    %364 = vector.broadcast %cst_147 : f32 to vector<2x32xf32>
    %365 = arith.maximumf %363, %364 : vector<2x32xf32>
    %366 = arith.truncf %365 : vector<2x32xf32> to vector<2x32xbf16>
    %c0_148 = arith.constant 0 : index
    %c0_149 = arith.constant 0 : index
    %367 = vector.load %arg14[%c0_148, %c0_149] : memref<32x64xbf16, #tpu.memory_space<vmem>>, vector<32x64xbf16>
    %cst_150 = arith.constant dense<0.000000e+00> : vector<2x64xf32>
    %368 = tpu.matmul %366, %367, %cst_150 {dimension_numbers = #tpu.dot_dimension_numbers<[1], [0], [0], [1], [0, 0, 1, 1], [], []>} : vector<2x32xbf16>, vector<32x64xbf16>, vector<2x64xf32> -> vector<2x64xf32>
    %c0_151 = arith.constant 0 : index
    %c0_152 = arith.constant 0 : index
    %369 = vector.load %arg15[%c0_151, %c0_152] : memref<1x64xf32, #tpu.memory_space<vmem>>, vector<1x64xf32>
    %370 = vector.broadcast %369 : vector<1x64xf32> to vector<2x64xf32>
    %371 = arith.addf %368, %370 : vector<2x64xf32>
    %372 = arith.negf %371 : vector<2x64xf32>
    %373 = math.exp %372 : vector<2x64xf32>
    %cst_153 = arith.constant 1.000000e+00 : f32
    %374 = vector.broadcast %cst_153 : f32 to vector<2x64xf32>
    %375 = arith.addf %374, %373 : vector<2x64xf32>
    %376 = arith.divf %374, %375 : vector<2x64xf32>
    %377 = vector.shape_cast %376 : vector<2x64xf32> to vector<2x1x64xf32>
    %378 = vector.broadcast %377 : vector<2x1x64xf32> to vector<2x16x64xf32>
    %379 = arith.mulf %354, %378 : vector<2x16x64xf32>
    %380 = arith.addf %379, %4 : vector<2x16x64xf32>
    %c0_154 = arith.constant 0 : index
    %c0_155 = arith.constant 0 : index
    %c0_156 = arith.constant 0 : index
    %381 = vector.load %arg16[%c0_154, %c0_155, %c0_156] : memref<2x16x64xf32, #tpu.memory_space<vmem>>, vector<2x16x64xf32>
    tpu.vector_store %arg16[%c0_154, %c0_155, %c0_156], %380 {strides = array<i32>} : memref<2x16x64xf32, #tpu.memory_space<vmem>>, vector<2x16x64xf32>,
    return
  }
}

module attributes {stable_mosaic.version = 11 : i64} {
  func.func @_final_concat_conv_kernel(%arg0: i32, %arg1: i32, %arg2: memref<32x64xf32, #tpu.memory_space<vmem>>, %arg3: memref<32x64xf32, #tpu.memory_space<vmem>>, %arg4: memref<32x64xf32, #tpu.memory_space<vmem>>, %arg5: memref<64x512xbf16, #tpu.memory_space<vmem>>, %arg6: memref<64x512xbf16, #tpu.memory_space<vmem>>, %arg7: memref<64x512xbf16, #tpu.memory_space<vmem>>, %arg8: memref<1x512xf32, #tpu.memory_space<vmem>>, %arg9: memref<32x512xf32, #tpu.memory_space<vmem>>) attributes {dimension_semantics = [#tpu.dimension_semantics<parallel>, #tpu.dimension_semantics<parallel>], iteration_bounds = array<i64: 1, 3>, scalar_prefetch = 0 : i64, scratch_operands = 0 : i64, tpu.core_type = #tpu.core_type<tc>, window_params = [{transform_indices = @transform_0, window_bounds = array<i64: 32, 64>}, {transform_indices = @transform_1, window_bounds = array<i64: 32, 64>}, {transform_indices = @transform_2, window_bounds = array<i64: 32, 64>}, {transform_indices = @transform_3, window_bounds = array<i64: 64, 512>}, {transform_indices = @transform_4, window_bounds = array<i64: 64, 512>}, {transform_indices = @transform_5, window_bounds = array<i64: 64, 512>}, {transform_indices = @transform_6, window_bounds = array<i64: 1, 512>}, {transform_indices = @transform_7, window_bounds = array<i64: 32, 512>}]} {
    %c0 = arith.constant 0 : index
    %c0_0 = arith.constant 0 : index
    %0 = vector.load %arg2[%c0, %c0_0] : memref<32x64xf32, #tpu.memory_space<vmem>>, vector<32x64xf32>
    %1 = arith.truncf %0 : vector<32x64xf32> to vector<32x64xbf16>
    %c0_1 = arith.constant 0 : index
    %c0_2 = arith.constant 0 : index
    %2 = vector.load %arg5[%c0_1, %c0_2] : memref<64x512xbf16, #tpu.memory_space<vmem>>, vector<64x512xbf16>
    %cst = arith.constant dense<0.000000e+00> : vector<32x512xf32>
    %3 = tpu.matmul %1, %2, %cst {dimension_numbers = #tpu.dot_dimension_numbers<[1], [0], [0], [1], [0, 0, 1, 1], [], []>} : vector<32x64xbf16>, vector<64x512xbf16>, vector<32x512xf32> -> vector<32x512xf32>
    %c0_3 = arith.constant 0 : index
    %c0_4 = arith.constant 0 : index
    %4 = vector.load %arg3[%c0_3, %c0_4] : memref<32x64xf32, #tpu.memory_space<vmem>>, vector<32x64xf32>
    %5 = arith.truncf %4 : vector<32x64xf32> to vector<32x64xbf16>
    %c0_5 = arith.constant 0 : index
    %c0_6 = arith.constant 0 : index
    %6 = vector.load %arg6[%c0_5, %c0_6] : memref<64x512xbf16, #tpu.memory_space<vmem>>, vector<64x512xbf16>
    %cst_7 = arith.constant dense<0.000000e+00> : vector<32x512xf32>
    %7 = tpu.matmul %5, %6, %cst_7 {dimension_numbers = #tpu.dot_dimension_numbers<[1], [0], [0], [1], [0, 0, 1, 1], [], []>} : vector<32x64xbf16>, vector<64x512xbf16>, vector<32x512xf32> -> vector<32x512xf32>
    %8 = arith.addf %3, %7 : vector<32x512xf32>
    %c0_8 = arith.constant 0 : index
    %c0_9 = arith.constant 0 : index
    %9 = vector.load %arg4[%c0_8, %c0_9] : memref<32x64xf32, #tpu.memory_space<vmem>>, vector<32x64xf32>
    %10 = arith.truncf %9 : vector<32x64xf32> to vector<32x64xbf16>
    %c0_10 = arith.constant 0 : index
    %c0_11 = arith.constant 0 : index
    %11 = vector.load %arg7[%c0_10, %c0_11] : memref<64x512xbf16, #tpu.memory_space<vmem>>, vector<64x512xbf16>
    %cst_12 = arith.constant dense<0.000000e+00> : vector<32x512xf32>
    %12 = tpu.matmul %10, %11, %cst_12 {dimension_numbers = #tpu.dot_dimension_numbers<[1], [0], [0], [1], [0, 0, 1, 1], [], []>} : vector<32x64xbf16>, vector<64x512xbf16>, vector<32x512xf32> -> vector<32x512xf32>
    %13 = arith.addf %8, %12 : vector<32x512xf32>
    %c0_13 = arith.constant 0 : index
    %c0_14 = arith.constant 0 : index
    %14 = vector.load %arg8[%c0_13, %c0_14] : memref<1x512xf32, #tpu.memory_space<vmem>>, vector<1x512xf32>
    %15 = vector.broadcast %14 : vector<1x512xf32> to vector<32x512xf32>
    %16 = arith.addf %13, %15 : vector<32x512xf32>
    %cst_15 = arith.constant 0.000000e+00 : f32
    %17 = vector.broadcast %cst_15 : f32 to vector<32x512xf32>
    %18 = arith.maximumf %16, %17 : vector<32x512xf32>
    %c0_16 = arith.constant 0 : index
    %c0_17 = arith.constant 0 : index
    %19 = vector.load %arg9[%c0_16, %c0_17] : memref<32x512xf32, #tpu.memory_space<vmem>>, vector<32x512xf32>
    tpu.vector_store %arg9[%c0_16, %c0_17], %18 {strides = array<i32>} : memref<32x512xf32, #tpu.memory_space<vmem>>, vector<32x512xf32>,
    return
  }
  func.func @transform_0(%arg0: i32, %arg1: i32) -> (i32, i32) {
    %c0_i32 = arith.constant 0 : i32
    %c0_i32_0 = arith.constant 0 : i32
    return %arg0, %c0_i32 : i32, i32
  }
  func.func @transform_1(%arg0: i32, %arg1: i32) -> (i32, i32) {
    %c0_i32 = arith.constant 0 : i32
    %c0_i32_0 = arith.constant 0 : i32
    return %arg0, %c0_i32 : i32, i32
  }
  func.func @transform_2(%arg0: i32, %arg1: i32) -> (i32, i32) {
    %c0_i32 = arith.constant 0 : i32
    %c0_i32_0 = arith.constant 0 : i32
    return %arg0, %c0_i32 : i32, i32
  }
  func.func @transform_3(%arg0: i32, %arg1: i32) -> (i32, i32) {
    %c0_i32 = arith.constant 0 : i32
    %c0_i32_0 = arith.constant 0 : i32
    return %c0_i32, %arg1 : i32, i32
  }
  func.func @transform_4(%arg0: i32, %arg1: i32) -> (i32, i32) {
    %c0_i32 = arith.constant 0 : i32
    %c0_i32_0 = arith.constant 0 : i32
    return %c0_i32, %arg1 : i32, i32
  }
  func.func @transform_5(%arg0: i32, %arg1: i32) -> (i32, i32) {
    %c0_i32 = arith.constant 0 : i32
    %c0_i32_0 = arith.constant 0 : i32
    return %c0_i32, %arg1 : i32, i32
  }
  func.func @transform_6(%arg0: i32, %arg1: i32) -> (i32, i32) {
    %c0_i32 = arith.constant 0 : i32
    %c0_i32_0 = arith.constant 0 : i32
    return %c0_i32, %arg1 : i32, i32
  }
  func.func @transform_7(%arg0: i32, %arg1: i32) -> (i32, i32) {
    %c0_i32 = arith.constant 0 : i32
    return %arg0, %arg1 : i32, i32
  }
}

</mosaic_0001>

<bundles_post_ra>
// kernel: encode_forward.6
= control target key start
LH: loop header
LB: loop body
LE: loop exit
PB: predicated region body
PF: predicated region fallthrough
CT: control target
= control target key end

     0   :  { %s410_s9 = smov 0   ;;  %s520_s0 = inlined_call_operand.vmem [shape: f32[2,16,129], index: 0, kind: input, shape index: {}]   ;;  %s521_s1 = inlined_call_operand.vmem [shape: f32[129,128], index: 1, kind: input, shape index: {}]   ;;  %s522_s2 = inlined_call_operand.vmem [shape: f32[2,16,128], index: 2, kind: output, shape index: {}]  }
   0x1 LB: > { %s323_s10 = sadd.s32 4294967295, %s392_s9   ;;  %p327_p0 = scmp.ge.s32.totalorder %s392_s9, 1  ;;  %s392_s9 = sphi %s410_s9, %s12_s9  }
   0x2   : > { %p112_p1 = scmp.lt.s32.totalorder %s392_s9, 3 }
   0x4   : > { %p113_p2 = pnand %p327_p0, %p112_p1 }
   0x5   : > { %p134_p3 = scmp.lt.s32.totalorder (!%p113_p2), %s323_s10, 1 }
   0x6   : > { %116 = sbr.rel (%p113_p2) target bundleno = 278 (0x116), region = 28 }
   0xb   : > { %v163_v0 = vld [vmem:[%s521_s1 + $0x78] sm:$0xff]  ;;  %v394_v1 = vmov 0.0   ;;  %v162_v2 = vld [vmem:[%s521_s1 + $0x70] sm:$0xff]  ;;  %v161_v3 = vld [vmem:[%s521_s1 + $0x68] sm:$0xff]  ;;  %s524_s10 = smov (!%p134_p3, %s323_s10), 1  ;;  %vm172_vm0 = vcmask 1040384  }
   0xc   : > { %176 = vmatprep.subr.mxu0 %v394_v1  ;;  %339 = vmatprep.subr.mxu1 %v394_v1  ;;  %v160_v4 = vld [vmem:[%s521_s1 + $0x60] sm:$0xff]  ;;  %v159_v5 = vld [vmem:[%s521_s1 + $0x58] sm:$0xff]  ;;  %v158_v6 = vld [vmem:[%s521_s1 + $0x50] sm:$0xff]  ;;  %s337_s13 = sshll.u32 %s524_s10, 5  ;;  %vm165_vm1 = vcmask 7168   ;;  %s338_s23 = sshll.u32 %s524_s10, 4 }
   0xd   : > { %177 = vmatpush1.msra.mxu0 %v163_v0  ;;  %356 = vmatpush1.msra.mxu1 %v163_v0  ;;  %v157_v7 = vld [vmem:[%s521_s1 + $0x48] sm:$0xff]  ;;  %v156_v8 = vld [vmem:[%s521_s1 + $0x40] sm:$0xff]  ;;  %v155_v9 = vld [vmem:[%s521_s1 + $0x38] sm:$0xff]  ;;  %s138_s20 = scalar_lea.vmem %s520_s0, %s337_s13  ;;  %s143_s26 = scalar_lea.vmem %s522_s2, %s338_s23 }
   0xe   : > { %178 = vmatprep.subr.mxu0 %v394_v1  ;;  %340 = vmatprep.subr.mxu1 %v394_v1  ;;  %v154_v10 = vld [vmem:[%s521_s1 + $0x30] sm:$0xff]  ;;  %v153_v11 = vld [vmem:[%s521_s1 + $0x28] sm:$0xff]  ;;  %v152_v12 = vld [vmem:[%s521_s1 + $0x20] sm:$0xff] }
   0xf   : > { %179 = vmatpush1.msra.mxu0 %v162_v2  ;;  %357 = vmatpush1.msra.mxu1 %v162_v2  ;;  %v151_v13 = vld [vmem:[%s521_s1 + $0x18] sm:$0xff]  ;;  %v150_v14 = vld [vmem:[%s521_s1 + $0x10] sm:$0xff]  ;;  %v149_v15 = vld [vmem:[%s521_s1 + $0x8] sm:$0xff] }
  0x10   : > { %180 = vmatprep.subr.mxu0 %v394_v1  ;;  %341 = vmatprep.subr.mxu1 %v394_v1  ;;  %v148_v16 = vld [vmem:[%s521_s1] sm:$0xff]  ;;  %v145_v18 = vld [vmem:[%s138_s20 + $0x8] sm:$0xff]  ;;  %v147_v19 = vld [vmem:[%s138_s20 + $0x18] sm:$0xff] }
  0x11   : > { %181 = vmatpush1.msra.mxu0 %v161_v3  ;;  %358 = vmatpush1.msra.mxu1 %v161_v3  ;;  %v164_v17 = vld [vmem:[%s521_s1 + $0x80] sm:$0x1]  ;;  %v146_v21 = vld [vmem:[%s138_s20 + $0x10] sm:$0xff] }
  0x12   : > { %182 = vmatprep.subr.mxu0 %v394_v1  ;;  %342 = vmatprep.subr.mxu1 %v394_v1  ;;  %v144_v20 = vld [vmem:[%s138_s20] sm:$0xff] }
  0x13   : > { %183 = vmatpush1.msra.mxu0 %v160_v4  ;;  %359 = vmatpush1.msra.mxu1 %v160_v4 }
  0x14   : > { %184 = vmatprep.subr.mxu0 %v394_v1  ;;  %343 = vmatprep.subr.mxu1 %v394_v1 }
  0x15   : > { %185 = vmatpush1.msra.mxu0 %v159_v5  ;;  %360 = vmatpush1.msra.mxu1 %v159_v5 }
  0x16   : > { %186 = vmatprep.subr.mxu0 %v394_v1  ;;  %344 = vmatprep.subr.mxu1 %v394_v1 }
  0x17   : > { %187 = vmatpush1.msra.mxu0 %v158_v6  ;;  %361 = vmatpush1.msra.mxu1 %v158_v6 }
  0x18   : > { %188 = vmatprep.subr.mxu0 %v394_v1  ;;  %345 = vmatprep.subr.mxu1 %v394_v1 }
  0x19   : > { %189 = vmatpush1.msra.mxu0 %v157_v7  ;;  %362 = vmatpush1.msra.mxu1 %v157_v7 }
  0x1a   : > { %190 = vmatprep.subr.mxu0 %v394_v1  ;;  %346 = vmatprep.subr.mxu1 %v394_v1 }
  0x1b   : > { %191 = vmatpush1.msra.mxu0 %v156_v8  ;;  %363 = vmatpush1.msra.mxu1 %v156_v8 }
  0x1c   : > { %192 = vmatprep.subr.mxu0 %v394_v1  ;;  %347 = vmatprep.subr.mxu1 %v394_v1 }
  0x1d   : > { %193 = vmatpush1.msra.mxu0 %v155_v9  ;;  %364 = vmatpush1.msra.mxu1 %v155_v9 }
  0x1e   : > { %194 = vmatprep.subr.mxu0 %v394_v1  ;;  %348 = vmatprep.subr.mxu1 %v394_v1 }
  0x1f   : > { %195 = vmatpush1.msra.mxu0 %v154_v10  ;;  %365 = vmatpush1.msra.mxu1 %v154_v10 }
  0x20   : > { %196 = vmatprep.subr.mxu0 %v394_v1  ;;  %349 = vmatprep.subr.mxu1 %v394_v1 }
  0x21   : > { %197 = vmatpush1.msra.mxu0 %v153_v11  ;;  %366 = vmatpush1.msra.mxu1 %v153_v11 }
  0x22   : > { %198 = vmatprep.subr.mxu0 %v394_v1  ;;  %350 = vmatprep.subr.mxu1 %v394_v1 }
  0x23   : > { %199 = vmatpush1.msra.mxu0 %v152_v12  ;;  %367 = vmatpush1.msra.mxu1 %v152_v12 }
  0x24   : > { %200 = vmatprep.subr.mxu0 %v394_v1  ;;  %351 = vmatprep.subr.mxu1 %v394_v1 }
  0x25   : > { %201 = vmatpush1.msra.mxu0 %v151_v13  ;;  %368 = vmatpush1.msra.mxu1 %v151_v13 }
  0x26   : > { %202 = vmatprep.subr.mxu0 %v394_v1  ;;  %352 = vmatprep.subr.mxu1 %v394_v1 }
  0x27   : > { %203 = vmatpush1.msra.mxu0 %v150_v14  ;;  %369 = vmatpush1.msra.mxu1 %v150_v14 }
  0x28   : > { %204 = vmatprep.subr.mxu0 %v394_v1  ;;  %353 = vmatprep.subr.mxu1 %v394_v1 }
  0x29   : > { %205 = vmatpush1.msra.mxu0 %v149_v15  ;;  %370 = vmatpush1.msra.mxu1 %v149_v15 }
  0x2a   : > { %206 = vmatprep.subr.mxu0 %v394_v1  ;;  %354 = vmatprep.subr.mxu1 %v394_v1 }
  0x2b   : > { %207 = vmatpush1.msra.mxu0 %v148_v16  ;;  %371 = vmatpush1.msra.mxu1 %v148_v16 }
  0x2c   : > { %238 = vmatprep.subr.mxu0 %v394_v1  ;;  %355 = vmatprep.subr.mxu1 %v394_v1 }
  0x2d   : > { %332 = vmatpush2.msk.msra.mxu0 %vm172_vm0, %v164_v17  ;;  %372 = vmatpush2.msk.msra.mxu1 %vm172_vm0, %v164_v17 }
  0x2e   : > { %333 = vmatprep.mubr.msk.f32.mxu0 %vm165_vm1, %v145_v18  ;;  %334 = vmatprep.mubr.msk.f32.mxu1 %vm165_vm1, %v147_v19 }
  0x2f   : > { %241 = vmatmul.mubr.f32.vlgmr.msra.gmra.mxu0 %v144_v20  ;;  %246 = vmatmul.mubr.f32.vlgmr.msra.gmra.mxu1 %v146_v21 }
  0xef   : > { %v242_v22 = vpop.f32.mrf.mxu0  ;;  %v247_v23 = vpop.f32.mrf.mxu1 }
  0xf0   : > { %v243_v24 = vadd.f32 1e-06, %v242_v22  ;;  %v248_v25 = vadd.f32 1e-06, %v247_v23 }
  0xf1   : > { %v244_v26 = vpop.f32.mrf.mxu0  ;;  %v249_v27 = vpop.f32.mrf.mxu1 }
  0xf2   : > { %382 = vlog2.f32 %v243_v24 }
  0xf3   : > { %384 = vlog2.f32 %v248_v25 }
  0xff   : > { %v383_v28 = vpop.eup %382 }
 0x100   : > { %v385_v29 = vpop.eup %384  ;;  %v252_v30 = vmul.f32 0.6931472, %v383_v28 }
 0x101   : > { %v254_v31 = vmul.f32 0.6931472, %v385_v29 }
 0x103   : > { %v255_v32 = vadd.f32 %v254_v31, %v252_v30 }
 0x105   : > { %v256_v33 = vrot.slane %v255_v32, 4 }
 0x107   : > { %v257_v34 = vadd.f32 %v256_v33, %v255_v32 }
 0x109   : > { %v258_v35 = vrot.slane %v257_v34, 2 }
 0x10b   : > { %v259_v36 = vadd.f32 %v258_v35, %v257_v34 }
 0x10d   : > { %v260_v37 = vrot.slane %v259_v36, 1 }
 0x10f   : > { %v261_v38 = vadd.f32 %v260_v37, %v259_v36 }
 0x111   : > { %v263_v39 = vmul.f32 0.0625, %v261_v38 }
 0x113   : > { %v264_v40 = vsub.f32 %v252_v30, %v263_v39  ;;  %v265_v41 = vsub.f32 %v254_v31, %v263_v39 }
 0x115   : > { %266 = vst [vmem:[%s143_s26] sm:$0xff] %v264_v40  ;;  %267 = vst [vmem:[%s143_s26 + $0x8] sm:$0xff] %v265_v41 }
 0x116 PF: > { %s12_s9 = sadd.s32 1, %s392_s9  }
 0x117   : > { %p9_p4 = scmp.ge.s32.totalorder %s12_s9, 4  }
 0x119   :  { %11 = sbr.rel (!%p9_p4) target bundleno = 1 (0x1), region = 58 }

// kernel: encode_forward.7
= control target key start
LH: loop header
LB: loop body
LE: loop exit
PB: predicated region body
PF: predicated region fallthrough
CT: control target
= control target key end

     0   :  { %9 = vsyncpa [#allocation3], 0  ;;  %s851_s15 = smov [#allocation2]   ;;  %s1061_s0 = inlined_call_operand.vmem [shape: f32[2,20,128], index: 0, kind: input, shape index: {}]   ;;  %s1062_s1 = inlined_call_operand.vmem [shape: bf16[640,64], index: 1, kind: input, shape index: {}]   ;;  %s1063_s2 = inlined_call_operand.vmem [shape: f32[1,64], index: 2, kind: input, shape index: {}]   ;;  %s1064_s3 = inlined_call_operand.hbm [shape: f32[1,64], index: 3, kind: input, shape index: {}]   ;;  %s1065_s4 = inlined_call_operand.vmem [shape: f32[2,16,64], index: 4, kind: output, shape index: {}]  }
   0x1   :  { %s22_s16 = sshll.u32 %s851_s15, 4  ;;  %s23_s16 = int_to_ptr.vmem [resolvable:$true] %s22_s16 }
   0x2   :  { %s837_s17 = scalar_lea.vmem %s23_s16, 16  ;;  %s841_s18 = scalar_lea.vmem %s23_s16, 32 }
   0x3   :  { %p838_p0 = scmp.ne.s32.totalorder %s23_s16, %s837_s17  ;;  %p842_p1 = scmp.lt.s32.totalorder %s23_s16, %s23_s16 }
   0x4   :  { %p843_p2 = scmp.lt.s32.totalorder %s841_s18, %s837_s17 }
   0x6   :  { %p844_p3 = por %p843_p2, %p842_p1 }
   0x8   :  { %p845_p4 = pnand %p844_p3, %p838_p0 }
   0xa   :  { %848 = shalt.err (!%p845_p4)
}
   0xb   :  { %25 = dma.hbm_to_vmem [thread:$0]  %s1064_s3, 16, %s23_s16, [#allocation3]  }
   0xc   :  { %849 = dma.done.wait [#allocation3], 16  }
   0xd   :  { %850 = vsyncadd [#allocation3], 4294967280  ;;  %v787_v0 = vld [vmem:[%s1062_s1 + $0x78] sm:$0xff]   ;;  %v791_v4 = vld [vmem:[%s1062_s1 + $0x70] sm:$0xff]   ;;  %vm42_vm0 = vcmask 1046528   ;;  %vm72_vm1 = vcmask 1044480  }
   0xe   :  { %v788_v1 = vld [vmem:[%s1062_s1 + $0xf8] sm:$0xff]   ;;  %700 = vmatprep.subr.bf16.mxu0 %v787_v0  ;;  %v792_v5 = vld [vmem:[%s1062_s1 + $0xf0] sm:$0xff]   ;;  %v795_v8 = vld [vmem:[%s1062_s1 + $0x68] sm:$0xff]   ;;  %vm57_vm2 = vcmask 1045504   ;;  %vm87_vm3 = vcmask 1043456   ;;  %vm585_vm4 = vcmask 523264  }
   0xf   :  { %v789_v2 = vld [vmem:[%s1062_s1 + $0x38] sm:$0xff]   ;;  %728 = vmatprep.subr.bf16.mxu1 %v788_v1  ;;  %v793_v6 = vld [vmem:[%s1062_s1 + $0x30] sm:$0xff]   ;;  %v796_v9 = vld [vmem:[%s1062_s1 + $0xe8] sm:$0xff]  }
  0x10   :  { %v790_v3 = vld [vmem:[%s1062_s1 + $0xb8] sm:$0xff]   ;;  %701 = vmatpush3.bf16.msra.mxu0 %v789_v2  ;;  %v794_v7 = vld [vmem:[%s1062_s1 + $0xb0] sm:$0xff]   ;;  %v797_v10 = vld [vmem:[%s1062_s1 + $0x28] sm:$0xff]  }
  0x11   :  { %729 = vmatpush3.bf16.msra.mxu1 %v790_v3  ;;  %702 = vmatprep.subr.bf16.mxu0 %v791_v4  ;;  %v798_v11 = vld [vmem:[%s1062_s1 + $0xa8] sm:$0xff]   ;;  %v799_v12 = vld [vmem:[%s1062_s1 + $0x60] sm:$0xff]   ;;  %v803_v16 = vld [vmem:[%s1062_s1 + $0x58] sm:$0xff]  }
  0x12   :  { %730 = vmatprep.subr.bf16.mxu1 %v792_v5  ;;  %v800_v13 = vld [vmem:[%s1062_s1 + $0xe0] sm:$0xff]   ;;  %v804_v17 = vld [vmem:[%s1062_s1 + $0xd8] sm:$0xff]   ;;  %v807_v20 = vld [vmem:[%s1062_s1 + $0x50] sm:$0xff]  }
  0x13   :  { %v801_v14 = vld [vmem:[%s1062_s1 + $0x20] sm:$0xff]   ;;  %v805_v18 = vld [vmem:[%s1062_s1 + $0x18] sm:$0xff]   ;;  %v808_v21 = vld [vmem:[%s1062_s1 + $0xd0] sm:$0xff]  }
  0x14   :  { %703 = vmatpush3.bf16.msra.mxu0 %v793_v6  ;;  %v802_v15 = vld [vmem:[%s1062_s1 + $0xa0] sm:$0xff]   ;;  %v806_v19 = vld [vmem:[%s1062_s1 + $0x98] sm:$0xff]   ;;  %v809_v22 = vld [vmem:[%s1062_s1 + $0x10] sm:$0xff]  }
  0x15   :  { %731 = vmatpush3.bf16.msra.mxu1 %v794_v7  ;;  %704 = vmatprep.subr.bf16.mxu0 %v795_v8  ;;  %v810_v23 = vld [vmem:[%s1062_s1 + $0x90] sm:$0xff]   ;;  %v811_v24 = vld [vmem:[%s1062_s1 + $0x48] sm:$0xff]   ;;  %v815_v28 = vld [vmem:[%s1062_s1 + $0x40] sm:$0xff]  }
  0x16   :  { %732 = vmatprep.subr.bf16.mxu1 %v796_v9  ;;  %v812_v25 = vld [vmem:[%s1062_s1 + $0xc8] sm:$0xff]   ;;  %v816_v29 = vld [vmem:[%s1062_s1 + $0xc0] sm:$0xff]   ;;  %v32_v34 = vld [vmem:[%s1061_s0 + $0x10] sm:$0xf] }
  0x17   :  { %v813_v26 = vld [vmem:[%s1062_s1 + $0x8] sm:$0xff]   ;;  %v817_v30 = vld [vmem:[%s1062_s1] sm:$0xff]   ;;  %v46_v37 = vrot.slane %v32_v34, 1  ;;  %v76_v40 = vrot.slane %v32_v34, 3  ;;  %v819_v43 = vld [vmem:[%s1062_s1 + $0x138] sm:$0xff]   ;;  %v61_v47 = vrot.slane %v32_v34, 2 }
  0x18   :  { %705 = vmatpush3.bf16.msra.mxu0 %v797_v10  ;;  %v814_v27 = vld [vmem:[%s1062_s1 + $0x88] sm:$0xff]   ;;  %v818_v31 = vld [vmem:[%s1062_s1 + $0x80] sm:$0xff]   ;;  %v820_v55 = vld [vmem:[%s1062_s1 + $0x130] sm:$0xff]   ;;  %v91_v60 = vrot.slane %v32_v34, 4 }
  0x19   :  { %733 = vmatpush3.bf16.msra.mxu1 %v798_v11  ;;  %706 = vmatprep.subr.bf16.mxu0 %v799_v12  ;;  %v30_v32 = vld [vmem:[%s1061_s0] sm:$0xff]  ;;  %v31_v33 = vld [vmem:[%s1061_s0 + $0x8] sm:$0xff]  ;;  %v33_v58 = vld [vmem:[%s1061_s0 + $0x18] sm:$0xff] }
  0x1a   :  { %734 = vmatprep.subr.bf16.mxu1 %v800_v13  ;;  %v43_v35 = vrot.slane %v30_v32, 1  ;;  %v44_v36 = vrot.slane %v31_v33, 1  ;;  %v73_v38 = vrot.slane %v30_v32, 3  ;;  %v74_v39 = vrot.slane %v31_v33, 3  ;;  %v34_v59 = vld [vmem:[%s1061_s0 + $0x20] sm:$0xff]  ;;  %v821_v2 = vld [vmem:[%s1062_s1 + $0x128] sm:$0xff]  }
  0x1b   :  { %v102_v41 = vpack.c.bf16 %v31_v33, %v30_v32  ;;  %v58_v42 = vrot.slane %v30_v32, 2  ;;  %v59_v46 = vrot.slane %v31_v33, 2  ;;  %v88_v51 = vrot.slane %v30_v32, 4  ;;  %v35_v61 = vld [vmem:[%s1061_s0 + $0x28] sm:$0xf] }
  0x1c   :  { %707 = vmatpush3.bf16.msra.mxu0 %v801_v14  ;;  %v45_v44 = vsel %vm42_vm0, %v43_v35, %v44_v36  ;;  %v47_v45 = vsel %vm42_vm0, %v44_v36, %v46_v37  ;;  %v75_v49 = vsel %vm72_vm1, %v73_v38, %v74_v39  ;;  %v77_v50 = vsel %vm72_vm1, %v74_v39, %v76_v40 }
  0x1d   :  { %735 = vmatpush3.bf16.msra.mxu1 %v802_v15  ;;  %708 = vmatprep.subr.bf16.mxu0 %v803_v16  ;;  %v103_v48 = vpack.c.bf16 %v47_v45, %v45_v44  ;;  %v105_v52 = vpack.c.bf16 %v77_v50, %v75_v49  ;;  %v60_v53 = vsel %vm57_vm2, %v58_v42, %v59_v46  ;;  %v89_v56 = vrot.slane %v31_v33, 4 }
  0x1e   :  { %736 = vmatprep.subr.bf16.mxu1 %v804_v17  ;;  %v62_v54 = vsel %vm57_vm2, %v59_v46, %v61_v47  ;;  %v48_v62 = vrot.slane %v33_v58, 1  ;;  %v49_v63 = vrot.slane %v34_v59, 1  ;;  %v78_v0 = vrot.slane %v33_v58, 3 }
  0x1f   :  { %464 = vmatprep.mubr.bf16.mxu0 %v103_v48  ;;  %v104_v57 = vpack.c.bf16 %v62_v54, %v60_v53  ;;  %513 = vmatprep.mubr.bf16.mxu1 %v105_v52  ;;  %v79_v1 = vrot.slane %v34_v59, 3  ;;  %v51_v3 = vrot.slane %v35_v61, 1  ;;  %v81_v4 = vrot.slane %v35_v61, 3 }
  0x20   :  { %709 = vmatpush3.bf16.msra.mxu0 %v805_v18  ;;  %v63_v5 = vrot.slane %v33_v58, 2  ;;  %v90_v6 = vsel %vm87_vm3, %v88_v51, %v89_v56  ;;  %v50_v7 = vsel %vm42_vm0, %v48_v62, %v49_v63  ;;  %v64_v9 = vrot.slane %v34_v59, 2 }
  0x21   :  { %737 = vmatpush3.bf16.msra.mxu1 %v806_v19  ;;  %710 = vmatprep.subr.bf16.mxu0 %v807_v20  ;;  %v80_v8 = vsel %vm72_vm1, %v78_v0, %v79_v1  ;;  %v66_v10 = vrot.slane %v35_v61, 2  ;;  %v52_v11 = vsel %vm42_vm0, %v49_v63, %v51_v3  ;;  %v82_v12 = vsel %vm72_vm1, %v79_v1, %v81_v4  ;;  %v822_v19 = vld [vmem:[%s1062_s1 + $0x120] sm:$0xff]  }
  0x22   :  { %738 = vmatprep.subr.bf16.mxu1 %v808_v21  ;;  %v107_v13 = vpack.c.bf16 %v34_v59, %v33_v58  ;;  %v92_v14 = vsel %vm87_vm3, %v89_v56, %v91_v60  ;;  %v108_v15 = vpack.c.bf16 %v52_v11, %v50_v7  ;;  %v110_v16 = vpack.c.bf16 %v82_v12, %v80_v8 }
  0x23   :  { %v65_v17 = vsel %vm57_vm2, %v63_v5, %v64_v9  ;;  %v67_v18 = vsel %vm57_vm2, %v64_v9, %v66_v10  ;;  %v106_v21 = vpack.c.bf16 %v92_v14, %v90_v6 }
  0x24   :  { %711 = vmatpush3.bf16.msra.mxu0 %v809_v22  ;;  %v109_v20 = vpack.c.bf16 %v67_v18, %v65_v17  ;;  %v823_v22 = vld [vmem:[%s1062_s1 + $0x118] sm:$0xff]  }
  0x25   :  { %739 = vmatpush3.bf16.msra.mxu1 %v810_v23  ;;  %712 = vmatprep.subr.bf16.mxu0 %v811_v24  ;;  %v824_v23 = vld [vmem:[%s1062_s1 + $0x110] sm:$0xff]   ;;  %v825_v24 = vld [vmem:[%s1062_s1 + $0x108] sm:$0xff]  }
  0x26   :  { %740 = vmatprep.subr.bf16.mxu1 %v812_v25  ;;  %v93_v25 = vrot.slane %v33_v58, 4 }
  0x28   :  { %713 = vmatpush3.bf16.msra.mxu0 %v813_v26  ;;  %v94_v26 = vrot.slane %v34_v59, 4 }
  0x29   :  { %741 = vmatpush3.bf16.msra.mxu1 %v814_v27  ;;  %714 = vmatprep.subr.bf16.mxu0 %v815_v28  ;;  %v96_v27 = vrot.slane %v35_v61, 4  ;;  %v826_v28 = vld [vmem:[%s1062_s1 + $0x100] sm:$0xff]  }
  0x2a   :  { %742 = vmatprep.subr.bf16.mxu1 %v816_v29  ;;  %v95_v29 = vsel %vm87_vm3, %v93_v25, %v94_v26 }
  0x2c   :  { %715 = vmatpush3.bf16.msra.mxu0 %v817_v30  ;;  %v97_v30 = vsel %vm87_vm3, %v94_v26, %v96_v27 }
  0x2d   :  { %743 = vmatpush3.bf16.msra.mxu1 %v818_v31  ;;  %766 = vmatprep.subr.bf16.mxu0 %v819_v43  ;;  %v111_v31 = vpack.c.bf16 %v97_v30, %v95_v29 }
  0x2f   :  { %465 = vmatmul.mubr.bf16.vlgmr.msra.gmra.mxu0 %v102_v41 }
  0x30   :  { %514 = vmatmul.mubr.bf16.vlgmr.msra.gmra.mxu1 %v104_v57  ;;  %767 = vmatpush3.bf16.msra.mxu0 %v819_v43 }
  0x31   :  { %768 = vmatprep.subr.bf16.mxu0 %v820_v55  ;;  %472 = vmatprep.mubr.bf16.mxu0 %v108_v15 }
  0x32   :  { %521 = vmatprep.mubr.bf16.mxu1 %v110_v16 }
  0x34   :  { %769 = vmatpush3.bf16.msra.mxu0 %v820_v55 }
  0x35   :  { %770 = vmatprep.subr.bf16.mxu0 %v821_v2 }
  0x37   :  { %473 = vmatmul.mubr.bf16.gmra.mxu0 %v107_v13 }
  0x38   :  { %771 = vmatpush3.bf16.msra.mxu0 %v821_v2  ;;  %522 = vmatmul.mubr.bf16.gmra.mxu1 %v109_v20 }
  0x39   :  { %772 = vmatprep.subr.bf16.mxu0 %v822_v19  ;;  %782 = vmatprep.mubr.bf16.mxu0 %v106_v21 }
  0x3c   :  { %773 = vmatpush3.bf16.msra.mxu0 %v822_v19 }
  0x3d   :  { %774 = vmatprep.subr.bf16.mxu0 %v823_v22 }
  0x40   :  { %775 = vmatpush3.bf16.msra.mxu0 %v823_v22 }
  0x41   :  { %776 = vmatprep.subr.bf16.mxu0 %v824_v23 }
  0x44   :  { %777 = vmatpush3.bf16.msra.mxu0 %v824_v23 }
  0x45   :  { %778 = vmatprep.subr.bf16.mxu0 %v825_v24 }
  0x48   :  { %779 = vmatpush3.bf16.msra.mxu0 %v825_v24 }
  0x49   :  { %780 = vmatprep.subr.bf16.mxu0 %v826_v28 }
  0x4c   :  { %781 = vmatpush3.bf16.msra.mxu0 %v826_v28 }
  0x4f   :  { %783 = vmatmul.mubr.bf16.vlgmr.msra.gmra.mxu0 %v111_v31 }
  0xef   :  { %v716_v32 = vpop.f32.mrf.mxu0 }
  0xf0   :  { %v744_v33 = vpop.f32.mrf.mxu1 }
  0xf1   :  { %v717_v34 = vpop.f32.mrf.mxu0 }
  0xf2   :  { %v745_v35 = vpop.f32.mrf.mxu1  ;;  %v718_v46 = vadd.f32 %v717_v34, %v716_v32 }
  0xf3   :  { %v719_v36 = vpop.f32.mrf.mxu0  ;;  %v746_v47 = vadd.f32 %v745_v35, %v744_v33 }
  0xf4   :  { %v747_v37 = vpop.f32.mrf.mxu1 }
  0xf5   :  { %v720_v38 = vpop.f32.mrf.mxu0  ;;  %v516_v53 = vadd.f32 %v746_v47, %v718_v46  ;;  %v698_v46 = vld [vmem:[%s1063_s2] ss:$0 sm:$0xff] }
  0xf6   :  { %v748_v39 = vpop.f32.mrf.mxu1  ;;  %v721_v54 = vadd.f32 %v720_v38, %v719_v36 }
  0xf7   :  { %v722_v40 = vpop.f32.mrf.mxu0  ;;  %v749_v55 = vadd.f32 %v748_v39, %v747_v37 }
  0xf8   :  { %v750_v41 = vpop.f32.mrf.mxu1 }
  0xf9   :  { %v723_v42 = vpop.f32.mrf.mxu0  ;;  %v519_v0 = vadd.f32 %v749_v55, %v721_v54 }
  0xfa   :  { %v751_v43 = vpop.f32.mrf.mxu1  ;;  %v724_v50 = vadd.f32 %v723_v42, %v722_v40 }
  0xfb   :  { %v725_v44 = vpop.f32.mrf.mxu0  ;;  %v752_v51 = vadd.f32 %v751_v43, %v750_v41 }
  0xfc   :  { %v753_v45 = vpop.f32.mrf.mxu1 }
  0xfd   :  { %v726_v48 = vpop.f32.mrf.mxu0  ;;  %v524_v59 = vadd.f32 %v752_v51, %v724_v50  ;;  %v699_v51 = vld [vmem:[#allocation2] ss:$0 sm:$0xff] }
  0xfe   :  { %v754_v49 = vpop.f32.mrf.mxu1  ;;  %v727_v56 = vadd.f32 %v726_v48, %v725_v44 }
  0xff   :  { %v755_v57 = vadd.f32 %v754_v49, %v753_v45 }
 0x101   :  { %v527_v63 = vadd.f32 %v755_v57, %v727_v56 }
 0x10f   :  { %v784_v52 = vpop.f32.mrf.mxu0 }
 0x110   :  { %v573_v62 = vadd.f32 %v784_v52, %v524_v59 }
 0x111   :  { %v564_v58 = vpop.f32.mrf.mxu0 }
 0x112   :  { %v565_v60 = vadd.f32 %v564_v58, %v516_v53  ;;  %v581_v5 = vmax.f32 %v573_v62, 0.0 }
 0x113   :  { %v785_v61 = vpop.f32.mrf.mxu0 }
 0x114   :  { %v579_v2 = vmax.f32 %v565_v60, 0.0  ;;  %v576_v3 = vadd.f32 %v785_v61, %v527_v63  ;;  %v589_v11 = vsel %vm585_vm4, %v581_v5, 0.0 }
 0x115   :  { %v567_v1 = vpop.f32.mrf.mxu0 }
 0x116   :  { %v568_v4 = vadd.f32 %v567_v1, %v519_v0  ;;  %v586_v7 = vsel %vm585_vm4, %v579_v2, 0.0  ;;  %v582_v8 = vmax.f32 %v576_v3, 0.0 }
 0x118   :  { %v580_v6 = vmax.f32 %v568_v4, 0.0  ;;  %v591_v13 = vsel %vm585_vm4, %v582_v8, 0.0 }
 0x11a   :  { %v587_v9 = vsel %vm585_vm4, %v580_v6, 0.0 }
 0x11b   :  { %v588_v10 = vadd.f32 %v587_v9, %v586_v7 }
 0x11d   :  { %v590_v12 = vadd.f32 %v589_v11, %v588_v10 }
 0x11f   :  { %v592_v14 = vadd.f32 %v591_v13, %v590_v12 }
 0x121   :  { %v593_v15 = vrot.slane %v592_v14, 4 }
 0x123   :  { %v594_v16 = vadd.f32 %v593_v15, %v592_v14 }
 0x125   :  { %v595_v17 = vrot.slane %v594_v16, 2 }
 0x127   :  { %v596_v18 = vadd.f32 %v595_v17, %v594_v16 }
 0x129   :  { %v597_v19 = vrot.slane %v596_v18, 1 }
 0x12b   :  { %v598_v20 = vadd.f32 %v597_v19, %v596_v18 }
 0x12d   :  { %v600_v21 = vmul.f32 0.03125, %v598_v20 }
 0x12f   :  { %v601_v22 = vsub.f32 %v579_v2, %v600_v21  ;;  %v602_v23 = vsub.f32 %v580_v6, %v600_v21  ;;  %v603_v24 = vsub.f32 %v581_v5, %v600_v21  ;;  %v604_v25 = vsub.f32 %v582_v8, %v600_v21 }
 0x131   :  { %v605_v26 = vmul.f32 %v601_v22, %v601_v22  ;;  %v606_v27 = vmul.f32 %v602_v23, %v602_v23  ;;  %v607_v28 = vmul.f32 %v603_v24, %v603_v24  ;;  %v608_v29 = vmul.f32 %v604_v25, %v604_v25 }
 0x133   :  { %v609_v30 = vsel %vm585_vm4, %v605_v26, 0.0  ;;  %v610_v31 = vsel %vm585_vm4, %v606_v27, 0.0  ;;  %v612_v33 = vsel %vm585_vm4, %v607_v28, 0.0  ;;  %v614_v35 = vsel %vm585_vm4, %v608_v29, 0.0 }
 0x134   :  { %v611_v32 = vadd.f32 %v610_v31, %v609_v30 }
 0x136   :  { %v613_v34 = vadd.f32 %v612_v33, %v611_v32 }
 0x138   :  { %v615_v36 = vadd.f32 %v614_v35, %v613_v34 }
 0x13a   :  { %v616_v37 = vrot.slane %v615_v36, 4 }
 0x13c   :  { %v617_v38 = vadd.f32 %v616_v37, %v615_v36 }
 0x13e   :  { %v618_v39 = vrot.slane %v617_v38, 2 }
 0x140   :  { %v619_v40 = vadd.f32 %v618_v39, %v617_v38 }
 0x142   :  { %v620_v41 = vrot.slane %v619_v40, 1 }
 0x144   :  { %v621_v42 = vadd.f32 %v620_v41, %v619_v40 }
 0x146   :  { %v622_v43 = vmul.f32 0.03125, %v621_v42 }
 0x148   :  { %v623_v44 = vadd.f32 1e-05, %v622_v43 }
 0x14a   :  { %827 = vrsqrt.f32 %v623_v44 }
 0x157   :  { %v828_v45 = vpop.eup %827 }
 0x158   :  { %v625_v47 = vmul.f32 %v828_v45, %v601_v22  ;;  %v626_v48 = vmul.f32 %v828_v45, %v602_v23  ;;  %v627_v49 = vmul.f32 %v828_v45, %v603_v24  ;;  %v628_v50 = vmul.f32 %v828_v45, %v604_v25 }
 0x15a   :  { %v635_v52 = vmul.f32 %v698_v46, %v625_v47  ;;  %v636_v53 = vmul.f32 %v698_v46, %v626_v48  ;;  %v637_v54 = vmul.f32 %v698_v46, %v627_v49  ;;  %v638_v55 = vmul.f32 %v698_v46, %v628_v50 }
 0x15c   :  { %v645_v56 = vadd.f32 %v699_v51, %v635_v52  ;;  %v646_v57 = vadd.f32 %v699_v51, %v636_v53  ;;  %v647_v58 = vadd.f32 %v699_v51, %v637_v54  ;;  %v648_v59 = vadd.f32 %v699_v51, %v638_v55 }
 0x15e   :  { %649 = vst.msk [vmem:[%s1065_s4] sm:$0xff] %vm585_vm4, %v645_v56  ;;  %650 = vst.msk [vmem:[%s1065_s4 + $0x8] sm:$0xff] %vm585_vm4, %v646_v57 }
 0x15f   :  { %651 = vst.msk [vmem:[%s1065_s4 + $0x10] sm:$0xff] %vm585_vm4, %v647_v58  ;;  %652 = vst.msk [vmem:[%s1065_s4 + $0x18] sm:$0xff] %vm585_vm4, %v648_v59 }
 0x160   :  { %657 = vsyncpa [#allocation3], 1 }

// kernel: encode_forward.9
= control target key start
LH: loop header
LB: loop body
LE: loop exit
PB: predicated region body
PF: predicated region fallthrough
CT: control target
= control target key end

     0   :  { %20 = vsyncpa [#allocation3], 0  ;;  %s3779_s0 = inlined_call_operand.vmem [shape: f32[2,16,64], index: 0, kind: input, shape index: {}]   ;;  %s3780_s1 = inlined_call_operand.vmem [shape: f32[2,16,64], index: 1, kind: input, shape index: {}]   ;;  %s3781_s2 = inlined_call_operand.vmem [shape: bf16[64,64], index: 2, kind: input, shape index: {}]   ;;  %s3782_s3 = inlined_call_operand.vmem [shape: f32[1,64], index: 3, kind: input, shape index: {}]   ;;  %s3783_s4 = inlined_call_operand.vmem [shape: f32[1,64], index: 4, kind: input, shape index: {}]   ;;  %s3784_s5 = inlined_call_operand.vmem [shape: bf16[7,24,8], index: 5, kind: input, shape index: {}]   ;;  %s3785_s6 = inlined_call_operand.vmem [shape: f32[7,1,8], index: 6, kind: input, shape index: {}]   ;;  %s3786_s7 = inlined_call_operand.vmem [shape: f32[7,1,8], index: 7, kind: input, shape index: {}]   ;;  %s3787_s8 = inlined_call_operand.vmem [shape: bf16[64,64], index: 8, kind: input, shape index: {}]   ;;  %s3788_s9 = inlined_call_operand.vmem [shape: f32[1,64], index: 9, kind: input, shape index: {}]   ;;  %s3789_s10 = inlined_call_operand.vmem [shape: f32[1,64], index: 10, kind: input, shape index: {}]   ;;  %s3790_s11 = inlined_call_operand.vmem [shape: bf16[64,32], index: 11, kind: input, shape index: {}]   ;;  %s3791_s12 = inlined_call_operand.hbm [shape: f32[1,32], index: 12, kind: input, shape index: {}]   ;;  %s3792_s13 = inlined_call_operand.vmem [shape: bf16[32,64], index: 13, kind: input, shape index: {}]   ;;  %s3793_s14 = inlined_call_operand.hbm [shape: f32[1,64], index: 14, kind: input, shape index: {}]   ;;  %s3794_s15 = inlined_call_operand.vmem [shape: f32[2,16,64], index: 15, kind: output, shape index: {}]  }
   0x1   :  { %21 = vsyncpa [#allocation5], 0  ;;  %s2966_s18 = smov [#allocation2]   ;;  %s2967_s20 = smov [#allocation4]  }
   0x2   :  { %s52_s19 = sshll.u32 %s2966_s18, 4  ;;  %s64_s21 = sshll.u32 %s2967_s20, 4  ;;  %s53_s19 = int_to_ptr.vmem [resolvable:$true] %s52_s19  ;;  %s65_s21 = int_to_ptr.vmem [resolvable:$true] %s64_s21 }
   0x3   :  { %s2930_s22 = scalar_lea.vmem %s53_s19, 16  ;;  %s2934_s23 = scalar_lea.vmem %s53_s19, 32 }
   0x4   :  { %p2931_p0 = scmp.ne.s32.totalorder %s53_s19, %s2930_s22  ;;  %p2935_p1 = scmp.lt.s32.totalorder %s53_s19, %s53_s19 }
   0x5   :  { %p2936_p2 = scmp.lt.s32.totalorder %s2934_s23, %s2930_s22 }
   0x7   :  { %p2937_p3 = por %p2936_p2, %p2935_p1 }
   0x9   :  { %p2938_p4 = pnand %p2937_p3, %p2931_p0 }
   0xb   :  { %2941 = shalt.err (!%p2938_p4)
}
   0xc   :  { %55 = dma.hbm_to_vmem [thread:$0]  %s3791_s12, 16, %s53_s19, [#allocation3]  }
   0xd   :  { %s2950_s26 = scalar_lea.vmem %s65_s21, 16  ;;  %s2954_s27 = scalar_lea.vmem %s65_s21, 32 }
   0xe   :  { %p2951_p5 = scmp.ne.s32.totalorder %s65_s21, %s2950_s26  ;;  %p2955_p6 = scmp.lt.s32.totalorder %s65_s21, %s65_s21 }
   0xf   :  { %p2956_p7 = scmp.lt.s32.totalorder %s2954_s27, %s2950_s26 }
  0x11   :  { %p2957_p8 = por %p2956_p7, %p2955_p6 }
  0x13   :  { %p2958_p9 = pnand %p2957_p8, %p2951_p5 }
  0x15   :  { %2961 = shalt.err (!%p2958_p9)
}
  0x16   :  { %67 = dma.hbm_to_vmem [thread:$0]  %s3793_s14, 16, %s65_s21, [#allocation5]  }
  0x17   :  { %2962 = dma.done.wait [#allocation3], 16  }
  0x18   :  { %2963 = vsyncadd [#allocation3], 4294967280 }
  0x19   :  { %2964 = dma.done.wait [#allocation5], 16  }
  0x1a   :  { %2965 = vsyncadd [#allocation5], 4294967280  ;;  %v2872_v0 = vld [vmem:[%s3781_s2 + $0x18] sm:$0xff]   ;;  %v2873_v1 = vld [vmem:[%s3781_s2 + $0x10] sm:$0xff]   ;;  %vm121_vm0 = vcmask 523264   ;;  %vm348_vm1 = vcmask 1043456  }
  0x1b   :  { %2548 = vmatprep.subr.bf16.mxu0 %v2872_v0  ;;  %v2874_v2 = vld [vmem:[%s3781_s2 + $0x8] sm:$0xff]   ;;  %v75_v3 = vld [vmem:[%s3779_s0] sm:$0xff]  ;;  %v77_v8 = vld [vmem:[%s3779_s0 + $0x10] sm:$0xff]  ;;  %vm250_vm2 = vcmask 1042432   ;;  %vm294_vm3 = vcmask 1041408   ;;  %vm271_vm4 = vcmask 1044480  }
  0x1c   :  { %2549 = vmatpush3.bf16.msra.mxu0 %v2872_v0  ;;  %v76_v4 = vld [vmem:[%s3779_s0 + $0x8] sm:$0xff]  ;;  %v79_v5 = vld [vmem:[%s3780_s1] sm:$0xff]  ;;  %v78_v9 = vld [vmem:[%s3779_s0 + $0x18] sm:$0xff]  ;;  %s2968_s23 = smov 16   ;;  %s2969_s24 = smov 8   ;;  %vm317_vm5 = vcmask 64512  }
  0x1d   :  { %2550 = vmatprep.subr.bf16.mxu0 %v2873_v1  ;;  %v80_v6 = vld [vmem:[%s3780_s1 + $0x8] sm:$0xff]  ;;  %v3090_v7 = vadd.f32 %v79_v5, %v75_v3  ;;  %v2875_v10 = vld [vmem:[%s3781_s2] sm:$0xff]   ;;  %v81_v12 = vld [vmem:[%s3780_s1 + $0x10] sm:$0xff]  ;;  %s2970_s25 = smov 120   ;;  %vm322_vm6 = vcmask 130048   ;;  %vm341_vm7 = vcmask 195584  }
  0x1e   :  { %v3101_v11 = vadd.f32 %v80_v6, %v76_v4  ;;  %v82_v13 = vld [vmem:[%s3780_s1 + $0x18] sm:$0xff]  ;;  %v3112_v15 = vadd.f32 %v81_v12, %v77_v8  ;;  %v2407_v0 = vld [vmem:[%s3782_s3] ss:$0 sm:$0xff]  ;;  %v2876_v12 = vld [vmem:[%s3784_s5 + $0x8] ss:$0 sps:$4 sm:$0xff]   ;;  %s2971_s18 = smov 112  }
  0x1f   :  { %v3114_v16 = vadd.f32 %v82_v13, %v78_v9  ;;  %v2408_v5 = vld [vmem:[%s3783_s4] ss:$0 sm:$0xff]  ;;  %2648 = vmatprep.subr.msk.bf16.mxu1 %vm348_vm1, %v2876_v12  ;;  %s2972_s3 = smov 104   ;;  %s2973_s12 = smov 96   ;;  %vm1987_vm8 = vcmask 261120   ;;  %vm1992_vm9 = vcmask 326656  }
  0x20   :  { %2551 = vmatpush3.bf16.msra.mxu0 %v2873_v1  ;;  %v87_v14 = vpack.c.bf16 %v3101_v11, %v3090_v7  ;;  %s2974_s21 = smov 88   ;;  %s2975_s30 = smov 80   ;;  %vm1997_vm10 = vcmask 392192   ;;  %vm2002_vm11 = vcmask 457728   ;;  %vm2981_vm12 = vmmov 0  }
  0x21   :  { %2552 = vmatprep.subr.bf16.mxu0 %v2874_v2  ;;  %v88_v17 = vpack.c.bf16 %v3114_v16, %v3112_v15  ;;  %vm2206_vm13 = vcmask 1041409  }
  0x22   :  { %2556 = vmatprep.mubr.msk.bf16.mxu0 %vm121_vm0, %v87_v14 }
  0x24   :  { %2553 = vmatpush3.bf16.msra.mxu0 %v2874_v2 }
  0x25   :  { %2554 = vmatprep.subr.bf16.mxu0 %v2875_v10 }
  0x28   :  { %2555 = vmatpush3.bf16.msra.mxu0 %v2875_v10 }
  0x2b   :  { %2557 = vmatmul.mubr.msk.bf16.vlgmr.msra.gmra.mxu0 %vm121_vm0, %v88_v17 }
  0xeb   :  { %v2558_v18 = vpop.f32.mrf.mxu0 }
  0xec   :  { %v179_v23 = vmax.f32 %v2558_v18, 0.0 }
  0xed   :  { %v162_v19 = vpop.f32.mrf.mxu0 }
  0xee   :  { %v177_v21 = vmax.f32 %v162_v19, 0.0  ;;  %v186_v29 = vsel %vm121_vm0, %v179_v23, 0.0  ;;  %v350_v19 = vsel %vm348_vm1, %v2876_v12, 0 }
  0xef   :  { %v2559_v20 = vpop.f32.mrf.mxu0  ;;  %2561 = vmatpush3.bf16.msra.mxu1 %v350_v19 }
  0xf0   :  { %v183_v25 = vsel %vm121_vm0, %v177_v21, 0.0  ;;  %v180_v26 = vmax.f32 %v2559_v20, 0.0 }
  0xf1   :  { %v165_v22 = vpop.f32.mrf.mxu0 }
  0xf2   :  { %v178_v24 = vmax.f32 %v165_v22, 0.0  ;;  %v188_v31 = vsel %vm121_vm0, %v180_v26, 0.0 }
  0xf4   :  { %v184_v27 = vsel %vm121_vm0, %v178_v24, 0.0 }
  0xf5   :  { %v185_v28 = vadd.f32 %v184_v27, %v183_v25 }
  0xf7   :  { %v187_v30 = vadd.f32 %v186_v29, %v185_v28  ;;  %v2877_v28 = vld [vmem:[%s3784_s5] sm:$0xff]  }
  0xf8   :  { %2562 = vmatprep.subr.bf16.mxu1 %v2877_v28 }
  0xf9   :  { %v189_v32 = vadd.f32 %v188_v31, %v187_v30  ;;  %2563 = vmatpush3.bf16.msra.mxu1 %v2877_v28 }
  0xfb   :  { %v190_v33 = vrot.slane %v189_v32, 4 }
  0xfd   :  { %v191_v34 = vadd.f32 %v190_v33, %v189_v32 }
  0xff   :  { %v192_v35 = vrot.slane %v191_v34, 2 }
 0x101   :  { %v193_v36 = vadd.f32 %v192_v35, %v191_v34 }
 0x103   :  { %v194_v37 = vrot.slane %v193_v36, 1 }
 0x105   :  { %v195_v38 = vadd.f32 %v194_v37, %v193_v36 }
 0x107   :  { %v197_v39 = vmul.f32 0.03125, %v195_v38 }
 0x109   :  { %v198_v40 = vsub.f32 %v177_v21, %v197_v39  ;;  %v199_v41 = vsub.f32 %v178_v24, %v197_v39  ;;  %v200_v42 = vsub.f32 %v179_v23, %v197_v39  ;;  %v201_v43 = vsub.f32 %v180_v26, %v197_v39 }
 0x10b   :  { %v202_v44 = vmul.f32 %v198_v40, %v198_v40  ;;  %v203_v45 = vmul.f32 %v199_v41, %v199_v41  ;;  %v204_v46 = vmul.f32 %v200_v42, %v200_v42  ;;  %v205_v47 = vmul.f32 %v201_v43, %v201_v43 }
 0x10d   :  { %v206_v48 = vsel %vm121_vm0, %v202_v44, 0.0  ;;  %v207_v49 = vsel %vm121_vm0, %v203_v45, 0.0  ;;  %v209_v51 = vsel %vm121_vm0, %v204_v46, 0.0  ;;  %v211_v53 = vsel %vm121_vm0, %v205_v47, 0.0 }
 0x10e   :  { %v208_v50 = vadd.f32 %v207_v49, %v206_v48 }
 0x110   :  { %v210_v52 = vadd.f32 %v209_v51, %v208_v50 }
 0x112   :  { %v212_v54 = vadd.f32 %v211_v53, %v210_v52 }
 0x114   :  { %v213_v55 = vrot.slane %v212_v54, 4 }
 0x116   :  { %v214_v56 = vadd.f32 %v213_v55, %v212_v54 }
 0x118   :  { %v215_v57 = vrot.slane %v214_v56, 2 }
 0x11a   :  { %v216_v58 = vadd.f32 %v215_v57, %v214_v56 }
 0x11c   :  { %v217_v59 = vrot.slane %v216_v58, 1 }
 0x11e   :  { %v218_v60 = vadd.f32 %v217_v59, %v216_v58 }
 0x120   :  { %v219_v61 = vmul.f32 0.03125, %v218_v60 }
 0x122   :  { %v220_v62 = vadd.f32 1e-05, %v219_v61 }
 0x124   :  { %2900 = vrsqrt.f32 %v220_v62 }
 0x131   :  { %v2901_v63 = vpop.eup %2900 }
 0x132   :  { %v222_v1 = vmul.f32 %v2901_v63, %v198_v40  ;;  %v223_v2 = vmul.f32 %v2901_v63, %v199_v41  ;;  %v224_v3 = vmul.f32 %v2901_v63, %v200_v42  ;;  %v225_v4 = vmul.f32 %v2901_v63, %v201_v43 }
 0x134   :  { %v232_v6 = vmul.f32 %v2407_v0, %v222_v1  ;;  %v233_v8 = vmul.f32 %v2407_v0, %v223_v2  ;;  %v234_v9 = vmul.f32 %v2407_v0, %v224_v3  ;;  %v235_v10 = vmul.f32 %v2407_v0, %v225_v4 }
 0x136   :  { %v3136_v13 = vadd.f32 %v2408_v5, %v232_v6  ;;  %v3138_v14 = vadd.f32 %v2408_v5, %v233_v8  ;;  %v3140_v17 = vadd.f32 %v2408_v5, %v234_v9  ;;  %v3142_v18 = vadd.f32 %v2408_v5, %v235_v10 }
 0x138   :  { %v251_v20 = vrot.slane %v3136_v13, 5  ;;  %v252_v21 = vrot.slane %v3138_v14, 5  ;;  %v254_v22 = vrot.slane %v3140_v17, 5  ;;  %v255_v23 = vrot.slane %v3142_v18, 5 }
 0x13a   :  { %v253_v24 = vsel %vm250_vm2, %v251_v20, %v252_v21  ;;  %v263_v25 = vsel %vm250_vm2, 0.0, %v251_v20  ;;  %v265_v26 = vsel %vm250_vm2, %v252_v21, 0.0  ;;  %v256_v27 = vsel %vm250_vm2, %v254_v22, %v255_v23 }
 0x13b   :  { %v295_v29 = vrot.slane %v263_v25, 6  ;;  %v296_v30 = vrot.slane %v253_v24, 6  ;;  %v298_v31 = vrot.slane %v265_v26, 6  ;;  %v272_v32 = vrot.slane %v263_v25, 3 }
 0x13c   :  { %v273_v33 = vrot.slane %v253_v24, 3  ;;  %v275_v34 = vrot.slane %v265_v26, 3  ;;  %v264_v35 = vsel %vm250_vm2, 0.0, %v254_v22  ;;  %v266_v36 = vsel %vm250_vm2, %v255_v23, 0.0 }
 0x13d   :  { %v297_v37 = vsel %vm294_vm3, %v295_v29, %v296_v30  ;;  %v299_v38 = vsel %vm294_vm3, %v296_v30, %v298_v31  ;;  %v300_v39 = vrot.slane %v264_v35, 6  ;;  %v301_v40 = vrot.slane %v256_v27, 6 }
 0x13e   :  { %v2682_v41 = vpack.i.bf16 %v299_v38, %v297_v37  ;;  %v274_v42 = vsel %vm271_vm4, %v272_v32, %v273_v33  ;;  %v276_v43 = vsel %vm271_vm4, %v273_v33, %v275_v34  ;;  %v303_v44 = vrot.slane %v266_v36, 6 }
 0x13f   :  { %v2672_v45 = vpack.i.bf16 %v276_v43, %v274_v42  ;;  %v302_v46 = vsel %vm294_vm3, %v300_v39, %v301_v40  ;;  %v277_v47 = vrot.slane %v264_v35, 3  ;;  %v278_v48 = vrot.slane %v256_v27, 3 }
 0x140   :  { %2683 = vrot.lane.b32.xlu1 %v2682_v41, %s2968_s23  ;;  %v304_v49 = vsel %vm294_vm3, %v301_v40, %v303_v44  ;;  %v280_v50 = vrot.slane %v266_v36, 3 }
 0x141   :  { %2673 = vrot.lane.b32.xlu0 %v2672_v45, %s2969_s24  ;;  %v279_v51 = vsel %vm271_vm4, %v277_v47, %v278_v48  ;;  %v2687_v52 = vpack.i.bf16 %v304_v49, %v302_v46 }
 0x142   :  { %v281_v53 = vsel %vm271_vm4, %v278_v48, %v280_v50 }
 0x143   :  { %v2677_v54 = vpack.i.bf16 %v281_v53, %v279_v51 }
 0x144   :  { %2688 = vrot.lane.b32.xlu1 %v2687_v52, %s2968_s23 }
 0x145   :  { %2678 = vrot.lane.b32.xlu0 %v2677_v54, %s2969_s24 }
 0x148   :  { %471 = vrot.lane.b32.xlu1 %v3138_v14, %s2970_s25 }
 0x149   :  { %469 = vrot.lane.b32.xlu0 %v3136_v13, %s2970_s25 }
 0x14c   :  { %475 = vrot.lane.b32.xlu1 %v3142_v18, %s2970_s25 }
 0x14d   :  { %473 = vrot.lane.b32.xlu0 %v3140_v17, %s2970_s25 }
 0x1b2   :  { %v2684_v55 = vpop.permute.xlu1 %2683 }
 0x1b3   :  { %v2686_v56 = vunpack.i.h.bf16 %v2684_v55  ;;  %v2685_v57 = vunpack.i.l.bf16 %v2684_v55  ;;  %v2674_v58 = vpop.permute.xlu0 %2673 }
 0x1b4   :  { %v2676_v59 = vunpack.i.h.bf16 %v2674_v58  ;;  %v2675_v60 = vunpack.i.l.bf16 %v2674_v58 }
 0x1b6   :  { %v2689_v61 = vpop.permute.xlu1 %2688  ;;  %v318_v62 = vsel %vm317_vm5, %v263_v25, %v2675_v60  ;;  %v319_v63 = vsel %vm317_vm5, %v253_v24, %v2676_v59 }
 0x1b7   :  { %v2691_v0 = vunpack.i.h.bf16 %v2689_v61  ;;  %v2690_v1 = vunpack.i.l.bf16 %v2689_v61  ;;  %v2679_v2 = vpop.permute.xlu0 %2678  ;;  %v323_v3 = vsel %vm322_vm6, %v318_v62, %v2685_v57  ;;  %v324_v4 = vsel %vm322_vm6, %v319_v63, %v2686_v56 }
 0x1b8   :  { %v2681_v5 = vunpack.i.h.bf16 %v2679_v2  ;;  %v2680_v6 = vunpack.i.l.bf16 %v2679_v2  ;;  %v327_v8 = vpack.c.bf16 %v324_v4, %v323_v3 }
 0x1ba   :  { %v321_v9 = vsel %vm317_vm5, %v256_v27, %v2681_v5  ;;  %v320_v10 = vsel %vm317_vm5, %v264_v35, %v2680_v6  ;;  %2564 = vmatprep.mubr.msk.bf16.mxu1 %vm341_vm7, %v327_v8  ;;  %v472_v3 = vpop.permute.xlu1 %471  ;;  %v2413_v5 = vld [vmem:[%s3785_s6] ss:$0 sm:$0xff] }
 0x1bb   :  { %v325_v12 = vsel %vm322_vm6, %v320_v10, %v2690_v1  ;;  %v326_v19 = vsel %vm322_vm6, %v321_v9, %v2691_v0  ;;  %v470_v4 = vpop.permute.xlu0 %469 }
 0x1bc   :  { %v328_v20 = vpack.c.bf16 %v326_v19, %v325_v12  ;;  %v2414_v12 = vld [vmem:[%s3786_s7] ss:$0 sm:$0xff] }
 0x1be   :  { %2565 = vmatmul.mubr.msk.bf16.vlgmr.msra.gmra.mxu1 %vm341_vm7, %v328_v20 }
 0x27e   :  { %v2566_v21 = vpop.f32.mrf.mxu1 }
 0x27f   :  { %v403_v26 = vmax.f32 %v2566_v21, 0.0 }
 0x280   :  { %v386_v22 = vpop.f32.mrf.mxu1 }
 0x281   :  { %v401_v24 = vmax.f32 %v386_v22, 0.0  ;;  %v410_v32 = vsel %vm317_vm5, %v403_v26, 0.0 }
 0x282   :  { %v2567_v23 = vpop.f32.mrf.mxu1 }
 0x283   :  { %v407_v27 = vsel %vm317_vm5, %v401_v24, 0.0  ;;  %v404_v29 = vmax.f32 %v2567_v23, 0.0 }
 0x284   :  { %v389_v25 = vpop.f32.mrf.mxu1 }
 0x285   :  { %v402_v28 = vmax.f32 %v389_v25, 0.0  ;;  %v412_v34 = vsel %vm317_vm5, %v404_v29, 0.0 }
 0x287   :  { %v408_v30 = vsel %vm317_vm5, %v402_v28, 0.0 }
 0x288   :  { %v409_v31 = vadd.f32 %v408_v30, %v407_v27  ;;  %v474_v27 = vpop.permute.xlu0 %473 }
 0x28a   :  { %v411_v33 = vadd.f32 %v410_v32, %v409_v31 }
 0x28c   :  { %v413_v35 = vadd.f32 %v412_v34, %v411_v33  ;;  %v2878_v33 = vld [vmem:[%s3784_s5 + $0x14] ss:$0 sps:$4 sm:$0xff]  }
 0x28d   :  { %2649 = vmatprep.subr.msk.bf16.mxu1 %vm348_vm1, %v2878_v33 }
 0x28e   :  { %v414_v36 = vrot.slane %v413_v35, 4 }
 0x290   :  { %v415_v37 = vadd.f32 %v414_v36, %v413_v35 }
 0x292   :  { %v416_v38 = vrot.slane %v415_v37, 2 }
 0x294   :  { %v417_v39 = vadd.f32 %v416_v38, %v415_v37  ;;  %v583_v38 = vsel %vm348_vm1, %v2878_v33, 0 }
 0x295   :  { %2569 = vmatpush3.bf16.msra.mxu1 %v583_v38 }
 0x296   :  { %v418_v40 = vrot.slane %v417_v39, 1 }
 0x298   :  { %v419_v41 = vadd.f32 %v418_v40, %v417_v39 }
 0x29a   :  { %v420_v42 = vmul.f32 0.03125, %v419_v41 }
 0x29c   :  { %v421_v43 = vsub.f32 %v401_v24, %v420_v42  ;;  %v422_v44 = vsub.f32 %v402_v28, %v420_v42  ;;  %v423_v45 = vsub.f32 %v403_v26, %v420_v42  ;;  %v424_v46 = vsub.f32 %v404_v29, %v420_v42  ;;  %v476_v28 = vpop.permute.xlu1 %475 }
 0x29e   :  { %v425_v47 = vmul.f32 %v421_v43, %v421_v43  ;;  %v426_v48 = vmul.f32 %v422_v44, %v422_v44  ;;  %v427_v49 = vmul.f32 %v423_v45, %v423_v45  ;;  %v428_v50 = vmul.f32 %v424_v46, %v424_v46 }
 0x2a0   :  { %v429_v51 = vsel %vm317_vm5, %v425_v47, 0.0  ;;  %v430_v52 = vsel %vm317_vm5, %v426_v48, 0.0  ;;  %v432_v54 = vsel %vm317_vm5, %v427_v49, 0.0  ;;  %v434_v56 = vsel %vm317_vm5, %v428_v50, 0.0  ;;  %v2879_v47 = vld [vmem:[%s3784_s5 + $0xc] sm:$0xff]  }
 0x2a1   :  { %v431_v53 = vadd.f32 %v430_v52, %v429_v51  ;;  %2570 = vmatprep.subr.bf16.mxu1 %v2879_v47 }
 0x2a2   :  { %2571 = vmatpush3.bf16.msra.mxu1 %v2879_v47 }
 0x2a3   :  { %v433_v55 = vadd.f32 %v432_v54, %v431_v53 }
 0x2a5   :  { %v435_v57 = vadd.f32 %v434_v56, %v433_v55 }
 0x2a7   :  { %v436_v58 = vrot.slane %v435_v57, 4 }
 0x2a9   :  { %v437_v59 = vadd.f32 %v436_v58, %v435_v57 }
 0x2ab   :  { %v438_v60 = vrot.slane %v437_v59, 2 }
 0x2ad   :  { %v439_v61 = vadd.f32 %v438_v60, %v437_v59 }
 0x2af   :  { %v440_v62 = vrot.slane %v439_v61, 1 }
 0x2b1   :  { %v441_v63 = vadd.f32 %v440_v62, %v439_v61 }
 0x2b3   :  { %v442_v0 = vmul.f32 0.03125, %v441_v63 }
 0x2b5   :  { %v443_v1 = vadd.f32 1e-05, %v442_v0 }
 0x2b7   :  { %2902 = vrsqrt.f32 %v443_v1 }
 0x2c4   :  { %v2903_v2 = vpop.eup %2902 }
 0x2c5   :  { %v445_v6 = vmul.f32 %v2903_v2, %v421_v43  ;;  %v446_v8 = vmul.f32 %v2903_v2, %v422_v44  ;;  %v447_v9 = vmul.f32 %v2903_v2, %v423_v45  ;;  %v448_v10 = vmul.f32 %v2903_v2, %v424_v46 }
 0x2c7   :  { %v455_v19 = vmul.f32 %v2413_v5, %v445_v6  ;;  %v456_v20 = vmul.f32 %v2413_v5, %v446_v8  ;;  %v457_v21 = vmul.f32 %v2413_v5, %v447_v9  ;;  %v458_v22 = vmul.f32 %v2413_v5, %v448_v10 }
 0x2c9   :  { %v3199_v23 = vadd.f32 %v2414_v12, %v456_v20  ;;  %v3201_v24 = vadd.f32 %v2414_v12, %v457_v21  ;;  %v3203_v25 = vadd.f32 %v2414_v12, %v458_v22  ;;  %v3205_v26 = vadd.f32 %v2414_v12, %v455_v19 }
 0x2cb   :  { %v482_v29 = vadd.f32 %v472_v3, %v3199_v23  ;;  %v483_v30 = vadd.f32 %v474_v27, %v3201_v24  ;;  %v484_v31 = vadd.f32 %v476_v28, %v3203_v25  ;;  %v481_v32 = vadd.f32 %v470_v4, %v3205_v26 }
 0x2cd   :  { %v490_v34 = vrot.slane %v482_v29, 5  ;;  %v492_v35 = vrot.slane %v483_v30, 5  ;;  %v493_v36 = vrot.slane %v484_v31, 5  ;;  %v489_v37 = vrot.slane %v481_v32, 5 }
 0x2cf   :  { %v494_v39 = vsel %vm250_vm2, %v492_v35, %v493_v36  ;;  %v502_v40 = vsel %vm250_vm2, 0.0, %v492_v35  ;;  %v504_v41 = vsel %vm250_vm2, %v493_v36, 0.0  ;;  %v491_v42 = vsel %vm250_vm2, %v489_v37, %v490_v34 }
 0x2d0   :  { %v514_v43 = vrot.slane %v502_v40, 3  ;;  %v515_v44 = vrot.slane %v494_v39, 3  ;;  %v517_v45 = vrot.slane %v504_v41, 3  ;;  %v501_v46 = vsel %vm250_vm2, 0.0, %v489_v37 }
 0x2d1   :  { %v503_v48 = vsel %vm250_vm2, %v490_v34, 0.0  ;;  %v509_v49 = vrot.slane %v501_v46, 3  ;;  %v510_v50 = vrot.slane %v491_v42, 3  ;;  %v536_v51 = vrot.slane %v502_v40, 6 }
 0x2d2   :  { %v516_v52 = vsel %vm271_vm4, %v514_v43, %v515_v44  ;;  %v518_v53 = vsel %vm271_vm4, %v515_v44, %v517_v45  ;;  %v512_v54 = vrot.slane %v503_v48, 3  ;;  %v537_v55 = vrot.slane %v494_v39, 6 }
 0x2d3   :  { %v2697_v56 = vpack.i.bf16 %v518_v53, %v516_v52  ;;  %v511_v57 = vsel %vm271_vm4, %v509_v49, %v510_v50  ;;  %v539_v58 = vrot.slane %v504_v41, 6  ;;  %v531_v59 = vrot.slane %v501_v46, 6 }
 0x2d4   :  { %v513_v60 = vsel %vm271_vm4, %v510_v50, %v512_v54  ;;  %v538_v61 = vsel %vm294_vm3, %v536_v51, %v537_v55  ;;  %v532_v62 = vrot.slane %v491_v42, 6  ;;  %v534_v63 = vrot.slane %v503_v48, 6 }
 0x2d5   :  { %2698 = vrot.lane.b32.xlu1 %v2697_v56, %s2969_s24  ;;  %v2692_v0 = vpack.i.bf16 %v513_v60, %v511_v57  ;;  %v540_v1 = vsel %vm294_vm3, %v537_v55, %v539_v58 }
 0x2d6   :  { %v533_v2 = vsel %vm294_vm3, %v531_v59, %v532_v62  ;;  %v535_v3 = vsel %vm294_vm3, %v532_v62, %v534_v63  ;;  %v2707_v4 = vpack.i.bf16 %v540_v1, %v538_v61 }
 0x2d7   :  { %2693 = vrot.lane.b32.xlu0 %v2692_v0, %s2969_s24  ;;  %v2702_v5 = vpack.i.bf16 %v535_v3, %v533_v2 }
 0x2d9   :  { %2708 = vrot.lane.b32.xlu1 %v2707_v4, %s2968_s23 }
 0x2db   :  { %2703 = vrot.lane.b32.xlu0 %v2702_v5, %s2968_s23 }
 0x2dd   :  { %706 = vrot.lane.b32.xlu1 %v3138_v14, %s2971_s18 }
 0x2df   :  { %704 = vrot.lane.b32.xlu0 %v3136_v13, %s2971_s18 }
 0x2e1   :  { %710 = vrot.lane.b32.xlu1 %v3142_v18, %s2971_s18 }
 0x2e3   :  { %708 = vrot.lane.b32.xlu0 %v3140_v17, %s2971_s18 }
 0x347   :  { %v2699_v6 = vpop.permute.xlu1 %2698 }
 0x348   :  { %v2701_v8 = vunpack.i.h.bf16 %v2699_v6  ;;  %v2700_v9 = vunpack.i.l.bf16 %v2699_v6 }
 0x349   :  { %v2694_v10 = vpop.permute.xlu0 %2693 }
 0x34a   :  { %v2696_v12 = vunpack.i.h.bf16 %v2694_v10  ;;  %v2695_v19 = vunpack.i.l.bf16 %v2694_v10  ;;  %v556_v28 = vsel %vm317_vm5, %v494_v39, %v2701_v8  ;;  %v555_v27 = vsel %vm317_vm5, %v502_v40, %v2700_v9 }
 0x34b   :  { %v2709_v20 = vpop.permute.xlu1 %2708 }
 0x34c   :  { %v2711_v21 = vunpack.i.h.bf16 %v2709_v20  ;;  %v2710_v22 = vunpack.i.l.bf16 %v2709_v20  ;;  %v554_v34 = vsel %vm317_vm5, %v491_v42, %v2696_v12  ;;  %v553_v35 = vsel %vm317_vm5, %v501_v46, %v2695_v19 }
 0x34d   :  { %v2704_v29 = vpop.permute.xlu0 %2703 }
 0x34e   :  { %v559_v30 = vsel %vm322_vm6, %v555_v27, %v2710_v22  ;;  %v560_v31 = vsel %vm322_vm6, %v556_v28, %v2711_v21  ;;  %v2706_v32 = vunpack.i.h.bf16 %v2704_v29  ;;  %v2705_v33 = vunpack.i.l.bf16 %v2704_v29 }
 0x34f   :  { %v562_v36 = vpack.c.bf16 %v560_v31, %v559_v30 }
 0x350   :  { %v557_v37 = vsel %vm322_vm6, %v553_v35, %v2705_v33  ;;  %v558_v38 = vsel %vm322_vm6, %v554_v34, %v2706_v32  ;;  %v707_v34 = vpop.permute.xlu1 %706 }
 0x351   :  { %v561_v41 = vpack.c.bf16 %v558_v38, %v557_v37  ;;  %v705_v35 = vpop.permute.xlu0 %704 }
 0x353   :  { %2572 = vmatprep.mubr.msk.bf16.mxu1 %vm341_vm7, %v561_v41 }
 0x354   :  { %2573 = vmatmul.mubr.msk.bf16.vlgmr.msra.gmra.mxu1 %vm341_vm7, %v562_v36  ;;  %v2424_v36 = vld [vmem:[%s3785_s6 + $0x1] ss:$0 sm:$0xff] }
 0x414   :  { %v2574_v39 = vpop.f32.mrf.mxu1 }
 0x415   :  { %v636_v47 = vmax.f32 %v2574_v39, 0.0 }
 0x416   :  { %v619_v40 = vpop.f32.mrf.mxu1 }
 0x417   :  { %v634_v44 = vmax.f32 %v619_v40, 0.0  ;;  %v645_v51 = vsel %vm317_vm5, %v636_v47, 0.0  ;;  %v2425_v40 = vld [vmem:[%s3786_s7 + $0x1] ss:$0 sm:$0xff] }
 0x418   :  { %v2575_v43 = vpop.f32.mrf.mxu1 }
 0x419   :  { %v642_v42 = vsel %vm317_vm5, %v634_v44, 0.0  ;;  %v637_v46 = vmax.f32 %v2575_v43, 0.0 }
 0x41a   :  { %v622_v45 = vpop.f32.mrf.mxu1 }
 0x41b   :  { %v635_v48 = vmax.f32 %v622_v45, 0.0  ;;  %v647_v53 = vsel %vm317_vm5, %v637_v46, 0.0 }
 0x41d   :  { %v643_v49 = vsel %vm317_vm5, %v635_v48, 0.0 }
 0x41e   :  { %v644_v50 = vadd.f32 %v643_v49, %v642_v42 }
 0x420   :  { %v646_v52 = vadd.f32 %v645_v51, %v644_v50  ;;  %v711_v50 = vpop.permute.xlu1 %710  ;;  %v709_v51 = vpop.permute.xlu0 %708 }
 0x422   :  { %v648_v54 = vadd.f32 %v647_v53, %v646_v52 }
 0x424   :  { %v649_v55 = vrot.slane %v648_v54, 4 }
 0x426   :  { %v650_v56 = vadd.f32 %v649_v55, %v648_v54 }
 0x428   :  { %v651_v57 = vrot.slane %v650_v56, 2 }
 0x42a   :  { %v652_v58 = vadd.f32 %v651_v57, %v650_v56  ;;  %v2880_v56 = vld [vmem:[%s3784_s5 + $0x20] ss:$0 sps:$4 sm:$0xff]  }
 0x42b   :  { %2650 = vmatprep.subr.msk.bf16.mxu0 %vm348_vm1, %v2880_v56 }
 0x42c   :  { %v653_v59 = vrot.slane %v652_v58, 1 }
 0x42e   :  { %v654_v60 = vadd.f32 %v653_v59, %v652_v58 }
 0x430   :  { %v655_v61 = vmul.f32 0.03125, %v654_v60 }
 0x432   :  { %v656_v62 = vsub.f32 %v634_v44, %v655_v61  ;;  %v657_v63 = vsub.f32 %v635_v48, %v655_v61  ;;  %v658_v0 = vsub.f32 %v636_v47, %v655_v61  ;;  %v659_v1 = vsub.f32 %v637_v46, %v655_v61 }
 0x434   :  { %v660_v2 = vmul.f32 %v656_v62, %v656_v62  ;;  %v661_v3 = vmul.f32 %v657_v63, %v657_v63  ;;  %v662_v4 = vmul.f32 %v658_v0, %v658_v0  ;;  %v663_v5 = vmul.f32 %v659_v1, %v659_v1 }
 0x436   :  { %v664_v6 = vsel %vm317_vm5, %v660_v2, 0.0  ;;  %v665_v8 = vsel %vm317_vm5, %v661_v3, 0.0  ;;  %v667_v10 = vsel %vm317_vm5, %v662_v4, 0.0  ;;  %v669_v19 = vsel %vm317_vm5, %v663_v5, 0.0 }
 0x437   :  { %v666_v9 = vadd.f32 %v665_v8, %v664_v6 }
 0x439   :  { %v668_v12 = vadd.f32 %v667_v10, %v666_v9  ;;  %v2881_v9 = vld [vmem:[%s3784_s5 + $0x18] sm:$0xff]  }
 0x43b   :  { %v670_v20 = vadd.f32 %v669_v19, %v668_v12 }
 0x43d   :  { %v671_v21 = vrot.slane %v670_v20, 4 }
 0x43f   :  { %v672_v22 = vadd.f32 %v671_v21, %v670_v20 }
 0x441   :  { %v673_v28 = vrot.slane %v672_v22, 2 }
 0x443   :  { %v674_v27 = vadd.f32 %v673_v28, %v672_v22 }
 0x445   :  { %v675_v29 = vrot.slane %v674_v27, 1 }
 0x447   :  { %v676_v30 = vadd.f32 %v675_v29, %v674_v27 }
 0x449   :  { %v677_v31 = vmul.f32 0.03125, %v676_v30 }
 0x44b   :  { %v678_v32 = vadd.f32 1e-05, %v677_v31 }
 0x44d   :  { %2904 = vrsqrt.f32 %v678_v32 }
 0x45a   :  { %v2905_v33 = vpop.eup %2904 }
 0x45b   :  { %v680_v37 = vmul.f32 %v2905_v33, %v656_v62  ;;  %v681_v38 = vmul.f32 %v2905_v33, %v657_v63  ;;  %v682_v41 = vmul.f32 %v2905_v33, %v658_v0  ;;  %v683_v39 = vmul.f32 %v2905_v33, %v659_v1 }
 0x45c   :  { %v818_v63 = vsel %vm348_vm1, %v2880_v56, 0 }
 0x45d   :  { %v690_v43 = vmul.f32 %v2424_v36, %v680_v37  ;;  %v691_v44 = vmul.f32 %v2424_v36, %v681_v38  ;;  %v692_v45 = vmul.f32 %v2424_v36, %v682_v41  ;;  %v693_v47 = vmul.f32 %v2424_v36, %v683_v39  ;;  %2577 = vmatpush3.bf16.msra.mxu0 %v818_v63 }
 0x45e   :  { %2578 = vmatprep.subr.bf16.mxu0 %v2881_v9 }
 0x45f   :  { %v3265_v48 = vadd.f32 %v2425_v40, %v691_v44  ;;  %v3267_v42 = vadd.f32 %v2425_v40, %v692_v45  ;;  %v3269_v46 = vadd.f32 %v2425_v40, %v693_v47  ;;  %v3271_v49 = vadd.f32 %v2425_v40, %v690_v43 }
 0x461   :  { %v717_v52 = vadd.f32 %v707_v34, %v3265_v48  ;;  %v718_v53 = vadd.f32 %v709_v51, %v3267_v42  ;;  %v719_v54 = vadd.f32 %v711_v50, %v3269_v46  ;;  %v716_v55 = vadd.f32 %v705_v35, %v3271_v49  ;;  %2579 = vmatpush3.bf16.msra.mxu0 %v2881_v9 }
 0x462   :  { %v2817_v57 = vpack.i.bf16 %v3269_v46, %v3267_v42  ;;  %v2812_v58 = vpack.i.bf16 %v3265_v48, %v3271_v49 }
 0x463   :  { %v725_v59 = vrot.slane %v717_v52, 5  ;;  %v727_v60 = vrot.slane %v718_v53, 5  ;;  %v728_v61 = vrot.slane %v719_v54, 5  ;;  %v724_v62 = vrot.slane %v716_v55, 5 }
 0x465   :  { %v729_v0 = vsel %vm250_vm2, %v727_v60, %v728_v61  ;;  %v737_v1 = vsel %vm250_vm2, 0.0, %v727_v60  ;;  %v739_v2 = vsel %vm250_vm2, %v728_v61, 0.0  ;;  %v726_v3 = vsel %vm250_vm2, %v724_v62, %v725_v59 }
 0x466   :  { %v749_v4 = vrot.slane %v737_v1, 3  ;;  %v750_v5 = vrot.slane %v729_v0, 3  ;;  %v752_v6 = vrot.slane %v739_v2, 3  ;;  %v736_v8 = vsel %vm250_vm2, 0.0, %v724_v62 }
 0x467   :  { %v738_v10 = vsel %vm250_vm2, %v725_v59, 0.0  ;;  %v744_v12 = vrot.slane %v736_v8, 3  ;;  %v745_v19 = vrot.slane %v726_v3, 3  ;;  %v771_v20 = vrot.slane %v737_v1, 6 }
 0x468   :  { %v751_v21 = vsel %vm271_vm4, %v749_v4, %v750_v5  ;;  %v753_v22 = vsel %vm271_vm4, %v750_v5, %v752_v6  ;;  %v747_v28 = vrot.slane %v738_v10, 3  ;;  %v772_v27 = vrot.slane %v729_v0, 6 }
 0x469   :  { %v2717_v29 = vpack.i.bf16 %v753_v22, %v751_v21  ;;  %v746_v30 = vsel %vm271_vm4, %v744_v12, %v745_v19  ;;  %v774_v31 = vrot.slane %v739_v2, 6  ;;  %v766_v32 = vrot.slane %v736_v8, 6 }
 0x46a   :  { %v748_v33 = vsel %vm271_vm4, %v745_v19, %v747_v28  ;;  %v773_v34 = vsel %vm294_vm3, %v771_v20, %v772_v27  ;;  %v767_v35 = vrot.slane %v726_v3, 6  ;;  %v769_v36 = vrot.slane %v738_v10, 6 }
 0x46b   :  { %2718 = vrot.lane.b32.xlu1 %v2717_v29, %s2969_s24  ;;  %v2712_v37 = vpack.i.bf16 %v748_v33, %v746_v30  ;;  %v775_v38 = vsel %vm294_vm3, %v772_v27, %v774_v31 }
 0x46c   :  { %v768_v41 = vsel %vm294_vm3, %v766_v32, %v767_v35  ;;  %v770_v39 = vsel %vm294_vm3, %v767_v35, %v769_v36  ;;  %v2727_v40 = vpack.i.bf16 %v775_v38, %v773_v34 }
 0x46d   :  { %2713 = vrot.lane.b32.xlu0 %v2712_v37, %s2969_s24  ;;  %v2722_v43 = vpack.i.bf16 %v770_v39, %v768_v41 }
 0x46f   :  { %2728 = vrot.lane.b32.xlu1 %v2727_v40, %s2968_s23 }
 0x471   :  { %2723 = vrot.lane.b32.xlu0 %v2722_v43, %s2968_s23 }
 0x473   :  { %941 = vrot.lane.b32.xlu1 %v3138_v14, %s2972_s3 }
 0x475   :  { %939 = vrot.lane.b32.xlu0 %v3136_v13, %s2972_s3 }
 0x477   :  { %945 = vrot.lane.b32.xlu1 %v3142_v18, %s2972_s3 }
 0x479   :  { %943 = vrot.lane.b32.xlu0 %v3140_v17, %s2972_s3 }
 0x4dd   :  { %v2719_v44 = vpop.permute.xlu1 %2718 }
 0x4de   :  { %v2721_v45 = vunpack.i.h.bf16 %v2719_v44  ;;  %v2720_v47 = vunpack.i.l.bf16 %v2719_v44 }
 0x4df   :  { %v2714_v50 = vpop.permute.xlu0 %2713 }
 0x4e0   :  { %v2716_v51 = vunpack.i.h.bf16 %v2714_v50  ;;  %v2715_v52 = vunpack.i.l.bf16 %v2714_v50  ;;  %v791_v56 = vsel %vm317_vm5, %v729_v0, %v2721_v45  ;;  %v790_v59 = vsel %vm317_vm5, %v737_v1, %v2720_v47 }
 0x4e1   :  { %v2729_v53 = vpop.permute.xlu1 %2728 }
 0x4e2   :  { %v2731_v54 = vunpack.i.h.bf16 %v2729_v53  ;;  %v2730_v55 = vunpack.i.l.bf16 %v2729_v53  ;;  %v789_v4 = vsel %vm317_vm5, %v726_v3, %v2716_v51  ;;  %v788_v5 = vsel %vm317_vm5, %v736_v8, %v2715_v52 }
 0x4e3   :  { %v2724_v60 = vpop.permute.xlu0 %2723 }
 0x4e4   :  { %v794_v61 = vsel %vm322_vm6, %v790_v59, %v2730_v55  ;;  %v795_v62 = vsel %vm322_vm6, %v791_v56, %v2731_v54  ;;  %v2726_v63 = vunpack.i.h.bf16 %v2724_v60  ;;  %v2725_v2 = vunpack.i.l.bf16 %v2724_v60 }
 0x4e5   :  { %v797_v6 = vpack.c.bf16 %v795_v62, %v794_v61 }
 0x4e6   :  { %v792_v9 = vsel %vm322_vm6, %v788_v5, %v2725_v2  ;;  %v793_v10 = vsel %vm322_vm6, %v789_v4, %v2726_v63 }
 0x4e7   :  { %v796_v12 = vpack.c.bf16 %v793_v10, %v792_v9 }
 0x4e9   :  { %2580 = vmatprep.mubr.msk.bf16.mxu0 %vm341_vm7, %v796_v12 }
 0x4ea   :  { %2581 = vmatmul.mubr.msk.bf16.vlgmr.msra.gmra.mxu0 %vm341_vm7, %v797_v6 }
 0x5aa   :  { %v2582_v0 = vpop.f32.mrf.mxu0 }
 0x5ab   :  { %v871_v22 = vmax.f32 %v2582_v0, 0.0  ;;  %v942_v0 = vpop.permute.xlu1 %941 }
 0x5ac   :  { %v854_v1 = vpop.f32.mrf.mxu0 }
 0x5ad   :  { %v869_v20 = vmax.f32 %v854_v1, 0.0  ;;  %v880_v30 = vsel %vm317_vm5, %v871_v22, 0.0  ;;  %v940_v1 = vpop.permute.xlu0 %939 }
 0x5ae   :  { %v2583_v19 = vpop.f32.mrf.mxu0 }
 0x5af   :  { %v877_v3 = vsel %vm317_vm5, %v869_v20, 0.0  ;;  %v872_v8 = vmax.f32 %v2583_v19, 0.0  ;;  %v2435_v19 = vld [vmem:[%s3785_s6 + $0x2] ss:$0 sm:$0xff] }
 0x5b0   :  { %v857_v21 = vpop.f32.mrf.mxu0 }
 0x5b1   :  { %v870_v28 = vmax.f32 %v857_v21, 0.0  ;;  %v882_v32 = vsel %vm317_vm5, %v872_v8, 0.0 }
 0x5b3   :  { %v878_v27 = vsel %vm317_vm5, %v870_v28, 0.0 }
 0x5b4   :  { %v879_v29 = vadd.f32 %v878_v27, %v877_v3  ;;  %v2436_v3 = vld [vmem:[%s3786_s7 + $0x2] ss:$0 sm:$0xff] }
 0x5b6   :  { %v881_v31 = vadd.f32 %v880_v30, %v879_v29 }
 0x5b8   :  { %v883_v33 = vadd.f32 %v882_v32, %v881_v31 }
 0x5ba   :  { %v884_v34 = vrot.slane %v883_v33, 4 }
 0x5bc   :  { %v885_v35 = vadd.f32 %v884_v34, %v883_v33 }
 0x5be   :  { %v886_v36 = vrot.slane %v885_v35, 2 }
 0x5c0   :  { %v887_v37 = vadd.f32 %v886_v36, %v885_v35  ;;  %v946_v35 = vpop.permute.xlu1 %945  ;;  %v944_v36 = vpop.permute.xlu0 %943 }
 0x5c2   :  { %v888_v38 = vrot.slane %v887_v37, 1 }
 0x5c4   :  { %v889_v41 = vadd.f32 %v888_v38, %v887_v37 }
 0x5c6   :  { %v890_v39 = vmul.f32 0.03125, %v889_v41 }
 0x5c8   :  { %v891_v40 = vsub.f32 %v869_v20, %v890_v39  ;;  %v892_v43 = vsub.f32 %v870_v28, %v890_v39  ;;  %v893_v44 = vsub.f32 %v871_v22, %v890_v39  ;;  %v894_v45 = vsub.f32 %v872_v8, %v890_v39 }
 0x5ca   :  { %v895_v47 = vmul.f32 %v891_v40, %v891_v40  ;;  %v896_v50 = vmul.f32 %v892_v43, %v892_v43  ;;  %v897_v51 = vmul.f32 %v893_v44, %v893_v44  ;;  %v898_v52 = vmul.f32 %v894_v45, %v894_v45 }
 0x5cc   :  { %v899_v53 = vsel %vm317_vm5, %v895_v47, 0.0  ;;  %v900_v54 = vsel %vm317_vm5, %v896_v50, 0.0  ;;  %v902_v56 = vsel %vm317_vm5, %v897_v51, 0.0  ;;  %v904_v60 = vsel %vm317_vm5, %v898_v52, 0.0 }
 0x5cd   :  { %v901_v55 = vadd.f32 %v900_v54, %v899_v53 }
 0x5cf   :  { %v903_v59 = vadd.f32 %v902_v56, %v901_v55 }
 0x5d1   :  { %v905_v61 = vadd.f32 %v904_v60, %v903_v59 }
 0x5d3   :  { %v906_v62 = vrot.slane %v905_v61, 4 }
 0x5d5   :  { %v907_v63 = vadd.f32 %v906_v62, %v905_v61 }
 0x5d7   :  { %v908_v2 = vrot.slane %v907_v63, 2 }
 0x5d9   :  { %v909_v4 = vadd.f32 %v908_v2, %v907_v63  ;;  %v2883_v63 = vld [vmem:[%s3784_s5 + $0x24] sm:$0xff]  }
 0x5db   :  { %v910_v5 = vrot.slane %v909_v4, 1 }
 0x5dd   :  { %v911_v6 = vadd.f32 %v910_v5, %v909_v4 }
 0x5df   :  { %v912_v9 = vmul.f32 0.03125, %v911_v6 }
 0x5e1   :  { %v913_v10 = vadd.f32 1e-05, %v912_v9 }
 0x5e3   :  { %2906 = vrsqrt.f32 %v913_v10 }
 0x5f0   :  { %v2907_v12 = vpop.eup %2906 }
 0x5f1   :  { %v915_v20 = vmul.f32 %v2907_v12, %v891_v40  ;;  %v916_v21 = vmul.f32 %v2907_v12, %v892_v43  ;;  %v917_v22 = vmul.f32 %v2907_v12, %v893_v44  ;;  %v918_v28 = vmul.f32 %v2907_v12, %v894_v45  ;;  %v2882_v40 = vld [vmem:[%s3784_s5 + $0x2c] ss:$0 sps:$4 sm:$0xff]  }
 0x5f2   :  { %2651 = vmatprep.subr.msk.bf16.mxu1 %vm348_vm1, %v2882_v40  ;;  %v1053_v52 = vsel %vm348_vm1, %v2882_v40, 0 }
 0x5f3   :  { %v925_v8 = vmul.f32 %v2435_v19, %v915_v20  ;;  %v926_v27 = vmul.f32 %v2435_v19, %v916_v21  ;;  %v927_v29 = vmul.f32 %v2435_v19, %v917_v22  ;;  %v928_v30 = vmul.f32 %v2435_v19, %v918_v28  ;;  %2585 = vmatpush3.bf16.msra.mxu1 %v1053_v52 }
 0x5f4   :  { %2586 = vmatprep.subr.bf16.mxu1 %v2883_v63 }
 0x5f5   :  { %v3335_v31 = vadd.f32 %v2436_v3, %v926_v27  ;;  %v3337_v32 = vadd.f32 %v2436_v3, %v927_v29  ;;  %v3339_v33 = vadd.f32 %v2436_v3, %v928_v30  ;;  %v3341_v34 = vadd.f32 %v2436_v3, %v925_v8 }
 0x5f7   :  { %v952_v37 = vadd.f32 %v942_v0, %v3335_v31  ;;  %v953_v38 = vadd.f32 %v944_v36, %v3337_v32  ;;  %v954_v41 = vadd.f32 %v946_v35, %v3339_v33  ;;  %v951_v39 = vadd.f32 %v940_v1, %v3341_v34  ;;  %2587 = vmatpush3.bf16.msra.mxu1 %v2883_v63 }
 0x5f8   :  { %v2827_v43 = vpack.i.bf16 %v3339_v33, %v3337_v32  ;;  %v2822_v44 = vpack.i.bf16 %v3335_v31, %v3341_v34 }
 0x5f9   :  { %v960_v45 = vrot.slane %v952_v37, 5  ;;  %v962_v47 = vrot.slane %v953_v38, 5  ;;  %v963_v50 = vrot.slane %v954_v41, 5  ;;  %v959_v51 = vrot.slane %v951_v39, 5 }
 0x5fb   :  { %v964_v53 = vsel %vm250_vm2, %v962_v47, %v963_v50  ;;  %v972_v54 = vsel %vm250_vm2, 0.0, %v962_v47  ;;  %v974_v55 = vsel %vm250_vm2, %v963_v50, 0.0  ;;  %v961_v56 = vsel %vm250_vm2, %v959_v51, %v960_v45 }
 0x5fc   :  { %v984_v59 = vrot.slane %v972_v54, 3  ;;  %v985_v60 = vrot.slane %v964_v53, 3  ;;  %v987_v61 = vrot.slane %v974_v55, 3  ;;  %v971_v62 = vsel %vm250_vm2, 0.0, %v959_v51 }
 0x5fd   :  { %v973_v2 = vsel %vm250_vm2, %v960_v45, 0.0  ;;  %v979_v4 = vrot.slane %v971_v62, 3  ;;  %v980_v5 = vrot.slane %v961_v56, 3  ;;  %v1006_v6 = vrot.slane %v972_v54, 6 }
 0x5fe   :  { %v986_v9 = vsel %vm271_vm4, %v984_v59, %v985_v60  ;;  %v988_v10 = vsel %vm271_vm4, %v985_v60, %v987_v61  ;;  %v982_v12 = vrot.slane %v973_v2, 3  ;;  %v1007_v0 = vrot.slane %v964_v53, 6 }
 0x5ff   :  { %v2737_v1 = vpack.i.bf16 %v988_v10, %v986_v9  ;;  %v981_v19 = vsel %vm271_vm4, %v979_v4, %v980_v5  ;;  %v1009_v20 = vrot.slane %v974_v55, 6  ;;  %v1001_v21 = vrot.slane %v971_v62, 6 }
 0x600   :  { %v983_v22 = vsel %vm271_vm4, %v980_v5, %v982_v12  ;;  %v1008_v28 = vsel %vm294_vm3, %v1006_v6, %v1007_v0  ;;  %v1002_v3 = vrot.slane %v961_v56, 6  ;;  %v1004_v8 = vrot.slane %v973_v2, 6 }
 0x601   :  { %2738 = vrot.lane.b32.xlu1 %v2737_v1, %s2969_s24  ;;  %v2732_v27 = vpack.i.bf16 %v983_v22, %v981_v19  ;;  %v1010_v29 = vsel %vm294_vm3, %v1007_v0, %v1009_v20 }
 0x602   :  { %v1003_v30 = vsel %vm294_vm3, %v1001_v21, %v1002_v3  ;;  %v1005_v35 = vsel %vm294_vm3, %v1002_v3, %v1004_v8  ;;  %v2747_v36 = vpack.i.bf16 %v1010_v29, %v1008_v28 }
 0x603   :  { %2733 = vrot.lane.b32.xlu0 %v2732_v27, %s2969_s24  ;;  %v2742_v37 = vpack.i.bf16 %v1005_v35, %v1003_v30 }
 0x605   :  { %2748 = vrot.lane.b32.xlu1 %v2747_v36, %s2968_s23 }
 0x607   :  { %2743 = vrot.lane.b32.xlu0 %v2742_v37, %s2968_s23 }
 0x609   :  { %1176 = vrot.lane.b32.xlu1 %v3138_v14, %s2973_s12 }
 0x60b   :  { %1174 = vrot.lane.b32.xlu0 %v3136_v13, %s2973_s12 }
 0x60d   :  { %1180 = vrot.lane.b32.xlu1 %v3142_v18, %s2973_s12 }
 0x60f   :  { %1178 = vrot.lane.b32.xlu0 %v3140_v17, %s2973_s12 }
 0x673   :  { %v2739_v38 = vpop.permute.xlu1 %2738 }
 0x674   :  { %v2741_v41 = vunpack.i.h.bf16 %v2739_v38  ;;  %v2740_v39 = vunpack.i.l.bf16 %v2739_v38 }
 0x675   :  { %v2734_v40 = vpop.permute.xlu0 %2733 }
 0x676   :  { %v2736_v45 = vunpack.i.h.bf16 %v2734_v40  ;;  %v2735_v47 = vunpack.i.l.bf16 %v2734_v40  ;;  %v1026_v55 = vsel %vm317_vm5, %v964_v53, %v2741_v41  ;;  %v1025_v59 = vsel %vm317_vm5, %v972_v54, %v2740_v39 }
 0x677   :  { %v2749_v50 = vpop.permute.xlu1 %2748 }
 0x678   :  { %v2751_v51 = vunpack.i.h.bf16 %v2749_v50  ;;  %v2750_v52 = vunpack.i.l.bf16 %v2749_v50  ;;  %v1024_v5 = vsel %vm317_vm5, %v961_v56, %v2736_v45  ;;  %v1023_v6 = vsel %vm317_vm5, %v971_v62, %v2735_v47 }
 0x679   :  { %v2744_v60 = vpop.permute.xlu0 %2743 }
 0x67a   :  { %v1029_v61 = vsel %vm322_vm6, %v1025_v59, %v2750_v52  ;;  %v1030_v63 = vsel %vm322_vm6, %v1026_v55, %v2751_v51  ;;  %v2746_v2 = vunpack.i.h.bf16 %v2744_v60  ;;  %v2745_v4 = vunpack.i.l.bf16 %v2744_v60 }
 0x67b   :  { %v1032_v9 = vpack.c.bf16 %v1030_v63, %v1029_v61 }
 0x67c   :  { %v1027_v10 = vsel %vm322_vm6, %v1023_v6, %v2745_v4  ;;  %v1028_v12 = vsel %vm322_vm6, %v1024_v5, %v2746_v2 }
 0x67d   :  { %v1031_v0 = vpack.c.bf16 %v1028_v12, %v1027_v10 }
 0x67f   :  { %2588 = vmatprep.mubr.msk.bf16.mxu1 %vm341_vm7, %v1031_v0 }
 0x680   :  { %2589 = vmatmul.mubr.msk.bf16.vlgmr.msra.gmra.mxu1 %vm341_vm7, %v1032_v9 }
 0x740   :  { %v2590_v53 = vpop.f32.mrf.mxu1 }
 0x741   :  { %v1106_v21 = vmax.f32 %v2590_v53, 0.0 }
 0x742   :  { %v1089_v54 = vpop.f32.mrf.mxu1 }
 0x743   :  { %v1104_v19 = vmax.f32 %v1089_v54, 0.0  ;;  %v1115_v8 = vsel %vm317_vm5, %v1106_v21, 0.0 }
 0x744   :  { %v2591_v1 = vpop.f32.mrf.mxu1 }
 0x745   :  { %v1112_v56 = vsel %vm317_vm5, %v1104_v19, 0.0  ;;  %v1107_v62 = vmax.f32 %v2591_v1, 0.0 }
 0x746   :  { %v1092_v20 = vpop.f32.mrf.mxu1 }
 0x747   :  { %v1105_v22 = vmax.f32 %v1092_v20, 0.0  ;;  %v1117_v29 = vsel %vm317_vm5, %v1107_v62, 0.0 }
 0x749   :  { %v1113_v28 = vsel %vm317_vm5, %v1105_v22, 0.0 }
 0x74a   :  { %v1114_v3 = vadd.f32 %v1113_v28, %v1112_v56  ;;  %v1175_v56 = vpop.permute.xlu0 %1174 }
 0x74c   :  { %v1116_v27 = vadd.f32 %v1115_v8, %v1114_v3 }
 0x74e   :  { %v1118_v30 = vadd.f32 %v1117_v29, %v1116_v27  ;;  %v2447_v29 = vld [vmem:[%s3786_s7 + $0x3] ss:$0 sm:$0xff] }
 0x750   :  { %v1119_v35 = vrot.slane %v1118_v30, 4 }
 0x752   :  { %v1120_v36 = vadd.f32 %v1119_v35, %v1118_v30 }
 0x754   :  { %v1121_v37 = vrot.slane %v1120_v36, 2 }
 0x756   :  { %v1122_v38 = vadd.f32 %v1121_v37, %v1120_v36 }
 0x758   :  { %v1123_v41 = vrot.slane %v1122_v38, 1 }
 0x75a   :  { %v1124_v39 = vadd.f32 %v1123_v41, %v1122_v38 }
 0x75c   :  { %v1125_v40 = vmul.f32 0.03125, %v1124_v39 }
 0x75e   :  { %v1126_v45 = vsub.f32 %v1104_v19, %v1125_v40  ;;  %v1127_v47 = vsub.f32 %v1105_v22, %v1125_v40  ;;  %v1128_v50 = vsub.f32 %v1106_v21, %v1125_v40  ;;  %v1129_v51 = vsub.f32 %v1107_v62, %v1125_v40  ;;  %v1177_v22 = vpop.permute.xlu1 %1176  ;;  %v2446_v62 = vld [vmem:[%s3785_s6 + $0x3] ss:$0 sm:$0xff] }
 0x760   :  { %v1130_v52 = vmul.f32 %v1126_v45, %v1126_v45  ;;  %v1131_v55 = vmul.f32 %v1127_v47, %v1127_v47  ;;  %v1132_v59 = vmul.f32 %v1128_v50, %v1128_v50  ;;  %v1133_v60 = vmul.f32 %v1129_v51, %v1129_v51 }
 0x762   :  { %v1134_v61 = vsel %vm317_vm5, %v1130_v52, 0.0  ;;  %v1135_v63 = vsel %vm317_vm5, %v1131_v55, 0.0  ;;  %v1137_v4 = vsel %vm317_vm5, %v1132_v59, 0.0  ;;  %v1139_v6 = vsel %vm317_vm5, %v1133_v60, 0.0  ;;  %v2884_v59 = vld [vmem:[%s3784_s5 + $0x38] ss:$0 sps:$4 sm:$0xff]  }
 0x763   :  { %v1136_v2 = vadd.f32 %v1135_v63, %v1134_v61  ;;  %2652 = vmatprep.subr.msk.bf16.mxu0 %vm348_vm1, %v2884_v59 }
 0x765   :  { %v1138_v5 = vadd.f32 %v1137_v4, %v1136_v2 }
 0x767   :  { %v1140_v9 = vadd.f32 %v1139_v6, %v1138_v5  ;;  %v1288_v6 = vsel %vm348_vm1, %v2884_v59, 0 }
 0x768   :  { %2593 = vmatpush3.bf16.msra.mxu0 %v1288_v6 }
 0x769   :  { %v1141_v10 = vrot.slane %v1140_v9, 4 }
 0x76b   :  { %v1142_v12 = vadd.f32 %v1141_v10, %v1140_v9 }
 0x76d   :  { %v1143_v0 = vrot.slane %v1142_v12, 2 }
 0x76f   :  { %v1144_v53 = vadd.f32 %v1143_v0, %v1142_v12 }
 0x771   :  { %v1145_v54 = vrot.slane %v1144_v53, 1 }
 0x773   :  { %v1146_v1 = vadd.f32 %v1145_v54, %v1144_v53 }
 0x775   :  { %v1147_v19 = vmul.f32 0.03125, %v1146_v1 }
 0x777   :  { %v1148_v20 = vadd.f32 1e-05, %v1147_v19 }
 0x779   :  { %2908 = vrsqrt.f32 %v1148_v20  ;;  %v2885_v20 = vld [vmem:[%s3784_s5 + $0x30] sm:$0xff]  }
 0x77a   :  { %2594 = vmatprep.subr.bf16.mxu0 %v2885_v20 }
 0x77b   :  { %2595 = vmatpush3.bf16.msra.mxu0 %v2885_v20 }
 0x786   :  { %v2909_v21 = vpop.eup %2908 }
 0x787   :  { %v1150_v28 = vmul.f32 %v2909_v21, %v1126_v45  ;;  %v1151_v3 = vmul.f32 %v2909_v21, %v1127_v47  ;;  %v1152_v8 = vmul.f32 %v2909_v21, %v1128_v50  ;;  %v1153_v27 = vmul.f32 %v2909_v21, %v1129_v51  ;;  %v1181_v45 = vpop.permute.xlu1 %1180  ;;  %v1179_v47 = vpop.permute.xlu0 %1178 }
 0x789   :  { %v1160_v30 = vmul.f32 %v2446_v62, %v1150_v28  ;;  %v1161_v35 = vmul.f32 %v2446_v62, %v1151_v3  ;;  %v1162_v36 = vmul.f32 %v2446_v62, %v1152_v8  ;;  %v1163_v37 = vmul.f32 %v2446_v62, %v1153_v27 }
 0x78b   :  { %v3405_v38 = vadd.f32 %v2447_v29, %v1161_v35  ;;  %v3407_v41 = vadd.f32 %v2447_v29, %v1162_v36  ;;  %v3409_v39 = vadd.f32 %v2447_v29, %v1163_v37  ;;  %v3411_v40 = vadd.f32 %v2447_v29, %v1160_v30 }
 0x78d   :  { %v1187_v50 = vadd.f32 %v1177_v22, %v3405_v38  ;;  %v1188_v51 = vadd.f32 %v1179_v47, %v3407_v41  ;;  %v1189_v52 = vadd.f32 %v1181_v45, %v3409_v39  ;;  %v1186_v55 = vadd.f32 %v1175_v56, %v3411_v40 }
 0x78e   :  { %v2837_v60 = vpack.i.bf16 %v3409_v39, %v3407_v41  ;;  %v2832_v61 = vpack.i.bf16 %v3405_v38, %v3411_v40 }
 0x78f   :  { %v1195_v63 = vrot.slane %v1187_v50, 5  ;;  %v1197_v2 = vrot.slane %v1188_v51, 5  ;;  %v1198_v4 = vrot.slane %v1189_v52, 5  ;;  %v1194_v5 = vrot.slane %v1186_v55, 5 }
 0x791   :  { %v1199_v9 = vsel %vm250_vm2, %v1197_v2, %v1198_v4  ;;  %v1207_v10 = vsel %vm250_vm2, 0.0, %v1197_v2  ;;  %v1209_v12 = vsel %vm250_vm2, %v1198_v4, 0.0  ;;  %v1196_v0 = vsel %vm250_vm2, %v1194_v5, %v1195_v63 }
 0x792   :  { %v1219_v53 = vrot.slane %v1207_v10, 3  ;;  %v1220_v54 = vrot.slane %v1199_v9, 3  ;;  %v1222_v1 = vrot.slane %v1209_v12, 3  ;;  %v1206_v19 = vsel %vm250_vm2, 0.0, %v1194_v5 }
 0x793   :  { %v1208_v21 = vsel %vm250_vm2, %v1195_v63, 0.0  ;;  %v1214_v22 = vrot.slane %v1206_v19, 3  ;;  %v1215_v56 = vrot.slane %v1196_v0, 3  ;;  %v1241_v62 = vrot.slane %v1207_v10, 6 }
 0x794   :  { %v1221_v28 = vsel %vm271_vm4, %v1219_v53, %v1220_v54  ;;  %v1223_v3 = vsel %vm271_vm4, %v1220_v54, %v1222_v1  ;;  %v1217_v8 = vrot.slane %v1208_v21, 3  ;;  %v1242_v27 = vrot.slane %v1199_v9, 6 }
 0x795   :  { %v2757_v29 = vpack.i.bf16 %v1223_v3, %v1221_v28  ;;  %v1216_v30 = vsel %vm271_vm4, %v1214_v22, %v1215_v56  ;;  %v1244_v35 = vrot.slane %v1209_v12, 6  ;;  %v1236_v36 = vrot.slane %v1206_v19, 6 }
 0x796   :  { %v1218_v37 = vsel %vm271_vm4, %v1215_v56, %v1217_v8  ;;  %v1243_v45 = vsel %vm294_vm3, %v1241_v62, %v1242_v27  ;;  %v1237_v47 = vrot.slane %v1196_v0, 6  ;;  %v1239_v50 = vrot.slane %v1208_v21, 6 }
 0x797   :  { %2758 = vrot.lane.b32.xlu1 %v2757_v29, %s2969_s24  ;;  %v2752_v51 = vpack.i.bf16 %v1218_v37, %v1216_v30  ;;  %v1245_v52 = vsel %vm294_vm3, %v1242_v27, %v1244_v35 }
 0x798   :  { %v1238_v55 = vsel %vm294_vm3, %v1236_v36, %v1237_v47  ;;  %v1240_v59 = vsel %vm294_vm3, %v1237_v47, %v1239_v50  ;;  %v2767_v63 = vpack.i.bf16 %v1245_v52, %v1243_v45 }
 0x799   :  { %2753 = vrot.lane.b32.xlu0 %v2752_v51, %s2969_s24  ;;  %v2762_v2 = vpack.i.bf16 %v1240_v59, %v1238_v55 }
 0x79b   :  { %2768 = vrot.lane.b32.xlu1 %v2767_v63, %s2968_s23 }
 0x79d   :  { %2763 = vrot.lane.b32.xlu0 %v2762_v2, %s2968_s23 }
 0x79f   :  { %1411 = vrot.lane.b32.xlu1 %v3138_v14, %s2974_s21 }
 0x7a1   :  { %1409 = vrot.lane.b32.xlu0 %v3136_v13, %s2974_s21 }
 0x7a3   :  { %1415 = vrot.lane.b32.xlu1 %v3142_v18, %s2974_s21 }
 0x7a5   :  { %1413 = vrot.lane.b32.xlu0 %v3140_v17, %s2974_s21 }
 0x809   :  { %v2759_v4 = vpop.permute.xlu1 %2758 }
 0x80a   :  { %v2761_v5 = vunpack.i.h.bf16 %v2759_v4  ;;  %v2760_v6 = vunpack.i.l.bf16 %v2759_v4 }
 0x80b   :  { %v2754_v12 = vpop.permute.xlu0 %2753 }
 0x80c   :  { %v2756_v53 = vunpack.i.h.bf16 %v2754_v12  ;;  %v2755_v54 = vunpack.i.l.bf16 %v2754_v12  ;;  %v1261_v22 = vsel %vm317_vm5, %v1199_v9, %v2761_v5  ;;  %v1260_v56 = vsel %vm317_vm5, %v1207_v10, %v2760_v6 }
 0x80d   :  { %v2769_v1 = vpop.permute.xlu1 %2768 }
 0x80e   :  { %v2771_v20 = vunpack.i.h.bf16 %v2769_v1  ;;  %v2770_v21 = vunpack.i.l.bf16 %v2769_v1  ;;  %v1259_v29 = vsel %vm317_vm5, %v1196_v0, %v2756_v53  ;;  %v1258_v30 = vsel %vm317_vm5, %v1206_v19, %v2755_v54 }
 0x80f   :  { %v2764_v62 = vpop.permute.xlu0 %2763 }
 0x810   :  { %v1264_v28 = vsel %vm322_vm6, %v1260_v56, %v2770_v21  ;;  %v1265_v3 = vsel %vm322_vm6, %v1261_v22, %v2771_v20  ;;  %v2766_v8 = vunpack.i.h.bf16 %v2764_v62  ;;  %v2765_v27 = vunpack.i.l.bf16 %v2764_v62 }
 0x811   :  { %v1267_v35 = vpack.c.bf16 %v1265_v3, %v1264_v28 }
 0x812   :  { %v1262_v36 = vsel %vm322_vm6, %v1258_v30, %v2765_v27  ;;  %v1263_v37 = vsel %vm322_vm6, %v1259_v29, %v2766_v8 }
 0x813   :  { %v1266_v45 = vpack.c.bf16 %v1263_v37, %v1262_v36 }
 0x815   :  { %2596 = vmatprep.mubr.msk.bf16.mxu0 %vm341_vm7, %v1266_v45 }
 0x816   :  { %2597 = vmatmul.mubr.msk.bf16.vlgmr.msra.gmra.mxu0 %vm341_vm7, %v1267_v35 }
 0x8d6   :  { %v2598_v9 = vpop.f32.mrf.mxu0 }
 0x8d7   :  { %v1341_v52 = vmax.f32 %v2598_v9, 0.0 }
 0x8d8   :  { %v1324_v10 = vpop.f32.mrf.mxu0 }
 0x8d9   :  { %v1339_v50 = vmax.f32 %v1324_v10, 0.0  ;;  %v1350_v2 = vsel %vm317_vm5, %v1341_v52, 0.0 }
 0x8da   :  { %v2599_v47 = vpop.f32.mrf.mxu0 }
 0x8db   :  { %v1347_v0 = vsel %vm317_vm5, %v1339_v50, 0.0  ;;  %v1342_v19 = vmax.f32 %v2599_v47, 0.0 }
 0x8dc   :  { %v1327_v51 = vpop.f32.mrf.mxu0 }
 0x8dd   :  { %v1340_v55 = vmax.f32 %v1327_v51, 0.0  ;;  %v1352_v5 = vsel %vm317_vm5, %v1342_v19, 0.0 }
 0x8df   :  { %v1348_v59 = vsel %vm317_vm5, %v1340_v55, 0.0 }
 0x8e0   :  { %v1349_v63 = vadd.f32 %v1348_v59, %v1347_v0 }
 0x8e2   :  { %v1351_v4 = vadd.f32 %v1350_v2, %v1349_v63 }
 0x8e4   :  { %v1353_v6 = vadd.f32 %v1352_v5, %v1351_v4  ;;  %v1412_v4 = vpop.permute.xlu1 %1411  ;;  %v1410_v5 = vpop.permute.xlu0 %1409 }
 0x8e6   :  { %v1354_v12 = vrot.slane %v1353_v6, 4 }
 0x8e8   :  { %v1355_v53 = vadd.f32 %v1354_v12, %v1353_v6  ;;  %v2457_v6 = vld [vmem:[%s3785_s6 + $0x4] ss:$0 sm:$0xff] }
 0x8ea   :  { %v1356_v54 = vrot.slane %v1355_v53, 2 }
 0x8ec   :  { %v1357_v1 = vadd.f32 %v1356_v54, %v1355_v53 }
 0x8ee   :  { %v1358_v20 = vrot.slane %v1357_v1, 1 }
 0x8f0   :  { %v1359_v21 = vadd.f32 %v1358_v20, %v1357_v1  ;;  %v2458_v20 = vld [vmem:[%s3786_s7 + $0x4] ss:$0 sm:$0xff] }
 0x8f2   :  { %v1360_v22 = vmul.f32 0.03125, %v1359_v21 }
 0x8f4   :  { %v1361_v56 = vsub.f32 %v1339_v50, %v1360_v22  ;;  %v1362_v62 = vsub.f32 %v1340_v55, %v1360_v22  ;;  %v1363_v28 = vsub.f32 %v1341_v52, %v1360_v22  ;;  %v1364_v3 = vsub.f32 %v1342_v19, %v1360_v22 }
 0x8f6   :  { %v1365_v8 = vmul.f32 %v1361_v56, %v1361_v56  ;;  %v1366_v27 = vmul.f32 %v1362_v62, %v1362_v62  ;;  %v1367_v29 = vmul.f32 %v1363_v28, %v1363_v28  ;;  %v1368_v30 = vmul.f32 %v1364_v3, %v1364_v3 }
 0x8f8   :  { %v1369_v35 = vsel %vm317_vm5, %v1365_v8, 0.0  ;;  %v1370_v36 = vsel %vm317_vm5, %v1366_v27, 0.0  ;;  %v1372_v45 = vsel %vm317_vm5, %v1367_v29, 0.0  ;;  %v1374_v10 = vsel %vm317_vm5, %v1368_v30, 0.0 }
 0x8f9   :  { %v1371_v37 = vadd.f32 %v1370_v36, %v1369_v35 }
 0x8fb   :  { %v1373_v9 = vadd.f32 %v1372_v45, %v1371_v37 }
 0x8fd   :  { %v1375_v47 = vadd.f32 %v1374_v10, %v1373_v9  ;;  %v2886_v9 = vld [vmem:[%s3784_s5 + $0x44] ss:$0 sps:$4 sm:$0xff]  }
 0x8fe   :  { %2653 = vmatprep.subr.msk.bf16.mxu1 %vm348_vm1, %v2886_v9 }
 0x8ff   :  { %v1376_v51 = vrot.slane %v1375_v47, 4 }
 0x901   :  { %v1377_v50 = vadd.f32 %v1376_v51, %v1375_v47 }
 0x903   :  { %v1378_v55 = vrot.slane %v1377_v50, 2 }
 0x905   :  { %v1379_v52 = vadd.f32 %v1378_v55, %v1377_v50 }
 0x907   :  { %v1380_v0 = vrot.slane %v1379_v52, 1 }
 0x909   :  { %v1381_v19 = vadd.f32 %v1380_v0, %v1379_v52  ;;  %v1523_v0 = vsel %vm348_vm1, %v2886_v9, 0 }
 0x90a   :  { %2601 = vmatpush3.bf16.msra.mxu1 %v1523_v0 }
 0x90b   :  { %v1382_v59 = vmul.f32 0.03125, %v1381_v19 }
 0x90d   :  { %v1383_v63 = vadd.f32 1e-05, %v1382_v59 }
 0x90f   :  { %2910 = vrsqrt.f32 %v1383_v63 }
 0x91c   :  { %v2911_v2 = vpop.eup %2910 }
 0x91d   :  { %v1385_v12 = vmul.f32 %v2911_v2, %v1361_v56  ;;  %v1386_v53 = vmul.f32 %v2911_v2, %v1362_v62  ;;  %v1387_v54 = vmul.f32 %v2911_v2, %v1363_v28  ;;  %v1388_v1 = vmul.f32 %v2911_v2, %v1364_v3  ;;  %v1416_v56 = vpop.permute.xlu1 %1415  ;;  %v1414_v62 = vpop.permute.xlu0 %1413 }
 0x91f   :  { %v1395_v21 = vmul.f32 %v2457_v6, %v1385_v12  ;;  %v1396_v22 = vmul.f32 %v2457_v6, %v1386_v53  ;;  %v1397_v8 = vmul.f32 %v2457_v6, %v1387_v54  ;;  %v1398_v27 = vmul.f32 %v2457_v6, %v1388_v1  ;;  %v2887_v53 = vld [vmem:[%s3784_s5 + $0x3c] sm:$0xff]  }
 0x920   :  { %2602 = vmatprep.subr.bf16.mxu1 %v2887_v53 }
 0x921   :  { %v3475_v29 = vadd.f32 %v2458_v20, %v1396_v22  ;;  %v3477_v30 = vadd.f32 %v2458_v20, %v1397_v8  ;;  %v3479_v35 = vadd.f32 %v2458_v20, %v1398_v27  ;;  %v3481_v36 = vadd.f32 %v2458_v20, %v1395_v21  ;;  %2603 = vmatpush3.bf16.msra.mxu1 %v2887_v53 }
 0x923   :  { %v1422_v28 = vadd.f32 %v1412_v4, %v3475_v29  ;;  %v1423_v3 = vadd.f32 %v1414_v62, %v3477_v30  ;;  %v1424_v37 = vadd.f32 %v1416_v56, %v3479_v35  ;;  %v1421_v45 = vadd.f32 %v1410_v5, %v3481_v36 }
 0x924   :  { %v2847_v10 = vpack.i.bf16 %v3479_v35, %v3477_v30  ;;  %v2842_v47 = vpack.i.bf16 %v3475_v29, %v3481_v36 }
 0x925   :  { %v1430_v51 = vrot.slane %v1422_v28, 5  ;;  %v1432_v50 = vrot.slane %v1423_v3, 5  ;;  %v1433_v55 = vrot.slane %v1424_v37, 5  ;;  %v1429_v52 = vrot.slane %v1421_v45, 5 }
 0x927   :  { %v1434_v19 = vsel %vm250_vm2, %v1432_v50, %v1433_v55  ;;  %v1442_v59 = vsel %vm250_vm2, 0.0, %v1432_v50  ;;  %v1444_v63 = vsel %vm250_vm2, %v1433_v55, 0.0  ;;  %v1431_v2 = vsel %vm250_vm2, %v1429_v52, %v1430_v51 }
 0x928   :  { %v1454_v4 = vrot.slane %v1442_v59, 3  ;;  %v1455_v5 = vrot.slane %v1434_v19, 3  ;;  %v1457_v6 = vrot.slane %v1444_v63, 3  ;;  %v1441_v12 = vsel %vm250_vm2, 0.0, %v1429_v52 }
 0x929   :  { %v1443_v54 = vsel %vm250_vm2, %v1430_v51, 0.0  ;;  %v1449_v1 = vrot.slane %v1441_v12, 3  ;;  %v1450_v20 = vrot.slane %v1431_v2, 3  ;;  %v1476_v21 = vrot.slane %v1442_v59, 6 }
 0x92a   :  { %v1456_v22 = vsel %vm271_vm4, %v1454_v4, %v1455_v5  ;;  %v1458_v8 = vsel %vm271_vm4, %v1455_v5, %v1457_v6  ;;  %v1452_v27 = vrot.slane %v1443_v54, 3  ;;  %v1477_v56 = vrot.slane %v1434_v19, 6 }
 0x92b   :  { %v2777_v62 = vpack.i.bf16 %v1458_v8, %v1456_v22  ;;  %v1451_v28 = vsel %vm271_vm4, %v1449_v1, %v1450_v20  ;;  %v1479_v3 = vrot.slane %v1444_v63, 6  ;;  %v1471_v37 = vrot.slane %v1441_v12, 6 }
 0x92c   :  { %v1453_v45 = vsel %vm271_vm4, %v1450_v20, %v1452_v27  ;;  %v1478_v9 = vsel %vm294_vm3, %v1476_v21, %v1477_v56  ;;  %v1472_v51 = vrot.slane %v1431_v2, 6  ;;  %v1474_v50 = vrot.slane %v1443_v54, 6 }
 0x92d   :  { %2778 = vrot.lane.b32.xlu1 %v2777_v62, %s2969_s24  ;;  %v2772_v55 = vpack.i.bf16 %v1453_v45, %v1451_v28  ;;  %v1480_v52 = vsel %vm294_vm3, %v1477_v56, %v1479_v3 }
 0x92e   :  { %v1473_v0 = vsel %vm294_vm3, %v1471_v37, %v1472_v51  ;;  %v1475_v4 = vsel %vm294_vm3, %v1472_v51, %v1474_v50  ;;  %v2787_v63 = vpack.i.bf16 %v1480_v52, %v1478_v9 }
 0x92f   :  { %2773 = vrot.lane.b32.xlu0 %v2772_v55, %s2969_s24  ;;  %v2782_v5 = vpack.i.bf16 %v1475_v4, %v1473_v0 }
 0x931   :  { %2788 = vrot.lane.b32.xlu1 %v2787_v63, %s2968_s23 }
 0x933   :  { %2783 = vrot.lane.b32.xlu0 %v2782_v5, %s2968_s23 }
 0x935   :  { %1646 = vrot.lane.b32.xlu1 %v3138_v14, %s2975_s30 }
 0x937   :  { %1644 = vrot.lane.b32.xlu0 %v3136_v13, %s2975_s30 }
 0x939   :  { %1650 = vrot.lane.b32.xlu1 %v3142_v18, %s2975_s30 }
 0x93b   :  { %1648 = vrot.lane.b32.xlu0 %v3140_v17, %s2975_s30 }
 0x99f   :  { %v2779_v6 = vpop.permute.xlu1 %2778 }
 0x9a0   :  { %v2781_v53 = vunpack.i.h.bf16 %v2779_v6  ;;  %v2780_v54 = vunpack.i.l.bf16 %v2779_v6 }
 0x9a1   :  { %v2774_v1 = vpop.permute.xlu0 %2773 }
 0x9a2   :  { %v2776_v20 = vunpack.i.h.bf16 %v2774_v1  ;;  %v2775_v21 = vunpack.i.l.bf16 %v2774_v1  ;;  %v1496_v56 = vsel %vm317_vm5, %v1434_v19, %v2781_v53  ;;  %v1495_v62 = vsel %vm317_vm5, %v1442_v59, %v2780_v54 }
 0x9a3   :  { %v2789_v22 = vpop.permute.xlu1 %2788 }
 0x9a4   :  { %v2791_v8 = vunpack.i.h.bf16 %v2789_v22  ;;  %v2790_v27 = vunpack.i.l.bf16 %v2789_v22  ;;  %v1494_v51 = vsel %vm317_vm5, %v1431_v2, %v2776_v20  ;;  %v1493_v50 = vsel %vm317_vm5, %v1441_v12, %v2775_v21 }
 0x9a5   :  { %v2784_v28 = vpop.permute.xlu0 %2783 }
 0x9a6   :  { %v1499_v3 = vsel %vm322_vm6, %v1495_v62, %v2790_v27  ;;  %v1500_v37 = vsel %vm322_vm6, %v1496_v56, %v2791_v8  ;;  %v2786_v45 = vunpack.i.h.bf16 %v2784_v28  ;;  %v2785_v9 = vunpack.i.l.bf16 %v2784_v28 }
 0x9a7   :  { %v1502_v55 = vpack.c.bf16 %v1500_v37, %v1499_v3 }
 0x9a8   :  { %v1497_v52 = vsel %vm322_vm6, %v1493_v50, %v2785_v9  ;;  %v1498_v0 = vsel %vm322_vm6, %v1494_v51, %v2786_v45 }
 0x9a9   :  { %v1501_v4 = vpack.c.bf16 %v1498_v0, %v1497_v52 }
 0x9ab   :  { %2604 = vmatprep.mubr.msk.bf16.mxu1 %vm341_vm7, %v1501_v4 }
 0x9ac   :  { %2605 = vmatmul.mubr.msk.bf16.vlgmr.msra.gmra.mxu1 %vm341_vm7, %v1502_v55 }
 0xa6c   :  { %v2606_v19 = vpop.f32.mrf.mxu1 }
 0xa6d   :  { %v1576_v53 = vmax.f32 %v2606_v19, 0.0 }
 0xa6e   :  { %v1559_v59 = vpop.f32.mrf.mxu1 }
 0xa6f   :  { %v1574_v5 = vmax.f32 %v1559_v59, 0.0  ;;  %v1585_v21 = vsel %vm317_vm5, %v1576_v53, 0.0 }
 0xa70   :  { %v2607_v63 = vpop.f32.mrf.mxu1 }
 0xa71   :  { %v1582_v2 = vsel %vm317_vm5, %v1574_v5, 0.0  ;;  %v1577_v12 = vmax.f32 %v2607_v63, 0.0 }
 0xa72   :  { %v1562_v6 = vpop.f32.mrf.mxu1 }
 0xa73   :  { %v1575_v54 = vmax.f32 %v1562_v6, 0.0  ;;  %v1587_v8 = vsel %vm317_vm5, %v1577_v12, 0.0 }
 0xa75   :  { %v1583_v1 = vsel %vm317_vm5, %v1575_v54, 0.0 }
 0xa76   :  { %v1584_v20 = vadd.f32 %v1583_v1, %v1582_v2 }
 0xa78   :  { %v1586_v22 = vadd.f32 %v1585_v21, %v1584_v20 }
 0xa7a   :  { %v1588_v27 = vadd.f32 %v1587_v8, %v1586_v22 }
 0xa7c   :  { %v1589_v56 = vrot.slane %v1588_v27, 4 }
 0xa7e   :  { %v1590_v62 = vadd.f32 %v1589_v56, %v1588_v27 }
 0xa80   :  { %v1591_v28 = vrot.slane %v1590_v62, 2 }
 0xa82   :  { %v1592_v3 = vadd.f32 %v1591_v28, %v1590_v62 }
 0xa84   :  { %v1593_v37 = vrot.slane %v1592_v3, 1 }
 0xa86   :  { %v1594_v45 = vadd.f32 %v1593_v37, %v1592_v3  ;;  %v1647_v3 = vpop.permute.xlu1 %1646  ;;  %v1645_v37 = vpop.permute.xlu0 %1644 }
 0xa88   :  { %v1595_v9 = vmul.f32 0.03125, %v1594_v45  ;;  %v2468_v45 = vld [vmem:[%s3785_s6 + $0x5] ss:$0 sm:$0xff] }
 0xa8a   :  { %v1596_v51 = vsub.f32 %v1574_v5, %v1595_v9  ;;  %v1597_v50 = vsub.f32 %v1575_v54, %v1595_v9  ;;  %v1598_v55 = vsub.f32 %v1576_v53, %v1595_v9  ;;  %v1599_v52 = vsub.f32 %v1577_v12, %v1595_v9 }
 0xa8c   :  { %v1600_v0 = vmul.f32 %v1596_v51, %v1596_v51  ;;  %v1601_v4 = vmul.f32 %v1597_v50, %v1597_v50  ;;  %v1602_v19 = vmul.f32 %v1598_v55, %v1598_v55  ;;  %v1603_v59 = vmul.f32 %v1599_v52, %v1599_v52 }
 0xa8e   :  { %v1604_v63 = vsel %vm317_vm5, %v1600_v0, 0.0  ;;  %v1605_v6 = vsel %vm317_vm5, %v1601_v4, 0.0  ;;  %v1607_v1 = vsel %vm317_vm5, %v1602_v19, 0.0  ;;  %v1609_v21 = vsel %vm317_vm5, %v1603_v59, 0.0  ;;  %v2469_v59 = vld [vmem:[%s3786_s7 + $0x5] ss:$0 sm:$0xff] }
 0xa8f   :  { %v1606_v2 = vadd.f32 %v1605_v6, %v1604_v63 }
 0xa91   :  { %v1608_v20 = vadd.f32 %v1607_v1, %v1606_v2 }
 0xa93   :  { %v1610_v22 = vadd.f32 %v1609_v21, %v1608_v20 }
 0xa95   :  { %v1611_v8 = vrot.slane %v1610_v22, 4 }
 0xa97   :  { %v1612_v5 = vadd.f32 %v1611_v8, %v1610_v22 }
 0xa99   :  { %v1613_v54 = vrot.slane %v1612_v5, 2 }
 0xa9b   :  { %v1614_v53 = vadd.f32 %v1613_v54, %v1612_v5 }
 0xa9d   :  { %v1615_v12 = vrot.slane %v1614_v53, 1 }
 0xa9f   :  { %v1616_v27 = vadd.f32 %v1615_v12, %v1614_v53  ;;  %v2888_v53 = vld [vmem:[%s3784_s5 + $0x50] ss:$0 sps:$4 sm:$0xff]  }
 0xaa0   :  { %2654 = vmatprep.subr.msk.bf16.mxu0 %vm348_vm1, %v2888_v53 }
 0xaa1   :  { %v1617_v56 = vmul.f32 0.03125, %v1616_v27 }
 0xaa3   :  { %v1618_v62 = vadd.f32 1e-05, %v1617_v56 }
 0xaa5   :  { %2912 = vrsqrt.f32 %v1618_v62 }
 0xab2   :  { %v2913_v28 = vpop.eup %2912 }
 0xab3   :  { %v1620_v9 = vmul.f32 %v2913_v28, %v1596_v51  ;;  %v1621_v0 = vmul.f32 %v2913_v28, %v1597_v50  ;;  %v1622_v4 = vmul.f32 %v2913_v28, %v1598_v55  ;;  %v1623_v19 = vmul.f32 %v2913_v28, %v1599_v52  ;;  %v1651_v51 = vpop.permute.xlu1 %1650  ;;  %v1649_v50 = vpop.permute.xlu0 %1648 }
 0xab4   :  { %v1758_v28 = vsel %vm348_vm1, %v2888_v53, 0 }
 0xab5   :  { %v1630_v63 = vmul.f32 %v2468_v45, %v1620_v9  ;;  %v1631_v6 = vmul.f32 %v2468_v45, %v1621_v0  ;;  %v1632_v2 = vmul.f32 %v2468_v45, %v1622_v4  ;;  %v1633_v1 = vmul.f32 %v2468_v45, %v1623_v19  ;;  %2609 = vmatpush3.bf16.msra.mxu0 %v1758_v28 }
 0xab7   :  { %v3545_v20 = vadd.f32 %v2469_v59, %v1631_v6  ;;  %v3547_v21 = vadd.f32 %v2469_v59, %v1632_v2  ;;  %v3549_v22 = vadd.f32 %v2469_v59, %v1633_v1  ;;  %v3551_v8 = vadd.f32 %v2469_v59, %v1630_v63  ;;  %v2889_v63 = vld [vmem:[%s3784_s5 + $0x48] sm:$0xff]   ;;  %s2976_s5 = smov 24  }
 0xab8   :  { %2610 = vmatprep.subr.bf16.mxu0 %v2889_v63 }
 0xab9   :  { %v1657_v55 = vadd.f32 %v1647_v3, %v3545_v20  ;;  %v1658_v52 = vadd.f32 %v1649_v50, %v3547_v21  ;;  %v1659_v5 = vadd.f32 %v1651_v51, %v3549_v22  ;;  %v1656_v54 = vadd.f32 %v1645_v37, %v3551_v8  ;;  %2611 = vmatpush3.bf16.msra.mxu0 %v2889_v63 }
 0xaba   :  { %v2857_v48 = vpack.i.bf16 %v3549_v22, %v3547_v21  ;;  %v2852_v42 = vpack.i.bf16 %v3545_v20, %v3551_v8  ;;  %v2890_v20 = vld [vmem:[%s3787_s8 + $0x18] sm:$0xff]   ;;  %v2891_v21 = vld [vmem:[%s3787_s8 + $0x10] sm:$0xff]   ;;  %v2892_v22 = vld [vmem:[%s3787_s8 + $0x8] sm:$0xff]  }
 0xabb   :  { %v1665_v12 = vrot.slane %v1657_v55, 5  ;;  %v1667_v27 = vrot.slane %v1658_v52, 5  ;;  %v1668_v56 = vrot.slane %v1659_v5, 5  ;;  %v1664_v62 = vrot.slane %v1656_v54, 5  ;;  %2616 = vmatprep.subr.bf16.mxu1 %v2890_v20 }
 0xabc   :  { %2617 = vmatpush3.bf16.msra.mxu1 %v2890_v20 }
 0xabd   :  { %v3563_v3 = vsel %vm250_vm2, %v1667_v27, %v1668_v56  ;;  %v3566_v45 = vsel %vm250_vm2, 0.0, %v1667_v27  ;;  %v1679_v37 = vsel %vm250_vm2, %v1668_v56, 0.0  ;;  %v3570_v9 = vsel %vm250_vm2, %v1664_v62, %v1665_v12  ;;  %2618 = vmatprep.subr.bf16.mxu1 %v2891_v21 }
 0xabe   :  { %v1689_v0 = vrot.slane %v3566_v45, 3  ;;  %v1690_v4 = vrot.slane %v3563_v3, 3  ;;  %v1692_v19 = vrot.slane %v1679_v37, 3  ;;  %v3575_v59 = vsel %vm250_vm2, 0.0, %v1664_v62 }
 0xabf   :  { %v1678_v6 = vsel %vm250_vm2, %v1665_v12, 0.0  ;;  %v1684_v2 = vrot.slane %v3575_v59, 3  ;;  %v1685_v1 = vrot.slane %v3570_v9, 3  ;;  %v1711_v51 = vrot.slane %v3566_v45, 6 }
 0xac0   :  { %v1691_v50 = vsel %vm271_vm4, %v1689_v0, %v1690_v4  ;;  %v1693_v55 = vsel %vm271_vm4, %v1690_v4, %v1692_v19  ;;  %v1687_v52 = vrot.slane %v1678_v6, 3  ;;  %v1712_v5 = vrot.slane %v3563_v3, 6  ;;  %2619 = vmatpush3.bf16.msra.mxu1 %v2891_v21 }
 0xac1   :  { %v2797_v54 = vpack.i.bf16 %v1693_v55, %v1691_v50  ;;  %v1686_v53 = vsel %vm271_vm4, %v1684_v2, %v1685_v1  ;;  %v1714_v27 = vrot.slane %v1679_v37, 6  ;;  %v1706_v12 = vrot.slane %v3575_v59, 6  ;;  %2620 = vmatprep.subr.bf16.mxu1 %v2892_v22 }
 0xac2   :  { %v1688_v56 = vsel %vm271_vm4, %v1685_v1, %v1687_v52  ;;  %v1713_v62 = vsel %vm294_vm3, %v1711_v51, %v1712_v5  ;;  %v1707_v28 = vrot.slane %v3570_v9, 6  ;;  %v1709_v0 = vrot.slane %v1678_v6, 6 }
 0xac3   :  { %2798 = vrot.lane.b32.xlu1 %v2797_v54, %s2969_s24  ;;  %v2792_v4 = vpack.i.bf16 %v1688_v56, %v1686_v53  ;;  %v1715_v19 = vsel %vm294_vm3, %v1712_v5, %v1714_v27 }
 0xac4   :  { %v1708_v50 = vsel %vm294_vm3, %v1706_v12, %v1707_v28  ;;  %v1710_v2 = vsel %vm294_vm3, %v1707_v28, %v1709_v0  ;;  %v2807_v37 = vpack.i.bf16 %v1715_v19, %v1713_v62  ;;  %2621 = vmatpush3.bf16.msra.mxu1 %v2892_v22 }
 0xac5   :  { %2793 = vrot.lane.b32.xlu0 %v2792_v4, %s2969_s24  ;;  %v2802_v63 = vpack.i.bf16 %v1710_v2, %v1708_v50 }
 0xac7   :  { %2808 = vrot.lane.b32.xlu1 %v2807_v37, %s2968_s23 }
 0xac9   :  { %2803 = vrot.lane.b32.xlu0 %v2802_v63, %s2968_s23 }
 0xacb   :  { %2818 = vrot.lane.b32.xlu1 %v2817_v57, %s2969_s24 }
 0xacd   :  { %2813 = vrot.lane.b32.xlu0 %v2812_v58, %s2969_s24  ;;  %s2977_s24 = smov 32  }
 0xacf   :  { %2828 = vrot.lane.b32.xlu1 %v2827_v43, %s2968_s23 }
 0xad1   :  { %2823 = vrot.lane.b32.xlu0 %v2822_v44, %s2968_s23  ;;  %s2978_s23 = smov 40  }
 0xad3   :  { %2838 = vrot.lane.b32.xlu1 %v2837_v60, %s2976_s5 }
 0xad5   :  { %2833 = vrot.lane.b32.xlu0 %v2832_v61, %s2976_s5 }
 0xad7   :  { %2848 = vrot.lane.b32.xlu1 %v2847_v10, %s2977_s24 }
 0xad9   :  { %2843 = vrot.lane.b32.xlu0 %v2842_v47, %s2977_s24 }
 0xadb   :  { %2858 = vrot.lane.b32.xlu1 %v2857_v48, %s2978_s23 }
 0xadd   :  { %2853 = vrot.lane.b32.xlu0 %v2852_v42, %s2978_s23 }
 0xb35   :  { %v2799_v46 = vpop.permute.xlu1 %2798 }
 0xb36   :  { %v2801_v49 = vunpack.i.h.bf16 %v2799_v46  ;;  %v2800_v57 = vunpack.i.l.bf16 %v2799_v46 }
 0xb37   :  { %v2794_v58 = vpop.permute.xlu0 %2793 }
 0xb38   :  { %v2796_v31 = vunpack.i.h.bf16 %v2794_v58  ;;  %v2795_v32 = vunpack.i.l.bf16 %v2794_v58  ;;  %v1731_v44 = vsel %vm317_vm5, %v3563_v3, %v2801_v49  ;;  %v1730_v38 = vsel %vm317_vm5, %v3566_v45, %v2800_v57 }
 0xb39   :  { %v2809_v33 = vpop.permute.xlu1 %2808 }
 0xb3a   :  { %v2811_v34 = vunpack.i.h.bf16 %v2809_v33  ;;  %v2810_v43 = vunpack.i.l.bf16 %v2809_v33  ;;  %v1729_v29 = vsel %vm317_vm5, %v3570_v9, %v2796_v31  ;;  %v1728_v30 = vsel %vm317_vm5, %v3575_v59, %v2795_v32 }
 0xb3b   :  { %v2804_v41 = vpop.permute.xlu0 %2803 }
 0xb3c   :  { %v1734_v39 = vsel %vm322_vm6, %v1730_v38, %v2810_v43  ;;  %v1735_v40 = vsel %vm322_vm6, %v1731_v44, %v2811_v34  ;;  %v2806_v60 = vunpack.i.h.bf16 %v2804_v41  ;;  %v2805_v61 = vunpack.i.l.bf16 %v2804_v41 }
 0xb3d   :  { %v1737_v35 = vpack.c.bf16 %v1735_v40, %v1734_v39 }
 0xb3e   :  { %v1732_v36 = vsel %vm322_vm6, %v1728_v30, %v2805_v61  ;;  %v1733_v10 = vsel %vm322_vm6, %v1729_v29, %v2806_v60 }
 0xb3f   :  { %v1736_v47 = vpack.c.bf16 %v1733_v10, %v1732_v36  ;;  %v2479_v10 = vld [vmem:[%s3785_s6 + $0x6] ss:$0 sm:$0xff]  ;;  %s2979_s6 = smov 48  }
 0xb41   :  { %2612 = vmatprep.mubr.msk.bf16.mxu0 %vm341_vm7, %v1736_v47 }
 0xb42   :  { %2613 = vmatmul.mubr.msk.bf16.vlgmr.msra.gmra.mxu0 %vm341_vm7, %v1737_v35  ;;  %v2893_v35 = vld [vmem:[%s3787_s8] sm:$0xff]  }
 0xb43   :  { %2622 = vmatprep.subr.bf16.mxu1 %v2893_v35 }
 0xb44   :  { %2623 = vmatpush3.bf16.msra.mxu1 %v2893_v35 }
 0xc02   :  { %v2614_v8 = vpop.f32.mrf.mxu0 }
 0xc03   :  { %v1811_v6 = vmax.f32 %v2614_v8, 0.0  ;;  %v2480_v8 = vld [vmem:[%s3786_s7 + $0x6] ss:$0 sm:$0xff] }
 0xc04   :  { %v1794_v3 = vpop.f32.mrf.mxu0 }
 0xc05   :  { %v1809_v9 = vmax.f32 %v1794_v3, 0.0  ;;  %v1820_v54 = vsel %vm317_vm5, %v1811_v6, 0.0 }
 0xc06   :  { %v2615_v45 = vpop.f32.mrf.mxu0 }
 0xc07   :  { %v1817_v51 = vsel %vm317_vm5, %v1809_v9, 0.0  ;;  %v1812_v55 = vmax.f32 %v2615_v45, 0.0 }
 0xc08   :  { %v1797_v59 = vpop.f32.mrf.mxu0 }
 0xc09   :  { %v1810_v1 = vmax.f32 %v1797_v59, 0.0  ;;  %v1822_v27 = vsel %vm317_vm5, %v1812_v55, 0.0 }
 0xc0b   :  { %v1818_v52 = vsel %vm317_vm5, %v1810_v1, 0.0 }
 0xc0c   :  { %v1819_v5 = vadd.f32 %v1818_v52, %v1817_v51 }
 0xc0e   :  { %v1821_v53 = vadd.f32 %v1820_v54, %v1819_v5  ;;  %v2819_v54 = vpop.permute.xlu1 %2818 }
 0xc10   :  { %v1823_v12 = vadd.f32 %v1822_v27, %v1821_v53  ;;  %v2814_v53 = vpop.permute.xlu0 %2813 }
 0xc12   :  { %v1824_v56 = vrot.slane %v1823_v12, 4  ;;  %v2829_v27 = vpop.permute.xlu1 %2828 }
 0xc14   :  { %v1825_v62 = vadd.f32 %v1824_v56, %v1823_v12  ;;  %v2824_v12 = vpop.permute.xlu0 %2823 }
 0xc16   :  { %v1826_v28 = vrot.slane %v1825_v62, 2  ;;  %v2839_v56 = vpop.permute.xlu1 %2838 }
 0xc18   :  { %v1827_v0 = vadd.f32 %v1826_v28, %v1825_v62  ;;  %v2834_v62 = vpop.permute.xlu0 %2833 }
 0xc1a   :  { %v1828_v4 = vrot.slane %v1827_v0, 1  ;;  %v2849_v28 = vpop.permute.xlu1 %2848 }
 0xc1c   :  { %v1829_v19 = vadd.f32 %v1828_v4, %v1827_v0  ;;  %v2844_v0 = vpop.permute.xlu0 %2843  ;;  %v2821_v4 = vunpack.i.h.bf16 %v2819_v54 }
 0xc1e   :  { %v1830_v50 = vmul.f32 0.03125, %v1829_v19  ;;  %v2820_v19 = vunpack.i.l.bf16 %v2819_v54 }
 0xc20   :  { %v1831_v2 = vsub.f32 %v1809_v9, %v1830_v50  ;;  %v1832_v37 = vsub.f32 %v1810_v1, %v1830_v50  ;;  %v1833_v63 = vsub.f32 %v1811_v6, %v1830_v50  ;;  %v1834_v48 = vsub.f32 %v1812_v55, %v1830_v50 }
 0xc21   :  { %v2816_v50 = vunpack.i.h.bf16 %v2814_v53 }
 0xc22   :  { %v1835_v42 = vmul.f32 %v1831_v2, %v1831_v2  ;;  %v1836_v46 = vmul.f32 %v1832_v37, %v1832_v37  ;;  %v1837_v49 = vmul.f32 %v1833_v63, %v1833_v63  ;;  %v1838_v57 = vmul.f32 %v1834_v48, %v1834_v48 }
 0xc24   :  { %v1839_v58 = vsel %vm317_vm5, %v1835_v42, 0.0  ;;  %v1840_v31 = vsel %vm317_vm5, %v1836_v46, 0.0  ;;  %v1842_v33 = vsel %vm317_vm5, %v1837_v49, 0.0  ;;  %v1844_v43 = vsel %vm317_vm5, %v1838_v57, 0.0 }
 0xc25   :  { %v1841_v32 = vadd.f32 %v1840_v31, %v1839_v58  ;;  %v2825_v42 = vunpack.i.l.bf16 %v2824_v12  ;;  %v2841_v46 = vunpack.i.h.bf16 %v2839_v56  ;;  %v2840_v49 = vunpack.i.l.bf16 %v2839_v56 }
 0xc26   :  { %v1978_v57 = vsel %vm317_vm5, %v3203_v25, %v2821_v4  ;;  %v1977_v58 = vsel %vm317_vm5, %v3201_v24, %v2820_v19  ;;  %v1976_v31 = vsel %vm317_vm5, %v3199_v23, %v2816_v50  ;;  %v2846_v25 = vunpack.i.h.bf16 %v2844_v0  ;;  %v2894_v50 = vld [vmem:[%s3790_s11 + $0x18] sm:$0xff]  }
 0xc27   :  { %v1843_v34 = vadd.f32 %v1842_v33, %v1841_v32  ;;  %v2836_v33 = vunpack.i.h.bf16 %v2834_v62 }
 0xc29   :  { %v1845_v44 = vadd.f32 %v1844_v43, %v1843_v34  ;;  %v2835_v34 = vunpack.i.l.bf16 %v2834_v62  ;;  %v2851_v43 = vunpack.i.h.bf16 %v2849_v28 }
 0xc2b   :  { %v1846_v38 = vrot.slane %v1845_v44, 4 }
 0xc2d   :  { %v1847_v41 = vadd.f32 %v1846_v38, %v1845_v44  ;;  %v2850_v44 = vunpack.i.l.bf16 %v2849_v28  ;;  %v2859_v38 = vpop.permute.xlu1 %2858 }
 0xc2f   :  { %v1848_v39 = vrot.slane %v1847_v41, 2 }
 0xc31   :  { %v1849_v40 = vadd.f32 %v1848_v39, %v1847_v41  ;;  %v2854_v41 = vpop.permute.xlu0 %2853 }
 0xc32   :  { %v2856_v35 = vunpack.i.h.bf16 %v2854_v41 }
 0xc33   :  { %v1850_v60 = vrot.slane %v1849_v40, 1 }
 0xc35   :  { %v1851_v61 = vadd.f32 %v1850_v60, %v1849_v40  ;;  %v2845_v60 = vunpack.i.l.bf16 %v2844_v0 }
 0xc37   :  { %v1852_v29 = vmul.f32 0.03125, %v1851_v61 }
 0xc39   :  { %v1853_v30 = vadd.f32 1e-05, %v1852_v29  ;;  %v2861_v29 = vunpack.i.h.bf16 %v2859_v38 }
 0xc3b   :  { %2914 = vrsqrt.f32 %v1853_v30  ;;  %v2860_v30 = vunpack.i.l.bf16 %v2859_v38 }
 0xc48   :  { %v2915_v36 = vpop.eup %2914 }
 0xc49   :  { %v1856_v47 = vmul.f32 %v2915_v36, %v1832_v37  ;;  %v1857_v20 = vmul.f32 %v2915_v36, %v1833_v63  ;;  %v1858_v21 = vmul.f32 %v2915_v36, %v1834_v48  ;;  %v1855_v22 = vmul.f32 %v2915_v36, %v1831_v2 }
 0xc4a   :  { %v2815_v2 = vunpack.i.l.bf16 %v2814_v53  ;;  %v2831_v37 = vunpack.i.h.bf16 %v2829_v27  ;;  %v2830_v63 = vunpack.i.l.bf16 %v2829_v27  ;;  %v2826_v48 = vunpack.i.h.bf16 %v2824_v12 }
 0xc4b   :  { %v1866_v3 = vmul.f32 %v2479_v10, %v1856_v47  ;;  %v1867_v45 = vmul.f32 %v2479_v10, %v1857_v20  ;;  %v1868_v9 = vmul.f32 %v2479_v10, %v1858_v21  ;;  %v1865_v59 = vmul.f32 %v2479_v10, %v1855_v22 }
 0xc4c   :  { %v1975_v32 = vsel %vm317_vm5, %v3205_v26, %v2815_v2  ;;  %v1981_v39 = vsel %vm322_vm6, %v1977_v58, %v2830_v63  ;;  %v1982_v40 = vsel %vm322_vm6, %v1978_v57, %v2831_v37  ;;  %v1980_v61 = vsel %vm322_vm6, %v1976_v31, %v2826_v48  ;;  %v2898_v2 = vld [vmem:[%s3792_s13 + $0x8] sm:$0xff]  }
 0xc4d   :  { %v1877_v6 = vadd.f32 %v2480_v8, %v1867_v45  ;;  %v1878_v1 = vadd.f32 %v2480_v8, %v1868_v9  ;;  %v1875_v51 = vadd.f32 %v2480_v8, %v1865_v59  ;;  %v1876_v55 = vadd.f32 %v2480_v8, %v1866_v3 }
 0xc4e   :  { %v1979_v24 = vsel %vm322_vm6, %v1975_v32, %v2825_v42  ;;  %v1985_v23 = vsel %vm341_vm7, %v1981_v39, %v2840_v49  ;;  %v1986_v26 = vsel %vm341_vm7, %v1982_v40, %v2841_v46  ;;  %v2855_v36 = vunpack.i.l.bf16 %v2854_v41 }
 0xc4f   :  { %v2867_v52 = vpack.i.bf16 %v1878_v1, %v1877_v6  ;;  %v2862_v5 = vpack.i.bf16 %v1876_v55, %v1875_v51  ;;  %v1983_v10 = vsel %vm341_vm7, %v1979_v24, %v2835_v34  ;;  %v1984_v47 = vsel %vm341_vm7, %v1980_v61, %v2836_v33 }
 0xc50   :  { %v1990_v20 = vsel %vm1987_vm8, %v1985_v23, %v2850_v44  ;;  %v1991_v21 = vsel %vm1987_vm8, %v1986_v26, %v2851_v43  ;;  %v1988_v22 = vsel %vm1987_vm8, %v1983_v10, %v2845_v60  ;;  %v1989_v8 = vsel %vm1987_vm8, %v1984_v47, %v2846_v25 }
 0xc51   :  { %2868 = vrot.lane.b32.xlu1 %v2867_v52, %s2979_s6  ;;  %2863 = vrot.lane.b32.xlu0 %v2862_v5, %s2979_s6  ;;  %v1995_v51 = vsel %vm1992_vm9, %v1990_v20, %v2860_v30  ;;  %v1996_v55 = vsel %vm1992_vm9, %v1991_v21, %v2861_v29  ;;  %v1993_v52 = vsel %vm1992_vm9, %v1988_v22, %v2855_v36 }
 0xc52   :  { %v1994_v5 = vsel %vm1992_vm9, %v1989_v8, %v2856_v35 }
 0xcc3   :  { %v2869_v3 = vpop.permute.xlu1 %2868  ;;  %v2864_v45 = vpop.permute.xlu0 %2863 }
 0xcc4   :  { %v2871_v9 = vunpack.i.h.bf16 %v2869_v3  ;;  %v2870_v59 = vunpack.i.l.bf16 %v2869_v3  ;;  %v2866_v6 = vunpack.i.h.bf16 %v2864_v45  ;;  %v2865_v1 = vunpack.i.l.bf16 %v2864_v45 }
 0xcc6   :  { %v2001_v54 = vsel %vm1997_vm10, %v1996_v55, %v2871_v9  ;;  %v2000_v53 = vsel %vm1997_vm10, %v1995_v51, %v2870_v59  ;;  %v1999_v27 = vsel %vm1997_vm10, %v1994_v5, %v2866_v6  ;;  %v1998_v12 = vsel %vm1997_vm10, %v1993_v52, %v2865_v1 }
 0xcc7   :  { %v2006_v56 = vsel %vm2002_vm11, %v2001_v54, %v3142_v18  ;;  %v2005_v62 = vsel %vm2002_vm11, %v2000_v53, %v3140_v17  ;;  %v2004_v28 = vsel %vm2002_vm11, %v1999_v27, %v3138_v14  ;;  %v2003_v0 = vsel %vm2002_vm11, %v1998_v12, %v3136_v13  ;;  %v2895_v14 = vld [vmem:[%s3790_s11 + $0x10] sm:$0xff]   ;;  %v2896_v13 = vld [vmem:[%s3790_s11 + $0x8] sm:$0xff]   ;;  %v2897_v17 = vld [vmem:[%s3790_s11] sm:$0xff]  }
 0xcc8   :  { %v2008_v4 = vpack.c.bf16 %v2006_v56, %v2005_v62  ;;  %v2007_v19 = vpack.c.bf16 %v2004_v28, %v2003_v0  ;;  %v2980_v18 = vmov 0.0   ;;  %v2487_v27 = vld [vmem:[%s3788_s9] ss:$0 sm:$0xff] }
 0xcc9   :  { %2628 = vmatprep.subr.bf16.mxu0 %v2980_v18  ;;  %2640 = vmatprep.subr.bf16.mxu1 %v2980_v18  ;;  %v2488_v0 = vld [vmem:[%s3789_s10] ss:$0 sm:$0xff] }
 0xcca   :  { %2624 = vmatprep.mubr.msk.bf16.mxu1 %vm121_vm0, %v2007_v19  ;;  %2629 = vmatpush3.bf16.msra.mxu0 %v2894_v50 }
 0xccb   :  { %2625 = vmatmul.mubr.msk.bf16.vlgmr.msra.gmra.mxu1 %vm121_vm0, %v2008_v4  ;;  %2630 = vmatprep.subr.bf16.mxu0 %v2980_v18 }
 0xccc   :  { %2636 = vmatprep.mubr.msk.bf16.mxu0 %vm2981_vm12, %v2980_v18  ;;  %2644 = vmatprep.mubr.msk.bf16.mxu1 %vm2981_vm12, %v2980_v18 }
 0xccd   :  { %2641 = vmatpush3.bf16.msra.mxu1 %v2898_v2 }
 0xcce   :  { %2631 = vmatpush3.bf16.msra.mxu0 %v2895_v14  ;;  %2642 = vmatprep.subr.bf16.mxu1 %v2980_v18 }
 0xccf   :  { %2632 = vmatprep.subr.bf16.mxu0 %v2980_v18 }
 0xcd2   :  { %2633 = vmatpush3.bf16.msra.mxu0 %v2896_v13 }
 0xcd3   :  { %2634 = vmatprep.subr.bf16.mxu0 %v2980_v18 }
 0xcd6   :  { %2635 = vmatpush3.bf16.msra.mxu0 %v2897_v17 }
 0xd8b   :  { %v2626_v37 = vpop.f32.mrf.mxu1 }
 0xd8c   :  { %v2098_v49 = vmax.f32 %v2626_v37, 0.0 }
 0xd8d   :  { %v2081_v63 = vpop.f32.mrf.mxu1 }
 0xd8e   :  { %v2096_v42 = vmax.f32 %v2081_v63, 0.0  ;;  %v2105_v34 = vsel %vm121_vm0, %v2098_v49, 0.0 }
 0xd8f   :  { %v2627_v48 = vpop.f32.mrf.mxu1 }
 0xd90   :  { %v2102_v58 = vsel %vm121_vm0, %v2096_v42, 0.0  ;;  %v2099_v31 = vmax.f32 %v2627_v48, 0.0 }
 0xd91   :  { %v2084_v46 = vpop.f32.mrf.mxu1 }
 0xd92   :  { %v2097_v57 = vmax.f32 %v2084_v46, 0.0  ;;  %v2107_v44 = vsel %vm121_vm0, %v2099_v31, 0.0 }
 0xd94   :  { %v2103_v32 = vsel %vm121_vm0, %v2097_v57, 0.0 }
 0xd95   :  { %v2104_v33 = vadd.f32 %v2103_v32, %v2102_v58 }
 0xd97   :  { %v2106_v43 = vadd.f32 %v2105_v34, %v2104_v33 }
 0xd99   :  { %v2108_v38 = vadd.f32 %v2107_v44, %v2106_v43 }
 0xd9b   :  { %v2109_v41 = vrot.slane %v2108_v38, 4 }
 0xd9d   :  { %v2110_v39 = vadd.f32 %v2109_v41, %v2108_v38 }
 0xd9f   :  { %v2111_v40 = vrot.slane %v2110_v39, 2 }
 0xda1   :  { %v2112_v25 = vadd.f32 %v2111_v40, %v2110_v39 }
 0xda3   :  { %v2113_v60 = vrot.slane %v2112_v25, 1 }
 0xda5   :  { %v2114_v24 = vadd.f32 %v2113_v60, %v2112_v25 }
 0xda7   :  { %v2115_v61 = vmul.f32 0.03125, %v2114_v24 }
 0xda9   :  { %v2116_v23 = vsub.f32 %v2096_v42, %v2115_v61  ;;  %v2117_v26 = vsub.f32 %v2097_v57, %v2115_v61  ;;  %v2118_v29 = vsub.f32 %v2098_v49, %v2115_v61  ;;  %v2119_v30 = vsub.f32 %v2099_v31, %v2115_v61 }
 0xdab   :  { %v2120_v35 = vmul.f32 %v2116_v23, %v2116_v23  ;;  %v2121_v36 = vmul.f32 %v2117_v26, %v2117_v26  ;;  %v2122_v10 = vmul.f32 %v2118_v29, %v2118_v29  ;;  %v2123_v47 = vmul.f32 %v2119_v30, %v2119_v30 }
 0xdad   :  { %v2124_v20 = vsel %vm121_vm0, %v2120_v35, 0.0  ;;  %v2125_v21 = vsel %vm121_vm0, %v2121_v36, 0.0  ;;  %v2127_v8 = vsel %vm121_vm0, %v2122_v10, 0.0  ;;  %v2129_v45 = vsel %vm121_vm0, %v2123_v47, 0.0  ;;  %v2899_v35 = vld [vmem:[%s3792_s13] sm:$0xff]  }
 0xdae   :  { %v2126_v22 = vadd.f32 %v2125_v21, %v2124_v20  ;;  %2643 = vmatpush3.bf16.msra.mxu1 %v2899_v35  ;;  %v2489_v36 = vld [vmem:[#allocation2] ss:$0 sm:$0xff] }
 0xdb0   :  { %v2128_v3 = vadd.f32 %v2127_v8, %v2126_v22 }
 0xdb2   :  { %v2130_v9 = vadd.f32 %v2129_v45, %v2128_v3  ;;  %v2495_v45 = vld [vmem:[#allocation4] ss:$0 sm:$0xff] }
 0xdb4   :  { %v2131_v59 = vrot.slane %v2130_v9, 4 }
 0xdb6   :  { %v2132_v6 = vadd.f32 %v2131_v59, %v2130_v9 }
 0xdb8   :  { %v2133_v1 = vrot.slane %v2132_v6, 2 }
 0xdba   :  { %v2134_v51 = vadd.f32 %v2133_v1, %v2132_v6 }
 0xdbc   :  { %v2135_v55 = vrot.slane %v2134_v51, 1 }
 0xdbe   :  { %v2136_v52 = vadd.f32 %v2135_v55, %v2134_v51 }
 0xdc0   :  { %v2137_v5 = vmul.f32 0.03125, %v2136_v52 }
 0xdc2   :  { %v2138_v54 = vadd.f32 1e-05, %v2137_v5 }
 0xdc4   :  { %2916 = vrsqrt.f32 %v2138_v54  ;;  %v2982_v54 = vmov 1966171168  }
 0xdd1   :  { %v2917_v53 = vpop.eup %2916 }
 0xdd2   :  { %v2140_v12 = vmul.f32 %v2917_v53, %v2116_v23  ;;  %v2141_v56 = vmul.f32 %v2917_v53, %v2117_v26  ;;  %v2142_v62 = vmul.f32 %v2917_v53, %v2118_v29  ;;  %v2143_v28 = vmul.f32 %v2917_v53, %v2119_v30 }
 0xdd3   :  { %v2352_v53 = vunpack.c.l.s4 %v2982_v54 }
 0xdd4   :  { %v2150_v4 = vmul.f32 %v2487_v27, %v2140_v12  ;;  %v2151_v19 = vmul.f32 %v2487_v27, %v2141_v56  ;;  %v2152_v50 = vmul.f32 %v2487_v27, %v2142_v62  ;;  %v2153_v18 = vmul.f32 %v2487_v27, %v2143_v28 }
 0xdd5   :  { %v2354_v27 = vlaneseq  ;;  %v2353_v12 = vunpack.c.0.s8 %v2352_v53 }
 0xdd6   :  { %v3734_v14 = vadd.f32 %v2488_v0, %v2150_v4  ;;  %v3736_v13 = vadd.f32 %v2488_v0, %v2151_v19  ;;  %v3738_v17 = vadd.f32 %v2488_v0, %v2152_v50  ;;  %v3740_v2 = vadd.f32 %v2488_v0, %v2153_v18 }
 0xdd7   :  { %v2355_v56 = vshrl.u32 %v2354_v27, 7 }
 0xdd8   :  { %v2164_v37 = vsel %vm121_vm0, %v3734_v14, 0.0  ;;  %v2165_v63 = vsel %vm121_vm0, %v3736_v13, 0.0  ;;  %v2173_v48 = vsel %vm121_vm0, %v3738_v17, 0.0  ;;  %v2174_v42 = vsel %vm121_vm0, %v3740_v2, 0.0 }
 0xdd9   :  { %v2166_v46 = vadd.f32 %v2165_v63, %v2164_v37  ;;  %v2175_v49 = vadd.f32 %v2174_v42, %v2173_v48  ;;  %v2356_v62 = vsub.s32 %v2353_v12, %v2355_v56  ;;  %v2375_v4 = vsub.s32 0, %v2355_v56 }
 0xddb   :  { %v2167_v57 = vrot.slane %v2166_v46, 4  ;;  %v2176_v58 = vrot.slane %v2175_v49, 4 }
 0xddd   :  { %v2168_v31 = vadd.f32 %v2167_v57, %v2166_v46  ;;  %v2177_v32 = vadd.f32 %v2176_v58, %v2175_v49 }
 0xddf   :  { %v2169_v33 = vrot.slane %v2168_v31, 2  ;;  %v2178_v34 = vrot.slane %v2177_v32, 2 }
 0xde1   :  { %v2170_v43 = vadd.f32 %v2169_v33, %v2168_v31  ;;  %v2179_v44 = vadd.f32 %v2178_v34, %v2177_v32 }
 0xde3   :  { %v2171_v38 = vrot.slane %v2170_v43, 1  ;;  %v2180_v41 = vrot.slane %v2179_v44, 1 }
 0xde5   :  { %v2172_v39 = vadd.f32 %v2171_v38, %v2170_v43  ;;  %v2181_v40 = vadd.f32 %v2180_v41, %v2179_v44 }
 0xde7   :  { %v2183_v25 = vmul.f32 0.0625, %v2172_v39  ;;  %v2184_v60 = vmul.f32 0.0625, %v2181_v40 }
 0xde9   :  { %v2185_v24 = vpack.c.bf16 %v2183_v25, %v2183_v25  ;;  %v2186_v61 = vpack.c.bf16 %v2184_v60, %v2184_v60 }
 0xdeb   :  { %v2204_v23 = vunpack.c.l.b16 %v2185_v24  ;;  %v2205_v26 = vunpack.c.l.b16 %v2186_v61 }
 0xded   :  { %v2207_v29 = vsel %vm2206_vm13, %v2205_v26, %v2204_v23 }
 0xdee   :  { %v2208_v30 = vpack.c.b16 %v2207_v29, %v2207_v29 }
 0xdf0   :  { %2637 = vmatmul.mubr.msk.bf16.vlgmr.msra.gmra.mxu0 %vm121_vm0, %v2208_v30 }
 0xeb0   :  { %v2270_v10 = vpop.f32.mrf.mxu0 }
 0xeb1   :  { %v2271_v47 = vadd.f32 %v2489_v36, %v2270_v10 }
 0xeb2   :  { %v2638_v20 = vpop.f32.mrf.mxu0 }
 0xeb3   :  { %v2276_v21 = vmax.f32 %v2271_v47, 0.0 }
 0xeb4   :  { %v2273_v22 = vpop.f32.mrf.mxu0 }
 0xeb5   :  { %v2277_v8 = vpack.c.bf16 %v2276_v21, %v2276_v21 }
 0xeb6   :  { %v2639_v3 = vpop.f32.mrf.mxu0 }
 0xeb7   :  { %2645 = vmatmul.mubr.msk.bf16.vlgmr.msra.gmra.mxu1 %vm1987_vm8, %v2277_v8 }
 0xf77   :  { %v2338_v9 = vpop.f32.mrf.mxu1 }
 0xf78   :  { %v2339_v59 = vadd.f32 %v2495_v45, %v2338_v9 }
 0xf79   :  { %v2646_v6 = vpop.f32.mrf.mxu1 }
 0xf7a   :  { %v2499_v1 = vmul.f32 -1.442695, %v2339_v59 }
 0xf7b   :  { %v2341_v51 = vpop.f32.mrf.mxu1 }
 0xf7c   :  { %2918 = vpow2.f32 %v2499_v1 }
 0xf7d   :  { %v2647_v55 = vpop.f32.mrf.mxu1 }
 0xf89   :  { %v2919_v52 = vpop.eup %2918 }
 0xf8a   :  { %v2347_v5 = vadd.f32 1.0, %v2919_v52 }
 0xf8c   :  { %2920 = vrcp.f32 %v2347_v5 }
 0xf99   :  { %v2921_v28 = vpop.eup %2920 }
 0xf9a   :  { %v2357_v0 = vrot.slane %v2921_v28, %v2356_v62 }
 0xf9c   :  { %v2358_v19 = vcombine.high %v2357_v0, %v2357_v0  ;;  %v2365_v50 = vrot.slane %v2357_v0, %v2356_v62 }
 0xf9e   :  { %v2372_v18 = vrot.slane %v2358_v19, %v2356_v62  ;;  %v2376_v37 = vrot.slane %v2365_v50, %v2375_v4 }
 0xfa0   :  { %v2380_v63 = vrot.slane %v2372_v18, %v2375_v4  ;;  %v2383_v48 = vmul.f32 %v2376_v37, %v3734_v14  ;;  %v2384_v42 = vmul.f32 %v2376_v37, %v3736_v13 }
 0xfa2   :  { %v2385_v46 = vmul.f32 %v2380_v63, %v3738_v17  ;;  %v2386_v49 = vmul.f32 %v2380_v63, %v3740_v2  ;;  %v2387_v57 = vadd.f32 %v2383_v48, %v3090_v7  ;;  %v2388_v58 = vadd.f32 %v2384_v42, %v3101_v11 }
 0xfa4   :  { %v2389_v31 = vadd.f32 %v2385_v46, %v3112_v15  ;;  %v2390_v32 = vadd.f32 %v2386_v49, %v3114_v16  ;;  %2391 = vst.msk [vmem:[%s3794_s15] sm:$0xff] %vm121_vm0, %v2387_v57  ;;  %2392 = vst.msk [vmem:[%s3794_s15 + $0x8] sm:$0xff] %vm121_vm0, %v2388_v58 }
 0xfa6   :  { %2393 = vst.msk [vmem:[%s3794_s15 + $0x10] sm:$0xff] %vm121_vm0, %v2389_v31  ;;  %2394 = vst.msk [vmem:[%s3794_s15 + $0x18] sm:$0xff] %vm121_vm0, %v2390_v32 }
 0xfa7   :  { %2399 = vsyncpa [#allocation3], 1 }
 0xfa8   :  { %2400 = vsyncpa [#allocation5], 1 }

// kernel: encode_forward.8
= control target key start
LH: loop header
LB: loop body
LE: loop exit
PB: predicated region body
PF: predicated region fallthrough
CT: control target
= control target key end

     0   :  { %vm86_vm0 = vcmask 523264   ;;  %vm215_vm1 = vcmask 1041408   ;;  %vm259_vm2 = vcmask 1043456   ;;  %vm236_vm3 = vcmask 1045504   ;;  %s2886_s18 = smov 16   ;;  %s2887_s19 = smov 8   ;;  %s3676_s1 = inlined_call_operand.vmem [shape: bf16[64,64], index: 1, kind: input, shape index: {}]   ;;  %s3677_s0 = inlined_call_operand.vmem [shape: f32[2,16,64], index: 0, kind: input, shape index: {}]   ;;  %s3678_s2 = inlined_call_operand.vmem [shape: f32[1,64], index: 2, kind: input, shape index: {}]   ;;  %s3679_s3 = inlined_call_operand.vmem [shape: f32[1,64], index: 3, kind: input, shape index: {}]   ;;  %s3680_s4 = inlined_call_operand.vmem [shape: bf16[7,24,8], index: 4, kind: input, shape index: {}]   ;;  %s3681_s5 = inlined_call_operand.vmem [shape: f32[7,1,8], index: 5, kind: input, shape index: {}]   ;;  %s3682_s6 = inlined_call_operand.vmem [shape: f32[7,1,8], index: 6, kind: input, shape index: {}]   ;;  %s3683_s7 = inlined_call_operand.vmem [shape: bf16[64,64], index: 7, kind: input, shape index: {}]   ;;  %s3684_s10 = inlined_call_operand.vmem [shape: bf16[64,32], index: 10, kind: input, shape index: {}]   ;;  %s3685_s12 = inlined_call_operand.vmem [shape: bf16[32,64], index: 12, kind: input, shape index: {}]   ;;  %s3686_s8 = inlined_call_operand.vmem [shape: f32[1,64], index: 8, kind: input, shape index: {}]   ;;  %s3687_s9 = inlined_call_operand.vmem [shape: f32[1,64], index: 9, kind: input, shape index: {}]   ;;  %s3688_s11 = inlined_call_operand.vmem [shape: f32[1,32], index: 11, kind: input, shape index: {}]   ;;  %s3689_s13 = inlined_call_operand.vmem [shape: f32[1,64], index: 13, kind: input, shape index: {}]   ;;  %s3690_s14 = inlined_call_operand.vmem [shape: f32[2,16,64], index: 14, kind: output, shape index: {}]  }
   0x1   :  { %v2832_v0 = vld [vmem:[%s3676_s1 + $0x18] sm:$0xff]   ;;  %v2833_v1 = vld [vmem:[%s3676_s1 + $0x10] sm:$0xff]   ;;  %v2834_v2 = vld [vmem:[%s3676_s1 + $0x8] sm:$0xff]   ;;  %s2888_s20 = smov 120   ;;  %vm282_vm4 = vcmask 64512   ;;  %vm287_vm5 = vcmask 130048  }
   0x2   :  { %2510 = vmatprep.subr.bf16.mxu0 %v2832_v0  ;;  %v48_v3 = vld [vmem:[%s3677_s0] sm:$0xff]  ;;  %v49_v4 = vld [vmem:[%s3677_s0 + $0x8] sm:$0xff]  ;;  %v50_v7 = vld [vmem:[%s3677_s0 + $0x10] sm:$0xff]  ;;  %vm306_vm6 = vcmask 195584   ;;  %s2890_s21 = smov 104   ;;  %s2891_s29 = smov 96  }
   0x3   :  { %2511 = vmatpush3.bf16.msra.mxu0 %v2832_v0  ;;  %v52_v5 = vpack.c.bf16 %v49_v4, %v48_v3  ;;  %v2835_v6 = vld [vmem:[%s3676_s1] sm:$0xff]   ;;  %v51_v8 = vld [vmem:[%s3677_s0 + $0x18] sm:$0xff]  ;;  %s2889_s1 = smov 112   ;;  %s2892_s22 = smov 88   ;;  %vm1951_vm7 = vcmask 261120   ;;  %vm1956_vm8 = vcmask 326656  }
   0x4   :  { %2512 = vmatprep.subr.bf16.mxu0 %v2833_v1  ;;  %v53_v9 = vpack.c.bf16 %v51_v8, %v50_v7  ;;  %v2369_v56 = vld [vmem:[%s3678_s2] ss:$0 sm:$0xff]  ;;  %s2893_s30 = smov 80   ;;  %vm1961_vm9 = vcmask 392192   ;;  %vm1966_vm10 = vcmask 457728   ;;  %vm2899_vm11 = vmmov 0  }
   0x5   :  { %2518 = vmatprep.mubr.msk.bf16.mxu0 %vm86_vm0, %v52_v5  ;;  %v2370_v61 = vld [vmem:[%s3679_s3] ss:$0 sm:$0xff]  ;;  %vm2170_vm12 = vcmask 1041409  }
   0x7   :  { %2513 = vmatpush3.bf16.msra.mxu0 %v2833_v1 }
   0x8   :  { %2514 = vmatprep.subr.bf16.mxu0 %v2834_v2 }
   0xb   :  { %2515 = vmatpush3.bf16.msra.mxu0 %v2834_v2  ;;  %v2836_v2 = vld [vmem:[%s3680_s4 + $0x8] ss:$0 sps:$4 sm:$0xff]  }
   0xc   :  { %2516 = vmatprep.subr.bf16.mxu0 %v2835_v6  ;;  %2610 = vmatprep.subr.msk.bf16.mxu1 %vm259_vm2, %v2836_v2  ;;  %v314_v7 = vsel %vm259_vm2, %v2836_v2, 0 }
   0xd   :  { %2523 = vmatpush3.bf16.msra.mxu1 %v314_v7 }
   0xf   :  { %2517 = vmatpush3.bf16.msra.mxu0 %v2835_v6 }
  0x12   :  { %2519 = vmatmul.mubr.msk.bf16.vlgmr.msra.gmra.mxu0 %vm86_vm0, %v53_v9 }
  0xd2   :  { %v2520_v10 = vpop.f32.mrf.mxu0 }
  0xd3   :  { %v144_v15 = vmax.f32 %v2520_v10, 0.0 }
  0xd4   :  { %v127_v11 = vpop.f32.mrf.mxu0 }
  0xd5   :  { %v142_v13 = vmax.f32 %v127_v11, 0.0  ;;  %v151_v21 = vsel %vm86_vm0, %v144_v15, 0.0 }
  0xd6   :  { %v2521_v12 = vpop.f32.mrf.mxu0 }
  0xd7   :  { %v148_v17 = vsel %vm86_vm0, %v142_v13, 0.0  ;;  %v145_v18 = vmax.f32 %v2521_v12, 0.0 }
  0xd8   :  { %v130_v14 = vpop.f32.mrf.mxu0 }
  0xd9   :  { %v143_v16 = vmax.f32 %v130_v14, 0.0  ;;  %v153_v23 = vsel %vm86_vm0, %v145_v18, 0.0 }
  0xdb   :  { %v149_v19 = vsel %vm86_vm0, %v143_v16, 0.0 }
  0xdc   :  { %v150_v20 = vadd.f32 %v149_v19, %v148_v17 }
  0xde   :  { %v152_v22 = vadd.f32 %v151_v21, %v150_v20 }
  0xe0   :  { %v154_v24 = vadd.f32 %v153_v23, %v152_v22 }
  0xe2   :  { %v155_v25 = vrot.slane %v154_v24, 4 }
  0xe4   :  { %v156_v26 = vadd.f32 %v155_v25, %v154_v24 }
  0xe6   :  { %v157_v27 = vrot.slane %v156_v26, 2 }
  0xe8   :  { %v158_v28 = vadd.f32 %v157_v27, %v156_v26 }
  0xea   :  { %v159_v29 = vrot.slane %v158_v28, 1 }
  0xec   :  { %v160_v30 = vadd.f32 %v159_v29, %v158_v28 }
  0xee   :  { %v162_v31 = vmul.f32 0.03125, %v160_v30 }
  0xf0   :  { %v163_v32 = vsub.f32 %v142_v13, %v162_v31  ;;  %v164_v33 = vsub.f32 %v143_v16, %v162_v31  ;;  %v165_v34 = vsub.f32 %v144_v15, %v162_v31  ;;  %v166_v35 = vsub.f32 %v145_v18, %v162_v31  ;;  %v2837_v16 = vld [vmem:[%s3680_s4] sm:$0xff]  }
  0xf1   :  { %2524 = vmatprep.subr.bf16.mxu1 %v2837_v16 }
  0xf2   :  { %v167_v36 = vmul.f32 %v163_v32, %v163_v32  ;;  %v168_v37 = vmul.f32 %v164_v33, %v164_v33  ;;  %v169_v38 = vmul.f32 %v165_v34, %v165_v34  ;;  %v170_v39 = vmul.f32 %v166_v35, %v166_v35  ;;  %2525 = vmatpush3.bf16.msra.mxu1 %v2837_v16 }
  0xf4   :  { %v171_v40 = vsel %vm86_vm0, %v167_v36, 0.0  ;;  %v172_v41 = vsel %vm86_vm0, %v168_v37, 0.0  ;;  %v174_v43 = vsel %vm86_vm0, %v169_v38, 0.0  ;;  %v176_v45 = vsel %vm86_vm0, %v170_v39, 0.0 }
  0xf5   :  { %v173_v42 = vadd.f32 %v172_v41, %v171_v40 }
  0xf7   :  { %v175_v44 = vadd.f32 %v174_v43, %v173_v42 }
  0xf9   :  { %v177_v46 = vadd.f32 %v176_v45, %v175_v44 }
  0xfb   :  { %v178_v47 = vrot.slane %v177_v46, 4 }
  0xfd   :  { %v179_v48 = vadd.f32 %v178_v47, %v177_v46 }
  0xff   :  { %v180_v49 = vrot.slane %v179_v48, 2 }
 0x101   :  { %v181_v50 = vadd.f32 %v180_v49, %v179_v48 }
 0x103   :  { %v182_v51 = vrot.slane %v181_v50, 1 }
 0x105   :  { %v183_v52 = vadd.f32 %v182_v51, %v181_v50 }
 0x107   :  { %v184_v53 = vmul.f32 0.03125, %v183_v52 }
 0x109   :  { %v185_v54 = vadd.f32 1e-05, %v184_v53 }
 0x10b   :  { %2860 = vrsqrt.f32 %v185_v54 }
 0x118   :  { %v2861_v55 = vpop.eup %2860 }
 0x119   :  { %v187_v57 = vmul.f32 %v2861_v55, %v163_v32  ;;  %v188_v58 = vmul.f32 %v2861_v55, %v164_v33  ;;  %v189_v59 = vmul.f32 %v2861_v55, %v165_v34  ;;  %v190_v60 = vmul.f32 %v2861_v55, %v166_v35 }
 0x11b   :  { %v197_v62 = vmul.f32 %v2369_v56, %v187_v57  ;;  %v198_v63 = vmul.f32 %v2369_v56, %v188_v58  ;;  %v199_v0 = vmul.f32 %v2369_v56, %v189_v59  ;;  %v200_v1 = vmul.f32 %v2369_v56, %v190_v60 }
 0x11d   :  { %v3019_v3 = vadd.f32 %v2370_v61, %v197_v62  ;;  %v3021_v4 = vadd.f32 %v2370_v61, %v198_v63  ;;  %v3023_v5 = vadd.f32 %v2370_v61, %v199_v0  ;;  %v3025_v6 = vadd.f32 %v2370_v61, %v200_v1 }
 0x11f   :  { %v216_v8 = vrot.slane %v3019_v3, 6  ;;  %v217_v9 = vrot.slane %v3021_v4, 6  ;;  %v219_v10 = vrot.slane %v3023_v5, 6  ;;  %v220_v11 = vrot.slane %v3025_v6, 6 }
 0x121   :  { %v218_v12 = vsel %vm215_vm1, %v216_v8, %v217_v9  ;;  %v228_v13 = vsel %vm215_vm1, 0.0, %v216_v8  ;;  %v230_v14 = vsel %vm215_vm1, %v217_v9, 0.0  ;;  %v221_v15 = vsel %vm215_vm1, %v219_v10, %v220_v11 }
 0x122   :  { %v260_v17 = vrot.slane %v228_v13, 4  ;;  %v261_v18 = vrot.slane %v218_v12, 4  ;;  %v263_v19 = vrot.slane %v230_v14, 4  ;;  %v237_v20 = vrot.slane %v228_v13, 2 }
 0x123   :  { %v238_v21 = vrot.slane %v218_v12, 2  ;;  %v240_v22 = vrot.slane %v230_v14, 2  ;;  %v229_v23 = vsel %vm215_vm1, 0.0, %v219_v10  ;;  %v231_v24 = vsel %vm215_vm1, %v220_v11, 0.0 }
 0x124   :  { %v262_v25 = vsel %vm259_vm2, %v260_v17, %v261_v18  ;;  %v264_v26 = vsel %vm259_vm2, %v261_v18, %v263_v19  ;;  %v265_v27 = vrot.slane %v229_v23, 4  ;;  %v266_v28 = vrot.slane %v221_v15, 4 }
 0x125   :  { %v2642_v29 = vpack.i.bf16 %v264_v26, %v262_v25  ;;  %v239_v30 = vsel %vm236_vm3, %v237_v20, %v238_v21  ;;  %v241_v31 = vsel %vm236_vm3, %v238_v21, %v240_v22  ;;  %v268_v32 = vrot.slane %v231_v24, 4 }
 0x126   :  { %v2632_v33 = vpack.i.bf16 %v241_v31, %v239_v30  ;;  %v267_v34 = vsel %vm259_vm2, %v265_v27, %v266_v28  ;;  %v242_v35 = vrot.slane %v229_v23, 2  ;;  %v243_v36 = vrot.slane %v221_v15, 2 }
 0x127   :  { %2643 = vrot.lane.b32.xlu1 %v2642_v29, %s2886_s18  ;;  %v269_v37 = vsel %vm259_vm2, %v266_v28, %v268_v32  ;;  %v245_v38 = vrot.slane %v231_v24, 2 }
 0x128   :  { %2633 = vrot.lane.b32.xlu0 %v2632_v33, %s2887_s19  ;;  %v244_v39 = vsel %vm236_vm3, %v242_v35, %v243_v36  ;;  %v2647_v40 = vpack.i.bf16 %v269_v37, %v267_v34 }
 0x129   :  { %v246_v41 = vsel %vm236_vm3, %v243_v36, %v245_v38 }
 0x12a   :  { %v2637_v42 = vpack.i.bf16 %v246_v41, %v244_v39 }
 0x12b   :  { %2648 = vrot.lane.b32.xlu1 %v2647_v40, %s2886_s18 }
 0x12c   :  { %2638 = vrot.lane.b32.xlu0 %v2637_v42, %s2887_s19 }
 0x12f   :  { %435 = vrot.lane.b32.xlu1 %v3021_v4, %s2888_s20 }
 0x130   :  { %433 = vrot.lane.b32.xlu0 %v3019_v3, %s2888_s20 }
 0x133   :  { %439 = vrot.lane.b32.xlu1 %v3025_v6, %s2888_s20 }
 0x134   :  { %437 = vrot.lane.b32.xlu0 %v3023_v5, %s2888_s20 }
 0x199   :  { %v2644_v43 = vpop.permute.xlu1 %2643 }
 0x19a   :  { %v2646_v44 = vunpack.i.h.bf16 %v2644_v43  ;;  %v2645_v45 = vunpack.i.l.bf16 %v2644_v43  ;;  %v2634_v46 = vpop.permute.xlu0 %2633 }
 0x19b   :  { %v2636_v47 = vunpack.i.h.bf16 %v2634_v46  ;;  %v2635_v48 = vunpack.i.l.bf16 %v2634_v46 }
 0x19d   :  { %v2649_v49 = vpop.permute.xlu1 %2648  ;;  %v283_v50 = vsel %vm282_vm4, %v228_v13, %v2635_v48  ;;  %v284_v51 = vsel %vm282_vm4, %v218_v12, %v2636_v47 }
 0x19e   :  { %v2651_v52 = vunpack.i.h.bf16 %v2649_v49  ;;  %v2650_v53 = vunpack.i.l.bf16 %v2649_v49  ;;  %v2639_v54 = vpop.permute.xlu0 %2638  ;;  %v288_v55 = vsel %vm287_vm5, %v283_v50, %v2645_v45  ;;  %v289_v56 = vsel %vm287_vm5, %v284_v51, %v2646_v44 }
 0x19f   :  { %v2641_v57 = vunpack.i.h.bf16 %v2639_v54  ;;  %v2640_v58 = vunpack.i.l.bf16 %v2639_v54  ;;  %v292_v59 = vpack.c.bf16 %v289_v56, %v288_v55 }
 0x1a1   :  { %v286_v60 = vsel %vm282_vm4, %v221_v15, %v2641_v57  ;;  %v285_v61 = vsel %vm282_vm4, %v229_v23, %v2640_v58  ;;  %2526 = vmatprep.mubr.msk.bf16.mxu1 %vm306_vm6, %v292_v59  ;;  %v436_v51 = vpop.permute.xlu1 %435  ;;  %v2376_v58 = vld [vmem:[%s3682_s6] ss:$0 sm:$0xff] }
 0x1a2   :  { %v290_v62 = vsel %vm287_vm5, %v285_v61, %v2650_v53  ;;  %v291_v63 = vsel %vm287_vm5, %v286_v60, %v2651_v52  ;;  %v434_v52 = vpop.permute.xlu0 %433  ;;  %v2375_v53 = vld [vmem:[%s3681_s5] ss:$0 sm:$0xff] }
 0x1a3   :  { %v293_v0 = vpack.c.bf16 %v291_v63, %v290_v62 }
 0x1a5   :  { %2527 = vmatmul.mubr.msk.bf16.vlgmr.msra.gmra.mxu1 %vm306_vm6, %v293_v0 }
 0x265   :  { %v2528_v1 = vpop.f32.mrf.mxu1 }
 0x266   :  { %v367_v10 = vmax.f32 %v2528_v1, 0.0 }
 0x267   :  { %v350_v2 = vpop.f32.mrf.mxu1 }
 0x268   :  { %v365_v8 = vmax.f32 %v350_v2, 0.0  ;;  %v374_v16 = vsel %vm282_vm4, %v367_v10, 0.0 }
 0x269   :  { %v2529_v7 = vpop.f32.mrf.mxu1 }
 0x26a   :  { %v371_v12 = vsel %vm282_vm4, %v365_v8, 0.0  ;;  %v368_v13 = vmax.f32 %v2529_v7, 0.0  ;;  %v440_v7 = vpop.permute.xlu1 %439 }
 0x26b   :  { %v353_v9 = vpop.f32.mrf.mxu1 }
 0x26c   :  { %v366_v11 = vmax.f32 %v353_v9, 0.0  ;;  %v376_v18 = vsel %vm282_vm4, %v368_v13, 0.0 }
 0x26e   :  { %v372_v14 = vsel %vm282_vm4, %v366_v11, 0.0 }
 0x26f   :  { %v373_v15 = vadd.f32 %v372_v14, %v371_v12 }
 0x271   :  { %v375_v17 = vadd.f32 %v374_v16, %v373_v15 }
 0x273   :  { %v377_v19 = vadd.f32 %v376_v18, %v375_v17 }
 0x275   :  { %v378_v20 = vrot.slane %v377_v19, 4 }
 0x277   :  { %v379_v21 = vadd.f32 %v378_v20, %v377_v19 }
 0x279   :  { %v380_v22 = vrot.slane %v379_v21, 2 }
 0x27b   :  { %v381_v23 = vadd.f32 %v380_v22, %v379_v21 }
 0x27d   :  { %v382_v24 = vrot.slane %v381_v23, 1 }
 0x27f   :  { %v383_v25 = vadd.f32 %v382_v24, %v381_v23 }
 0x281   :  { %v384_v26 = vmul.f32 0.03125, %v383_v25 }
 0x283   :  { %v385_v27 = vsub.f32 %v365_v8, %v384_v26  ;;  %v386_v28 = vsub.f32 %v366_v11, %v384_v26  ;;  %v387_v29 = vsub.f32 %v367_v10, %v384_v26  ;;  %v388_v30 = vsub.f32 %v368_v13, %v384_v26  ;;  %v438_v8 = vpop.permute.xlu0 %437  ;;  %v2838_v13 = vld [vmem:[%s3680_s4 + $0x14] ss:$0 sps:$4 sm:$0xff]  }
 0x284   :  { %2611 = vmatprep.subr.msk.bf16.mxu1 %vm259_vm2, %v2838_v13  ;;  %v547_v18 = vsel %vm259_vm2, %v2838_v13, 0 }
 0x285   :  { %v389_v31 = vmul.f32 %v385_v27, %v385_v27  ;;  %v390_v32 = vmul.f32 %v386_v28, %v386_v28  ;;  %v391_v33 = vmul.f32 %v387_v29, %v387_v29  ;;  %v392_v34 = vmul.f32 %v388_v30, %v388_v30  ;;  %2531 = vmatpush3.bf16.msra.mxu1 %v547_v18 }
 0x287   :  { %v393_v35 = vsel %vm282_vm4, %v389_v31, 0.0  ;;  %v394_v36 = vsel %vm282_vm4, %v390_v32, 0.0  ;;  %v396_v38 = vsel %vm282_vm4, %v391_v33, 0.0  ;;  %v398_v40 = vsel %vm282_vm4, %v392_v34, 0.0 }
 0x288   :  { %v395_v37 = vadd.f32 %v394_v36, %v393_v35 }
 0x28a   :  { %v397_v39 = vadd.f32 %v396_v38, %v395_v37 }
 0x28c   :  { %v399_v41 = vadd.f32 %v398_v40, %v397_v39 }
 0x28e   :  { %v400_v42 = vrot.slane %v399_v41, 4 }
 0x290   :  { %v401_v43 = vadd.f32 %v400_v42, %v399_v41 }
 0x292   :  { %v402_v44 = vrot.slane %v401_v43, 2 }
 0x294   :  { %v403_v45 = vadd.f32 %v402_v44, %v401_v43 }
 0x296   :  { %v404_v46 = vrot.slane %v403_v45, 1 }
 0x298   :  { %v405_v47 = vadd.f32 %v404_v46, %v403_v45 }
 0x29a   :  { %v406_v48 = vmul.f32 0.03125, %v405_v47 }
 0x29c   :  { %v407_v49 = vadd.f32 1e-05, %v406_v48 }
 0x29e   :  { %2862 = vrsqrt.f32 %v407_v49 }
 0x2ab   :  { %v2863_v50 = vpop.eup %2862 }
 0x2ac   :  { %v409_v54 = vmul.f32 %v2863_v50, %v385_v27  ;;  %v410_v55 = vmul.f32 %v2863_v50, %v386_v28  ;;  %v411_v56 = vmul.f32 %v2863_v50, %v387_v29  ;;  %v412_v57 = vmul.f32 %v2863_v50, %v388_v30  ;;  %v2839_v27 = vld [vmem:[%s3680_s4 + $0xc] sm:$0xff]  }
 0x2ad   :  { %2532 = vmatprep.subr.bf16.mxu1 %v2839_v27 }
 0x2ae   :  { %v419_v59 = vmul.f32 %v2375_v53, %v409_v54  ;;  %v420_v60 = vmul.f32 %v2375_v53, %v410_v55  ;;  %v421_v61 = vmul.f32 %v2375_v53, %v411_v56  ;;  %v422_v62 = vmul.f32 %v2375_v53, %v412_v57  ;;  %2533 = vmatpush3.bf16.msra.mxu1 %v2839_v27 }
 0x2b0   :  { %v3082_v63 = vadd.f32 %v2376_v58, %v420_v60  ;;  %v3084_v0 = vadd.f32 %v2376_v58, %v421_v61  ;;  %v3086_v1 = vadd.f32 %v2376_v58, %v422_v62  ;;  %v3088_v2 = vadd.f32 %v2376_v58, %v419_v59 }
 0x2b2   :  { %v446_v9 = vadd.f32 %v436_v51, %v3082_v63  ;;  %v447_v10 = vadd.f32 %v438_v8, %v3084_v0  ;;  %v448_v11 = vadd.f32 %v440_v7, %v3086_v1  ;;  %v445_v12 = vadd.f32 %v434_v52, %v3088_v2 }
 0x2b4   :  { %v454_v14 = vrot.slane %v446_v9, 6  ;;  %v456_v15 = vrot.slane %v447_v10, 6  ;;  %v457_v16 = vrot.slane %v448_v11, 6  ;;  %v453_v17 = vrot.slane %v445_v12, 6 }
 0x2b6   :  { %v458_v19 = vsel %vm215_vm1, %v456_v15, %v457_v16  ;;  %v466_v20 = vsel %vm215_vm1, 0.0, %v456_v15  ;;  %v468_v21 = vsel %vm215_vm1, %v457_v16, 0.0  ;;  %v455_v22 = vsel %vm215_vm1, %v453_v17, %v454_v14 }
 0x2b7   :  { %v478_v23 = vrot.slane %v466_v20, 2  ;;  %v479_v24 = vrot.slane %v458_v19, 2  ;;  %v481_v25 = vrot.slane %v468_v21, 2  ;;  %v465_v26 = vsel %vm215_vm1, 0.0, %v453_v17 }
 0x2b8   :  { %v467_v28 = vsel %vm215_vm1, %v454_v14, 0.0  ;;  %v473_v29 = vrot.slane %v465_v26, 2  ;;  %v474_v30 = vrot.slane %v455_v22, 2  ;;  %v500_v31 = vrot.slane %v466_v20, 4 }
 0x2b9   :  { %v480_v32 = vsel %vm236_vm3, %v478_v23, %v479_v24  ;;  %v482_v33 = vsel %vm236_vm3, %v479_v24, %v481_v25  ;;  %v476_v34 = vrot.slane %v467_v28, 2  ;;  %v501_v35 = vrot.slane %v458_v19, 4 }
 0x2ba   :  { %v2657_v36 = vpack.i.bf16 %v482_v33, %v480_v32  ;;  %v475_v37 = vsel %vm236_vm3, %v473_v29, %v474_v30  ;;  %v503_v38 = vrot.slane %v468_v21, 4  ;;  %v495_v39 = vrot.slane %v465_v26, 4 }
 0x2bb   :  { %v477_v40 = vsel %vm236_vm3, %v474_v30, %v476_v34  ;;  %v502_v41 = vsel %vm259_vm2, %v500_v31, %v501_v35  ;;  %v496_v42 = vrot.slane %v455_v22, 4  ;;  %v498_v43 = vrot.slane %v467_v28, 4 }
 0x2bc   :  { %2658 = vrot.lane.b32.xlu1 %v2657_v36, %s2887_s19  ;;  %v2652_v44 = vpack.i.bf16 %v477_v40, %v475_v37  ;;  %v504_v45 = vsel %vm259_vm2, %v501_v35, %v503_v38 }
 0x2bd   :  { %v497_v46 = vsel %vm259_vm2, %v495_v39, %v496_v42  ;;  %v499_v47 = vsel %vm259_vm2, %v496_v42, %v498_v43  ;;  %v2667_v48 = vpack.i.bf16 %v504_v45, %v502_v41 }
 0x2be   :  { %2653 = vrot.lane.b32.xlu0 %v2652_v44, %s2887_s19  ;;  %v2662_v49 = vpack.i.bf16 %v499_v47, %v497_v46 }
 0x2c0   :  { %2668 = vrot.lane.b32.xlu1 %v2667_v48, %s2886_s18 }
 0x2c2   :  { %2663 = vrot.lane.b32.xlu0 %v2662_v49, %s2886_s18 }
 0x2c4   :  { %670 = vrot.lane.b32.xlu1 %v3021_v4, %s2889_s1 }
 0x2c6   :  { %668 = vrot.lane.b32.xlu0 %v3019_v3, %s2889_s1 }
 0x2c8   :  { %674 = vrot.lane.b32.xlu1 %v3025_v6, %s2889_s1 }
 0x2ca   :  { %672 = vrot.lane.b32.xlu0 %v3023_v5, %s2889_s1 }
 0x32e   :  { %v2659_v50 = vpop.permute.xlu1 %2658 }
 0x32f   :  { %v2661_v51 = vunpack.i.h.bf16 %v2659_v50  ;;  %v2660_v52 = vunpack.i.l.bf16 %v2659_v50 }
 0x330   :  { %v2654_v53 = vpop.permute.xlu0 %2653 }
 0x331   :  { %v2656_v54 = vunpack.i.h.bf16 %v2654_v53  ;;  %v2655_v55 = vunpack.i.l.bf16 %v2654_v53  ;;  %v520_v59 = vsel %vm282_vm4, %v458_v19, %v2661_v51  ;;  %v519_v60 = vsel %vm282_vm4, %v466_v20, %v2660_v52 }
 0x332   :  { %v2669_v56 = vpop.permute.xlu1 %2668 }
 0x333   :  { %v2671_v57 = vunpack.i.h.bf16 %v2669_v56  ;;  %v2670_v58 = vunpack.i.l.bf16 %v2669_v56  ;;  %v518_v10 = vsel %vm282_vm4, %v455_v22, %v2656_v54  ;;  %v517_v11 = vsel %vm282_vm4, %v465_v26, %v2655_v55 }
 0x334   :  { %v2664_v61 = vpop.permute.xlu0 %2663 }
 0x335   :  { %v523_v62 = vsel %vm287_vm5, %v519_v60, %v2670_v58  ;;  %v524_v7 = vsel %vm287_vm5, %v520_v59, %v2671_v57  ;;  %v2666_v8 = vunpack.i.h.bf16 %v2664_v61  ;;  %v2665_v9 = vunpack.i.l.bf16 %v2664_v61 }
 0x336   :  { %v526_v12 = vpack.c.bf16 %v524_v7, %v523_v62  ;;  %v671_v62 = vpop.permute.xlu1 %670 }
 0x337   :  { %v521_v13 = vsel %vm287_vm5, %v517_v11, %v2665_v9  ;;  %v522_v14 = vsel %vm287_vm5, %v518_v10, %v2666_v8  ;;  %v2386_v8 = vld [vmem:[%s3681_s5 + $0x1] ss:$0 sm:$0xff] }
 0x338   :  { %v525_v15 = vpack.c.bf16 %v522_v14, %v521_v13  ;;  %v669_v7 = vpop.permute.xlu0 %668  ;;  %v2387_v13 = vld [vmem:[%s3682_s6 + $0x1] ss:$0 sm:$0xff] }
 0x33a   :  { %2534 = vmatprep.mubr.msk.bf16.mxu1 %vm306_vm6, %v525_v15 }
 0x33b   :  { %2535 = vmatmul.mubr.msk.bf16.vlgmr.msra.gmra.mxu1 %vm306_vm6, %v526_v12 }
 0x3fb   :  { %v2536_v16 = vpop.f32.mrf.mxu1 }
 0x3fc   :  { %v600_v21 = vmax.f32 %v2536_v16, 0.0 }
 0x3fd   :  { %v583_v17 = vpop.f32.mrf.mxu1 }
 0x3fe   :  { %v598_v19 = vmax.f32 %v583_v17, 0.0  ;;  %v609_v27 = vsel %vm282_vm4, %v600_v21, 0.0 }
 0x3ff   :  { %v2537_v18 = vpop.f32.mrf.mxu1 }
 0x400   :  { %v606_v22 = vsel %vm282_vm4, %v598_v19, 0.0  ;;  %v601_v24 = vmax.f32 %v2537_v18, 0.0 }
 0x401   :  { %v586_v20 = vpop.f32.mrf.mxu1 }
 0x402   :  { %v599_v23 = vmax.f32 %v586_v20, 0.0  ;;  %v611_v29 = vsel %vm282_vm4, %v601_v24, 0.0 }
 0x404   :  { %v607_v25 = vsel %vm282_vm4, %v599_v23, 0.0 }
 0x405   :  { %v608_v26 = vadd.f32 %v607_v25, %v606_v22  ;;  %v673_v22 = vpop.permute.xlu0 %672 }
 0x407   :  { %v610_v28 = vadd.f32 %v609_v27, %v608_v26 }
 0x409   :  { %v612_v30 = vadd.f32 %v611_v29, %v610_v28  ;;  %v2840_v28 = vld [vmem:[%s3680_s4 + $0x20] ss:$0 sps:$4 sm:$0xff]  }
 0x40a   :  { %2612 = vmatprep.subr.msk.bf16.mxu0 %vm259_vm2, %v2840_v28 }
 0x40b   :  { %v613_v31 = vrot.slane %v612_v30, 4 }
 0x40d   :  { %v614_v32 = vadd.f32 %v613_v31, %v612_v30 }
 0x40f   :  { %v615_v33 = vrot.slane %v614_v32, 2 }
 0x411   :  { %v616_v34 = vadd.f32 %v615_v33, %v614_v32 }
 0x413   :  { %v617_v35 = vrot.slane %v616_v34, 1 }
 0x415   :  { %v618_v36 = vadd.f32 %v617_v35, %v616_v34  ;;  %v782_v35 = vsel %vm259_vm2, %v2840_v28, 0 }
 0x416   :  { %2539 = vmatpush3.bf16.msra.mxu0 %v782_v35 }
 0x417   :  { %v619_v37 = vmul.f32 0.03125, %v618_v36 }
 0x419   :  { %v620_v38 = vsub.f32 %v598_v19, %v619_v37  ;;  %v621_v39 = vsub.f32 %v599_v23, %v619_v37  ;;  %v622_v40 = vsub.f32 %v600_v21, %v619_v37  ;;  %v623_v41 = vsub.f32 %v601_v24, %v619_v37  ;;  %v675_v23 = vpop.permute.xlu1 %674 }
 0x41b   :  { %v624_v42 = vmul.f32 %v620_v38, %v620_v38  ;;  %v625_v43 = vmul.f32 %v621_v39, %v621_v39  ;;  %v626_v44 = vmul.f32 %v622_v40, %v622_v40  ;;  %v627_v45 = vmul.f32 %v623_v41, %v623_v41 }
 0x41d   :  { %v628_v46 = vsel %vm282_vm4, %v624_v42, 0.0  ;;  %v629_v47 = vsel %vm282_vm4, %v625_v43, 0.0  ;;  %v631_v49 = vsel %vm282_vm4, %v626_v44, 0.0  ;;  %v633_v51 = vsel %vm282_vm4, %v627_v45, 0.0  ;;  %v2841_v44 = vld [vmem:[%s3680_s4 + $0x18] sm:$0xff]  }
 0x41e   :  { %v630_v48 = vadd.f32 %v629_v47, %v628_v46  ;;  %2540 = vmatprep.subr.bf16.mxu0 %v2841_v44 }
 0x41f   :  { %2541 = vmatpush3.bf16.msra.mxu0 %v2841_v44 }
 0x420   :  { %v632_v50 = vadd.f32 %v631_v49, %v630_v48 }
 0x422   :  { %v634_v52 = vadd.f32 %v633_v51, %v632_v50 }
 0x424   :  { %v635_v53 = vrot.slane %v634_v52, 4 }
 0x426   :  { %v636_v54 = vadd.f32 %v635_v53, %v634_v52 }
 0x428   :  { %v637_v55 = vrot.slane %v636_v54, 2 }
 0x42a   :  { %v638_v56 = vadd.f32 %v637_v55, %v636_v54 }
 0x42c   :  { %v639_v57 = vrot.slane %v638_v56, 1 }
 0x42e   :  { %v640_v58 = vadd.f32 %v639_v57, %v638_v56 }
 0x430   :  { %v641_v59 = vmul.f32 0.03125, %v640_v58 }
 0x432   :  { %v642_v60 = vadd.f32 1e-05, %v641_v59 }
 0x434   :  { %2864 = vrsqrt.f32 %v642_v60 }
 0x441   :  { %v2865_v61 = vpop.eup %2864 }
 0x442   :  { %v644_v9 = vmul.f32 %v2865_v61, %v620_v38  ;;  %v645_v10 = vmul.f32 %v2865_v61, %v621_v39  ;;  %v646_v11 = vmul.f32 %v2865_v61, %v622_v40  ;;  %v647_v12 = vmul.f32 %v2865_v61, %v623_v41 }
 0x444   :  { %v654_v14 = vmul.f32 %v2386_v8, %v644_v9  ;;  %v655_v15 = vmul.f32 %v2386_v8, %v645_v10  ;;  %v656_v16 = vmul.f32 %v2386_v8, %v646_v11  ;;  %v657_v17 = vmul.f32 %v2386_v8, %v647_v12 }
 0x446   :  { %v3148_v18 = vadd.f32 %v2387_v13, %v655_v15  ;;  %v3150_v19 = vadd.f32 %v2387_v13, %v656_v16  ;;  %v3152_v20 = vadd.f32 %v2387_v13, %v657_v17  ;;  %v3154_v21 = vadd.f32 %v2387_v13, %v654_v14 }
 0x448   :  { %v681_v24 = vadd.f32 %v671_v62, %v3148_v18  ;;  %v682_v25 = vadd.f32 %v673_v22, %v3150_v19  ;;  %v683_v26 = vadd.f32 %v675_v23, %v3152_v20  ;;  %v680_v27 = vadd.f32 %v669_v7, %v3154_v21 }
 0x449   :  { %v2777_v29 = vpack.i.bf16 %v3152_v20, %v3150_v19  ;;  %v2772_v30 = vpack.i.bf16 %v3148_v18, %v3154_v21 }
 0x44a   :  { %v689_v31 = vrot.slane %v681_v24, 6  ;;  %v691_v32 = vrot.slane %v682_v25, 6  ;;  %v692_v33 = vrot.slane %v683_v26, 6  ;;  %v688_v34 = vrot.slane %v680_v27, 6 }
 0x44c   :  { %v693_v36 = vsel %vm215_vm1, %v691_v32, %v692_v33  ;;  %v701_v37 = vsel %vm215_vm1, 0.0, %v691_v32  ;;  %v703_v38 = vsel %vm215_vm1, %v692_v33, 0.0  ;;  %v690_v39 = vsel %vm215_vm1, %v688_v34, %v689_v31 }
 0x44d   :  { %v713_v40 = vrot.slane %v701_v37, 2  ;;  %v714_v41 = vrot.slane %v693_v36, 2  ;;  %v716_v42 = vrot.slane %v703_v38, 2  ;;  %v700_v43 = vsel %vm215_vm1, 0.0, %v688_v34 }
 0x44e   :  { %v702_v45 = vsel %vm215_vm1, %v689_v31, 0.0  ;;  %v708_v46 = vrot.slane %v700_v43, 2  ;;  %v709_v47 = vrot.slane %v690_v39, 2  ;;  %v735_v48 = vrot.slane %v701_v37, 4 }
 0x44f   :  { %v715_v49 = vsel %vm236_vm3, %v713_v40, %v714_v41  ;;  %v717_v50 = vsel %vm236_vm3, %v714_v41, %v716_v42  ;;  %v711_v51 = vrot.slane %v702_v45, 2  ;;  %v736_v52 = vrot.slane %v693_v36, 4 }
 0x450   :  { %v2677_v53 = vpack.i.bf16 %v717_v50, %v715_v49  ;;  %v710_v54 = vsel %vm236_vm3, %v708_v46, %v709_v47  ;;  %v738_v55 = vrot.slane %v703_v38, 4  ;;  %v730_v56 = vrot.slane %v700_v43, 4 }
 0x451   :  { %v712_v57 = vsel %vm236_vm3, %v709_v47, %v711_v51  ;;  %v737_v58 = vsel %vm259_vm2, %v735_v48, %v736_v52  ;;  %v731_v59 = vrot.slane %v690_v39, 4  ;;  %v733_v60 = vrot.slane %v702_v45, 4 }
 0x452   :  { %2678 = vrot.lane.b32.xlu1 %v2677_v53, %s2887_s19  ;;  %v2672_v61 = vpack.i.bf16 %v712_v57, %v710_v54  ;;  %v739_v62 = vsel %vm259_vm2, %v736_v52, %v738_v55 }
 0x453   :  { %v732_v7 = vsel %vm259_vm2, %v730_v56, %v731_v59  ;;  %v734_v8 = vsel %vm259_vm2, %v731_v59, %v733_v60  ;;  %v2687_v9 = vpack.i.bf16 %v739_v62, %v737_v58 }
 0x454   :  { %2673 = vrot.lane.b32.xlu0 %v2672_v61, %s2887_s19  ;;  %v2682_v10 = vpack.i.bf16 %v734_v8, %v732_v7 }
 0x456   :  { %2688 = vrot.lane.b32.xlu1 %v2687_v9, %s2886_s18 }
 0x458   :  { %2683 = vrot.lane.b32.xlu0 %v2682_v10, %s2886_s18 }
 0x45a   :  { %905 = vrot.lane.b32.xlu1 %v3021_v4, %s2890_s21 }
 0x45c   :  { %903 = vrot.lane.b32.xlu0 %v3019_v3, %s2890_s21 }
 0x45e   :  { %909 = vrot.lane.b32.xlu1 %v3025_v6, %s2890_s21 }
 0x460   :  { %907 = vrot.lane.b32.xlu0 %v3023_v5, %s2890_s21 }
 0x4c4   :  { %v2679_v11 = vpop.permute.xlu1 %2678 }
 0x4c5   :  { %v2681_v12 = vunpack.i.h.bf16 %v2679_v11  ;;  %v2680_v13 = vunpack.i.l.bf16 %v2679_v11 }
 0x4c6   :  { %v2674_v14 = vpop.permute.xlu0 %2673 }
 0x4c7   :  { %v2676_v15 = vunpack.i.h.bf16 %v2674_v14  ;;  %v2675_v16 = vunpack.i.l.bf16 %v2674_v14  ;;  %v755_v24 = vsel %vm282_vm4, %v693_v36, %v2681_v12  ;;  %v754_v25 = vsel %vm282_vm4, %v701_v37, %v2680_v13 }
 0x4c8   :  { %v2689_v17 = vpop.permute.xlu1 %2688 }
 0x4c9   :  { %v2691_v23 = vunpack.i.h.bf16 %v2689_v17  ;;  %v2690_v22 = vunpack.i.l.bf16 %v2689_v17  ;;  %v753_v33 = vsel %vm282_vm4, %v690_v39, %v2676_v15  ;;  %v752_v34 = vsel %vm282_vm4, %v700_v43, %v2675_v16 }
 0x4ca   :  { %v2684_v26 = vpop.permute.xlu0 %2683 }
 0x4cb   :  { %v758_v27 = vsel %vm287_vm5, %v754_v25, %v2690_v22  ;;  %v759_v28 = vsel %vm287_vm5, %v755_v24, %v2691_v23  ;;  %v2686_v31 = vunpack.i.h.bf16 %v2684_v26  ;;  %v2685_v32 = vunpack.i.l.bf16 %v2684_v26 }
 0x4cc   :  { %v761_v35 = vpack.c.bf16 %v759_v28, %v758_v27 }
 0x4cd   :  { %v756_v38 = vsel %vm287_vm5, %v752_v34, %v2685_v32  ;;  %v757_v40 = vsel %vm287_vm5, %v753_v33, %v2686_v31 }
 0x4ce   :  { %v760_v41 = vpack.c.bf16 %v757_v40, %v756_v38  ;;  %v904_v38 = vpop.permute.xlu0 %903  ;;  %v2397_v40 = vld [vmem:[%s3681_s5 + $0x2] ss:$0 sm:$0xff] }
 0x4d0   :  { %2542 = vmatprep.mubr.msk.bf16.mxu0 %vm306_vm6, %v760_v41 }
 0x4d1   :  { %2543 = vmatmul.mubr.msk.bf16.vlgmr.msra.gmra.mxu0 %vm306_vm6, %v761_v35  ;;  %v906_v35 = vpop.permute.xlu1 %905 }
 0x591   :  { %v2544_v36 = vpop.f32.mrf.mxu0 }
 0x592   :  { %v835_v46 = vmax.f32 %v2544_v36, 0.0 }
 0x593   :  { %v818_v37 = vpop.f32.mrf.mxu0 }
 0x594   :  { %v833_v44 = vmax.f32 %v818_v37, 0.0  ;;  %v844_v50 = vsel %vm282_vm4, %v835_v46, 0.0 }
 0x595   :  { %v2545_v42 = vpop.f32.mrf.mxu0 }
 0x596   :  { %v841_v39 = vsel %vm282_vm4, %v833_v44, 0.0  ;;  %v836_v43 = vmax.f32 %v2545_v42, 0.0 }
 0x597   :  { %v821_v45 = vpop.f32.mrf.mxu0 }
 0x598   :  { %v834_v47 = vmax.f32 %v821_v45, 0.0  ;;  %v846_v52 = vsel %vm282_vm4, %v836_v43, 0.0 }
 0x59a   :  { %v842_v48 = vsel %vm282_vm4, %v834_v47, 0.0 }
 0x59b   :  { %v843_v49 = vadd.f32 %v842_v48, %v841_v39 }
 0x59d   :  { %v845_v51 = vadd.f32 %v844_v50, %v843_v49 }
 0x59f   :  { %v847_v53 = vadd.f32 %v846_v52, %v845_v51  ;;  %v910_v51 = vpop.permute.xlu1 %909  ;;  %v908_v52 = vpop.permute.xlu0 %907 }
 0x5a1   :  { %v848_v54 = vrot.slane %v847_v53, 4 }
 0x5a3   :  { %v849_v55 = vadd.f32 %v848_v54, %v847_v53 }
 0x5a5   :  { %v850_v56 = vrot.slane %v849_v55, 2 }
 0x5a7   :  { %v851_v57 = vadd.f32 %v850_v56, %v849_v55 }
 0x5a9   :  { %v852_v58 = vrot.slane %v851_v57, 1 }
 0x5ab   :  { %v853_v59 = vadd.f32 %v852_v58, %v851_v57  ;;  %v2842_v57 = vld [vmem:[%s3680_s4 + $0x2c] ss:$0 sps:$4 sm:$0xff]  }
 0x5ac   :  { %2613 = vmatprep.subr.msk.bf16.mxu1 %vm259_vm2, %v2842_v57 }
 0x5ad   :  { %v854_v60 = vmul.f32 0.03125, %v853_v59 }
 0x5af   :  { %v855_v61 = vsub.f32 %v833_v44, %v854_v60  ;;  %v856_v62 = vsub.f32 %v834_v47, %v854_v60  ;;  %v857_v7 = vsub.f32 %v835_v46, %v854_v60  ;;  %v858_v8 = vsub.f32 %v836_v43, %v854_v60  ;;  %v2398_v44 = vld [vmem:[%s3682_s6 + $0x2] ss:$0 sm:$0xff] }
 0x5b1   :  { %v859_v9 = vmul.f32 %v855_v61, %v855_v61  ;;  %v860_v10 = vmul.f32 %v856_v62, %v856_v62  ;;  %v861_v11 = vmul.f32 %v857_v7, %v857_v7  ;;  %v862_v12 = vmul.f32 %v858_v8, %v858_v8 }
 0x5b3   :  { %v863_v13 = vsel %vm282_vm4, %v859_v9, 0.0  ;;  %v864_v14 = vsel %vm282_vm4, %v860_v10, 0.0  ;;  %v866_v16 = vsel %vm282_vm4, %v861_v11, 0.0  ;;  %v868_v23 = vsel %vm282_vm4, %v862_v12, 0.0 }
 0x5b4   :  { %v865_v15 = vadd.f32 %v864_v14, %v863_v13 }
 0x5b6   :  { %v867_v17 = vadd.f32 %v866_v16, %v865_v15 }
 0x5b8   :  { %v869_v22 = vadd.f32 %v868_v23, %v867_v17  ;;  %v2843_v17 = vld [vmem:[%s3680_s4 + $0x24] sm:$0xff]  }
 0x5ba   :  { %v870_v24 = vrot.slane %v869_v22, 4 }
 0x5bc   :  { %v871_v25 = vadd.f32 %v870_v24, %v869_v22 }
 0x5be   :  { %v872_v26 = vrot.slane %v871_v25, 2 }
 0x5c0   :  { %v873_v27 = vadd.f32 %v872_v26, %v871_v25 }
 0x5c2   :  { %v874_v28 = vrot.slane %v873_v27, 1 }
 0x5c4   :  { %v875_v31 = vadd.f32 %v874_v28, %v873_v27 }
 0x5c6   :  { %v876_v32 = vmul.f32 0.03125, %v875_v31 }
 0x5c8   :  { %v877_v33 = vadd.f32 1e-05, %v876_v32 }
 0x5ca   :  { %2866 = vrsqrt.f32 %v877_v33 }
 0x5d7   :  { %v2867_v34 = vpop.eup %2866 }
 0x5d8   :  { %v879_v41 = vmul.f32 %v2867_v34, %v855_v61  ;;  %v880_v36 = vmul.f32 %v2867_v34, %v856_v62  ;;  %v881_v37 = vmul.f32 %v2867_v34, %v857_v7  ;;  %v882_v42 = vmul.f32 %v2867_v34, %v858_v8 }
 0x5d9   :  { %v1017_v8 = vsel %vm259_vm2, %v2842_v57, 0 }
 0x5da   :  { %v889_v45 = vmul.f32 %v2397_v40, %v879_v41  ;;  %v890_v46 = vmul.f32 %v2397_v40, %v880_v36  ;;  %v891_v47 = vmul.f32 %v2397_v40, %v881_v37  ;;  %v892_v39 = vmul.f32 %v2397_v40, %v882_v42  ;;  %2547 = vmatpush3.bf16.msra.mxu1 %v1017_v8 }
 0x5db   :  { %2548 = vmatprep.subr.bf16.mxu1 %v2843_v17 }
 0x5dc   :  { %v3218_v43 = vadd.f32 %v2398_v44, %v890_v46  ;;  %v3220_v48 = vadd.f32 %v2398_v44, %v891_v47  ;;  %v3222_v49 = vadd.f32 %v2398_v44, %v892_v39  ;;  %v3224_v50 = vadd.f32 %v2398_v44, %v889_v45 }
 0x5de   :  { %v916_v53 = vadd.f32 %v906_v35, %v3218_v43  ;;  %v917_v54 = vadd.f32 %v908_v52, %v3220_v48  ;;  %v918_v55 = vadd.f32 %v910_v51, %v3222_v49  ;;  %v915_v56 = vadd.f32 %v904_v38, %v3224_v50  ;;  %2549 = vmatpush3.bf16.msra.mxu1 %v2843_v17 }
 0x5df   :  { %v2787_v58 = vpack.i.bf16 %v3222_v49, %v3220_v48  ;;  %v2782_v59 = vpack.i.bf16 %v3218_v43, %v3224_v50 }
 0x5e0   :  { %v924_v60 = vrot.slane %v916_v53, 6  ;;  %v926_v61 = vrot.slane %v917_v54, 6  ;;  %v927_v62 = vrot.slane %v918_v55, 6  ;;  %v923_v7 = vrot.slane %v915_v56, 6 }
 0x5e2   :  { %v928_v9 = vsel %vm215_vm1, %v926_v61, %v927_v62  ;;  %v936_v10 = vsel %vm215_vm1, 0.0, %v926_v61  ;;  %v938_v11 = vsel %vm215_vm1, %v927_v62, 0.0  ;;  %v925_v12 = vsel %vm215_vm1, %v923_v7, %v924_v60 }
 0x5e3   :  { %v948_v13 = vrot.slane %v936_v10, 2  ;;  %v949_v14 = vrot.slane %v928_v9, 2  ;;  %v951_v15 = vrot.slane %v938_v11, 2  ;;  %v935_v16 = vsel %vm215_vm1, 0.0, %v923_v7 }
 0x5e4   :  { %v937_v23 = vsel %vm215_vm1, %v924_v60, 0.0  ;;  %v943_v22 = vrot.slane %v935_v16, 2  ;;  %v944_v24 = vrot.slane %v925_v12, 2  ;;  %v970_v25 = vrot.slane %v936_v10, 4 }
 0x5e5   :  { %v950_v26 = vsel %vm236_vm3, %v948_v13, %v949_v14  ;;  %v952_v27 = vsel %vm236_vm3, %v949_v14, %v951_v15  ;;  %v946_v28 = vrot.slane %v937_v23, 2  ;;  %v971_v31 = vrot.slane %v928_v9, 4 }
 0x5e6   :  { %v2697_v32 = vpack.i.bf16 %v952_v27, %v950_v26  ;;  %v945_v33 = vsel %vm236_vm3, %v943_v22, %v944_v24  ;;  %v973_v34 = vrot.slane %v938_v11, 4  ;;  %v965_v35 = vrot.slane %v935_v16, 4 }
 0x5e7   :  { %v947_v38 = vsel %vm236_vm3, %v944_v24, %v946_v28  ;;  %v972_v40 = vsel %vm259_vm2, %v970_v25, %v971_v31  ;;  %v966_v41 = vrot.slane %v925_v12, 4  ;;  %v968_v36 = vrot.slane %v937_v23, 4 }
 0x5e8   :  { %2698 = vrot.lane.b32.xlu1 %v2697_v32, %s2887_s19  ;;  %v2692_v37 = vpack.i.bf16 %v947_v38, %v945_v33  ;;  %v974_v42 = vsel %vm259_vm2, %v971_v31, %v973_v34 }
 0x5e9   :  { %v967_v44 = vsel %vm259_vm2, %v965_v35, %v966_v41  ;;  %v969_v45 = vsel %vm259_vm2, %v966_v41, %v968_v36  ;;  %v2707_v46 = vpack.i.bf16 %v974_v42, %v972_v40 }
 0x5ea   :  { %2693 = vrot.lane.b32.xlu0 %v2692_v37, %s2887_s19  ;;  %v2702_v47 = vpack.i.bf16 %v969_v45, %v967_v44 }
 0x5ec   :  { %2708 = vrot.lane.b32.xlu1 %v2707_v46, %s2886_s18 }
 0x5ee   :  { %2703 = vrot.lane.b32.xlu0 %v2702_v47, %s2886_s18 }
 0x5f0   :  { %1140 = vrot.lane.b32.xlu1 %v3021_v4, %s2891_s29 }
 0x5f2   :  { %1138 = vrot.lane.b32.xlu0 %v3019_v3, %s2891_s29 }
 0x5f4   :  { %1144 = vrot.lane.b32.xlu1 %v3025_v6, %s2891_s29 }
 0x5f6   :  { %1142 = vrot.lane.b32.xlu0 %v3023_v5, %s2891_s29 }
 0x65a   :  { %v2699_v39 = vpop.permute.xlu1 %2698 }
 0x65b   :  { %v2701_v51 = vunpack.i.h.bf16 %v2699_v39  ;;  %v2700_v52 = vunpack.i.l.bf16 %v2699_v39 }
 0x65c   :  { %v2694_v53 = vpop.permute.xlu0 %2693 }
 0x65d   :  { %v2696_v54 = vunpack.i.h.bf16 %v2694_v53  ;;  %v2695_v55 = vunpack.i.l.bf16 %v2694_v53  ;;  %v990_v61 = vsel %vm282_vm4, %v928_v9, %v2701_v51  ;;  %v989_v62 = vsel %vm282_vm4, %v936_v10, %v2700_v52 }
 0x65e   :  { %v2709_v56 = vpop.permute.xlu1 %2708 }
 0x65f   :  { %v2711_v57 = vunpack.i.h.bf16 %v2709_v56  ;;  %v2710_v60 = vunpack.i.l.bf16 %v2709_v56  ;;  %v988_v15 = vsel %vm282_vm4, %v925_v12, %v2696_v54  ;;  %v987_v17 = vsel %vm282_vm4, %v935_v16, %v2695_v55 }
 0x660   :  { %v2704_v7 = vpop.permute.xlu0 %2703 }
 0x661   :  { %v993_v8 = vsel %vm287_vm5, %v989_v62, %v2710_v60  ;;  %v994_v11 = vsel %vm287_vm5, %v990_v61, %v2711_v57  ;;  %v2706_v13 = vunpack.i.h.bf16 %v2704_v7  ;;  %v2705_v14 = vunpack.i.l.bf16 %v2704_v7 }
 0x662   :  { %v996_v23 = vpack.c.bf16 %v994_v11, %v993_v8 }
 0x663   :  { %v991_v22 = vsel %vm287_vm5, %v987_v17, %v2705_v14  ;;  %v992_v24 = vsel %vm287_vm5, %v988_v15, %v2706_v13 }
 0x664   :  { %v995_v25 = vpack.c.bf16 %v992_v24, %v991_v22 }
 0x666   :  { %2550 = vmatprep.mubr.msk.bf16.mxu1 %vm306_vm6, %v995_v25 }
 0x667   :  { %2551 = vmatmul.mubr.msk.bf16.vlgmr.msra.gmra.mxu1 %vm306_vm6, %v996_v23 }
 0x727   :  { %v2552_v9 = vpop.f32.mrf.mxu1 }
 0x728   :  { %v1070_v31 = vmax.f32 %v2552_v9, 0.0 }
 0x729   :  { %v1053_v10 = vpop.f32.mrf.mxu1 }
 0x72a   :  { %v1068_v27 = vmax.f32 %v1053_v10, 0.0  ;;  %v1079_v35 = vsel %vm282_vm4, %v1070_v31, 0.0 }
 0x72b   :  { %v2553_v26 = vpop.f32.mrf.mxu1 }
 0x72c   :  { %v1076_v12 = vsel %vm282_vm4, %v1068_v27, 0.0  ;;  %v1071_v16 = vmax.f32 %v2553_v26, 0.0  ;;  %v1141_v26 = vpop.permute.xlu1 %1140 }
 0x72d   :  { %v1056_v28 = vpop.f32.mrf.mxu1 }
 0x72e   :  { %v1069_v32 = vmax.f32 %v1056_v28, 0.0  ;;  %v1081_v40 = vsel %vm282_vm4, %v1071_v16, 0.0  ;;  %v2408_v28 = vld [vmem:[%s3681_s5 + $0x3] ss:$0 sm:$0xff] }
 0x730   :  { %v1077_v33 = vsel %vm282_vm4, %v1069_v32, 0.0 }
 0x731   :  { %v1078_v34 = vadd.f32 %v1077_v33, %v1076_v12  ;;  %v2409_v33 = vld [vmem:[%s3682_s6 + $0x3] ss:$0 sm:$0xff] }
 0x733   :  { %v1080_v38 = vadd.f32 %v1079_v35, %v1078_v34 }
 0x735   :  { %v1082_v41 = vadd.f32 %v1081_v40, %v1080_v38 }
 0x737   :  { %v1083_v36 = vrot.slane %v1082_v41, 4 }
 0x739   :  { %v1084_v37 = vadd.f32 %v1083_v36, %v1082_v41 }
 0x73b   :  { %v1085_v42 = vrot.slane %v1084_v37, 2 }
 0x73d   :  { %v1086_v44 = vadd.f32 %v1085_v42, %v1084_v37 }
 0x73f   :  { %v1087_v45 = vrot.slane %v1086_v44, 1 }
 0x741   :  { %v1088_v46 = vadd.f32 %v1087_v45, %v1086_v44  ;;  %v1145_v44 = vpop.permute.xlu1 %1144 }
 0x743   :  { %v1089_v47 = vmul.f32 0.03125, %v1088_v46 }
 0x745   :  { %v1090_v39 = vsub.f32 %v1068_v27, %v1089_v47  ;;  %v1091_v51 = vsub.f32 %v1069_v32, %v1089_v47  ;;  %v1092_v52 = vsub.f32 %v1070_v31, %v1089_v47  ;;  %v1093_v53 = vsub.f32 %v1071_v16, %v1089_v47  ;;  %v1139_v27 = vpop.permute.xlu0 %1138 }
 0x747   :  { %v1094_v54 = vmul.f32 %v1090_v39, %v1090_v39  ;;  %v1095_v55 = vmul.f32 %v1091_v51, %v1091_v51  ;;  %v1096_v56 = vmul.f32 %v1092_v52, %v1092_v52  ;;  %v1097_v57 = vmul.f32 %v1093_v53, %v1093_v53 }
 0x749   :  { %v1098_v60 = vsel %vm282_vm4, %v1094_v54, 0.0  ;;  %v1099_v61 = vsel %vm282_vm4, %v1095_v55, 0.0  ;;  %v1101_v7 = vsel %vm282_vm4, %v1096_v56, 0.0  ;;  %v1103_v11 = vsel %vm282_vm4, %v1097_v57, 0.0  ;;  %v1143_v45 = vpop.permute.xlu0 %1142 }
 0x74a   :  { %v1100_v62 = vadd.f32 %v1099_v61, %v1098_v60 }
 0x74c   :  { %v1102_v8 = vadd.f32 %v1101_v7, %v1100_v62 }
 0x74e   :  { %v1104_v13 = vadd.f32 %v1103_v11, %v1102_v8 }
 0x750   :  { %v1105_v14 = vrot.slane %v1104_v13, 4 }
 0x752   :  { %v1106_v15 = vadd.f32 %v1105_v14, %v1104_v13 }
 0x754   :  { %v1107_v17 = vrot.slane %v1106_v15, 2 }
 0x756   :  { %v1108_v23 = vadd.f32 %v1107_v17, %v1106_v15 }
 0x758   :  { %v1109_v22 = vrot.slane %v1108_v23, 1 }
 0x75a   :  { %v1110_v24 = vadd.f32 %v1109_v22, %v1108_v23  ;;  %v2845_v23 = vld [vmem:[%s3680_s4 + $0x30] sm:$0xff]  }
 0x75c   :  { %v1111_v25 = vmul.f32 0.03125, %v1110_v24 }
 0x75e   :  { %v1112_v9 = vadd.f32 1e-05, %v1111_v25 }
 0x760   :  { %2868 = vrsqrt.f32 %v1112_v9 }
 0x76d   :  { %v2869_v10 = vpop.eup %2868 }
 0x76e   :  { %v1114_v31 = vmul.f32 %v2869_v10, %v1090_v39  ;;  %v1115_v32 = vmul.f32 %v2869_v10, %v1091_v51  ;;  %v1116_v12 = vmul.f32 %v2869_v10, %v1092_v52  ;;  %v1117_v16 = vmul.f32 %v2869_v10, %v1093_v53  ;;  %v2844_v52 = vld [vmem:[%s3680_s4 + $0x38] ss:$0 sps:$4 sm:$0xff]  }
 0x76f   :  { %2614 = vmatprep.subr.msk.bf16.mxu0 %vm259_vm2, %v2844_v52  ;;  %v1252_v61 = vsel %vm259_vm2, %v2844_v52, 0 }
 0x770   :  { %v1124_v34 = vmul.f32 %v2408_v28, %v1114_v31  ;;  %v1125_v35 = vmul.f32 %v2408_v28, %v1115_v32  ;;  %v1126_v38 = vmul.f32 %v2408_v28, %v1116_v12  ;;  %v1127_v40 = vmul.f32 %v2408_v28, %v1117_v16  ;;  %2555 = vmatpush3.bf16.msra.mxu0 %v1252_v61 }
 0x771   :  { %2556 = vmatprep.subr.bf16.mxu0 %v2845_v23 }
 0x772   :  { %v3288_v41 = vadd.f32 %v2409_v33, %v1125_v35  ;;  %v3290_v36 = vadd.f32 %v2409_v33, %v1126_v38  ;;  %v3292_v37 = vadd.f32 %v2409_v33, %v1127_v40  ;;  %v3294_v42 = vadd.f32 %v2409_v33, %v1124_v34 }
 0x774   :  { %v1151_v46 = vadd.f32 %v1141_v26, %v3288_v41  ;;  %v1152_v47 = vadd.f32 %v1143_v45, %v3290_v36  ;;  %v1153_v39 = vadd.f32 %v1145_v44, %v3292_v37  ;;  %v1150_v51 = vadd.f32 %v1139_v27, %v3294_v42  ;;  %2557 = vmatpush3.bf16.msra.mxu0 %v2845_v23 }
 0x775   :  { %v2797_v53 = vpack.i.bf16 %v3292_v37, %v3290_v36  ;;  %v2792_v54 = vpack.i.bf16 %v3288_v41, %v3294_v42 }
 0x776   :  { %v1159_v55 = vrot.slane %v1151_v46, 6  ;;  %v1161_v56 = vrot.slane %v1152_v47, 6  ;;  %v1162_v57 = vrot.slane %v1153_v39, 6  ;;  %v1158_v60 = vrot.slane %v1150_v51, 6 }
 0x778   :  { %v1163_v62 = vsel %vm215_vm1, %v1161_v56, %v1162_v57  ;;  %v1171_v7 = vsel %vm215_vm1, 0.0, %v1161_v56  ;;  %v1173_v8 = vsel %vm215_vm1, %v1162_v57, 0.0  ;;  %v1160_v11 = vsel %vm215_vm1, %v1158_v60, %v1159_v55 }
 0x779   :  { %v1183_v13 = vrot.slane %v1171_v7, 2  ;;  %v1184_v14 = vrot.slane %v1163_v62, 2  ;;  %v1186_v15 = vrot.slane %v1173_v8, 2  ;;  %v1170_v17 = vsel %vm215_vm1, 0.0, %v1158_v60 }
 0x77a   :  { %v1172_v22 = vsel %vm215_vm1, %v1159_v55, 0.0  ;;  %v1178_v24 = vrot.slane %v1170_v17, 2  ;;  %v1179_v25 = vrot.slane %v1160_v11, 2  ;;  %v1205_v9 = vrot.slane %v1171_v7, 4 }
 0x77b   :  { %v1185_v10 = vsel %vm236_vm3, %v1183_v13, %v1184_v14  ;;  %v1187_v26 = vsel %vm236_vm3, %v1184_v14, %v1186_v15  ;;  %v1181_v27 = vrot.slane %v1172_v22, 2  ;;  %v1206_v28 = vrot.slane %v1163_v62, 4 }
 0x77c   :  { %v2717_v31 = vpack.i.bf16 %v1187_v26, %v1185_v10  ;;  %v1180_v32 = vsel %vm236_vm3, %v1178_v24, %v1179_v25  ;;  %v1208_v12 = vrot.slane %v1173_v8, 4  ;;  %v1200_v16 = vrot.slane %v1170_v17, 4 }
 0x77d   :  { %v1182_v33 = vsel %vm236_vm3, %v1179_v25, %v1181_v27  ;;  %v1207_v34 = vsel %vm259_vm2, %v1205_v9, %v1206_v28  ;;  %v1201_v35 = vrot.slane %v1160_v11, 4  ;;  %v1203_v38 = vrot.slane %v1172_v22, 4 }
 0x77e   :  { %2718 = vrot.lane.b32.xlu1 %v2717_v31, %s2887_s19  ;;  %v2712_v40 = vpack.i.bf16 %v1182_v33, %v1180_v32  ;;  %v1209_v44 = vsel %vm259_vm2, %v1206_v28, %v1208_v12 }
 0x77f   :  { %v1202_v45 = vsel %vm259_vm2, %v1200_v16, %v1201_v35  ;;  %v1204_v46 = vsel %vm259_vm2, %v1201_v35, %v1203_v38  ;;  %v2727_v47 = vpack.i.bf16 %v1209_v44, %v1207_v34 }
 0x780   :  { %2713 = vrot.lane.b32.xlu0 %v2712_v40, %s2887_s19  ;;  %v2722_v39 = vpack.i.bf16 %v1204_v46, %v1202_v45 }
 0x782   :  { %2728 = vrot.lane.b32.xlu1 %v2727_v47, %s2886_s18 }
 0x784   :  { %2723 = vrot.lane.b32.xlu0 %v2722_v39, %s2886_s18 }
 0x786   :  { %1375 = vrot.lane.b32.xlu1 %v3021_v4, %s2892_s22 }
 0x788   :  { %1373 = vrot.lane.b32.xlu0 %v3019_v3, %s2892_s22 }
 0x78a   :  { %1379 = vrot.lane.b32.xlu1 %v3025_v6, %s2892_s22 }
 0x78c   :  { %1377 = vrot.lane.b32.xlu0 %v3023_v5, %s2892_s22 }
 0x7f0   :  { %v2719_v51 = vpop.permute.xlu1 %2718 }
 0x7f1   :  { %v2721_v52 = vunpack.i.h.bf16 %v2719_v51  ;;  %v2720_v55 = vunpack.i.l.bf16 %v2719_v51 }
 0x7f2   :  { %v2714_v56 = vpop.permute.xlu0 %2713 }
 0x7f3   :  { %v2716_v57 = vunpack.i.h.bf16 %v2714_v56  ;;  %v2715_v60 = vunpack.i.l.bf16 %v2714_v56  ;;  %v1225_v14 = vsel %vm282_vm4, %v1163_v62, %v2721_v52  ;;  %v1224_v15 = vsel %vm282_vm4, %v1171_v7, %v2720_v55 }
 0x7f4   :  { %v2729_v61 = vpop.permute.xlu1 %2728 }
 0x7f5   :  { %v2731_v8 = vunpack.i.h.bf16 %v2729_v61  ;;  %v2730_v13 = vunpack.i.l.bf16 %v2729_v61  ;;  %v1223_v10 = vsel %vm282_vm4, %v1160_v11, %v2716_v57  ;;  %v1222_v26 = vsel %vm282_vm4, %v1170_v17, %v2715_v60 }
 0x7f6   :  { %v2724_v23 = vpop.permute.xlu0 %2723 }
 0x7f7   :  { %v1228_v22 = vsel %vm287_vm5, %v1224_v15, %v2730_v13  ;;  %v1229_v24 = vsel %vm287_vm5, %v1225_v14, %v2731_v8  ;;  %v2726_v25 = vunpack.i.h.bf16 %v2724_v23  ;;  %v2725_v9 = vunpack.i.l.bf16 %v2724_v23 }
 0x7f8   :  { %v1231_v27 = vpack.c.bf16 %v1229_v24, %v1228_v22 }
 0x7f9   :  { %v1226_v28 = vsel %vm287_vm5, %v1222_v26, %v2725_v9  ;;  %v1227_v31 = vsel %vm287_vm5, %v1223_v10, %v2726_v25 }
 0x7fa   :  { %v1230_v32 = vpack.c.bf16 %v1227_v31, %v1226_v28 }
 0x7fc   :  { %2558 = vmatprep.mubr.msk.bf16.mxu0 %vm306_vm6, %v1230_v32 }
 0x7fd   :  { %2559 = vmatmul.mubr.msk.bf16.vlgmr.msra.gmra.mxu0 %vm306_vm6, %v1231_v27 }
 0x8bd   :  { %v2560_v62 = vpop.f32.mrf.mxu0 }
 0x8be   :  { %v1305_v34 = vmax.f32 %v2560_v62, 0.0 }
 0x8bf   :  { %v1288_v7 = vpop.f32.mrf.mxu0 }
 0x8c0   :  { %v1303_v16 = vmax.f32 %v1288_v7, 0.0  ;;  %v1314_v44 = vsel %vm282_vm4, %v1305_v34, 0.0 }
 0x8c1   :  { %v2561_v12 = vpop.f32.mrf.mxu0 }
 0x8c2   :  { %v1311_v11 = vsel %vm282_vm4, %v1303_v16, 0.0  ;;  %v1306_v17 = vmax.f32 %v2561_v12, 0.0 }
 0x8c3   :  { %v1291_v33 = vpop.f32.mrf.mxu0 }
 0x8c4   :  { %v1304_v35 = vmax.f32 %v1291_v33, 0.0  ;;  %v1316_v46 = vsel %vm282_vm4, %v1306_v17, 0.0 }
 0x8c6   :  { %v1312_v38 = vsel %vm282_vm4, %v1304_v35, 0.0 }
 0x8c7   :  { %v1313_v40 = vadd.f32 %v1312_v38, %v1311_v11  ;;  %v1374_v38 = vpop.permute.xlu0 %1373 }
 0x8c9   :  { %v1315_v45 = vadd.f32 %v1314_v44, %v1313_v40  ;;  %v2419_v40 = vld [vmem:[%s3681_s5 + $0x4] ss:$0 sm:$0xff] }
 0x8cb   :  { %v1317_v47 = vadd.f32 %v1316_v46, %v1315_v45 }
 0x8cd   :  { %v1318_v39 = vrot.slane %v1317_v47, 4 }
 0x8cf   :  { %v1319_v51 = vadd.f32 %v1318_v39, %v1317_v47  ;;  %v2420_v39 = vld [vmem:[%s3682_s6 + $0x4] ss:$0 sm:$0xff] }
 0x8d1   :  { %v1320_v52 = vrot.slane %v1319_v51, 2 }
 0x8d3   :  { %v1321_v55 = vadd.f32 %v1320_v52, %v1319_v51 }
 0x8d5   :  { %v1322_v56 = vrot.slane %v1321_v55, 1 }
 0x8d7   :  { %v1323_v57 = vadd.f32 %v1322_v56, %v1321_v55 }
 0x8d9   :  { %v1324_v60 = vmul.f32 0.03125, %v1323_v57 }
 0x8db   :  { %v1325_v61 = vsub.f32 %v1303_v16, %v1324_v60  ;;  %v1326_v8 = vsub.f32 %v1304_v35, %v1324_v60  ;;  %v1327_v13 = vsub.f32 %v1305_v34, %v1324_v60  ;;  %v1328_v14 = vsub.f32 %v1306_v17, %v1324_v60  ;;  %v1376_v17 = vpop.permute.xlu1 %1375 }
 0x8dd   :  { %v1329_v15 = vmul.f32 %v1325_v61, %v1325_v61  ;;  %v1330_v23 = vmul.f32 %v1326_v8, %v1326_v8  ;;  %v1331_v22 = vmul.f32 %v1327_v13, %v1327_v13  ;;  %v1332_v24 = vmul.f32 %v1328_v14, %v1328_v14 }
 0x8df   :  { %v1333_v25 = vsel %vm282_vm4, %v1329_v15, 0.0  ;;  %v1334_v9 = vsel %vm282_vm4, %v1330_v23, 0.0  ;;  %v1336_v26 = vsel %vm282_vm4, %v1331_v22, 0.0  ;;  %v1338_v28 = vsel %vm282_vm4, %v1332_v24, 0.0 }
 0x8e0   :  { %v1335_v10 = vadd.f32 %v1334_v9, %v1333_v25  ;;  %v2846_v25 = vld [vmem:[%s3680_s4 + $0x44] ss:$0 sps:$4 sm:$0xff]  }
 0x8e1   :  { %2615 = vmatprep.subr.msk.bf16.mxu1 %vm259_vm2, %v2846_v25 }
 0x8e2   :  { %v1337_v27 = vadd.f32 %v1336_v26, %v1335_v10 }
 0x8e4   :  { %v1339_v31 = vadd.f32 %v1338_v28, %v1337_v27 }
 0x8e6   :  { %v1340_v32 = vrot.slane %v1339_v31, 4 }
 0x8e8   :  { %v1341_v62 = vadd.f32 %v1340_v32, %v1339_v31  ;;  %v1487_v32 = vsel %vm259_vm2, %v2846_v25, 0 }
 0x8e9   :  { %2563 = vmatpush3.bf16.msra.mxu1 %v1487_v32 }
 0x8ea   :  { %v1342_v7 = vrot.slane %v1341_v62, 2 }
 0x8ec   :  { %v1343_v12 = vadd.f32 %v1342_v7, %v1341_v62 }
 0x8ee   :  { %v1344_v16 = vrot.slane %v1343_v12, 1 }
 0x8f0   :  { %v1345_v33 = vadd.f32 %v1344_v16, %v1343_v12 }
 0x8f2   :  { %v1346_v34 = vmul.f32 0.03125, %v1345_v33 }
 0x8f4   :  { %v1347_v35 = vadd.f32 1e-05, %v1346_v34 }
 0x8f6   :  { %2870 = vrsqrt.f32 %v1347_v35 }
 0x903   :  { %v2871_v11 = vpop.eup %2870 }
 0x904   :  { %v1349_v44 = vmul.f32 %v2871_v11, %v1325_v61  ;;  %v1350_v45 = vmul.f32 %v2871_v11, %v1326_v8  ;;  %v1351_v46 = vmul.f32 %v2871_v11, %v1327_v13  ;;  %v1352_v47 = vmul.f32 %v2871_v11, %v1328_v14  ;;  %v1380_v61 = vpop.permute.xlu1 %1379  ;;  %v1378_v8 = vpop.permute.xlu0 %1377 }
 0x906   :  { %v1359_v51 = vmul.f32 %v2419_v40, %v1349_v44  ;;  %v1360_v52 = vmul.f32 %v2419_v40, %v1350_v45  ;;  %v1361_v55 = vmul.f32 %v2419_v40, %v1351_v46  ;;  %v1362_v56 = vmul.f32 %v2419_v40, %v1352_v47 }
 0x908   :  { %v3358_v57 = vadd.f32 %v2420_v39, %v1360_v52  ;;  %v3360_v60 = vadd.f32 %v2420_v39, %v1361_v55  ;;  %v3362_v15 = vadd.f32 %v2420_v39, %v1362_v56  ;;  %v3364_v23 = vadd.f32 %v2420_v39, %v1359_v51 }
 0x90a   :  { %v1386_v13 = vadd.f32 %v1376_v17, %v3358_v57  ;;  %v1387_v14 = vadd.f32 %v1378_v8, %v3360_v60  ;;  %v1388_v22 = vadd.f32 %v1380_v61, %v3362_v15  ;;  %v1385_v24 = vadd.f32 %v1374_v38, %v3364_v23  ;;  %v2847_v17 = vld [vmem:[%s3680_s4 + $0x3c] sm:$0xff]  }
 0x90b   :  { %v2807_v9 = vpack.i.bf16 %v3362_v15, %v3360_v60  ;;  %v2802_v10 = vpack.i.bf16 %v3358_v57, %v3364_v23  ;;  %2564 = vmatprep.subr.bf16.mxu1 %v2847_v17 }
 0x90c   :  { %v1394_v26 = vrot.slane %v1386_v13, 6  ;;  %v1396_v27 = vrot.slane %v1387_v14, 6  ;;  %v1397_v28 = vrot.slane %v1388_v22, 6  ;;  %v1393_v31 = vrot.slane %v1385_v24, 6  ;;  %2565 = vmatpush3.bf16.msra.mxu1 %v2847_v17 }
 0x90e   :  { %v1398_v62 = vsel %vm215_vm1, %v1396_v27, %v1397_v28  ;;  %v1406_v7 = vsel %vm215_vm1, 0.0, %v1396_v27  ;;  %v1408_v12 = vsel %vm215_vm1, %v1397_v28, 0.0  ;;  %v1395_v16 = vsel %vm215_vm1, %v1393_v31, %v1394_v26 }
 0x90f   :  { %v1418_v33 = vrot.slane %v1406_v7, 2  ;;  %v1419_v34 = vrot.slane %v1398_v62, 2  ;;  %v1421_v35 = vrot.slane %v1408_v12, 2  ;;  %v1405_v11 = vsel %vm215_vm1, 0.0, %v1393_v31 }
 0x910   :  { %v1407_v38 = vsel %vm215_vm1, %v1394_v26, 0.0  ;;  %v1413_v40 = vrot.slane %v1405_v11, 2  ;;  %v1414_v44 = vrot.slane %v1395_v16, 2  ;;  %v1440_v45 = vrot.slane %v1406_v7, 4 }
 0x911   :  { %v1420_v46 = vsel %vm236_vm3, %v1418_v33, %v1419_v34  ;;  %v1422_v47 = vsel %vm236_vm3, %v1419_v34, %v1421_v35  ;;  %v1416_v39 = vrot.slane %v1407_v38, 2  ;;  %v1441_v51 = vrot.slane %v1398_v62, 4 }
 0x912   :  { %v2737_v52 = vpack.i.bf16 %v1422_v47, %v1420_v46  ;;  %v1415_v55 = vsel %vm236_vm3, %v1413_v40, %v1414_v44  ;;  %v1443_v56 = vrot.slane %v1408_v12, 4  ;;  %v1435_v61 = vrot.slane %v1405_v11, 4 }
 0x913   :  { %v1417_v8 = vsel %vm236_vm3, %v1414_v44, %v1416_v39  ;;  %v1442_v13 = vsel %vm259_vm2, %v1440_v45, %v1441_v51  ;;  %v1436_v14 = vrot.slane %v1395_v16, 4  ;;  %v1438_v22 = vrot.slane %v1407_v38, 4 }
 0x914   :  { %2738 = vrot.lane.b32.xlu1 %v2737_v52, %s2887_s19  ;;  %v2732_v24 = vpack.i.bf16 %v1417_v8, %v1415_v55  ;;  %v1444_v25 = vsel %vm259_vm2, %v1441_v51, %v1443_v56 }
 0x915   :  { %v1437_v26 = vsel %vm259_vm2, %v1435_v61, %v1436_v14  ;;  %v1439_v27 = vsel %vm259_vm2, %v1436_v14, %v1438_v22  ;;  %v2747_v28 = vpack.i.bf16 %v1444_v25, %v1442_v13 }
 0x916   :  { %2733 = vrot.lane.b32.xlu0 %v2732_v24, %s2887_s19  ;;  %v2742_v31 = vpack.i.bf16 %v1439_v27, %v1437_v26 }
 0x918   :  { %2748 = vrot.lane.b32.xlu1 %v2747_v28, %s2886_s18 }
 0x91a   :  { %2743 = vrot.lane.b32.xlu0 %v2742_v31, %s2886_s18 }
 0x91c   :  { %1610 = vrot.lane.b32.xlu1 %v3021_v4, %s2893_s30 }
 0x91e   :  { %1608 = vrot.lane.b32.xlu0 %v3019_v3, %s2893_s30 }
 0x920   :  { %1614 = vrot.lane.b32.xlu1 %v3025_v6, %s2893_s30 }
 0x922   :  { %1612 = vrot.lane.b32.xlu0 %v3023_v5, %s2893_s30 }
 0x986   :  { %v2739_v32 = vpop.permute.xlu1 %2738 }
 0x987   :  { %v2741_v12 = vunpack.i.h.bf16 %v2739_v32  ;;  %v2740_v33 = vunpack.i.l.bf16 %v2739_v32 }
 0x988   :  { %v2734_v34 = vpop.permute.xlu0 %2733 }
 0x989   :  { %v2736_v35 = vunpack.i.h.bf16 %v2734_v34  ;;  %v2735_v17 = vunpack.i.l.bf16 %v2734_v34  ;;  %v1460_v45 = vsel %vm282_vm4, %v1398_v62, %v2741_v12  ;;  %v1459_v46 = vsel %vm282_vm4, %v1406_v7, %v2740_v33 }
 0x98a   :  { %v2749_v38 = vpop.permute.xlu1 %2748 }
 0x98b   :  { %v2751_v40 = vunpack.i.h.bf16 %v2749_v38  ;;  %v2750_v44 = vunpack.i.l.bf16 %v2749_v38  ;;  %v1458_v56 = vsel %vm282_vm4, %v1395_v16, %v2736_v35  ;;  %v1457_v61 = vsel %vm282_vm4, %v1405_v11, %v2735_v17 }
 0x98c   :  { %v2744_v47 = vpop.permute.xlu0 %2743 }
 0x98d   :  { %v1463_v39 = vsel %vm287_vm5, %v1459_v46, %v2750_v44  ;;  %v1464_v51 = vsel %vm287_vm5, %v1460_v45, %v2751_v40  ;;  %v2746_v52 = vunpack.i.h.bf16 %v2744_v47  ;;  %v2745_v55 = vunpack.i.l.bf16 %v2744_v47 }
 0x98e   :  { %v1466_v8 = vpack.c.bf16 %v1464_v51, %v1463_v39 }
 0x98f   :  { %v1461_v13 = vsel %vm287_vm5, %v1457_v61, %v2745_v55  ;;  %v1462_v14 = vsel %vm287_vm5, %v1458_v56, %v2746_v52 }
 0x990   :  { %v1465_v22 = vpack.c.bf16 %v1462_v14, %v1461_v13 }
 0x992   :  { %2566 = vmatprep.mubr.msk.bf16.mxu1 %vm306_vm6, %v1465_v22 }
 0x993   :  { %2567 = vmatmul.mubr.msk.bf16.vlgmr.msra.gmra.mxu1 %vm306_vm6, %v1466_v8 }
 0xa53   :  { %v2568_v62 = vpop.f32.mrf.mxu1 }
 0xa54   :  { %v1540_v27 = vmax.f32 %v2568_v62, 0.0 }
 0xa55   :  { %v1523_v7 = vpop.f32.mrf.mxu1 }
 0xa56   :  { %v1538_v25 = vmax.f32 %v1523_v7, 0.0  ;;  %v1549_v12 = vsel %vm282_vm4, %v1540_v27, 0.0 }
 0xa57   :  { %v2569_v24 = vpop.f32.mrf.mxu1 }
 0xa58   :  { %v1546_v16 = vsel %vm282_vm4, %v1538_v25, 0.0  ;;  %v1541_v11 = vmax.f32 %v2569_v24, 0.0 }
 0xa59   :  { %v1526_v26 = vpop.f32.mrf.mxu1 }
 0xa5a   :  { %v1539_v28 = vmax.f32 %v1526_v26, 0.0  ;;  %v1551_v34 = vsel %vm282_vm4, %v1541_v11, 0.0 }
 0xa5c   :  { %v1547_v31 = vsel %vm282_vm4, %v1539_v28, 0.0 }
 0xa5d   :  { %v1548_v32 = vadd.f32 %v1547_v31, %v1546_v16 }
 0xa5f   :  { %v1550_v33 = vadd.f32 %v1549_v12, %v1548_v32 }
 0xa61   :  { %v1552_v35 = vadd.f32 %v1551_v34, %v1550_v33 }
 0xa63   :  { %v1553_v17 = vrot.slane %v1552_v35, 4 }
 0xa65   :  { %v1554_v38 = vadd.f32 %v1553_v17, %v1552_v35  ;;  %v1611_v35 = vpop.permute.xlu1 %1610  ;;  %v1609_v17 = vpop.permute.xlu0 %1608 }
 0xa67   :  { %v1555_v40 = vrot.slane %v1554_v38, 2 }
 0xa69   :  { %v1556_v44 = vadd.f32 %v1555_v40, %v1554_v38  ;;  %v2430_v38 = vld [vmem:[%s3681_s5 + $0x5] ss:$0 sm:$0xff] }
 0xa6b   :  { %v1557_v45 = vrot.slane %v1556_v44, 1 }
 0xa6d   :  { %v1558_v46 = vadd.f32 %v1557_v45, %v1556_v44 }
 0xa6f   :  { %v1559_v47 = vmul.f32 0.03125, %v1558_v46 }
 0xa71   :  { %v1560_v39 = vsub.f32 %v1538_v25, %v1559_v47  ;;  %v1561_v51 = vsub.f32 %v1539_v28, %v1559_v47  ;;  %v1562_v52 = vsub.f32 %v1540_v27, %v1559_v47  ;;  %v1563_v55 = vsub.f32 %v1541_v11, %v1559_v47  ;;  %v2431_v47 = vld [vmem:[%s3682_s6 + $0x5] ss:$0 sm:$0xff] }
 0xa73   :  { %v1564_v56 = vmul.f32 %v1560_v39, %v1560_v39  ;;  %v1565_v61 = vmul.f32 %v1561_v51, %v1561_v51  ;;  %v1566_v8 = vmul.f32 %v1562_v52, %v1562_v52  ;;  %v1567_v13 = vmul.f32 %v1563_v55, %v1563_v55 }
 0xa75   :  { %v1568_v14 = vsel %vm282_vm4, %v1564_v56, 0.0  ;;  %v1569_v22 = vsel %vm282_vm4, %v1565_v61, 0.0  ;;  %v1571_v7 = vsel %vm282_vm4, %v1566_v8, 0.0  ;;  %v1573_v26 = vsel %vm282_vm4, %v1567_v13, 0.0 }
 0xa76   :  { %v1570_v62 = vadd.f32 %v1569_v22, %v1568_v14 }
 0xa78   :  { %v1572_v24 = vadd.f32 %v1571_v7, %v1570_v62 }
 0xa7a   :  { %v1574_v16 = vadd.f32 %v1573_v26, %v1572_v24 }
 0xa7c   :  { %v1575_v31 = vrot.slane %v1574_v16, 4 }
 0xa7e   :  { %v1576_v25 = vadd.f32 %v1575_v31, %v1574_v16  ;;  %v2848_v16 = vld [vmem:[%s3680_s4 + $0x50] ss:$0 sps:$4 sm:$0xff]  }
 0xa7f   :  { %2616 = vmatprep.subr.msk.bf16.mxu0 %vm259_vm2, %v2848_v16 }
 0xa80   :  { %v1577_v28 = vrot.slane %v1576_v25, 2 }
 0xa82   :  { %v1578_v27 = vadd.f32 %v1577_v28, %v1576_v25 }
 0xa84   :  { %v1579_v11 = vrot.slane %v1578_v27, 1 }
 0xa86   :  { %v1580_v32 = vadd.f32 %v1579_v11, %v1578_v27  ;;  %v1722_v11 = vsel %vm259_vm2, %v2848_v16, 0 }
 0xa87   :  { %2571 = vmatpush3.bf16.msra.mxu0 %v1722_v11 }
 0xa88   :  { %v1581_v12 = vmul.f32 0.03125, %v1580_v32 }
 0xa8a   :  { %v1582_v33 = vadd.f32 1e-05, %v1581_v12 }
 0xa8c   :  { %2872 = vrsqrt.f32 %v1582_v33 }
 0xa99   :  { %v2873_v34 = vpop.eup %2872 }
 0xa9a   :  { %v1584_v40 = vmul.f32 %v2873_v34, %v1560_v39  ;;  %v1585_v44 = vmul.f32 %v2873_v34, %v1561_v51  ;;  %v1586_v45 = vmul.f32 %v2873_v34, %v1562_v52  ;;  %v1587_v46 = vmul.f32 %v2873_v34, %v1563_v55  ;;  %v1615_v39 = vpop.permute.xlu1 %1614  ;;  %v1613_v51 = vpop.permute.xlu0 %1612 }
 0xa9c   :  { %v1594_v56 = vmul.f32 %v2430_v38, %v1584_v40  ;;  %v1595_v61 = vmul.f32 %v2430_v38, %v1585_v44  ;;  %v1596_v8 = vmul.f32 %v2430_v38, %v1586_v45  ;;  %v1597_v13 = vmul.f32 %v2430_v38, %v1587_v46  ;;  %v2849_v44 = vld [vmem:[%s3680_s4 + $0x48] sm:$0xff]   ;;  %s2894_s4 = smov 24  }
 0xa9d   :  { %2572 = vmatprep.subr.bf16.mxu0 %v2849_v44 }
 0xa9e   :  { %v3428_v14 = vadd.f32 %v2431_v47, %v1595_v61  ;;  %v3430_v22 = vadd.f32 %v2431_v47, %v1596_v8  ;;  %v3432_v62 = vadd.f32 %v2431_v47, %v1597_v13  ;;  %v3434_v7 = vadd.f32 %v2431_v47, %v1594_v56  ;;  %2573 = vmatpush3.bf16.msra.mxu0 %v2849_v44 }
 0xaa0   :  { %v1621_v52 = vadd.f32 %v1611_v35, %v3428_v14  ;;  %v1622_v55 = vadd.f32 %v1613_v51, %v3430_v22  ;;  %v1623_v24 = vadd.f32 %v1615_v39, %v3432_v62  ;;  %v1620_v26 = vadd.f32 %v1609_v17, %v3434_v7 }
 0xaa1   :  { %v2817_v18 = vpack.i.bf16 %v3432_v62, %v3430_v22  ;;  %v2812_v19 = vpack.i.bf16 %v3428_v14, %v3434_v7  ;;  %v2850_v14 = vld [vmem:[%s3683_s7 + $0x18] sm:$0xff]   ;;  %v2851_v22 = vld [vmem:[%s3683_s7 + $0x10] sm:$0xff]   ;;  %v2852_v62 = vld [vmem:[%s3683_s7 + $0x8] sm:$0xff]  }
 0xaa2   :  { %v1629_v31 = vrot.slane %v1621_v52, 6  ;;  %v1631_v25 = vrot.slane %v1622_v55, 6  ;;  %v1632_v28 = vrot.slane %v1623_v24, 6  ;;  %v1628_v27 = vrot.slane %v1620_v26, 6  ;;  %2578 = vmatprep.subr.bf16.mxu1 %v2850_v14 }
 0xaa3   :  { %2579 = vmatpush3.bf16.msra.mxu1 %v2850_v14 }
 0xaa4   :  { %v3446_v32 = vsel %vm215_vm1, %v1631_v25, %v1632_v28  ;;  %v3449_v12 = vsel %vm215_vm1, 0.0, %v1631_v25  ;;  %v1643_v33 = vsel %vm215_vm1, %v1632_v28, 0.0  ;;  %v3453_v34 = vsel %vm215_vm1, %v1628_v27, %v1629_v31  ;;  %2580 = vmatprep.subr.bf16.mxu1 %v2851_v22 }
 0xaa5   :  { %v1653_v35 = vrot.slane %v3449_v12, 2  ;;  %v1654_v17 = vrot.slane %v3446_v32, 2  ;;  %v1656_v38 = vrot.slane %v1643_v33, 2  ;;  %v3458_v40 = vsel %vm215_vm1, 0.0, %v1628_v27 }
 0xaa6   :  { %v1642_v45 = vsel %vm215_vm1, %v1629_v31, 0.0  ;;  %v1648_v46 = vrot.slane %v3458_v40, 2  ;;  %v1649_v47 = vrot.slane %v3453_v34, 2  ;;  %v1675_v56 = vrot.slane %v3449_v12, 4 }
 0xaa7   :  { %v1655_v61 = vsel %vm236_vm3, %v1653_v35, %v1654_v17  ;;  %v1657_v8 = vsel %vm236_vm3, %v1654_v17, %v1656_v38  ;;  %v1651_v13 = vrot.slane %v1642_v45, 2  ;;  %v1676_v39 = vrot.slane %v3446_v32, 4  ;;  %2581 = vmatpush3.bf16.msra.mxu1 %v2851_v22 }
 0xaa8   :  { %v2757_v51 = vpack.i.bf16 %v1657_v8, %v1655_v61  ;;  %v1650_v52 = vsel %vm236_vm3, %v1648_v46, %v1649_v47  ;;  %v1678_v55 = vrot.slane %v1643_v33, 4  ;;  %v1670_v24 = vrot.slane %v3458_v40, 4  ;;  %2582 = vmatprep.subr.bf16.mxu1 %v2852_v62 }
 0xaa9   :  { %v1652_v26 = vsel %vm236_vm3, %v1649_v47, %v1651_v13  ;;  %v1677_v16 = vsel %vm259_vm2, %v1675_v56, %v1676_v39  ;;  %v1671_v31 = vrot.slane %v3453_v34, 4  ;;  %v1673_v25 = vrot.slane %v1642_v45, 4 }
 0xaaa   :  { %2758 = vrot.lane.b32.xlu1 %v2757_v51, %s2887_s19  ;;  %v2752_v28 = vpack.i.bf16 %v1652_v26, %v1650_v52  ;;  %v1679_v27 = vsel %vm259_vm2, %v1676_v39, %v1678_v55 }
 0xaab   :  { %v1672_v11 = vsel %vm259_vm2, %v1670_v24, %v1671_v31  ;;  %v1674_v35 = vsel %vm259_vm2, %v1671_v31, %v1673_v25  ;;  %v2767_v33 = vpack.i.bf16 %v1679_v27, %v1677_v16  ;;  %2583 = vmatpush3.bf16.msra.mxu1 %v2852_v62 }
 0xaac   :  { %2753 = vrot.lane.b32.xlu0 %v2752_v28, %s2887_s19  ;;  %v2762_v17 = vpack.i.bf16 %v1674_v35, %v1672_v11 }
 0xaae   :  { %2768 = vrot.lane.b32.xlu1 %v2767_v33, %s2886_s18 }
 0xab0   :  { %2763 = vrot.lane.b32.xlu0 %v2762_v17, %s2886_s18 }
 0xab2   :  { %2778 = vrot.lane.b32.xlu1 %v2777_v29, %s2887_s19 }
 0xab4   :  { %2773 = vrot.lane.b32.xlu0 %v2772_v30, %s2887_s19  ;;  %s2895_s19 = smov 32  }
 0xab6   :  { %2788 = vrot.lane.b32.xlu1 %v2787_v58, %s2886_s18 }
 0xab8   :  { %2783 = vrot.lane.b32.xlu0 %v2782_v59, %s2886_s18  ;;  %s2896_s18 = smov 40  }
 0xaba   :  { %2798 = vrot.lane.b32.xlu1 %v2797_v53, %s2894_s4 }
 0xabc   :  { %2793 = vrot.lane.b32.xlu0 %v2792_v54, %s2894_s4 }
 0xabe   :  { %2808 = vrot.lane.b32.xlu1 %v2807_v9, %s2895_s19 }
 0xac0   :  { %2803 = vrot.lane.b32.xlu0 %v2802_v10, %s2895_s19 }
 0xac2   :  { %2818 = vrot.lane.b32.xlu1 %v2817_v18, %s2896_s18 }
 0xac4   :  { %2813 = vrot.lane.b32.xlu0 %v2812_v19, %s2896_s18 }
 0xb1c   :  { %v2759_v20 = vpop.permute.xlu1 %2758 }
 0xb1d   :  { %v2761_v21 = vunpack.i.h.bf16 %v2759_v20  ;;  %v2760_v29 = vunpack.i.l.bf16 %v2759_v20 }
 0xb1e   :  { %v2754_v30 = vpop.permute.xlu0 %2753 }
 0xb1f   :  { %v2756_v43 = vunpack.i.h.bf16 %v2754_v30  ;;  %v2755_v48 = vunpack.i.l.bf16 %v2754_v30  ;;  %v1695_v59 = vsel %vm282_vm4, %v3446_v32, %v2761_v21  ;;  %v1694_v41 = vsel %vm282_vm4, %v3449_v12, %v2760_v29 }
 0xb20   :  { %v2769_v49 = vpop.permute.xlu1 %2768 }
 0xb21   :  { %v2771_v50 = vunpack.i.h.bf16 %v2769_v49  ;;  %v2770_v58 = vunpack.i.l.bf16 %v2769_v49  ;;  %v1693_v57 = vsel %vm282_vm4, %v3453_v34, %v2756_v43  ;;  %v1692_v60 = vsel %vm282_vm4, %v3458_v40, %v2755_v48 }
 0xb22   :  { %v2764_v36 = vpop.permute.xlu0 %2763 }
 0xb23   :  { %v1698_v37 = vsel %vm287_vm5, %v1694_v41, %v2770_v58  ;;  %v1699_v42 = vsel %vm287_vm5, %v1695_v59, %v2771_v50  ;;  %v2766_v53 = vunpack.i.h.bf16 %v2764_v36  ;;  %v2765_v54 = vunpack.i.l.bf16 %v2764_v36 }
 0xb24   :  { %v1701_v15 = vpack.c.bf16 %v1699_v42, %v1698_v37 }
 0xb25   :  { %v1696_v23 = vsel %vm287_vm5, %v1692_v60, %v2765_v54  ;;  %v1697_v9 = vsel %vm287_vm5, %v1693_v57, %v2766_v53  ;;  %v2853_v53 = vld [vmem:[%s3683_s7] sm:$0xff]  }
 0xb26   :  { %v1700_v10 = vpack.c.bf16 %v1697_v9, %v1696_v23  ;;  %v2441_v57 = vld [vmem:[%s3681_s5 + $0x6] ss:$0 sm:$0xff]  ;;  %2584 = vmatprep.subr.bf16.mxu1 %v2853_v53  ;;  %s2897_s5 = smov 48  }
 0xb27   :  { %2585 = vmatpush3.bf16.msra.mxu1 %v2853_v53 }
 0xb28   :  { %2574 = vmatprep.mubr.msk.bf16.mxu0 %vm306_vm6, %v1700_v10  ;;  %v2442_v10 = vld [vmem:[%s3682_s6 + $0x6] ss:$0 sm:$0xff] }
 0xb29   :  { %2575 = vmatmul.mubr.msk.bf16.vlgmr.msra.gmra.mxu0 %vm306_vm6, %v1701_v15 }
 0xbe9   :  { %v2576_v7 = vpop.f32.mrf.mxu0 }
 0xbea   :  { %v1775_v40 = vmax.f32 %v2576_v7, 0.0 }
 0xbeb   :  { %v1758_v32 = vpop.f32.mrf.mxu0 }
 0xbec   :  { %v1773_v34 = vmax.f32 %v1758_v32, 0.0  ;;  %v1784_v61 = vsel %vm282_vm4, %v1775_v40, 0.0 }
 0xbed   :  { %v2577_v12 = vpop.f32.mrf.mxu0 }
 0xbee   :  { %v1781_v45 = vsel %vm282_vm4, %v1773_v34, 0.0  ;;  %v1776_v46 = vmax.f32 %v2577_v12, 0.0 }
 0xbef   :  { %v1761_v38 = vpop.f32.mrf.mxu0 }
 0xbf0   :  { %v1774_v44 = vmax.f32 %v1761_v38, 0.0  ;;  %v1786_v13 = vsel %vm282_vm4, %v1776_v46, 0.0 }
 0xbf2   :  { %v1782_v47 = vsel %vm282_vm4, %v1774_v44, 0.0 }
 0xbf3   :  { %v1783_v56 = vadd.f32 %v1782_v47, %v1781_v45  ;;  %v2779_v45 = vpop.permute.xlu1 %2778 }
 0xbf5   :  { %v1785_v8 = vadd.f32 %v1784_v61, %v1783_v56 }
 0xbf7   :  { %v1787_v39 = vadd.f32 %v1786_v13, %v1785_v8  ;;  %v2789_v47 = vpop.permute.xlu1 %2788 }
 0xbf9   :  { %v1788_v51 = vrot.slane %v1787_v39, 4 }
 0xbfb   :  { %v1789_v52 = vadd.f32 %v1788_v51, %v1787_v39  ;;  %v2799_v61 = vpop.permute.xlu1 %2798  ;;  %v2781_v51 = vunpack.i.h.bf16 %v2779_v45 }
 0xbfd   :  { %v1790_v55 = vrot.slane %v1789_v52, 2 }
 0xbff   :  { %v1791_v24 = vadd.f32 %v1790_v55, %v1789_v52  ;;  %v2809_v13 = vpop.permute.xlu1 %2808  ;;  %v2780_v52 = vunpack.i.l.bf16 %v2779_v45 }
 0xc01   :  { %v1792_v26 = vrot.slane %v1791_v24, 1 }
 0xc03   :  { %v1793_v16 = vadd.f32 %v1792_v26, %v1791_v24  ;;  %v2791_v26 = vunpack.i.h.bf16 %v2789_v47 }
 0xc05   :  { %v1794_v31 = vmul.f32 0.03125, %v1793_v16  ;;  %v2790_v16 = vunpack.i.l.bf16 %v2789_v47 }
 0xc07   :  { %v1795_v25 = vsub.f32 %v1773_v34, %v1794_v31  ;;  %v1796_v28 = vsub.f32 %v1774_v44, %v1794_v31  ;;  %v1797_v27 = vsub.f32 %v1775_v40, %v1794_v31  ;;  %v1798_v11 = vsub.f32 %v1776_v46, %v1794_v31  ;;  %v2774_v46 = vpop.permute.xlu0 %2773 }
 0xc08   :  { %v2776_v55 = vunpack.i.h.bf16 %v2774_v46  ;;  %v2775_v24 = vunpack.i.l.bf16 %v2774_v46 }
 0xc09   :  { %v1799_v35 = vmul.f32 %v1795_v25, %v1795_v25  ;;  %v1800_v33 = vmul.f32 %v1796_v28, %v1796_v28  ;;  %v1801_v17 = vmul.f32 %v1797_v27, %v1797_v27  ;;  %v1802_v18 = vmul.f32 %v1798_v11, %v1798_v11 }
 0xc0b   :  { %v1803_v19 = vsel %vm282_vm4, %v1799_v35, 0.0  ;;  %v1804_v20 = vsel %vm282_vm4, %v1800_v33, 0.0  ;;  %v1806_v29 = vsel %vm282_vm4, %v1801_v17, 0.0  ;;  %v1808_v43 = vsel %vm282_vm4, %v1802_v18, 0.0  ;;  %v2784_v56 = vpop.permute.xlu0 %2783 }
 0xc0c   :  { %v1805_v21 = vadd.f32 %v1804_v20, %v1803_v19  ;;  %v2786_v31 = vunpack.i.h.bf16 %v2784_v56  ;;  %v1941_v35 = vsel %vm282_vm4, %v3084_v0, %v2780_v52  ;;  %v1940_v33 = vsel %vm282_vm4, %v3082_v63, %v2776_v55 }
 0xc0d   :  { %v1939_v17 = vsel %vm282_vm4, %v3088_v2, %v2775_v24  ;;  %v2811_v20 = vunpack.i.h.bf16 %v2809_v13 }
 0xc0e   :  { %v1807_v30 = vadd.f32 %v1806_v29, %v1805_v21  ;;  %v2810_v21 = vunpack.i.l.bf16 %v2809_v13  ;;  %v2819_v29 = vpop.permute.xlu1 %2818  ;;  %v2854_v13 = vld [vmem:[%s3684_s10 + $0x18] sm:$0xff]  }
 0xc0f   :  { %v2794_v8 = vpop.permute.xlu0 %2793 }
 0xc10   :  { %v1809_v48 = vadd.f32 %v1808_v43, %v1807_v30  ;;  %v2796_v18 = vunpack.i.h.bf16 %v2794_v8  ;;  %v2795_v19 = vunpack.i.l.bf16 %v2794_v8  ;;  %v1945_v43 = vsel %vm287_vm5, %v1941_v35, %v2790_v16 }
 0xc12   :  { %v1810_v49 = vrot.slane %v1809_v48, 4 }
 0xc13   :  { %v2804_v39 = vpop.permute.xlu0 %2803 }
 0xc14   :  { %v1811_v50 = vadd.f32 %v1810_v49, %v1809_v48  ;;  %v2805_v49 = vunpack.i.l.bf16 %v2804_v39 }
 0xc16   :  { %v1812_v58 = vrot.slane %v1811_v50, 2 }
 0xc17   :  { %v2814_v30 = vpop.permute.xlu0 %2813 }
 0xc18   :  { %v1813_v59 = vadd.f32 %v1812_v58, %v1811_v50  ;;  %v1944_v50 = vsel %vm287_vm5, %v1940_v33, %v2786_v31  ;;  %v2821_v58 = vunpack.i.h.bf16 %v2819_v29 }
 0xc1a   :  { %v1814_v41 = vrot.slane %v1813_v59, 1 }
 0xc1c   :  { %v1815_v36 = vadd.f32 %v1814_v41, %v1813_v59  ;;  %v2820_v59 = vunpack.i.l.bf16 %v2819_v29  ;;  %v2816_v41 = vunpack.i.h.bf16 %v2814_v30 }
 0xc1e   :  { %v1816_v37 = vmul.f32 0.03125, %v1815_v36  ;;  %v2815_v36 = vunpack.i.l.bf16 %v2814_v30 }
 0xc20   :  { %v1817_v42 = vadd.f32 1e-05, %v1816_v37 }
 0xc22   :  { %2874 = vrsqrt.f32 %v1817_v42  ;;  %v1948_v42 = vsel %vm306_vm6, %v1944_v50, %v2796_v18 }
 0xc2f   :  { %v2875_v54 = vpop.eup %2874 }
 0xc30   :  { %v1820_v60 = vmul.f32 %v2875_v54, %v1796_v28  ;;  %v1821_v15 = vmul.f32 %v2875_v54, %v1797_v27  ;;  %v1822_v23 = vmul.f32 %v2875_v54, %v1798_v11  ;;  %v1819_v9 = vmul.f32 %v2875_v54, %v1795_v25 }
 0xc31   :  { %v2785_v25 = vunpack.i.l.bf16 %v2784_v56  ;;  %v2801_v28 = vunpack.i.h.bf16 %v2799_v61  ;;  %v2800_v27 = vunpack.i.l.bf16 %v2799_v61  ;;  %v1942_v11 = vsel %vm282_vm4, %v3086_v1, %v2781_v51 }
 0xc32   :  { %v1830_v14 = vmul.f32 %v2441_v57, %v1820_v60  ;;  %v1831_v22 = vmul.f32 %v2441_v57, %v1821_v15  ;;  %v1832_v62 = vmul.f32 %v2441_v57, %v1822_v23  ;;  %v1829_v7 = vmul.f32 %v2441_v57, %v1819_v9 }
 0xc33   :  { %v1946_v48 = vsel %vm287_vm5, %v1942_v11, %v2791_v26  ;;  %v2806_v1 = vunpack.i.h.bf16 %v2804_v39  ;;  %v1943_v0 = vsel %vm287_vm5, %v1939_v17, %v2785_v25  ;;  %v1949_v63 = vsel %vm306_vm6, %v1945_v43, %v2800_v27  ;;  %v2858_v39 = vld [vmem:[%s3685_s12 + $0x8] sm:$0xff]  }
 0xc34   :  { %v1841_v32 = vadd.f32 %v2442_v10, %v1831_v22  ;;  %v1842_v12 = vadd.f32 %v2442_v10, %v1832_v62  ;;  %v1839_v34 = vadd.f32 %v2442_v10, %v1829_v7  ;;  %v1840_v38 = vadd.f32 %v2442_v10, %v1830_v14 }
 0xc35   :  { %v1950_v2 = vsel %vm306_vm6, %v1946_v48, %v2801_v28  ;;  %v1947_v37 = vsel %vm306_vm6, %v1943_v0, %v2795_v19  ;;  %v1954_v53 = vsel %vm1951_vm7, %v1949_v63, %v2810_v21  ;;  %v1953_v60 = vsel %vm1951_vm7, %v1948_v42, %v2806_v1 }
 0xc36   :  { %v2827_v40 = vpack.i.bf16 %v1842_v12, %v1841_v32  ;;  %v2822_v44 = vpack.i.bf16 %v1840_v38, %v1839_v34  ;;  %v1955_v54 = vsel %vm1951_vm7, %v1950_v2, %v2811_v20  ;;  %v1952_v57 = vsel %vm1951_vm7, %v1947_v37, %v2805_v49 }
 0xc37   :  { %v1959_v62 = vsel %vm1956_vm8, %v1954_v53, %v2820_v59  ;;  %v1960_v7 = vsel %vm1956_vm8, %v1955_v54, %v2821_v58  ;;  %v1957_v32 = vsel %vm1956_vm8, %v1952_v57, %v2815_v36  ;;  %v1958_v12 = vsel %vm1956_vm8, %v1953_v60, %v2816_v41 }
 0xc38   :  { %2828 = vrot.lane.b32.xlu1 %v2827_v40, %s2897_s5  ;;  %2823 = vrot.lane.b32.xlu0 %v2822_v44, %s2897_s5 }
 0xcaa   :  { %v2829_v15 = vpop.permute.xlu1 %2828  ;;  %v2824_v23 = vpop.permute.xlu0 %2823 }
 0xcab   :  { %v2831_v9 = vunpack.i.h.bf16 %v2829_v15  ;;  %v2830_v10 = vunpack.i.l.bf16 %v2829_v15  ;;  %v2826_v14 = vunpack.i.h.bf16 %v2824_v23  ;;  %v2825_v22 = vunpack.i.l.bf16 %v2824_v23 }
 0xcad   :  { %v1965_v34 = vsel %vm1961_vm9, %v1960_v7, %v2831_v9  ;;  %v1964_v38 = vsel %vm1961_vm9, %v1959_v62, %v2830_v10  ;;  %v1963_v40 = vsel %vm1961_vm9, %v1958_v12, %v2826_v14  ;;  %v1962_v44 = vsel %vm1961_vm9, %v1957_v32, %v2825_v22  ;;  %v2449_v32 = vld [vmem:[%s3686_s8] ss:$0 sm:$0xff] }
 0xcae   :  { %v1970_v45 = vsel %vm1966_vm10, %v1965_v34, %v3025_v6  ;;  %v1969_v46 = vsel %vm1966_vm10, %v1964_v38, %v3023_v5  ;;  %v1968_v47 = vsel %vm1966_vm10, %v1963_v40, %v3021_v4  ;;  %v1967_v56 = vsel %vm1966_vm10, %v1962_v44, %v3019_v3  ;;  %v2855_v4 = vld [vmem:[%s3684_s10 + $0x10] sm:$0xff]   ;;  %v2856_v3 = vld [vmem:[%s3684_s10 + $0x8] sm:$0xff]   ;;  %v2857_v5 = vld [vmem:[%s3684_s10] sm:$0xff]  }
 0xcaf   :  { %v1972_v61 = vpack.c.bf16 %v1970_v45, %v1969_v46  ;;  %v1971_v8 = vpack.c.bf16 %v1968_v47, %v1967_v56  ;;  %v2898_v6 = vmov 0.0   ;;  %v2450_v44 = vld [vmem:[%s3687_s9] ss:$0 sm:$0xff] }
 0xcb0   :  { %2590 = vmatprep.subr.bf16.mxu0 %v2898_v6  ;;  %2602 = vmatprep.subr.bf16.mxu1 %v2898_v6 }
 0xcb1   :  { %2586 = vmatprep.mubr.msk.bf16.mxu1 %vm86_vm0, %v1971_v8  ;;  %2591 = vmatpush3.bf16.msra.mxu0 %v2854_v13 }
 0xcb2   :  { %2587 = vmatmul.mubr.msk.bf16.vlgmr.msra.gmra.mxu1 %vm86_vm0, %v1972_v61  ;;  %2592 = vmatprep.subr.bf16.mxu0 %v2898_v6 }
 0xcb3   :  { %2598 = vmatprep.mubr.msk.bf16.mxu0 %vm2899_vm11, %v2898_v6  ;;  %2606 = vmatprep.mubr.msk.bf16.mxu1 %vm2899_vm11, %v2898_v6 }
 0xcb4   :  { %2603 = vmatpush3.bf16.msra.mxu1 %v2858_v39 }
 0xcb5   :  { %2593 = vmatpush3.bf16.msra.mxu0 %v2855_v4  ;;  %2604 = vmatprep.subr.bf16.mxu1 %v2898_v6 }
 0xcb6   :  { %2594 = vmatprep.subr.bf16.mxu0 %v2898_v6 }
 0xcb9   :  { %2595 = vmatpush3.bf16.msra.mxu0 %v2856_v3 }
 0xcba   :  { %2596 = vmatprep.subr.bf16.mxu0 %v2898_v6 }
 0xcbd   :  { %2597 = vmatpush3.bf16.msra.mxu0 %v2857_v5 }
 0xd72   :  { %v2588_v51 = vpop.f32.mrf.mxu1 }
 0xd73   :  { %v2062_v16 = vmax.f32 %v2588_v51, 0.0 }
 0xd74   :  { %v2045_v52 = vpop.f32.mrf.mxu1 }
 0xd75   :  { %v2060_v24 = vmax.f32 %v2045_v52, 0.0  ;;  %v2069_v35 = vsel %vm86_vm0, %v2062_v16, 0.0 }
 0xd76   :  { %v2589_v55 = vpop.f32.mrf.mxu1 }
 0xd77   :  { %v2066_v25 = vsel %vm86_vm0, %v2060_v24, 0.0  ;;  %v2063_v28 = vmax.f32 %v2589_v55, 0.0 }
 0xd78   :  { %v2048_v26 = vpop.f32.mrf.mxu1 }
 0xd79   :  { %v2061_v31 = vmax.f32 %v2048_v26, 0.0  ;;  %v2071_v17 = vsel %vm86_vm0, %v2063_v28, 0.0 }
 0xd7b   :  { %v2067_v27 = vsel %vm86_vm0, %v2061_v31, 0.0 }
 0xd7c   :  { %v2068_v11 = vadd.f32 %v2067_v27, %v2066_v25 }
 0xd7e   :  { %v2070_v33 = vadd.f32 %v2069_v35, %v2068_v11 }
 0xd80   :  { %v2072_v18 = vadd.f32 %v2071_v17, %v2070_v33 }
 0xd82   :  { %v2073_v19 = vrot.slane %v2072_v18, 4 }
 0xd84   :  { %v2074_v20 = vadd.f32 %v2073_v19, %v2072_v18 }
 0xd86   :  { %v2075_v21 = vrot.slane %v2074_v20, 2 }
 0xd88   :  { %v2076_v29 = vadd.f32 %v2075_v21, %v2074_v20 }
 0xd8a   :  { %v2077_v30 = vrot.slane %v2076_v29, 1 }
 0xd8c   :  { %v2078_v43 = vadd.f32 %v2077_v30, %v2076_v29 }
 0xd8e   :  { %v2079_v48 = vmul.f32 0.03125, %v2078_v43 }
 0xd90   :  { %v2080_v1 = vsub.f32 %v2060_v24, %v2079_v48  ;;  %v2081_v49 = vsub.f32 %v2061_v31, %v2079_v48  ;;  %v2082_v0 = vsub.f32 %v2062_v16, %v2079_v48  ;;  %v2083_v50 = vsub.f32 %v2063_v28, %v2079_v48 }
 0xd92   :  { %v2084_v63 = vmul.f32 %v2080_v1, %v2080_v1  ;;  %v2085_v2 = vmul.f32 %v2081_v49, %v2081_v49  ;;  %v2086_v58 = vmul.f32 %v2082_v0, %v2082_v0  ;;  %v2087_v59 = vmul.f32 %v2083_v50, %v2083_v50 }
 0xd94   :  { %v2088_v41 = vsel %vm86_vm0, %v2084_v63, 0.0  ;;  %v2089_v36 = vsel %vm86_vm0, %v2085_v2, 0.0  ;;  %v2091_v42 = vsel %vm86_vm0, %v2086_v58, 0.0  ;;  %v2093_v54 = vsel %vm86_vm0, %v2087_v59, 0.0 }
 0xd95   :  { %v2090_v37 = vadd.f32 %v2089_v36, %v2088_v41  ;;  %v2457_v36 = vld [vmem:[%s3689_s13] ss:$0 sm:$0xff] }
 0xd97   :  { %v2092_v53 = vadd.f32 %v2091_v42, %v2090_v37 }
 0xd99   :  { %v2094_v57 = vadd.f32 %v2093_v54, %v2092_v53 }
 0xd9b   :  { %v2095_v60 = vrot.slane %v2094_v57, 4 }
 0xd9d   :  { %v2096_v15 = vadd.f32 %v2095_v60, %v2094_v57 }
 0xd9f   :  { %v2097_v23 = vrot.slane %v2096_v15, 2 }
 0xda1   :  { %v2098_v9 = vadd.f32 %v2097_v23, %v2096_v15 }
 0xda3   :  { %v2099_v10 = vrot.slane %v2098_v9, 1 }
 0xda5   :  { %v2100_v14 = vadd.f32 %v2099_v10, %v2098_v9  ;;  %v2900_v9 = vmov 1966171168  }
 0xda6   :  { %v2316_v10 = vunpack.c.l.s4 %v2900_v9 }
 0xda7   :  { %v2101_v22 = vmul.f32 0.03125, %v2100_v14  ;;  %v2318_v14 = vlaneseq }
 0xda9   :  { %v2102_v62 = vadd.f32 1e-05, %v2101_v22  ;;  %v2317_v22 = vunpack.c.0.s8 %v2316_v10 }
 0xdab   :  { %2876 = vrsqrt.f32 %v2102_v62  ;;  %v2319_v62 = vshrl.u32 %v2318_v14, 7 }
 0xdb8   :  { %v2877_v7 = vpop.eup %2876 }
 0xdb9   :  { %v2104_v12 = vmul.f32 %v2877_v7, %v2080_v1  ;;  %v2105_v34 = vmul.f32 %v2877_v7, %v2081_v49  ;;  %v2106_v38 = vmul.f32 %v2877_v7, %v2082_v0  ;;  %v2107_v40 = vmul.f32 %v2877_v7, %v2083_v50  ;;  %v2859_v1 = vld [vmem:[%s3685_s12] sm:$0xff]  }
 0xdba   :  { %2605 = vmatpush3.bf16.msra.mxu1 %v2859_v1  ;;  %v2451_v49 = vld [vmem:[%s3688_s11] ss:$0 sm:$0xff]  ;;  %v2320_v7 = vsub.s32 %v2317_v22, %v2319_v62 }
 0xdbb   :  { %v2114_v45 = vmul.f32 %v2449_v32, %v2104_v12  ;;  %v2115_v46 = vmul.f32 %v2449_v32, %v2105_v34  ;;  %v2116_v47 = vmul.f32 %v2449_v32, %v2106_v38  ;;  %v2117_v56 = vmul.f32 %v2449_v32, %v2107_v40 }
 0xdbc   :  { %v2339_v34 = vsub.s32 0, %v2319_v62 }
 0xdbd   :  { %v3617_v61 = vadd.f32 %v2450_v44, %v2114_v45  ;;  %v3619_v8 = vadd.f32 %v2450_v44, %v2115_v46  ;;  %v3621_v13 = vadd.f32 %v2450_v44, %v2116_v47  ;;  %v3623_v6 = vadd.f32 %v2450_v44, %v2117_v56 }
 0xdbf   :  { %v2128_v4 = vsel %vm86_vm0, %v3617_v61, 0.0  ;;  %v2129_v3 = vsel %vm86_vm0, %v3619_v8, 0.0  ;;  %v2137_v5 = vsel %vm86_vm0, %v3621_v13, 0.0  ;;  %v2138_v39 = vsel %vm86_vm0, %v3623_v6, 0.0 }
 0xdc0   :  { %v2130_v51 = vadd.f32 %v2129_v3, %v2128_v4  ;;  %v2139_v52 = vadd.f32 %v2138_v39, %v2137_v5  ;;  %v2882_v5 = vld [vmem:[%s3677_s0] sm:$0xff] }
 0xdc2   :  { %v2131_v55 = vrot.slane %v2130_v51, 4  ;;  %v2140_v24 = vrot.slane %v2139_v52, 4 }
 0xdc4   :  { %v2132_v26 = vadd.f32 %v2131_v55, %v2130_v51  ;;  %v2141_v16 = vadd.f32 %v2140_v24, %v2139_v52  ;;  %v2883_v51 = vld [vmem:[%s3677_s0 + $0x8] sm:$0xff] }
 0xdc6   :  { %v2133_v31 = vrot.slane %v2132_v26, 2  ;;  %v2142_v25 = vrot.slane %v2141_v16, 2 }
 0xdc8   :  { %v2134_v28 = vadd.f32 %v2133_v31, %v2132_v26  ;;  %v2143_v27 = vadd.f32 %v2142_v25, %v2141_v16 }
 0xdca   :  { %v2135_v11 = vrot.slane %v2134_v28, 1  ;;  %v2144_v35 = vrot.slane %v2143_v27, 1 }
 0xdcc   :  { %v2136_v33 = vadd.f32 %v2135_v11, %v2134_v28  ;;  %v2145_v17 = vadd.f32 %v2144_v35, %v2143_v27 }
 0xdce   :  { %v2147_v18 = vmul.f32 0.0625, %v2136_v33  ;;  %v2148_v19 = vmul.f32 0.0625, %v2145_v17 }
 0xdd0   :  { %v2149_v20 = vpack.c.bf16 %v2147_v18, %v2147_v18  ;;  %v2150_v21 = vpack.c.bf16 %v2148_v19, %v2148_v19 }
 0xdd2   :  { %v2168_v29 = vunpack.c.l.b16 %v2149_v20  ;;  %v2169_v30 = vunpack.c.l.b16 %v2150_v21 }
 0xdd4   :  { %v2171_v43 = vsel %vm2170_vm12, %v2169_v30, %v2168_v29 }
 0xdd5   :  { %v2172_v48 = vpack.c.b16 %v2171_v43, %v2171_v43 }
 0xdd7   :  { %2599 = vmatmul.mubr.msk.bf16.vlgmr.msra.gmra.mxu0 %vm86_vm0, %v2172_v48 }
 0xe97   :  { %v2234_v0 = vpop.f32.mrf.mxu0 }
 0xe98   :  { %v2235_v50 = vadd.f32 %v2451_v49, %v2234_v0 }
 0xe99   :  { %v2600_v63 = vpop.f32.mrf.mxu0 }
 0xe9a   :  { %v2240_v2 = vmax.f32 %v2235_v50, 0.0 }
 0xe9b   :  { %v2237_v58 = vpop.f32.mrf.mxu0 }
 0xe9c   :  { %v2241_v59 = vpack.c.bf16 %v2240_v2, %v2240_v2 }
 0xe9d   :  { %v2601_v41 = vpop.f32.mrf.mxu0 }
 0xe9e   :  { %2607 = vmatmul.mubr.msk.bf16.vlgmr.msra.gmra.mxu1 %vm1951_vm7, %v2241_v59 }
 0xf5e   :  { %v2302_v37 = vpop.f32.mrf.mxu1 }
 0xf5f   :  { %v2303_v42 = vadd.f32 %v2457_v36, %v2302_v37 }
 0xf60   :  { %v2608_v53 = vpop.f32.mrf.mxu1 }
 0xf61   :  { %v2461_v54 = vmul.f32 -1.442695, %v2303_v42 }
 0xf62   :  { %v2305_v57 = vpop.f32.mrf.mxu1 }
 0xf63   :  { %2878 = vpow2.f32 %v2461_v54 }
 0xf64   :  { %v2609_v60 = vpop.f32.mrf.mxu1 }
 0xf70   :  { %v2879_v15 = vpop.eup %2878 }
 0xf71   :  { %v2311_v23 = vadd.f32 1.0, %v2879_v15 }
 0xf73   :  { %2880 = vrcp.f32 %v2311_v23 }
 0xf80   :  { %v2881_v32 = vpop.eup %2880 }
 0xf81   :  { %v2321_v12 = vrot.slane %v2881_v32, %v2320_v7 }
 0xf83   :  { %v2322_v38 = vcombine.high %v2321_v12, %v2321_v12  ;;  %v2329_v40 = vrot.slane %v2321_v12, %v2320_v7 }
 0xf85   :  { %v2336_v44 = vrot.slane %v2322_v38, %v2320_v7  ;;  %v2340_v45 = vrot.slane %v2329_v40, %v2339_v34 }
 0xf87   :  { %v2344_v46 = vrot.slane %v2336_v44, %v2339_v34  ;;  %v2347_v47 = vmul.f32 %v2340_v45, %v3617_v61  ;;  %v2348_v56 = vmul.f32 %v2340_v45, %v3619_v8  ;;  %v2884_v61 = vld [vmem:[%s3677_s0 + $0x10] sm:$0xff]  ;;  %v2885_v8 = vld [vmem:[%s3677_s0 + $0x18] sm:$0xff] }
 0xf89   :  { %v2349_v4 = vmul.f32 %v2344_v46, %v3621_v13  ;;  %v2350_v3 = vmul.f32 %v2344_v46, %v3623_v6  ;;  %v2351_v39 = vadd.f32 %v2882_v5, %v2347_v47  ;;  %v2352_v52 = vadd.f32 %v2883_v51, %v2348_v56 }
 0xf8b   :  { %v2353_v55 = vadd.f32 %v2884_v61, %v2349_v4  ;;  %v2354_v13 = vadd.f32 %v2885_v8, %v2350_v3  ;;  %2355 = vst.msk [vmem:[%s3690_s14] sm:$0xff] %vm86_vm0, %v2351_v39  ;;  %2356 = vst.msk [vmem:[%s3690_s14 + $0x8] sm:$0xff] %vm86_vm0, %v2352_v52 }
 0xf8d   :  { %2357 = vst.msk [vmem:[%s3690_s14 + $0x10] sm:$0xff] %vm86_vm0, %v2353_v55  ;;  %2358 = vst.msk [vmem:[%s3690_s14 + $0x18] sm:$0xff] %vm86_vm0, %v2354_v13 }

// kernel: encode_forward.10
= control target key start
LH: loop header
LB: loop body
LE: loop exit
PB: predicated region body
PF: predicated region fallthrough
CT: control target
= control target key end

     0   :  { %vm108_vm0 = vcmask 523264   ;;  %vm237_vm1 = vcmask 1043456   ;;  %s2832_s28 = smov 16   ;;  %s2833_s29 = smov 8   ;;  %vm292_vm2 = vcmask 64512   ;;  %vm297_vm3 = vcmask 130048   ;;  %s3596_s3 = inlined_call_operand.vmem [shape: bf16[64,64], index: 3, kind: input, shape index: {}]   ;;  %s3597_s0 = inlined_call_operand.vmem [shape: f32[2,16,64], index: 0, kind: input, shape index: {}]   ;;  %s3598_s1 = inlined_call_operand.vmem [shape: f32[2,16,64], index: 1, kind: input, shape index: {}]   ;;  %s3599_s2 = inlined_call_operand.vmem [shape: f32[2,16,64], index: 2, kind: input, shape index: {}]   ;;  %s3600_s4 = inlined_call_operand.vmem [shape: f32[1,64], index: 4, kind: input, shape index: {}]   ;;  %s3601_s5 = inlined_call_operand.vmem [shape: f32[1,64], index: 5, kind: input, shape index: {}]   ;;  %s3602_s6 = inlined_call_operand.vmem [shape: bf16[7,24,8], index: 6, kind: input, shape index: {}]   ;;  %s3603_s7 = inlined_call_operand.vmem [shape: f32[7,1,8], index: 7, kind: input, shape index: {}]   ;;  %s3604_s8 = inlined_call_operand.vmem [shape: f32[7,1,8], index: 8, kind: input, shape index: {}]   ;;  %s3605_s9 = inlined_call_operand.vmem [shape: bf16[64,64], index: 9, kind: input, shape index: {}]   ;;  %s3606_s12 = inlined_call_operand.vmem [shape: bf16[64,32], index: 12, kind: input, shape index: {}]   ;;  %s3607_s14 = inlined_call_operand.vmem [shape: bf16[32,64], index: 14, kind: input, shape index: {}]   ;;  %s3608_s10 = inlined_call_operand.vmem [shape: f32[1,64], index: 10, kind: input, shape index: {}]   ;;  %s3609_s11 = inlined_call_operand.vmem [shape: f32[1,64], index: 11, kind: input, shape index: {}]   ;;  %s3610_s13 = inlined_call_operand.vmem [shape: f32[1,32], index: 13, kind: input, shape index: {}]   ;;  %s3611_s15 = inlined_call_operand.vmem [shape: f32[1,64], index: 15, kind: input, shape index: {}]   ;;  %s3612_s16 = inlined_call_operand.vmem [shape: f32[2,16,64], index: 16, kind: output, shape index: {}]  }
   0x1   :  { %3614 = sst [smem:[#allocation2_spill]] %s3596_s3  ;;  %v54_v3 = vld [vmem:[%s3597_s0] sm:$0xff]  ;;  %v55_v4 = vld [vmem:[%s3597_s0 + $0x8] sm:$0xff]  ;;  %v56_v11 = vld [vmem:[%s3597_s0 + $0x10] sm:$0xff]  ;;  %s2834_s30 = smov 120   ;;  %vm316_vm4 = vcmask 195584  }
   0x2   :  { %s3615_s23 = sld [smem:[#allocation2_spill]]  ;;  %v58_v5 = vld [vmem:[%s3598_s1] sm:$0xff]  ;;  %v59_v6 = vld [vmem:[%s3598_s1 + $0x8] sm:$0xff]  ;;  %v57_v12 = vld [vmem:[%s3597_s0 + $0x18] sm:$0xff]  ;;  %s2835_s24 = smov 112   ;;  %vm1901_vm5 = vcmask 261120  }
   0x3   :  { %v62_v7 = vadd.f32 %v58_v5, %v54_v3  ;;  %v66_v8 = vld [vmem:[%s3599_s2] sm:$0xff]  ;;  %v67_v9 = vld [vmem:[%s3599_s2 + $0x8] sm:$0xff]  ;;  %v63_v10 = vadd.f32 %v59_v6, %v55_v4  ;;  %v60_v13 = vld [vmem:[%s3598_s1 + $0x10] sm:$0xff]  ;;  %vm1906_vm6 = vcmask 326656   ;;  %vm1911_vm7 = vcmask 392192  }
   0x4   :  { %v61_v15 = vld [vmem:[%s3598_s1 + $0x18] sm:$0xff]  ;;  %v64_v16 = vadd.f32 %v60_v13, %v56_v11  ;;  %v68_v17 = vld [vmem:[%s3599_s2 + $0x10] sm:$0xff]  ;;  %v2320_v13 = vld [vmem:[%s3601_s5] ss:$0 sm:$0xff]  ;;  %vm1916_vm8 = vcmask 457728   ;;  %vm2845_vm9 = vmmov 0  }
   0x5   :  { %v2968_v14 = vadd.f32 %v66_v8, %v62_v7  ;;  %v69_v18 = vld [vmem:[%s3599_s2 + $0x18] sm:$0xff]  ;;  %v2982_v20 = vadd.f32 %v67_v9, %v63_v10  ;;  %v65_v21 = vadd.f32 %v61_v15, %v57_v12  ;;  %v2319_v8 = vld [vmem:[%s3600_s4] ss:$0 sm:$0xff]  ;;  %vm2120_vm10 = vcmask 1041409  }
   0x6   :  { %v2986_v23 = vadd.f32 %v68_v17, %v64_v16 }
   0x7   :  { %v74_v22 = vpack.c.bf16 %v2982_v20, %v2968_v14  ;;  %v2988_v24 = vadd.f32 %v69_v18, %v65_v21 }
   0x8   :  { %v2782_v0 = vld [vmem:[%s3615_s23 + $0x18] sm:$0xff]   ;;  %v2783_v1 = vld [vmem:[%s3615_s23 + $0x10] sm:$0xff]   ;;  %v2784_v2 = vld [vmem:[%s3615_s23 + $0x8] sm:$0xff]  }
   0x9   :  { %2460 = vmatprep.subr.bf16.mxu0 %v2782_v0  ;;  %v2785_v19 = vld [vmem:[%s3615_s23] sm:$0xff]   ;;  %2468 = vmatprep.mubr.msk.bf16.mxu0 %vm108_vm0, %v74_v22  ;;  %v75_v25 = vpack.c.bf16 %v2988_v24, %v2986_v23 }
   0xa   :  { %2461 = vmatpush3.bf16.msra.mxu0 %v2782_v0 }
   0xb   :  { %2462 = vmatprep.subr.bf16.mxu0 %v2783_v1 }
   0xe   :  { %2463 = vmatpush3.bf16.msra.mxu0 %v2783_v1 }
   0xf   :  { %2464 = vmatprep.subr.bf16.mxu0 %v2784_v2 }
  0x12   :  { %2465 = vmatpush3.bf16.msra.mxu0 %v2784_v2 }
  0x13   :  { %2466 = vmatprep.subr.bf16.mxu0 %v2785_v19 }
  0x16   :  { %2467 = vmatpush3.bf16.msra.mxu0 %v2785_v19  ;;  %v2786_v19 = vld [vmem:[%s3602_s6 + $0x8] ss:$0 sps:$4 sm:$0xff]  }
  0x17   :  { %2560 = vmatprep.subr.msk.bf16.mxu1 %vm237_vm1, %v2786_v19 }
  0x19   :  { %2469 = vmatmul.mubr.msk.bf16.vlgmr.msra.gmra.mxu0 %vm108_vm0, %v75_v25 }
  0xd9   :  { %v2470_v26 = vpop.f32.mrf.mxu0 }
  0xda   :  { %v166_v31 = vmax.f32 %v2470_v26, 0.0 }
  0xdb   :  { %v149_v27 = vpop.f32.mrf.mxu0 }
  0xdc   :  { %v164_v29 = vmax.f32 %v149_v27, 0.0  ;;  %v173_v37 = vsel %vm108_vm0, %v166_v31, 0.0  ;;  %v324_v27 = vsel %vm237_vm1, %v2786_v19, 0 }
  0xdd   :  { %v2471_v28 = vpop.f32.mrf.mxu0  ;;  %2473 = vmatpush3.bf16.msra.mxu1 %v324_v27 }
  0xde   :  { %v170_v33 = vsel %vm108_vm0, %v164_v29, 0.0  ;;  %v167_v34 = vmax.f32 %v2471_v28, 0.0 }
  0xdf   :  { %v152_v30 = vpop.f32.mrf.mxu0 }
  0xe0   :  { %v165_v32 = vmax.f32 %v152_v30, 0.0  ;;  %v175_v39 = vsel %vm108_vm0, %v167_v34, 0.0 }
  0xe2   :  { %v171_v35 = vsel %vm108_vm0, %v165_v32, 0.0 }
  0xe3   :  { %v172_v36 = vadd.f32 %v171_v35, %v170_v33 }
  0xe5   :  { %v174_v38 = vadd.f32 %v173_v37, %v172_v36 }
  0xe7   :  { %v176_v40 = vadd.f32 %v175_v39, %v174_v38 }
  0xe9   :  { %v177_v41 = vrot.slane %v176_v40, 4 }
  0xeb   :  { %v178_v42 = vadd.f32 %v177_v41, %v176_v40 }
  0xed   :  { %v179_v43 = vrot.slane %v178_v42, 2 }
  0xef   :  { %v180_v44 = vadd.f32 %v179_v43, %v178_v42 }
  0xf1   :  { %v181_v45 = vrot.slane %v180_v44, 1 }
  0xf3   :  { %v182_v46 = vadd.f32 %v181_v45, %v180_v44 }
  0xf5   :  { %v184_v47 = vmul.f32 0.03125, %v182_v46 }
  0xf7   :  { %v185_v48 = vsub.f32 %v164_v29, %v184_v47  ;;  %v186_v49 = vsub.f32 %v165_v32, %v184_v47  ;;  %v187_v50 = vsub.f32 %v166_v31, %v184_v47  ;;  %v188_v51 = vsub.f32 %v167_v34, %v184_v47  ;;  %v2787_v32 = vld [vmem:[%s3602_s6] sm:$0xff]  }
  0xf8   :  { %2474 = vmatprep.subr.bf16.mxu1 %v2787_v32 }
  0xf9   :  { %v189_v52 = vmul.f32 %v185_v48, %v185_v48  ;;  %v190_v53 = vmul.f32 %v186_v49, %v186_v49  ;;  %v191_v54 = vmul.f32 %v187_v50, %v187_v50  ;;  %v192_v55 = vmul.f32 %v188_v51, %v188_v51  ;;  %2475 = vmatpush3.bf16.msra.mxu1 %v2787_v32 }
  0xfb   :  { %v193_v56 = vsel %vm108_vm0, %v189_v52, 0.0  ;;  %v194_v57 = vsel %vm108_vm0, %v190_v53, 0.0  ;;  %v196_v59 = vsel %vm108_vm0, %v191_v54, 0.0  ;;  %v198_v61 = vsel %vm108_vm0, %v192_v55, 0.0 }
  0xfc   :  { %v195_v58 = vadd.f32 %v194_v57, %v193_v56 }
  0xfe   :  { %v197_v60 = vadd.f32 %v196_v59, %v195_v58 }
 0x100   :  { %v199_v62 = vadd.f32 %v198_v61, %v197_v60 }
 0x102   :  { %v200_v63 = vrot.slane %v199_v62, 4 }
 0x104   :  { %v201_v0 = vadd.f32 %v200_v63, %v199_v62 }
 0x106   :  { %v202_v1 = vrot.slane %v201_v0, 2 }
 0x108   :  { %v203_v2 = vadd.f32 %v202_v1, %v201_v0 }
 0x10a   :  { %v204_v3 = vrot.slane %v203_v2, 1 }
 0x10c   :  { %v205_v4 = vadd.f32 %v204_v3, %v203_v2 }
 0x10e   :  { %v206_v5 = vmul.f32 0.03125, %v205_v4 }
 0x110   :  { %v207_v6 = vadd.f32 1e-05, %v206_v5 }
 0x112   :  { %2810 = vrsqrt.f32 %v207_v6 }
 0x11f   :  { %v2811_v7 = vpop.eup %2810 }
 0x120   :  { %v209_v9 = vmul.f32 %v2811_v7, %v185_v48  ;;  %v210_v10 = vmul.f32 %v2811_v7, %v186_v49  ;;  %v211_v11 = vmul.f32 %v2811_v7, %v187_v50  ;;  %v212_v12 = vmul.f32 %v2811_v7, %v188_v51 }
 0x122   :  { %v219_v15 = vmul.f32 %v2319_v8, %v209_v9  ;;  %v220_v16 = vmul.f32 %v2319_v8, %v210_v10  ;;  %v221_v17 = vmul.f32 %v2319_v8, %v211_v11  ;;  %v222_v18 = vmul.f32 %v2319_v8, %v212_v12 }
 0x124   :  { %v3011_v21 = vadd.f32 %v2320_v13, %v219_v15  ;;  %v3013_v22 = vadd.f32 %v2320_v13, %v220_v16  ;;  %v3015_v25 = vadd.f32 %v2320_v13, %v221_v17  ;;  %v3017_v26 = vadd.f32 %v2320_v13, %v222_v18 }
 0x126   :  { %v238_v28 = vrot.slane %v3011_v21, 4  ;;  %v239_v29 = vrot.slane %v3013_v22, 4  ;;  %v241_v30 = vrot.slane %v3015_v25, 4  ;;  %v242_v31 = vrot.slane %v3017_v26, 4 }
 0x128   :  { %v240_v33 = vsel %vm237_vm1, %v238_v28, %v239_v29  ;;  %v252_v34 = vsel %vm237_vm1, %v239_v29, 0.0  ;;  %v250_v35 = vsel %vm237_vm1, 0.0, %v238_v28  ;;  %v243_v36 = vsel %vm237_vm1, %v241_v30, %v242_v31 }
 0x129   :  { %v261_v37 = vrot.slane %v252_v34, 4  ;;  %v2592_v38 = vpack.i.bf16 %v252_v34, %v240_v33  ;;  %v259_v39 = vrot.slane %v240_v33, 4  ;;  %v258_v40 = vrot.slane %v250_v35, 4 }
 0x12a   :  { %v253_v41 = vsel %vm237_vm1, %v242_v31, 0.0  ;;  %v264_v42 = vrot.slane %v243_v36, 4  ;;  %v251_v43 = vsel %vm237_vm1, 0.0, %v241_v30 }
 0x12b   :  { %2593 = vrot.lane.b32.xlu1 %v2592_v38, %s2832_s28  ;;  %v260_v44 = vsel %vm237_vm1, %v258_v40, %v259_v39  ;;  %v262_v45 = vsel %vm237_vm1, %v259_v39, %v261_v37  ;;  %v266_v46 = vrot.slane %v253_v41, 4  ;;  %v263_v48 = vrot.slane %v251_v43, 4 }
 0x12c   :  { %v2582_v47 = vpack.i.bf16 %v262_v45, %v260_v44  ;;  %v2597_v49 = vpack.i.bf16 %v253_v41, %v243_v36 }
 0x12d   :  { %v267_v50 = vsel %vm237_vm1, %v264_v42, %v266_v46  ;;  %v265_v51 = vsel %vm237_vm1, %v263_v48, %v264_v42 }
 0x12e   :  { %2583 = vrot.lane.b32.xlu0 %v2582_v47, %s2833_s29  ;;  %v2587_v52 = vpack.i.bf16 %v267_v50, %v265_v51 }
 0x12f   :  { %2598 = vrot.lane.b32.xlu1 %v2597_v49, %s2832_s28 }
 0x132   :  { %2588 = vrot.lane.b32.xlu0 %v2587_v52, %s2833_s29 }
 0x133   :  { %445 = vrot.lane.b32.xlu1 %v3013_v22, %s2834_s30 }
 0x136   :  { %443 = vrot.lane.b32.xlu0 %v3011_v21, %s2834_s30 }
 0x137   :  { %449 = vrot.lane.b32.xlu1 %v3017_v26, %s2834_s30 }
 0x13a   :  { %447 = vrot.lane.b32.xlu0 %v3015_v25, %s2834_s30  ;;  %s2836_s30 = smov 104  }
 0x19d   :  { %v2594_v53 = vpop.permute.xlu1 %2593 }
 0x19e   :  { %v2596_v57 = vunpack.i.h.bf16 %v2594_v53  ;;  %v2595_v58 = vunpack.i.l.bf16 %v2594_v53 }
 0x1a0   :  { %v2584_v54 = vpop.permute.xlu0 %2583 }
 0x1a1   :  { %v2586_v55 = vunpack.i.h.bf16 %v2584_v54  ;;  %v2585_v56 = vunpack.i.l.bf16 %v2584_v54  ;;  %v2599_v59 = vpop.permute.xlu1 %2598 }
 0x1a2   :  { %v2601_v4 = vunpack.i.h.bf16 %v2599_v59  ;;  %v2600_v5 = vunpack.i.l.bf16 %v2599_v59 }
 0x1a3   :  { %v293_v60 = vsel %vm292_vm2, %v250_v35, %v2585_v56  ;;  %v294_v61 = vsel %vm292_vm2, %v240_v33, %v2586_v55 }
 0x1a4   :  { %v2589_v62 = vpop.permute.xlu0 %2588  ;;  %v298_v63 = vsel %vm297_vm3, %v293_v60, %v2595_v58  ;;  %v299_v0 = vsel %vm297_vm3, %v294_v61, %v2596_v57 }
 0x1a5   :  { %v2591_v1 = vunpack.i.h.bf16 %v2589_v62  ;;  %v2590_v2 = vunpack.i.l.bf16 %v2589_v62  ;;  %v302_v3 = vpack.c.bf16 %v299_v0, %v298_v63 }
 0x1a7   :  { %v296_v6 = vsel %vm292_vm2, %v243_v36, %v2591_v1  ;;  %v295_v7 = vsel %vm292_vm2, %v251_v43, %v2590_v2  ;;  %2476 = vmatprep.mubr.msk.bf16.mxu1 %vm316_vm4, %v302_v3  ;;  %v446_v1 = vpop.permute.xlu1 %445  ;;  %v2325_v3 = vld [vmem:[%s3603_s7] ss:$0 sm:$0xff] }
 0x1a8   :  { %v300_v8 = vsel %vm297_vm3, %v295_v7, %v2600_v5  ;;  %v301_v9 = vsel %vm297_vm3, %v296_v6, %v2601_v4  ;;  %v444_v2 = vpop.permute.xlu0 %443 }
 0x1a9   :  { %v303_v10 = vpack.c.bf16 %v301_v9, %v300_v8  ;;  %v2326_v8 = vld [vmem:[%s3604_s8] ss:$0 sm:$0xff] }
 0x1ab   :  { %2477 = vmatmul.mubr.msk.bf16.vlgmr.msra.gmra.mxu1 %vm316_vm4, %v303_v10 }
 0x26b   :  { %v2478_v11 = vpop.f32.mrf.mxu1 }
 0x26c   :  { %v377_v17 = vmax.f32 %v2478_v11, 0.0 }
 0x26d   :  { %v360_v12 = vpop.f32.mrf.mxu1 }
 0x26e   :  { %v375_v15 = vmax.f32 %v360_v12, 0.0  ;;  %v384_v30 = vsel %vm292_vm2, %v377_v17, 0.0 }
 0x26f   :  { %v2479_v13 = vpop.f32.mrf.mxu1 }
 0x270   :  { %v381_v19 = vsel %vm292_vm2, %v375_v15, 0.0  ;;  %v378_v27 = vmax.f32 %v2479_v13, 0.0 }
 0x271   :  { %v363_v16 = vpop.f32.mrf.mxu1 }
 0x272   :  { %v376_v18 = vmax.f32 %v363_v16, 0.0  ;;  %v386_v32 = vsel %vm292_vm2, %v378_v27, 0.0 }
 0x274   :  { %v382_v28 = vsel %vm292_vm2, %v376_v18, 0.0 }
 0x275   :  { %v383_v29 = vadd.f32 %v382_v28, %v381_v19  ;;  %v448_v19 = vpop.permute.xlu0 %447 }
 0x277   :  { %v385_v31 = vadd.f32 %v384_v30, %v383_v29 }
 0x279   :  { %v387_v33 = vadd.f32 %v386_v32, %v385_v31  ;;  %v2788_v31 = vld [vmem:[%s3602_s6 + $0x14] ss:$0 sps:$4 sm:$0xff]  }
 0x27a   :  { %2561 = vmatprep.subr.msk.bf16.mxu1 %vm237_vm1, %v2788_v31 }
 0x27b   :  { %v388_v34 = vrot.slane %v387_v33, 4 }
 0x27d   :  { %v389_v35 = vadd.f32 %v388_v34, %v387_v33 }
 0x27f   :  { %v390_v36 = vrot.slane %v389_v35, 2 }
 0x281   :  { %v391_v37 = vadd.f32 %v390_v36, %v389_v35  ;;  %v547_v36 = vsel %vm237_vm1, %v2788_v31, 0 }
 0x282   :  { %2481 = vmatpush3.bf16.msra.mxu1 %v547_v36 }
 0x283   :  { %v392_v38 = vrot.slane %v391_v37, 1 }
 0x285   :  { %v393_v39 = vadd.f32 %v392_v38, %v391_v37 }
 0x287   :  { %v394_v40 = vmul.f32 0.03125, %v393_v39 }
 0x289   :  { %v395_v41 = vsub.f32 %v375_v15, %v394_v40  ;;  %v396_v42 = vsub.f32 %v376_v18, %v394_v40  ;;  %v397_v43 = vsub.f32 %v377_v17, %v394_v40  ;;  %v398_v44 = vsub.f32 %v378_v27, %v394_v40  ;;  %v450_v18 = vpop.permute.xlu1 %449 }
 0x28b   :  { %v399_v45 = vmul.f32 %v395_v41, %v395_v41  ;;  %v400_v46 = vmul.f32 %v396_v42, %v396_v42  ;;  %v401_v47 = vmul.f32 %v397_v43, %v397_v43  ;;  %v402_v48 = vmul.f32 %v398_v44, %v398_v44 }
 0x28d   :  { %v403_v49 = vsel %vm292_vm2, %v399_v45, 0.0  ;;  %v404_v50 = vsel %vm292_vm2, %v400_v46, 0.0  ;;  %v406_v52 = vsel %vm292_vm2, %v401_v47, 0.0  ;;  %v408_v54 = vsel %vm292_vm2, %v402_v48, 0.0 }
 0x28e   :  { %v405_v51 = vadd.f32 %v404_v50, %v403_v49 }
 0x290   :  { %v407_v53 = vadd.f32 %v406_v52, %v405_v51 }
 0x292   :  { %v409_v55 = vadd.f32 %v408_v54, %v407_v53 }
 0x294   :  { %v410_v56 = vrot.slane %v409_v55, 4 }
 0x296   :  { %v411_v57 = vadd.f32 %v410_v56, %v409_v55 }
 0x298   :  { %v412_v58 = vrot.slane %v411_v57, 2 }
 0x29a   :  { %v413_v59 = vadd.f32 %v412_v58, %v411_v57 }
 0x29c   :  { %v414_v60 = vrot.slane %v413_v59, 1 }
 0x29e   :  { %v415_v61 = vadd.f32 %v414_v60, %v413_v59 }
 0x2a0   :  { %v416_v62 = vmul.f32 0.03125, %v415_v61 }
 0x2a2   :  { %v417_v63 = vadd.f32 1e-05, %v416_v62 }
 0x2a4   :  { %2812 = vrsqrt.f32 %v417_v63 }
 0x2b1   :  { %v2813_v0 = vpop.eup %2812 }
 0x2b2   :  { %v419_v4 = vmul.f32 %v2813_v0, %v395_v41  ;;  %v420_v5 = vmul.f32 %v2813_v0, %v396_v42  ;;  %v421_v6 = vmul.f32 %v2813_v0, %v397_v43  ;;  %v422_v7 = vmul.f32 %v2813_v0, %v398_v44  ;;  %v2789_v41 = vld [vmem:[%s3602_s6 + $0xc] sm:$0xff]  }
 0x2b3   :  { %2482 = vmatprep.subr.bf16.mxu1 %v2789_v41 }
 0x2b4   :  { %v429_v9 = vmul.f32 %v2325_v3, %v419_v4  ;;  %v430_v10 = vmul.f32 %v2325_v3, %v420_v5  ;;  %v431_v11 = vmul.f32 %v2325_v3, %v421_v6  ;;  %v432_v12 = vmul.f32 %v2325_v3, %v422_v7  ;;  %2483 = vmatpush3.bf16.msra.mxu1 %v2789_v41 }
 0x2b6   :  { %v3070_v13 = vadd.f32 %v2326_v8, %v430_v10  ;;  %v3072_v15 = vadd.f32 %v2326_v8, %v431_v11  ;;  %v3074_v16 = vadd.f32 %v2326_v8, %v432_v12  ;;  %v3076_v17 = vadd.f32 %v2326_v8, %v429_v9 }
 0x2b8   :  { %v456_v27 = vadd.f32 %v446_v1, %v3070_v13  ;;  %v457_v28 = vadd.f32 %v448_v19, %v3072_v15  ;;  %v458_v29 = vadd.f32 %v450_v18, %v3074_v16  ;;  %v455_v30 = vadd.f32 %v444_v2, %v3076_v17 }
 0x2ba   :  { %v464_v32 = vrot.slane %v456_v27, 4  ;;  %v466_v33 = vrot.slane %v457_v28, 4  ;;  %v467_v34 = vrot.slane %v458_v29, 4  ;;  %v463_v35 = vrot.slane %v455_v30, 4 }
 0x2bc   :  { %v468_v37 = vsel %vm237_vm1, %v466_v33, %v467_v34  ;;  %v476_v38 = vsel %vm237_vm1, 0.0, %v466_v33  ;;  %v478_v39 = vsel %vm237_vm1, %v467_v34, 0.0  ;;  %v465_v40 = vsel %vm237_vm1, %v463_v35, %v464_v32 }
 0x2bd   :  { %v488_v42 = vrot.slane %v476_v38, 4  ;;  %v489_v43 = vrot.slane %v468_v37, 4  ;;  %v491_v44 = vrot.slane %v478_v39, 4  ;;  %v475_v45 = vsel %vm237_vm1, 0.0, %v463_v35 }
 0x2be   :  { %v477_v46 = vsel %vm237_vm1, %v464_v32, 0.0  ;;  %v483_v47 = vrot.slane %v475_v45, 4  ;;  %v484_v48 = vrot.slane %v465_v40, 4  ;;  %v2617_v56 = vpack.i.bf16 %v478_v39, %v468_v37 }
 0x2bf   :  { %v490_v49 = vsel %vm237_vm1, %v488_v42, %v489_v43  ;;  %v492_v50 = vsel %vm237_vm1, %v489_v43, %v491_v44  ;;  %v486_v51 = vrot.slane %v477_v46, 4  ;;  %v2607_v57 = vpack.i.bf16 %v477_v46, %v465_v40 }
 0x2c0   :  { %v2612_v52 = vpack.i.bf16 %v492_v50, %v490_v49  ;;  %v485_v53 = vsel %vm237_vm1, %v483_v47, %v484_v48 }
 0x2c1   :  { %v487_v54 = vsel %vm237_vm1, %v484_v48, %v486_v51 }
 0x2c2   :  { %2613 = vrot.lane.b32.xlu1 %v2612_v52, %s2833_s29  ;;  %v2602_v55 = vpack.i.bf16 %v487_v54, %v485_v53 }
 0x2c4   :  { %2603 = vrot.lane.b32.xlu0 %v2602_v55, %s2833_s29 }
 0x2c6   :  { %2618 = vrot.lane.b32.xlu1 %v2617_v56, %s2832_s28 }
 0x2c8   :  { %2608 = vrot.lane.b32.xlu0 %v2607_v57, %s2832_s28 }
 0x2ca   :  { %670 = vrot.lane.b32.xlu1 %v3013_v22, %s2835_s24 }
 0x2cc   :  { %668 = vrot.lane.b32.xlu0 %v3011_v21, %s2835_s24 }
 0x2ce   :  { %674 = vrot.lane.b32.xlu1 %v3017_v26, %s2835_s24 }
 0x2d0   :  { %672 = vrot.lane.b32.xlu0 %v3015_v25, %s2835_s24  ;;  %s2837_s24 = smov 96  }
 0x334   :  { %v2614_v58 = vpop.permute.xlu1 %2613 }
 0x335   :  { %v2616_v59 = vunpack.i.h.bf16 %v2614_v58  ;;  %v2615_v60 = vunpack.i.l.bf16 %v2614_v58 }
 0x336   :  { %v2604_v61 = vpop.permute.xlu0 %2603 }
 0x337   :  { %v2606_v62 = vunpack.i.h.bf16 %v2604_v61  ;;  %v2605_v63 = vunpack.i.l.bf16 %v2604_v61  ;;  %v520_v3 = vsel %vm292_vm2, %v468_v37, %v2616_v59  ;;  %v519_v4 = vsel %vm292_vm2, %v476_v38, %v2615_v60 }
 0x338   :  { %v2619_v0 = vpop.permute.xlu1 %2618 }
 0x339   :  { %v2621_v1 = vunpack.i.h.bf16 %v2619_v0  ;;  %v2620_v2 = vunpack.i.l.bf16 %v2619_v0  ;;  %v518_v10 = vsel %vm292_vm2, %v465_v40, %v2606_v62  ;;  %v517_v11 = vsel %vm292_vm2, %v475_v45, %v2605_v63 }
 0x33a   :  { %v2609_v5 = vpop.permute.xlu0 %2608 }
 0x33b   :  { %v523_v6 = vsel %vm297_vm3, %v519_v4, %v2620_v2  ;;  %v524_v7 = vsel %vm297_vm3, %v520_v3, %v2621_v1  ;;  %v2611_v8 = vunpack.i.h.bf16 %v2609_v5  ;;  %v2610_v9 = vunpack.i.l.bf16 %v2609_v5 }
 0x33c   :  { %v526_v12 = vpack.c.bf16 %v524_v7, %v523_v6 }
 0x33d   :  { %v521_v18 = vsel %vm297_vm3, %v517_v11, %v2610_v9  ;;  %v522_v19 = vsel %vm297_vm3, %v518_v10, %v2611_v8  ;;  %v671_v10 = vpop.permute.xlu1 %670 }
 0x33e   :  { %v525_v27 = vpack.c.bf16 %v522_v19, %v521_v18  ;;  %v669_v11 = vpop.permute.xlu0 %668 }
 0x340   :  { %2484 = vmatprep.mubr.msk.bf16.mxu1 %vm316_vm4, %v525_v27 }
 0x341   :  { %2485 = vmatmul.mubr.msk.bf16.vlgmr.msra.gmra.mxu1 %vm316_vm4, %v526_v12  ;;  %v2336_v12 = vld [vmem:[%s3603_s7 + $0x1] ss:$0 sm:$0xff] }
 0x401   :  { %v2486_v28 = vpop.f32.mrf.mxu1 }
 0x402   :  { %v600_v33 = vmax.f32 %v2486_v28, 0.0 }
 0x403   :  { %v583_v29 = vpop.f32.mrf.mxu1 }
 0x404   :  { %v598_v31 = vmax.f32 %v583_v29, 0.0  ;;  %v609_v39 = vsel %vm292_vm2, %v600_v33, 0.0  ;;  %v2337_v29 = vld [vmem:[%s3604_s8 + $0x1] ss:$0 sm:$0xff] }
 0x405   :  { %v2487_v30 = vpop.f32.mrf.mxu1 }
 0x406   :  { %v606_v35 = vsel %vm292_vm2, %v598_v31, 0.0  ;;  %v601_v36 = vmax.f32 %v2487_v30, 0.0 }
 0x407   :  { %v586_v32 = vpop.f32.mrf.mxu1 }
 0x408   :  { %v599_v34 = vmax.f32 %v586_v32, 0.0  ;;  %v611_v41 = vsel %vm292_vm2, %v601_v36, 0.0 }
 0x40a   :  { %v607_v37 = vsel %vm292_vm2, %v599_v34, 0.0 }
 0x40b   :  { %v608_v38 = vadd.f32 %v607_v37, %v606_v35 }
 0x40d   :  { %v610_v40 = vadd.f32 %v609_v39, %v608_v38  ;;  %v675_v38 = vpop.permute.xlu1 %674  ;;  %v673_v39 = vpop.permute.xlu0 %672 }
 0x40f   :  { %v612_v42 = vadd.f32 %v611_v41, %v610_v40  ;;  %v2790_v40 = vld [vmem:[%s3602_s6 + $0x20] ss:$0 sps:$4 sm:$0xff]  }
 0x410   :  { %2562 = vmatprep.subr.msk.bf16.mxu0 %vm237_vm1, %v2790_v40 }
 0x411   :  { %v613_v43 = vrot.slane %v612_v42, 4 }
 0x413   :  { %v614_v44 = vadd.f32 %v613_v43, %v612_v42 }
 0x415   :  { %v615_v45 = vrot.slane %v614_v44, 2 }
 0x417   :  { %v616_v46 = vadd.f32 %v615_v45, %v614_v44  ;;  %v772_v45 = vsel %vm237_vm1, %v2790_v40, 0 }
 0x418   :  { %2489 = vmatpush3.bf16.msra.mxu0 %v772_v45 }
 0x419   :  { %v617_v47 = vrot.slane %v616_v46, 1 }
 0x41b   :  { %v618_v48 = vadd.f32 %v617_v47, %v616_v46 }
 0x41d   :  { %v619_v49 = vmul.f32 0.03125, %v618_v48 }
 0x41f   :  { %v620_v50 = vsub.f32 %v598_v31, %v619_v49  ;;  %v621_v51 = vsub.f32 %v599_v34, %v619_v49  ;;  %v622_v52 = vsub.f32 %v600_v33, %v619_v49  ;;  %v623_v53 = vsub.f32 %v601_v36, %v619_v49 }
 0x421   :  { %v624_v54 = vmul.f32 %v620_v50, %v620_v50  ;;  %v625_v55 = vmul.f32 %v621_v51, %v621_v51  ;;  %v626_v56 = vmul.f32 %v622_v52, %v622_v52  ;;  %v627_v57 = vmul.f32 %v623_v53, %v623_v53 }
 0x423   :  { %v628_v58 = vsel %vm292_vm2, %v624_v54, 0.0  ;;  %v629_v59 = vsel %vm292_vm2, %v625_v55, 0.0  ;;  %v631_v61 = vsel %vm292_vm2, %v626_v56, 0.0  ;;  %v633_v63 = vsel %vm292_vm2, %v627_v57, 0.0 }
 0x424   :  { %v630_v60 = vadd.f32 %v629_v59, %v628_v58 }
 0x426   :  { %v632_v62 = vadd.f32 %v631_v61, %v630_v60 }
 0x428   :  { %v634_v0 = vadd.f32 %v633_v63, %v632_v62 }
 0x42a   :  { %v635_v1 = vrot.slane %v634_v0, 4 }
 0x42c   :  { %v636_v2 = vadd.f32 %v635_v1, %v634_v0 }
 0x42e   :  { %v637_v3 = vrot.slane %v636_v2, 2 }
 0x430   :  { %v638_v4 = vadd.f32 %v637_v3, %v636_v2 }
 0x432   :  { %v639_v5 = vrot.slane %v638_v4, 1 }
 0x434   :  { %v640_v6 = vadd.f32 %v639_v5, %v638_v4 }
 0x436   :  { %v641_v7 = vmul.f32 0.03125, %v640_v6 }
 0x438   :  { %v642_v8 = vadd.f32 1e-05, %v641_v7 }
 0x43a   :  { %2814 = vrsqrt.f32 %v642_v8 }
 0x447   :  { %v2815_v9 = vpop.eup %2814 }
 0x448   :  { %v644_v18 = vmul.f32 %v2815_v9, %v620_v50  ;;  %v645_v19 = vmul.f32 %v2815_v9, %v621_v51  ;;  %v646_v27 = vmul.f32 %v2815_v9, %v622_v52  ;;  %v647_v28 = vmul.f32 %v2815_v9, %v623_v53  ;;  %v2791_v52 = vld [vmem:[%s3602_s6 + $0x18] sm:$0xff]  }
 0x449   :  { %2490 = vmatprep.subr.bf16.mxu0 %v2791_v52 }
 0x44a   :  { %v654_v30 = vmul.f32 %v2336_v12, %v644_v18  ;;  %v655_v31 = vmul.f32 %v2336_v12, %v645_v19  ;;  %v656_v32 = vmul.f32 %v2336_v12, %v646_v27  ;;  %v657_v33 = vmul.f32 %v2336_v12, %v647_v28  ;;  %2491 = vmatpush3.bf16.msra.mxu0 %v2791_v52 }
 0x44c   :  { %v3132_v34 = vadd.f32 %v2337_v29, %v655_v31  ;;  %v3134_v35 = vadd.f32 %v2337_v29, %v656_v32  ;;  %v3136_v36 = vadd.f32 %v2337_v29, %v657_v33  ;;  %v3138_v37 = vadd.f32 %v2337_v29, %v654_v30 }
 0x44e   :  { %v681_v41 = vadd.f32 %v671_v10, %v3132_v34  ;;  %v682_v42 = vadd.f32 %v673_v39, %v3134_v35  ;;  %v683_v43 = vadd.f32 %v675_v38, %v3136_v36  ;;  %v680_v44 = vadd.f32 %v669_v11, %v3138_v37 }
 0x44f   :  { %v2727_v46 = vpack.i.bf16 %v3136_v36, %v3134_v35  ;;  %v2722_v47 = vpack.i.bf16 %v3132_v34, %v3138_v37 }
 0x450   :  { %v689_v48 = vrot.slane %v681_v41, 4  ;;  %v691_v49 = vrot.slane %v682_v42, 4  ;;  %v692_v50 = vrot.slane %v683_v43, 4  ;;  %v688_v51 = vrot.slane %v680_v44, 4 }
 0x452   :  { %v693_v53 = vsel %vm237_vm1, %v691_v49, %v692_v50  ;;  %v701_v54 = vsel %vm237_vm1, 0.0, %v691_v49  ;;  %v703_v55 = vsel %vm237_vm1, %v692_v50, 0.0  ;;  %v690_v56 = vsel %vm237_vm1, %v688_v51, %v689_v48 }
 0x453   :  { %v713_v57 = vrot.slane %v701_v54, 4  ;;  %v714_v58 = vrot.slane %v693_v53, 4  ;;  %v716_v59 = vrot.slane %v703_v55, 4  ;;  %v700_v60 = vsel %vm237_vm1, 0.0, %v688_v51 }
 0x454   :  { %v702_v61 = vsel %vm237_vm1, %v689_v48, 0.0  ;;  %v708_v62 = vrot.slane %v700_v60, 4  ;;  %v709_v63 = vrot.slane %v690_v56, 4  ;;  %v2637_v7 = vpack.i.bf16 %v703_v55, %v693_v53 }
 0x455   :  { %v715_v0 = vsel %vm237_vm1, %v713_v57, %v714_v58  ;;  %v717_v1 = vsel %vm237_vm1, %v714_v58, %v716_v59  ;;  %v711_v2 = vrot.slane %v702_v61, 4  ;;  %v2627_v8 = vpack.i.bf16 %v702_v61, %v690_v56 }
 0x456   :  { %v2632_v3 = vpack.i.bf16 %v717_v1, %v715_v0  ;;  %v710_v4 = vsel %vm237_vm1, %v708_v62, %v709_v63 }
 0x457   :  { %v712_v5 = vsel %vm237_vm1, %v709_v63, %v711_v2 }
 0x458   :  { %2633 = vrot.lane.b32.xlu1 %v2632_v3, %s2833_s29  ;;  %v2622_v6 = vpack.i.bf16 %v712_v5, %v710_v4 }
 0x45a   :  { %2623 = vrot.lane.b32.xlu0 %v2622_v6, %s2833_s29 }
 0x45c   :  { %2638 = vrot.lane.b32.xlu1 %v2637_v7, %s2832_s28 }
 0x45e   :  { %2628 = vrot.lane.b32.xlu0 %v2627_v8, %s2832_s28 }
 0x460   :  { %895 = vrot.lane.b32.xlu1 %v3013_v22, %s2836_s30 }
 0x462   :  { %893 = vrot.lane.b32.xlu0 %v3011_v21, %s2836_s30 }
 0x464   :  { %899 = vrot.lane.b32.xlu1 %v3017_v26, %s2836_s30 }
 0x466   :  { %897 = vrot.lane.b32.xlu0 %v3015_v25, %s2836_s30  ;;  %s2838_s30 = smov 88  }
 0x4ca   :  { %v2634_v9 = vpop.permute.xlu1 %2633 }
 0x4cb   :  { %v2636_v10 = vunpack.i.h.bf16 %v2634_v9  ;;  %v2635_v11 = vunpack.i.l.bf16 %v2634_v9 }
 0x4cc   :  { %v2624_v12 = vpop.permute.xlu0 %2623 }
 0x4cd   :  { %v2626_v18 = vunpack.i.h.bf16 %v2624_v12  ;;  %v2625_v19 = vunpack.i.l.bf16 %v2624_v12  ;;  %v745_v30 = vsel %vm292_vm2, %v693_v53, %v2636_v10  ;;  %v744_v31 = vsel %vm292_vm2, %v701_v54, %v2635_v11 }
 0x4ce   :  { %v2639_v27 = vpop.permute.xlu1 %2638 }
 0x4cf   :  { %v2641_v28 = vunpack.i.h.bf16 %v2639_v27  ;;  %v2640_v29 = vunpack.i.l.bf16 %v2639_v27  ;;  %v743_v41 = vsel %vm292_vm2, %v690_v56, %v2626_v18  ;;  %v742_v42 = vsel %vm292_vm2, %v700_v60, %v2625_v19 }
 0x4d0   :  { %v2629_v32 = vpop.permute.xlu0 %2628 }
 0x4d1   :  { %v748_v33 = vsel %vm297_vm3, %v744_v31, %v2640_v29  ;;  %v749_v38 = vsel %vm297_vm3, %v745_v30, %v2641_v28  ;;  %v2631_v39 = vunpack.i.h.bf16 %v2629_v32  ;;  %v2630_v40 = vunpack.i.l.bf16 %v2629_v32 }
 0x4d2   :  { %v751_v43 = vpack.c.bf16 %v749_v38, %v748_v33 }
 0x4d3   :  { %v746_v44 = vsel %vm297_vm3, %v742_v42, %v2630_v40  ;;  %v747_v45 = vsel %vm297_vm3, %v743_v41, %v2631_v39 }
 0x4d4   :  { %v750_v48 = vpack.c.bf16 %v747_v45, %v746_v44 }
 0x4d6   :  { %2492 = vmatprep.mubr.msk.bf16.mxu0 %vm316_vm4, %v750_v48 }
 0x4d7   :  { %2493 = vmatmul.mubr.msk.bf16.vlgmr.msra.gmra.mxu0 %vm316_vm4, %v751_v43 }
 0x597   :  { %v2494_v49 = vpop.f32.mrf.mxu0 }
 0x598   :  { %v825_v54 = vmax.f32 %v2494_v49, 0.0  ;;  %v896_v49 = vpop.permute.xlu1 %895 }
 0x599   :  { %v808_v50 = vpop.f32.mrf.mxu0 }
 0x59a   :  { %v823_v52 = vmax.f32 %v808_v50, 0.0  ;;  %v834_v60 = vsel %vm292_vm2, %v825_v54, 0.0  ;;  %v894_v50 = vpop.permute.xlu0 %893 }
 0x59b   :  { %v2495_v51 = vpop.f32.mrf.mxu0 }
 0x59c   :  { %v831_v56 = vsel %vm292_vm2, %v823_v52, 0.0  ;;  %v826_v57 = vmax.f32 %v2495_v51, 0.0  ;;  %v2347_v51 = vld [vmem:[%s3603_s7 + $0x2] ss:$0 sm:$0xff] }
 0x59d   :  { %v811_v53 = vpop.f32.mrf.mxu0 }
 0x59e   :  { %v824_v55 = vmax.f32 %v811_v53, 0.0  ;;  %v836_v62 = vsel %vm292_vm2, %v826_v57, 0.0 }
 0x5a0   :  { %v832_v58 = vsel %vm292_vm2, %v824_v55, 0.0 }
 0x5a1   :  { %v833_v59 = vadd.f32 %v832_v58, %v831_v56  ;;  %v2348_v56 = vld [vmem:[%s3604_s8 + $0x2] ss:$0 sm:$0xff] }
 0x5a3   :  { %v835_v61 = vadd.f32 %v834_v60, %v833_v59 }
 0x5a5   :  { %v837_v63 = vadd.f32 %v836_v62, %v835_v61 }
 0x5a7   :  { %v838_v0 = vrot.slane %v837_v63, 4 }
 0x5a9   :  { %v839_v1 = vadd.f32 %v838_v0, %v837_v63 }
 0x5ab   :  { %v840_v2 = vrot.slane %v839_v1, 2 }
 0x5ad   :  { %v841_v3 = vadd.f32 %v840_v2, %v839_v1  ;;  %v900_v1 = vpop.permute.xlu1 %899  ;;  %v898_v2 = vpop.permute.xlu0 %897 }
 0x5af   :  { %v842_v4 = vrot.slane %v841_v3, 1 }
 0x5b1   :  { %v843_v5 = vadd.f32 %v842_v4, %v841_v3  ;;  %v2792_v3 = vld [vmem:[%s3602_s6 + $0x2c] ss:$0 sps:$4 sm:$0xff]  }
 0x5b2   :  { %2563 = vmatprep.subr.msk.bf16.mxu1 %vm237_vm1, %v2792_v3 }
 0x5b3   :  { %v844_v6 = vmul.f32 0.03125, %v843_v5 }
 0x5b5   :  { %v845_v7 = vsub.f32 %v823_v52, %v844_v6  ;;  %v846_v8 = vsub.f32 %v824_v55, %v844_v6  ;;  %v847_v9 = vsub.f32 %v825_v54, %v844_v6  ;;  %v848_v10 = vsub.f32 %v826_v57, %v844_v6 }
 0x5b7   :  { %v849_v11 = vmul.f32 %v845_v7, %v845_v7  ;;  %v850_v12 = vmul.f32 %v846_v8, %v846_v8  ;;  %v851_v18 = vmul.f32 %v847_v9, %v847_v9  ;;  %v852_v19 = vmul.f32 %v848_v10, %v848_v10 }
 0x5b9   :  { %v853_v27 = vsel %vm292_vm2, %v849_v11, 0.0  ;;  %v854_v28 = vsel %vm292_vm2, %v850_v12, 0.0  ;;  %v856_v30 = vsel %vm292_vm2, %v851_v18, 0.0  ;;  %v858_v32 = vsel %vm292_vm2, %v852_v19, 0.0 }
 0x5ba   :  { %v855_v29 = vadd.f32 %v854_v28, %v853_v27  ;;  %v2793_v27 = vld [vmem:[%s3602_s6 + $0x24] sm:$0xff]  }
 0x5bc   :  { %v857_v31 = vadd.f32 %v856_v30, %v855_v29 }
 0x5be   :  { %v859_v33 = vadd.f32 %v858_v32, %v857_v31 }
 0x5c0   :  { %v860_v38 = vrot.slane %v859_v33, 4 }
 0x5c2   :  { %v861_v39 = vadd.f32 %v860_v38, %v859_v33 }
 0x5c4   :  { %v862_v40 = vrot.slane %v861_v39, 2 }
 0x5c6   :  { %v863_v41 = vadd.f32 %v862_v40, %v861_v39 }
 0x5c8   :  { %v864_v42 = vrot.slane %v863_v41, 1 }
 0x5ca   :  { %v865_v43 = vadd.f32 %v864_v42, %v863_v41 }
 0x5cc   :  { %v866_v44 = vmul.f32 0.03125, %v865_v43 }
 0x5ce   :  { %v867_v45 = vadd.f32 1e-05, %v866_v44 }
 0x5d0   :  { %2816 = vrsqrt.f32 %v867_v45 }
 0x5dd   :  { %v2817_v48 = vpop.eup %2816 }
 0x5de   :  { %v869_v52 = vmul.f32 %v2817_v48, %v845_v7  ;;  %v870_v53 = vmul.f32 %v2817_v48, %v846_v8  ;;  %v871_v54 = vmul.f32 %v2817_v48, %v847_v9  ;;  %v872_v55 = vmul.f32 %v2817_v48, %v848_v10 }
 0x5df   :  { %v997_v8 = vsel %vm237_vm1, %v2792_v3, 0 }
 0x5e0   :  { %v879_v57 = vmul.f32 %v2347_v51, %v869_v52  ;;  %v880_v58 = vmul.f32 %v2347_v51, %v870_v53  ;;  %v881_v59 = vmul.f32 %v2347_v51, %v871_v54  ;;  %v882_v60 = vmul.f32 %v2347_v51, %v872_v55  ;;  %2497 = vmatpush3.bf16.msra.mxu1 %v997_v8 }
 0x5e1   :  { %2498 = vmatprep.subr.bf16.mxu1 %v2793_v27 }
 0x5e2   :  { %v3198_v61 = vadd.f32 %v2348_v56, %v880_v58  ;;  %v3200_v62 = vadd.f32 %v2348_v56, %v881_v59  ;;  %v3202_v63 = vadd.f32 %v2348_v56, %v882_v60  ;;  %v3204_v0 = vadd.f32 %v2348_v56, %v879_v57 }
 0x5e4   :  { %v906_v4 = vadd.f32 %v896_v49, %v3198_v61  ;;  %v907_v5 = vadd.f32 %v898_v2, %v3200_v62  ;;  %v908_v6 = vadd.f32 %v900_v1, %v3202_v63  ;;  %v905_v7 = vadd.f32 %v894_v50, %v3204_v0  ;;  %2499 = vmatpush3.bf16.msra.mxu1 %v2793_v27 }
 0x5e5   :  { %v2737_v9 = vpack.i.bf16 %v3202_v63, %v3200_v62  ;;  %v2732_v10 = vpack.i.bf16 %v3198_v61, %v3204_v0 }
 0x5e6   :  { %v914_v11 = vrot.slane %v906_v4, 4  ;;  %v916_v12 = vrot.slane %v907_v5, 4  ;;  %v917_v18 = vrot.slane %v908_v6, 4  ;;  %v913_v19 = vrot.slane %v905_v7, 4 }
 0x5e8   :  { %v918_v28 = vsel %vm237_vm1, %v916_v12, %v917_v18  ;;  %v926_v29 = vsel %vm237_vm1, 0.0, %v916_v12  ;;  %v928_v30 = vsel %vm237_vm1, %v917_v18, 0.0  ;;  %v915_v31 = vsel %vm237_vm1, %v913_v19, %v914_v11 }
 0x5e9   :  { %v938_v32 = vrot.slane %v926_v29, 4  ;;  %v939_v33 = vrot.slane %v918_v28, 4  ;;  %v941_v38 = vrot.slane %v928_v30, 4  ;;  %v925_v39 = vsel %vm237_vm1, 0.0, %v913_v19 }
 0x5ea   :  { %v927_v40 = vsel %vm237_vm1, %v914_v11, 0.0  ;;  %v933_v41 = vrot.slane %v925_v39, 4  ;;  %v934_v42 = vrot.slane %v915_v31, 4  ;;  %v2657_v52 = vpack.i.bf16 %v928_v30, %v918_v28 }
 0x5eb   :  { %v940_v43 = vsel %vm237_vm1, %v938_v32, %v939_v33  ;;  %v942_v44 = vsel %vm237_vm1, %v939_v33, %v941_v38  ;;  %v936_v45 = vrot.slane %v927_v40, 4  ;;  %v2647_v53 = vpack.i.bf16 %v927_v40, %v915_v31 }
 0x5ec   :  { %v2652_v48 = vpack.i.bf16 %v942_v44, %v940_v43  ;;  %v935_v49 = vsel %vm237_vm1, %v933_v41, %v934_v42 }
 0x5ed   :  { %v937_v50 = vsel %vm237_vm1, %v934_v42, %v936_v45 }
 0x5ee   :  { %2653 = vrot.lane.b32.xlu1 %v2652_v48, %s2833_s29  ;;  %v2642_v51 = vpack.i.bf16 %v937_v50, %v935_v49 }
 0x5f0   :  { %2643 = vrot.lane.b32.xlu0 %v2642_v51, %s2833_s29 }
 0x5f2   :  { %2658 = vrot.lane.b32.xlu1 %v2657_v52, %s2832_s28 }
 0x5f4   :  { %2648 = vrot.lane.b32.xlu0 %v2647_v53, %s2832_s28 }
 0x5f6   :  { %1120 = vrot.lane.b32.xlu1 %v3013_v22, %s2837_s24 }
 0x5f8   :  { %1118 = vrot.lane.b32.xlu0 %v3011_v21, %s2837_s24 }
 0x5fa   :  { %1124 = vrot.lane.b32.xlu1 %v3017_v26, %s2837_s24 }
 0x5fc   :  { %1122 = vrot.lane.b32.xlu0 %v3015_v25, %s2837_s24  ;;  %s2839_s24 = smov 80  }
 0x660   :  { %v2654_v54 = vpop.permute.xlu1 %2653 }
 0x661   :  { %v2656_v55 = vunpack.i.h.bf16 %v2654_v54  ;;  %v2655_v56 = vunpack.i.l.bf16 %v2654_v54 }
 0x662   :  { %v2644_v57 = vpop.permute.xlu0 %2643 }
 0x663   :  { %v2646_v58 = vunpack.i.h.bf16 %v2644_v57  ;;  %v2645_v59 = vunpack.i.l.bf16 %v2644_v57  ;;  %v970_v3 = vsel %vm292_vm2, %v918_v28, %v2656_v55  ;;  %v969_v4 = vsel %vm292_vm2, %v926_v29, %v2655_v56 }
 0x664   :  { %v2659_v60 = vpop.permute.xlu1 %2658 }
 0x665   :  { %v2661_v1 = vunpack.i.h.bf16 %v2659_v60  ;;  %v2660_v2 = vunpack.i.l.bf16 %v2659_v60  ;;  %v968_v12 = vsel %vm292_vm2, %v915_v31, %v2646_v58  ;;  %v967_v18 = vsel %vm292_vm2, %v925_v39, %v2645_v59 }
 0x666   :  { %v2649_v5 = vpop.permute.xlu0 %2648 }
 0x667   :  { %v973_v6 = vsel %vm297_vm3, %v969_v4, %v2660_v2  ;;  %v974_v7 = vsel %vm297_vm3, %v970_v3, %v2661_v1  ;;  %v2651_v8 = vunpack.i.h.bf16 %v2649_v5  ;;  %v2650_v11 = vunpack.i.l.bf16 %v2649_v5 }
 0x668   :  { %v976_v19 = vpack.c.bf16 %v974_v7, %v973_v6 }
 0x669   :  { %v971_v27 = vsel %vm297_vm3, %v967_v18, %v2650_v11  ;;  %v972_v30 = vsel %vm297_vm3, %v968_v12, %v2651_v8 }
 0x66a   :  { %v975_v32 = vpack.c.bf16 %v972_v30, %v971_v27 }
 0x66c   :  { %2500 = vmatprep.mubr.msk.bf16.mxu1 %vm316_vm4, %v975_v32 }
 0x66d   :  { %2501 = vmatmul.mubr.msk.bf16.vlgmr.msra.gmra.mxu1 %vm316_vm4, %v976_v19 }
 0x72d   :  { %v2502_v28 = vpop.f32.mrf.mxu1 }
 0x72e   :  { %v1050_v41 = vmax.f32 %v2502_v28, 0.0 }
 0x72f   :  { %v1033_v29 = vpop.f32.mrf.mxu1 }
 0x730   :  { %v1048_v38 = vmax.f32 %v1033_v29, 0.0  ;;  %v1059_v45 = vsel %vm292_vm2, %v1050_v41, 0.0 }
 0x731   :  { %v2503_v33 = vpop.f32.mrf.mxu1 }
 0x732   :  { %v1056_v31 = vsel %vm292_vm2, %v1048_v38, 0.0  ;;  %v1051_v39 = vmax.f32 %v2503_v33, 0.0 }
 0x733   :  { %v1036_v40 = vpop.f32.mrf.mxu1 }
 0x734   :  { %v1049_v42 = vmax.f32 %v1036_v40, 0.0  ;;  %v1061_v49 = vsel %vm292_vm2, %v1051_v39, 0.0 }
 0x736   :  { %v1057_v43 = vsel %vm292_vm2, %v1049_v42, 0.0 }
 0x737   :  { %v1058_v44 = vadd.f32 %v1057_v43, %v1056_v31  ;;  %v1119_v31 = vpop.permute.xlu0 %1118 }
 0x739   :  { %v1060_v48 = vadd.f32 %v1059_v45, %v1058_v44 }
 0x73b   :  { %v1062_v50 = vadd.f32 %v1061_v49, %v1060_v48  ;;  %v2359_v49 = vld [vmem:[%s3604_s8 + $0x3] ss:$0 sm:$0xff] }
 0x73d   :  { %v1063_v51 = vrot.slane %v1062_v50, 4 }
 0x73f   :  { %v1064_v52 = vadd.f32 %v1063_v51, %v1062_v50 }
 0x741   :  { %v1065_v53 = vrot.slane %v1064_v52, 2 }
 0x743   :  { %v1066_v54 = vadd.f32 %v1065_v53, %v1064_v52 }
 0x745   :  { %v1067_v55 = vrot.slane %v1066_v54, 1 }
 0x747   :  { %v1068_v56 = vadd.f32 %v1067_v55, %v1066_v54 }
 0x749   :  { %v1069_v57 = vmul.f32 0.03125, %v1068_v56 }
 0x74b   :  { %v1070_v58 = vsub.f32 %v1048_v38, %v1069_v57  ;;  %v1071_v59 = vsub.f32 %v1049_v42, %v1069_v57  ;;  %v1072_v60 = vsub.f32 %v1050_v41, %v1069_v57  ;;  %v1073_v1 = vsub.f32 %v1051_v39, %v1069_v57  ;;  %v1121_v42 = vpop.permute.xlu1 %1120  ;;  %v2358_v39 = vld [vmem:[%s3603_s7 + $0x3] ss:$0 sm:$0xff] }
 0x74d   :  { %v1074_v2 = vmul.f32 %v1070_v58, %v1070_v58  ;;  %v1075_v3 = vmul.f32 %v1071_v59, %v1071_v59  ;;  %v1076_v4 = vmul.f32 %v1072_v60, %v1072_v60  ;;  %v1077_v5 = vmul.f32 %v1073_v1, %v1073_v1 }
 0x74f   :  { %v1078_v6 = vsel %vm292_vm2, %v1074_v2, 0.0  ;;  %v1079_v7 = vsel %vm292_vm2, %v1075_v3, 0.0  ;;  %v1081_v11 = vsel %vm292_vm2, %v1076_v4, 0.0  ;;  %v1083_v18 = vsel %vm292_vm2, %v1077_v5, 0.0 }
 0x750   :  { %v1080_v8 = vadd.f32 %v1079_v7, %v1078_v6 }
 0x752   :  { %v1082_v12 = vadd.f32 %v1081_v11, %v1080_v8 }
 0x754   :  { %v1084_v19 = vadd.f32 %v1083_v18, %v1082_v12 }
 0x756   :  { %v1085_v27 = vrot.slane %v1084_v19, 4 }
 0x758   :  { %v1086_v30 = vadd.f32 %v1085_v27, %v1084_v19  ;;  %v2795_v19 = vld [vmem:[%s3602_s6 + $0x30] sm:$0xff]  }
 0x75a   :  { %v1087_v32 = vrot.slane %v1086_v30, 2 }
 0x75c   :  { %v1088_v28 = vadd.f32 %v1087_v32, %v1086_v30 }
 0x75e   :  { %v1089_v29 = vrot.slane %v1088_v28, 1 }
 0x760   :  { %v1090_v33 = vadd.f32 %v1089_v29, %v1088_v28 }
 0x762   :  { %v1091_v38 = vmul.f32 0.03125, %v1090_v33 }
 0x764   :  { %v1092_v40 = vadd.f32 1e-05, %v1091_v38 }
 0x766   :  { %2818 = vrsqrt.f32 %v1092_v40 }
 0x773   :  { %v2819_v41 = vpop.eup %2818 }
 0x774   :  { %v1094_v43 = vmul.f32 %v2819_v41, %v1070_v58  ;;  %v1095_v44 = vmul.f32 %v2819_v41, %v1071_v59  ;;  %v1096_v45 = vmul.f32 %v2819_v41, %v1072_v60  ;;  %v1097_v48 = vmul.f32 %v2819_v41, %v1073_v1  ;;  %v1125_v58 = vpop.permute.xlu1 %1124  ;;  %v1123_v59 = vpop.permute.xlu0 %1122  ;;  %v2794_v60 = vld [vmem:[%s3602_s6 + $0x38] ss:$0 sps:$4 sm:$0xff]  }
 0x775   :  { %2564 = vmatprep.subr.msk.bf16.mxu0 %vm237_vm1, %v2794_v60  ;;  %v1222_v5 = vsel %vm237_vm1, %v2794_v60, 0 }
 0x776   :  { %v1104_v50 = vmul.f32 %v2358_v39, %v1094_v43  ;;  %v1105_v51 = vmul.f32 %v2358_v39, %v1095_v44  ;;  %v1106_v52 = vmul.f32 %v2358_v39, %v1096_v45  ;;  %v1107_v53 = vmul.f32 %v2358_v39, %v1097_v48  ;;  %2505 = vmatpush3.bf16.msra.mxu0 %v1222_v5 }
 0x777   :  { %2506 = vmatprep.subr.bf16.mxu0 %v2795_v19 }
 0x778   :  { %v3264_v54 = vadd.f32 %v2359_v49, %v1105_v51  ;;  %v3266_v55 = vadd.f32 %v2359_v49, %v1106_v52  ;;  %v3268_v56 = vadd.f32 %v2359_v49, %v1107_v53  ;;  %v3270_v57 = vadd.f32 %v2359_v49, %v1104_v50 }
 0x77a   :  { %v1131_v1 = vadd.f32 %v1121_v42, %v3264_v54  ;;  %v1132_v2 = vadd.f32 %v1123_v59, %v3266_v55  ;;  %v1133_v3 = vadd.f32 %v1125_v58, %v3268_v56  ;;  %v1130_v4 = vadd.f32 %v1119_v31, %v3270_v57  ;;  %2507 = vmatpush3.bf16.msra.mxu0 %v2795_v19 }
 0x77b   :  { %v2747_v6 = vpack.i.bf16 %v3268_v56, %v3266_v55  ;;  %v2742_v7 = vpack.i.bf16 %v3264_v54, %v3270_v57 }
 0x77c   :  { %v1139_v8 = vrot.slane %v1131_v1, 4  ;;  %v1141_v11 = vrot.slane %v1132_v2, 4  ;;  %v1142_v12 = vrot.slane %v1133_v3, 4  ;;  %v1138_v18 = vrot.slane %v1130_v4, 4 }
 0x77e   :  { %v1143_v27 = vsel %vm237_vm1, %v1141_v11, %v1142_v12  ;;  %v1151_v30 = vsel %vm237_vm1, 0.0, %v1141_v11  ;;  %v1153_v32 = vsel %vm237_vm1, %v1142_v12, 0.0  ;;  %v1140_v28 = vsel %vm237_vm1, %v1138_v18, %v1139_v8 }
 0x77f   :  { %v1163_v29 = vrot.slane %v1151_v30, 4  ;;  %v1164_v33 = vrot.slane %v1143_v27, 4  ;;  %v1166_v38 = vrot.slane %v1153_v32, 4  ;;  %v1150_v40 = vsel %vm237_vm1, 0.0, %v1138_v18 }
 0x780   :  { %v1152_v41 = vsel %vm237_vm1, %v1139_v8, 0.0  ;;  %v1158_v42 = vrot.slane %v1150_v40, 4  ;;  %v1159_v31 = vrot.slane %v1140_v28, 4  ;;  %v2677_v51 = vpack.i.bf16 %v1153_v32, %v1143_v27 }
 0x781   :  { %v1165_v39 = vsel %vm237_vm1, %v1163_v29, %v1164_v33  ;;  %v1167_v43 = vsel %vm237_vm1, %v1164_v33, %v1166_v38  ;;  %v1161_v44 = vrot.slane %v1152_v41, 4  ;;  %v2667_v52 = vpack.i.bf16 %v1152_v41, %v1140_v28 }
 0x782   :  { %v2672_v45 = vpack.i.bf16 %v1167_v43, %v1165_v39  ;;  %v1160_v48 = vsel %vm237_vm1, %v1158_v42, %v1159_v31 }
 0x783   :  { %v1162_v49 = vsel %vm237_vm1, %v1159_v31, %v1161_v44 }
 0x784   :  { %2673 = vrot.lane.b32.xlu1 %v2672_v45, %s2833_s29  ;;  %v2662_v50 = vpack.i.bf16 %v1162_v49, %v1160_v48 }
 0x786   :  { %2663 = vrot.lane.b32.xlu0 %v2662_v50, %s2833_s29 }
 0x788   :  { %2678 = vrot.lane.b32.xlu1 %v2677_v51, %s2832_s28 }
 0x78a   :  { %2668 = vrot.lane.b32.xlu0 %v2667_v52, %s2832_s28 }
 0x78c   :  { %1345 = vrot.lane.b32.xlu1 %v3013_v22, %s2838_s30 }
 0x78e   :  { %1343 = vrot.lane.b32.xlu0 %v3011_v21, %s2838_s30 }
 0x790   :  { %1349 = vrot.lane.b32.xlu1 %v3017_v26, %s2838_s30 }
 0x792   :  { %1347 = vrot.lane.b32.xlu0 %v3015_v25, %s2838_s30 }
 0x7f6   :  { %v2674_v53 = vpop.permute.xlu1 %2673 }
 0x7f7   :  { %v2676_v58 = vunpack.i.h.bf16 %v2674_v53  ;;  %v2675_v59 = vunpack.i.l.bf16 %v2674_v53 }
 0x7f8   :  { %v2664_v60 = vpop.permute.xlu0 %2663 }
 0x7f9   :  { %v2666_v1 = vunpack.i.h.bf16 %v2664_v60  ;;  %v2665_v2 = vunpack.i.l.bf16 %v2664_v60  ;;  %v1195_v8 = vsel %vm292_vm2, %v1143_v27, %v2676_v58  ;;  %v1194_v11 = vsel %vm292_vm2, %v1151_v30, %v2675_v59 }
 0x7fa   :  { %v2679_v3 = vpop.permute.xlu1 %2678 }
 0x7fb   :  { %v2681_v4 = vunpack.i.h.bf16 %v2679_v3  ;;  %v2680_v5 = vunpack.i.l.bf16 %v2679_v3  ;;  %v1193_v33 = vsel %vm292_vm2, %v1140_v28, %v2666_v1  ;;  %v1192_v38 = vsel %vm292_vm2, %v1150_v40, %v2665_v2 }
 0x7fc   :  { %v2669_v12 = vpop.permute.xlu0 %2668 }
 0x7fd   :  { %v1198_v18 = vsel %vm297_vm3, %v1194_v11, %v2680_v5  ;;  %v1199_v19 = vsel %vm297_vm3, %v1195_v8, %v2681_v4  ;;  %v2671_v32 = vunpack.i.h.bf16 %v2669_v12  ;;  %v2670_v29 = vunpack.i.l.bf16 %v2669_v12 }
 0x7fe   :  { %v1201_v41 = vpack.c.bf16 %v1199_v19, %v1198_v18 }
 0x7ff   :  { %v1196_v42 = vsel %vm297_vm3, %v1192_v38, %v2670_v29  ;;  %v1197_v31 = vsel %vm297_vm3, %v1193_v33, %v2671_v32 }
 0x800   :  { %v1200_v39 = vpack.c.bf16 %v1197_v31, %v1196_v42 }
 0x802   :  { %2508 = vmatprep.mubr.msk.bf16.mxu0 %vm316_vm4, %v1200_v39 }
 0x803   :  { %2509 = vmatmul.mubr.msk.bf16.vlgmr.msra.gmra.mxu0 %vm316_vm4, %v1201_v41 }
 0x8c3   :  { %v2510_v27 = vpop.f32.mrf.mxu0 }
 0x8c4   :  { %v1275_v48 = vmax.f32 %v2510_v27, 0.0 }
 0x8c5   :  { %v1258_v30 = vpop.f32.mrf.mxu0 }
 0x8c6   :  { %v1273_v44 = vmax.f32 %v1258_v30, 0.0  ;;  %v1284_v52 = vsel %vm292_vm2, %v1275_v48, 0.0 }
 0x8c7   :  { %v2511_v43 = vpop.f32.mrf.mxu0 }
 0x8c8   :  { %v1281_v28 = vsel %vm292_vm2, %v1273_v44, 0.0  ;;  %v1276_v40 = vmax.f32 %v2511_v43, 0.0 }
 0x8c9   :  { %v1261_v45 = vpop.f32.mrf.mxu0 }
 0x8ca   :  { %v1274_v49 = vmax.f32 %v1261_v45, 0.0  ;;  %v1286_v58 = vsel %vm292_vm2, %v1276_v40, 0.0 }
 0x8cc   :  { %v1282_v50 = vsel %vm292_vm2, %v1274_v49, 0.0 }
 0x8cd   :  { %v1283_v51 = vadd.f32 %v1282_v50, %v1281_v28 }
 0x8cf   :  { %v1285_v53 = vadd.f32 %v1284_v52, %v1283_v51 }
 0x8d1   :  { %v1287_v59 = vadd.f32 %v1286_v58, %v1285_v53  ;;  %v1346_v53 = vpop.permute.xlu1 %1345  ;;  %v1344_v58 = vpop.permute.xlu0 %1343 }
 0x8d3   :  { %v1288_v60 = vrot.slane %v1287_v59, 4 }
 0x8d5   :  { %v1289_v1 = vadd.f32 %v1288_v60, %v1287_v59  ;;  %v2369_v59 = vld [vmem:[%s3603_s7 + $0x4] ss:$0 sm:$0xff] }
 0x8d7   :  { %v1290_v2 = vrot.slane %v1289_v1, 2 }
 0x8d9   :  { %v1291_v3 = vadd.f32 %v1290_v2, %v1289_v1 }
 0x8db   :  { %v1292_v4 = vrot.slane %v1291_v3, 1 }
 0x8dd   :  { %v1293_v5 = vadd.f32 %v1292_v4, %v1291_v3  ;;  %v2370_v4 = vld [vmem:[%s3604_s8 + $0x4] ss:$0 sm:$0xff] }
 0x8df   :  { %v1294_v8 = vmul.f32 0.03125, %v1293_v5 }
 0x8e1   :  { %v1295_v11 = vsub.f32 %v1273_v44, %v1294_v8  ;;  %v1296_v12 = vsub.f32 %v1274_v49, %v1294_v8  ;;  %v1297_v18 = vsub.f32 %v1275_v48, %v1294_v8  ;;  %v1298_v19 = vsub.f32 %v1276_v40, %v1294_v8 }
 0x8e3   :  { %v1299_v32 = vmul.f32 %v1295_v11, %v1295_v11  ;;  %v1300_v29 = vmul.f32 %v1296_v12, %v1296_v12  ;;  %v1301_v33 = vmul.f32 %v1297_v18, %v1297_v18  ;;  %v1302_v38 = vmul.f32 %v1298_v19, %v1298_v19 }
 0x8e5   :  { %v1303_v41 = vsel %vm292_vm2, %v1299_v32, 0.0  ;;  %v1304_v42 = vsel %vm292_vm2, %v1300_v29, 0.0  ;;  %v1306_v39 = vsel %vm292_vm2, %v1301_v33, 0.0  ;;  %v1308_v30 = vsel %vm292_vm2, %v1302_v38, 0.0 }
 0x8e6   :  { %v1305_v31 = vadd.f32 %v1304_v42, %v1303_v41 }
 0x8e8   :  { %v1307_v27 = vadd.f32 %v1306_v39, %v1305_v31 }
 0x8ea   :  { %v1309_v43 = vadd.f32 %v1308_v30, %v1307_v27 }
 0x8ec   :  { %v1310_v45 = vrot.slane %v1309_v43, 4 }
 0x8ee   :  { %v1311_v44 = vadd.f32 %v1310_v45, %v1309_v43 }
 0x8f0   :  { %v1312_v49 = vrot.slane %v1311_v44, 2 }
 0x8f2   :  { %v1313_v48 = vadd.f32 %v1312_v49, %v1311_v44 }
 0x8f4   :  { %v1314_v28 = vrot.slane %v1313_v48, 1 }
 0x8f6   :  { %v1315_v40 = vadd.f32 %v1314_v28, %v1313_v48 }
 0x8f8   :  { %v1316_v50 = vmul.f32 0.03125, %v1315_v40  ;;  %v2797_v40 = vld [vmem:[%s3602_s6 + $0x3c] sm:$0xff]  }
 0x8fa   :  { %v1317_v51 = vadd.f32 1e-05, %v1316_v50 }
 0x8fc   :  { %2820 = vrsqrt.f32 %v1317_v51 }
 0x909   :  { %v2821_v52 = vpop.eup %2820 }
 0x90a   :  { %v1319_v60 = vmul.f32 %v2821_v52, %v1295_v11  ;;  %v1320_v1 = vmul.f32 %v2821_v52, %v1296_v12  ;;  %v1321_v2 = vmul.f32 %v2821_v52, %v1297_v18  ;;  %v1322_v3 = vmul.f32 %v2821_v52, %v1298_v19  ;;  %v1350_v11 = vpop.permute.xlu1 %1349  ;;  %v1348_v12 = vpop.permute.xlu0 %1347  ;;  %v2796_v18 = vld [vmem:[%s3602_s6 + $0x44] ss:$0 sps:$4 sm:$0xff]  }
 0x90b   :  { %2565 = vmatprep.subr.msk.bf16.mxu1 %vm237_vm1, %v2796_v18  ;;  %v1447_v30 = vsel %vm237_vm1, %v2796_v18, 0 }
 0x90c   :  { %v1329_v5 = vmul.f32 %v2369_v59, %v1319_v60  ;;  %v1330_v8 = vmul.f32 %v2369_v59, %v1320_v1  ;;  %v1331_v32 = vmul.f32 %v2369_v59, %v1321_v2  ;;  %v1332_v29 = vmul.f32 %v2369_v59, %v1322_v3  ;;  %2513 = vmatpush3.bf16.msra.mxu1 %v1447_v30 }
 0x90d   :  { %2514 = vmatprep.subr.bf16.mxu1 %v2797_v40 }
 0x90e   :  { %v3330_v33 = vadd.f32 %v2370_v4, %v1330_v8  ;;  %v3332_v38 = vadd.f32 %v2370_v4, %v1331_v32  ;;  %v3334_v41 = vadd.f32 %v2370_v4, %v1332_v29  ;;  %v3336_v42 = vadd.f32 %v2370_v4, %v1329_v5 }
 0x910   :  { %v1356_v19 = vadd.f32 %v1346_v53, %v3330_v33  ;;  %v1357_v31 = vadd.f32 %v1348_v12, %v3332_v38  ;;  %v1358_v39 = vadd.f32 %v1350_v11, %v3334_v41  ;;  %v1355_v27 = vadd.f32 %v1344_v58, %v3336_v42  ;;  %2515 = vmatpush3.bf16.msra.mxu1 %v2797_v40 }
 0x911   :  { %v2757_v43 = vpack.i.bf16 %v3334_v41, %v3332_v38  ;;  %v2752_v45 = vpack.i.bf16 %v3330_v33, %v3336_v42 }
 0x912   :  { %v1364_v44 = vrot.slane %v1356_v19, 4  ;;  %v1366_v49 = vrot.slane %v1357_v31, 4  ;;  %v1367_v48 = vrot.slane %v1358_v39, 4  ;;  %v1363_v28 = vrot.slane %v1355_v27, 4 }
 0x914   :  { %v1368_v50 = vsel %vm237_vm1, %v1366_v49, %v1367_v48  ;;  %v1376_v51 = vsel %vm237_vm1, 0.0, %v1366_v49  ;;  %v1378_v52 = vsel %vm237_vm1, %v1367_v48, 0.0  ;;  %v1365_v53 = vsel %vm237_vm1, %v1363_v28, %v1364_v44 }
 0x915   :  { %v1388_v58 = vrot.slane %v1376_v51, 4  ;;  %v1389_v59 = vrot.slane %v1368_v50, 4  ;;  %v1391_v60 = vrot.slane %v1378_v52, 4  ;;  %v1375_v1 = vsel %vm237_vm1, 0.0, %v1363_v28 }
 0x916   :  { %v1377_v2 = vsel %vm237_vm1, %v1364_v44, 0.0  ;;  %v1383_v3 = vrot.slane %v1375_v1, 4  ;;  %v1384_v4 = vrot.slane %v1365_v53, 4  ;;  %v2697_v19 = vpack.i.bf16 %v1378_v52, %v1368_v50 }
 0x917   :  { %v1390_v5 = vsel %vm237_vm1, %v1388_v58, %v1389_v59  ;;  %v1392_v8 = vsel %vm237_vm1, %v1389_v59, %v1391_v60  ;;  %v1386_v32 = vrot.slane %v1377_v2, 4  ;;  %v2687_v31 = vpack.i.bf16 %v1377_v2, %v1365_v53 }
 0x918   :  { %v2692_v29 = vpack.i.bf16 %v1392_v8, %v1390_v5  ;;  %v1385_v11 = vsel %vm237_vm1, %v1383_v3, %v1384_v4 }
 0x919   :  { %v1387_v12 = vsel %vm237_vm1, %v1384_v4, %v1386_v32 }
 0x91a   :  { %2693 = vrot.lane.b32.xlu1 %v2692_v29, %s2833_s29  ;;  %v2682_v18 = vpack.i.bf16 %v1387_v12, %v1385_v11 }
 0x91c   :  { %2683 = vrot.lane.b32.xlu0 %v2682_v18, %s2833_s29 }
 0x91e   :  { %2698 = vrot.lane.b32.xlu1 %v2697_v19, %s2832_s28 }
 0x920   :  { %2688 = vrot.lane.b32.xlu0 %v2687_v31, %s2832_s28 }
 0x922   :  { %1570 = vrot.lane.b32.xlu1 %v3013_v22, %s2839_s24 }
 0x924   :  { %1568 = vrot.lane.b32.xlu0 %v3011_v21, %s2839_s24 }
 0x926   :  { %1574 = vrot.lane.b32.xlu1 %v3017_v26, %s2839_s24 }
 0x928   :  { %1572 = vrot.lane.b32.xlu0 %v3015_v25, %s2839_s24 }
 0x98c   :  { %v2694_v39 = vpop.permute.xlu1 %2693 }
 0x98d   :  { %v2696_v27 = vunpack.i.h.bf16 %v2694_v39  ;;  %v2695_v30 = vunpack.i.l.bf16 %v2694_v39 }
 0x98e   :  { %v2684_v44 = vpop.permute.xlu0 %2683 }
 0x98f   :  { %v2686_v49 = vunpack.i.h.bf16 %v2684_v44  ;;  %v2685_v48 = vunpack.i.l.bf16 %v2684_v44  ;;  %v1420_v58 = vsel %vm292_vm2, %v1368_v50, %v2696_v27  ;;  %v1419_v59 = vsel %vm292_vm2, %v1376_v51, %v2695_v30 }
 0x990   :  { %v2699_v28 = vpop.permute.xlu1 %2698 }
 0x991   :  { %v2701_v40 = vunpack.i.h.bf16 %v2699_v28  ;;  %v2700_v52 = vunpack.i.l.bf16 %v2699_v28  ;;  %v1418_v8 = vsel %vm292_vm2, %v1365_v53, %v2686_v49  ;;  %v1417_v32 = vsel %vm292_vm2, %v1375_v1, %v2685_v48 }
 0x992   :  { %v2689_v60 = vpop.permute.xlu0 %2688 }
 0x993   :  { %v1423_v2 = vsel %vm297_vm3, %v1419_v59, %v2700_v52  ;;  %v1424_v3 = vsel %vm297_vm3, %v1420_v58, %v2701_v40  ;;  %v2691_v4 = vunpack.i.h.bf16 %v2689_v60  ;;  %v2690_v5 = vunpack.i.l.bf16 %v2689_v60 }
 0x994   :  { %v1426_v29 = vpack.c.bf16 %v1424_v3, %v1423_v2 }
 0x995   :  { %v1421_v11 = vsel %vm297_vm3, %v1417_v32, %v2690_v5  ;;  %v1422_v12 = vsel %vm297_vm3, %v1418_v8, %v2691_v4 }
 0x996   :  { %v1425_v18 = vpack.c.bf16 %v1422_v12, %v1421_v11 }
 0x998   :  { %2516 = vmatprep.mubr.msk.bf16.mxu1 %vm316_vm4, %v1425_v18 }
 0x999   :  { %2517 = vmatmul.mubr.msk.bf16.vlgmr.msra.gmra.mxu1 %vm316_vm4, %v1426_v29 }
 0xa59   :  { %v2518_v50 = vpop.f32.mrf.mxu1 }
 0xa5a   :  { %v1500_v27 = vmax.f32 %v2518_v50, 0.0 }
 0xa5b   :  { %v1483_v51 = vpop.f32.mrf.mxu1 }
 0xa5c   :  { %v1498_v31 = vmax.f32 %v1483_v51, 0.0  ;;  %v1509_v48 = vsel %vm292_vm2, %v1500_v27, 0.0 }
 0xa5d   :  { %v2519_v19 = vpop.f32.mrf.mxu1 }
 0xa5e   :  { %v1506_v53 = vsel %vm292_vm2, %v1498_v31, 0.0  ;;  %v1501_v1 = vmax.f32 %v2519_v19, 0.0 }
 0xa5f   :  { %v1486_v39 = vpop.f32.mrf.mxu1 }
 0xa60   :  { %v1499_v30 = vmax.f32 %v1486_v39, 0.0  ;;  %v1511_v40 = vsel %vm292_vm2, %v1501_v1, 0.0 }
 0xa62   :  { %v1507_v44 = vsel %vm292_vm2, %v1499_v30, 0.0 }
 0xa63   :  { %v1508_v49 = vadd.f32 %v1507_v44, %v1506_v53 }
 0xa65   :  { %v1510_v28 = vadd.f32 %v1509_v48, %v1508_v49 }
 0xa67   :  { %v1512_v52 = vadd.f32 %v1511_v40, %v1510_v28 }
 0xa69   :  { %v1513_v58 = vrot.slane %v1512_v52, 4 }
 0xa6b   :  { %v1514_v59 = vadd.f32 %v1513_v58, %v1512_v52 }
 0xa6d   :  { %v1515_v60 = vrot.slane %v1514_v59, 2 }
 0xa6f   :  { %v1516_v2 = vadd.f32 %v1515_v60, %v1514_v59 }
 0xa71   :  { %v1517_v3 = vrot.slane %v1516_v2, 1 }
 0xa73   :  { %v1518_v4 = vadd.f32 %v1517_v3, %v1516_v2  ;;  %v1571_v2 = vpop.permute.xlu1 %1570  ;;  %v1569_v3 = vpop.permute.xlu0 %1568 }
 0xa75   :  { %v1519_v5 = vmul.f32 0.03125, %v1518_v4  ;;  %v2380_v4 = vld [vmem:[%s3603_s7 + $0x5] ss:$0 sm:$0xff] }
 0xa77   :  { %v1520_v8 = vsub.f32 %v1498_v31, %v1519_v5  ;;  %v1521_v32 = vsub.f32 %v1499_v30, %v1519_v5  ;;  %v1522_v29 = vsub.f32 %v1500_v27, %v1519_v5  ;;  %v1523_v11 = vsub.f32 %v1501_v1, %v1519_v5 }
 0xa79   :  { %v1524_v12 = vmul.f32 %v1520_v8, %v1520_v8  ;;  %v1525_v18 = vmul.f32 %v1521_v32, %v1521_v32  ;;  %v1526_v50 = vmul.f32 %v1522_v29, %v1522_v29  ;;  %v1527_v51 = vmul.f32 %v1523_v11, %v1523_v11 }
 0xa7b   :  { %v1528_v19 = vsel %vm292_vm2, %v1524_v12, 0.0  ;;  %v1529_v39 = vsel %vm292_vm2, %v1525_v18, 0.0  ;;  %v1531_v44 = vsel %vm292_vm2, %v1526_v50, 0.0  ;;  %v1533_v48 = vsel %vm292_vm2, %v1527_v51, 0.0  ;;  %v2381_v51 = vld [vmem:[%s3604_s8 + $0x5] ss:$0 sm:$0xff] }
 0xa7c   :  { %v1530_v53 = vadd.f32 %v1529_v39, %v1528_v19 }
 0xa7e   :  { %v1532_v49 = vadd.f32 %v1531_v44, %v1530_v53 }
 0xa80   :  { %v1534_v28 = vadd.f32 %v1533_v48, %v1532_v49 }
 0xa82   :  { %v1535_v40 = vrot.slane %v1534_v28, 4 }
 0xa84   :  { %v1536_v31 = vadd.f32 %v1535_v40, %v1534_v28 }
 0xa86   :  { %v1537_v30 = vrot.slane %v1536_v31, 2 }
 0xa88   :  { %v1538_v27 = vadd.f32 %v1537_v30, %v1536_v31  ;;  %v1575_v31 = vpop.permute.xlu1 %1574  ;;  %v1573_v30 = vpop.permute.xlu0 %1572 }
 0xa8a   :  { %v1539_v1 = vrot.slane %v1538_v27, 1 }
 0xa8c   :  { %v1540_v52 = vadd.f32 %v1539_v1, %v1538_v27 }
 0xa8e   :  { %v1541_v58 = vmul.f32 0.03125, %v1540_v52 }
 0xa90   :  { %v1542_v59 = vadd.f32 1e-05, %v1541_v58 }
 0xa92   :  { %2822 = vrsqrt.f32 %v1542_v59 }
 0xa9f   :  { %v2823_v60 = vpop.eup %2822 }
 0xaa0   :  { %v1544_v5 = vmul.f32 %v2823_v60, %v1520_v8  ;;  %v1545_v12 = vmul.f32 %v2823_v60, %v1521_v32  ;;  %v1546_v18 = vmul.f32 %v2823_v60, %v1522_v29  ;;  %v1547_v50 = vmul.f32 %v2823_v60, %v1523_v11  ;;  %v2798_v8 = vld [vmem:[%s3602_s6 + $0x50] ss:$0 sps:$4 sm:$0xff]  }
 0xaa1   :  { %2566 = vmatprep.subr.msk.bf16.mxu0 %vm237_vm1, %v2798_v8  ;;  %v1672_v1 = vsel %vm237_vm1, %v2798_v8, 0 }
 0xaa2   :  { %v1554_v19 = vmul.f32 %v2380_v4, %v1544_v5  ;;  %v1555_v39 = vmul.f32 %v2380_v4, %v1545_v12  ;;  %v1556_v53 = vmul.f32 %v2380_v4, %v1546_v18  ;;  %v1557_v44 = vmul.f32 %v2380_v4, %v1547_v50  ;;  %2521 = vmatpush3.bf16.msra.mxu0 %v1672_v1  ;;  %v2799_v4 = vld [vmem:[%s3602_s6 + $0x48] sm:$0xff]   ;;  %s2840_s6 = smov 24  }
 0xaa3   :  { %2522 = vmatprep.subr.bf16.mxu0 %v2799_v4 }
 0xaa4   :  { %v1565_v49 = vadd.f32 %v2381_v51, %v1555_v39  ;;  %v1566_v48 = vadd.f32 %v2381_v51, %v1556_v53  ;;  %v1567_v28 = vadd.f32 %v2381_v51, %v1557_v44  ;;  %v1564_v40 = vadd.f32 %v2381_v51, %v1554_v19 }
 0xaa6   :  { %v1581_v32 = vadd.f32 %v1571_v2, %v1565_v49  ;;  %v1582_v29 = vadd.f32 %v1573_v30, %v1566_v48  ;;  %v1583_v11 = vadd.f32 %v1575_v31, %v1567_v28  ;;  %v1580_v27 = vadd.f32 %v1569_v3, %v1564_v40  ;;  %2523 = vmatpush3.bf16.msra.mxu0 %v2799_v4 }
 0xaa7   :  { %v2767_v34 = vpack.i.bf16 %v1567_v28, %v1566_v48  ;;  %v2762_v35 = vpack.i.bf16 %v1565_v49, %v1564_v40  ;;  %v2800_v49 = vld [vmem:[%s3605_s9 + $0x18] sm:$0xff]   ;;  %v2801_v48 = vld [vmem:[%s3605_s9 + $0x10] sm:$0xff]   ;;  %v2802_v28 = vld [vmem:[%s3605_s9 + $0x8] sm:$0xff]  }
 0xaa8   :  { %v1589_v52 = vrot.slane %v1581_v32, 4  ;;  %v1591_v58 = vrot.slane %v1582_v29, 4  ;;  %v1592_v59 = vrot.slane %v1583_v11, 4  ;;  %v1588_v60 = vrot.slane %v1580_v27, 4  ;;  %2528 = vmatprep.subr.bf16.mxu1 %v2800_v49 }
 0xaa9   :  { %2529 = vmatpush3.bf16.msra.mxu1 %v2800_v49 }
 0xaaa   :  { %v1593_v5 = vsel %vm237_vm1, %v1591_v58, %v1592_v59  ;;  %v1601_v2 = vsel %vm237_vm1, 0.0, %v1591_v58  ;;  %v1603_v12 = vsel %vm237_vm1, %v1592_v59, 0.0  ;;  %v1590_v3 = vsel %vm237_vm1, %v1588_v60, %v1589_v52  ;;  %2530 = vmatprep.subr.bf16.mxu1 %v2801_v48 }
 0xaab   :  { %v1613_v18 = vrot.slane %v1601_v2, 4  ;;  %v1614_v50 = vrot.slane %v1593_v5, 4  ;;  %v1616_v51 = vrot.slane %v1603_v12, 4  ;;  %v1600_v19 = vsel %vm237_vm1, 0.0, %v1588_v60 }
 0xaac   :  { %v1602_v39 = vsel %vm237_vm1, %v1589_v52, 0.0  ;;  %v1608_v53 = vrot.slane %v1600_v19, 4  ;;  %v1609_v44 = vrot.slane %v1590_v3, 4  ;;  %v2717_v1 = vpack.i.bf16 %v1603_v12, %v1593_v5 }
 0xaad   :  { %v1615_v31 = vsel %vm237_vm1, %v1613_v18, %v1614_v50  ;;  %v1617_v30 = vsel %vm237_vm1, %v1614_v50, %v1616_v51  ;;  %v1611_v8 = vrot.slane %v1602_v39, 4  ;;  %v2707_v52 = vpack.i.bf16 %v1602_v39, %v1590_v3  ;;  %2531 = vmatpush3.bf16.msra.mxu1 %v2801_v48 }
 0xaae   :  { %v2712_v32 = vpack.i.bf16 %v1617_v30, %v1615_v31  ;;  %v1610_v29 = vsel %vm237_vm1, %v1608_v53, %v1609_v44  ;;  %2532 = vmatprep.subr.bf16.mxu1 %v2802_v28 }
 0xaaf   :  { %v1612_v11 = vsel %vm237_vm1, %v1609_v44, %v1611_v8 }
 0xab0   :  { %2713 = vrot.lane.b32.xlu1 %v2712_v32, %s2833_s29  ;;  %v2702_v27 = vpack.i.bf16 %v1612_v11, %v1610_v29 }
 0xab1   :  { %2533 = vmatpush3.bf16.msra.mxu1 %v2802_v28 }
 0xab2   :  { %2703 = vrot.lane.b32.xlu0 %v2702_v27, %s2833_s29 }
 0xab4   :  { %2718 = vrot.lane.b32.xlu1 %v2717_v1, %s2832_s28 }
 0xab6   :  { %2708 = vrot.lane.b32.xlu0 %v2707_v52, %s2832_s28 }
 0xab8   :  { %2728 = vrot.lane.b32.xlu1 %v2727_v46, %s2833_s29 }
 0xaba   :  { %2723 = vrot.lane.b32.xlu0 %v2722_v47, %s2833_s29  ;;  %s2841_s29 = smov 32  }
 0xabc   :  { %2738 = vrot.lane.b32.xlu1 %v2737_v9, %s2832_s28 }
 0xabe   :  { %2733 = vrot.lane.b32.xlu0 %v2732_v10, %s2832_s28  ;;  %s2842_s28 = smov 40  }
 0xac0   :  { %2748 = vrot.lane.b32.xlu1 %v2747_v6, %s2840_s6 }
 0xac2   :  { %2743 = vrot.lane.b32.xlu0 %v2742_v7, %s2840_s6 }
 0xac4   :  { %2758 = vrot.lane.b32.xlu1 %v2757_v43, %s2841_s29 }
 0xac6   :  { %2753 = vrot.lane.b32.xlu0 %v2752_v45, %s2841_s29 }
 0xac8   :  { %2768 = vrot.lane.b32.xlu1 %v2767_v34, %s2842_s28 }
 0xaca   :  { %2763 = vrot.lane.b32.xlu0 %v2762_v35, %s2842_s28 }
 0xb22   :  { %v2714_v36 = vpop.permute.xlu1 %2713 }
 0xb23   :  { %v2716_v37 = vunpack.i.h.bf16 %v2714_v36  ;;  %v2715_v46 = vunpack.i.l.bf16 %v2714_v36 }
 0xb24   :  { %v2704_v47 = vpop.permute.xlu0 %2703 }
 0xb25   :  { %v2706_v61 = vunpack.i.h.bf16 %v2704_v47  ;;  %v2705_v62 = vunpack.i.l.bf16 %v2704_v47  ;;  %v1645_v10 = vsel %vm292_vm2, %v1593_v5, %v2716_v37  ;;  %v1644_v54 = vsel %vm292_vm2, %v1601_v2, %v2715_v46 }
 0xb26   :  { %v2719_v63 = vpop.permute.xlu1 %2718 }
 0xb27   :  { %v2721_v0 = vunpack.i.h.bf16 %v2719_v63  ;;  %v2720_v9 = vunpack.i.l.bf16 %v2719_v63  ;;  %v1643_v33 = vsel %vm292_vm2, %v1590_v3, %v2706_v61  ;;  %v1642_v38 = vsel %vm292_vm2, %v1600_v19, %v2705_v62 }
 0xb28   :  { %v2709_v55 = vpop.permute.xlu0 %2708 }
 0xb29   :  { %v1648_v56 = vsel %vm297_vm3, %v1644_v54, %v2720_v9  ;;  %v1649_v57 = vsel %vm297_vm3, %v1645_v10, %v2721_v0  ;;  %v2711_v6 = vunpack.i.h.bf16 %v2709_v55  ;;  %v2710_v7 = vunpack.i.l.bf16 %v2709_v55 }
 0xb2a   :  { %v1651_v41 = vpack.c.bf16 %v1649_v57, %v1648_v56 }
 0xb2b   :  { %v1646_v42 = vsel %vm297_vm3, %v1642_v38, %v2710_v7  ;;  %v1647_v43 = vsel %vm297_vm3, %v1643_v33, %v2711_v6 }
 0xb2c   :  { %v1650_v45 = vpack.c.bf16 %v1647_v43, %v1646_v42  ;;  %v2391_v43 = vld [vmem:[%s3603_s7 + $0x6] ss:$0 sm:$0xff]  ;;  %s2843_s7 = smov 48  }
 0xb2e   :  { %2524 = vmatprep.mubr.msk.bf16.mxu0 %vm316_vm4, %v1650_v45 }
 0xb2f   :  { %2525 = vmatmul.mubr.msk.bf16.vlgmr.msra.gmra.mxu0 %vm316_vm4, %v1651_v41  ;;  %v2803_v41 = vld [vmem:[%s3605_s9] sm:$0xff]  }
 0xb30   :  { %2534 = vmatprep.subr.bf16.mxu1 %v2803_v41 }
 0xb31   :  { %2535 = vmatpush3.bf16.msra.mxu1 %v2803_v41 }
 0xbef   :  { %v2526_v40 = vpop.f32.mrf.mxu0 }
 0xbf0   :  { %v1725_v5 = vmax.f32 %v2526_v40, 0.0  ;;  %v2392_v40 = vld [vmem:[%s3604_s8 + $0x6] ss:$0 sm:$0xff] }
 0xbf1   :  { %v1708_v58 = vpop.f32.mrf.mxu0 }
 0xbf2   :  { %v1723_v60 = vmax.f32 %v1708_v58, 0.0  ;;  %v1734_v51 = vsel %vm292_vm2, %v1725_v5, 0.0 }
 0xbf3   :  { %v2527_v59 = vpop.f32.mrf.mxu0 }
 0xbf4   :  { %v1731_v12 = vsel %vm292_vm2, %v1723_v60, 0.0  ;;  %v1726_v3 = vmax.f32 %v2527_v59, 0.0 }
 0xbf5   :  { %v1711_v4 = vpop.f32.mrf.mxu0 }
 0xbf6   :  { %v1724_v2 = vmax.f32 %v1711_v4, 0.0  ;;  %v1736_v39 = vsel %vm292_vm2, %v1726_v3, 0.0 }
 0xbf8   :  { %v1732_v18 = vsel %vm292_vm2, %v1724_v2, 0.0 }
 0xbf9   :  { %v1733_v50 = vadd.f32 %v1732_v18, %v1731_v12 }
 0xbfb   :  { %v1735_v19 = vadd.f32 %v1734_v51, %v1733_v50  ;;  %v2729_v51 = vpop.permute.xlu1 %2728 }
 0xbfd   :  { %v1737_v53 = vadd.f32 %v1736_v39, %v1735_v19  ;;  %v2724_v19 = vpop.permute.xlu0 %2723 }
 0xbff   :  { %v1738_v44 = vrot.slane %v1737_v53, 4  ;;  %v2739_v39 = vpop.permute.xlu1 %2738 }
 0xc01   :  { %v1739_v31 = vadd.f32 %v1738_v44, %v1737_v53  ;;  %v2734_v53 = vpop.permute.xlu0 %2733 }
 0xc03   :  { %v1740_v30 = vrot.slane %v1739_v31, 2  ;;  %v2749_v44 = vpop.permute.xlu1 %2748 }
 0xc05   :  { %v1741_v8 = vadd.f32 %v1740_v30, %v1739_v31  ;;  %v2744_v31 = vpop.permute.xlu0 %2743 }
 0xc07   :  { %v1742_v32 = vrot.slane %v1741_v8, 1  ;;  %v2759_v30 = vpop.permute.xlu1 %2758 }
 0xc09   :  { %v1743_v29 = vadd.f32 %v1742_v32, %v1741_v8  ;;  %v2754_v8 = vpop.permute.xlu0 %2753  ;;  %v2731_v32 = vunpack.i.h.bf16 %v2729_v51 }
 0xc0b   :  { %v1744_v11 = vmul.f32 0.03125, %v1743_v29  ;;  %v2730_v29 = vunpack.i.l.bf16 %v2729_v51 }
 0xc0d   :  { %v1745_v27 = vsub.f32 %v1723_v60, %v1744_v11  ;;  %v1746_v1 = vsub.f32 %v1724_v2, %v1744_v11  ;;  %v1747_v52 = vsub.f32 %v1725_v5, %v1744_v11  ;;  %v1748_v34 = vsub.f32 %v1726_v3, %v1744_v11 }
 0xc0e   :  { %v2726_v11 = vunpack.i.h.bf16 %v2724_v19 }
 0xc0f   :  { %v1749_v35 = vmul.f32 %v1745_v27, %v1745_v27  ;;  %v1750_v36 = vmul.f32 %v1746_v1, %v1746_v1  ;;  %v1751_v37 = vmul.f32 %v1747_v52, %v1747_v52  ;;  %v1752_v46 = vmul.f32 %v1748_v34, %v1748_v34 }
 0xc11   :  { %v1753_v47 = vsel %vm292_vm2, %v1749_v35, 0.0  ;;  %v1754_v61 = vsel %vm292_vm2, %v1750_v36, 0.0  ;;  %v1756_v63 = vsel %vm292_vm2, %v1751_v37, 0.0  ;;  %v1758_v9 = vsel %vm292_vm2, %v1752_v46, 0.0 }
 0xc12   :  { %v1755_v62 = vadd.f32 %v1754_v61, %v1753_v47  ;;  %v2735_v35 = vunpack.i.l.bf16 %v2734_v53  ;;  %v2751_v36 = vunpack.i.h.bf16 %v2749_v44  ;;  %v2750_v37 = vunpack.i.l.bf16 %v2749_v44 }
 0xc13   :  { %v1892_v46 = vsel %vm292_vm2, %v3074_v16, %v2731_v32  ;;  %v1891_v47 = vsel %vm292_vm2, %v3072_v15, %v2730_v29  ;;  %v1890_v61 = vsel %vm292_vm2, %v3070_v13, %v2726_v11  ;;  %v2756_v16 = vunpack.i.h.bf16 %v2754_v8  ;;  %v2804_v11 = vld [vmem:[%s3606_s12 + $0x18] sm:$0xff]  }
 0xc14   :  { %v1757_v0 = vadd.f32 %v1756_v63, %v1755_v62  ;;  %v2746_v63 = vunpack.i.h.bf16 %v2744_v31 }
 0xc16   :  { %v1759_v10 = vadd.f32 %v1758_v9, %v1757_v0  ;;  %v2745_v0 = vunpack.i.l.bf16 %v2744_v31  ;;  %v2761_v9 = vunpack.i.h.bf16 %v2759_v30 }
 0xc18   :  { %v1760_v54 = vrot.slane %v1759_v10, 4 }
 0xc1a   :  { %v1761_v55 = vadd.f32 %v1760_v54, %v1759_v10  ;;  %v2760_v10 = vunpack.i.l.bf16 %v2759_v30  ;;  %v2769_v54 = vpop.permute.xlu1 %2768 }
 0xc1c   :  { %v1762_v56 = vrot.slane %v1761_v55, 2 }
 0xc1e   :  { %v1763_v57 = vadd.f32 %v1762_v56, %v1761_v55  ;;  %v2764_v55 = vpop.permute.xlu0 %2763 }
 0xc1f   :  { %v2766_v41 = vunpack.i.h.bf16 %v2764_v55 }
 0xc20   :  { %v1764_v6 = vrot.slane %v1763_v57, 1 }
 0xc22   :  { %v1765_v7 = vadd.f32 %v1764_v6, %v1763_v57  ;;  %v2755_v6 = vunpack.i.l.bf16 %v2754_v8 }
 0xc24   :  { %v1766_v33 = vmul.f32 0.03125, %v1765_v7 }
 0xc26   :  { %v1767_v38 = vadd.f32 1e-05, %v1766_v33  ;;  %v2771_v33 = vunpack.i.h.bf16 %v2769_v54 }
 0xc28   :  { %2824 = vrsqrt.f32 %v1767_v38  ;;  %v2770_v38 = vunpack.i.l.bf16 %v2769_v54 }
 0xc35   :  { %v2825_v42 = vpop.eup %2824 }
 0xc36   :  { %v1770_v45 = vmul.f32 %v2825_v42, %v1746_v1  ;;  %v1771_v49 = vmul.f32 %v2825_v42, %v1747_v52  ;;  %v1772_v48 = vmul.f32 %v2825_v42, %v1748_v34  ;;  %v1769_v28 = vmul.f32 %v2825_v42, %v1745_v27 }
 0xc37   :  { %v2725_v27 = vunpack.i.l.bf16 %v2724_v19  ;;  %v2741_v1 = vunpack.i.h.bf16 %v2739_v39  ;;  %v2740_v52 = vunpack.i.l.bf16 %v2739_v39  ;;  %v2736_v34 = vunpack.i.h.bf16 %v2734_v53 }
 0xc38   :  { %v1780_v58 = vmul.f32 %v2391_v43, %v1770_v45  ;;  %v1781_v59 = vmul.f32 %v2391_v43, %v1771_v49  ;;  %v1782_v60 = vmul.f32 %v2391_v43, %v1772_v48  ;;  %v1779_v4 = vmul.f32 %v2391_v43, %v1769_v28 }
 0xc39   :  { %v1889_v62 = vsel %vm292_vm2, %v3076_v17, %v2725_v27  ;;  %v1895_v56 = vsel %vm297_vm3, %v1891_v47, %v2740_v52  ;;  %v1896_v57 = vsel %vm297_vm3, %v1892_v46, %v2741_v1  ;;  %v1894_v7 = vsel %vm297_vm3, %v1890_v61, %v2736_v34  ;;  %v2808_v27 = vld [vmem:[%s3607_s14 + $0x8] sm:$0xff]  }
 0xc3a   :  { %v1791_v5 = vadd.f32 %v2392_v40, %v1781_v59  ;;  %v1792_v2 = vadd.f32 %v2392_v40, %v1782_v60  ;;  %v1789_v12 = vadd.f32 %v2392_v40, %v1779_v4  ;;  %v1790_v3 = vadd.f32 %v2392_v40, %v1780_v58 }
 0xc3b   :  { %v1893_v15 = vsel %vm297_vm3, %v1889_v62, %v2735_v35  ;;  %v1899_v13 = vsel %vm316_vm4, %v1895_v56, %v2750_v37  ;;  %v1900_v17 = vsel %vm316_vm4, %v1896_v57, %v2751_v36  ;;  %v2765_v42 = vunpack.i.l.bf16 %v2764_v55 }
 0xc3c   :  { %v2777_v18 = vpack.i.bf16 %v1792_v2, %v1791_v5  ;;  %v2772_v50 = vpack.i.bf16 %v1790_v3, %v1789_v12  ;;  %v1897_v43 = vsel %vm316_vm4, %v1893_v15, %v2745_v0  ;;  %v1898_v45 = vsel %vm316_vm4, %v1894_v7, %v2746_v63 }
 0xc3d   :  { %v1904_v49 = vsel %vm1901_vm5, %v1899_v13, %v2760_v10  ;;  %v1905_v48 = vsel %vm1901_vm5, %v1900_v17, %v2761_v9  ;;  %v1902_v28 = vsel %vm1901_vm5, %v1897_v43, %v2755_v6  ;;  %v1903_v40 = vsel %vm1901_vm5, %v1898_v45, %v2756_v16 }
 0xc3e   :  { %2778 = vrot.lane.b32.xlu1 %v2777_v18, %s2843_s7  ;;  %2773 = vrot.lane.b32.xlu0 %v2772_v50, %s2843_s7  ;;  %v1909_v12 = vsel %vm1906_vm6, %v1904_v49, %v2770_v38  ;;  %v1910_v3 = vsel %vm1906_vm6, %v1905_v48, %v2771_v33  ;;  %v1907_v18 = vsel %vm1906_vm6, %v1902_v28, %v2765_v42 }
 0xc3f   :  { %v1908_v50 = vsel %vm1906_vm6, %v1903_v40, %v2766_v41 }
 0xcb0   :  { %v2779_v58 = vpop.permute.xlu1 %2778  ;;  %v2774_v59 = vpop.permute.xlu0 %2773 }
 0xcb1   :  { %v2781_v60 = vunpack.i.h.bf16 %v2779_v58  ;;  %v2780_v4 = vunpack.i.l.bf16 %v2779_v58  ;;  %v2776_v5 = vunpack.i.h.bf16 %v2774_v59  ;;  %v2775_v2 = vunpack.i.l.bf16 %v2774_v59 }
 0xcb3   :  { %v1915_v51 = vsel %vm1911_vm7, %v1910_v3, %v2781_v60  ;;  %v1914_v19 = vsel %vm1911_vm7, %v1909_v12, %v2780_v4  ;;  %v1913_v39 = vsel %vm1911_vm7, %v1908_v50, %v2776_v5  ;;  %v1912_v53 = vsel %vm1911_vm7, %v1907_v18, %v2775_v2 }
 0xcb4   :  { %v1920_v44 = vsel %vm1916_vm8, %v1915_v51, %v3017_v26  ;;  %v1919_v31 = vsel %vm1916_vm8, %v1914_v19, %v3015_v25  ;;  %v1918_v30 = vsel %vm1916_vm8, %v1913_v39, %v3013_v22  ;;  %v1917_v8 = vsel %vm1916_vm8, %v1912_v53, %v3011_v21  ;;  %v2805_v22 = vld [vmem:[%s3606_s12 + $0x10] sm:$0xff]   ;;  %v2806_v21 = vld [vmem:[%s3606_s12 + $0x8] sm:$0xff]   ;;  %v2807_v25 = vld [vmem:[%s3606_s12] sm:$0xff]  }
 0xcb5   :  { %v1922_v32 = vpack.c.bf16 %v1920_v44, %v1919_v31  ;;  %v1921_v29 = vpack.c.bf16 %v1918_v30, %v1917_v8  ;;  %v2844_v26 = vmov 0.0   ;;  %v2399_v39 = vld [vmem:[%s3608_s10] ss:$0 sm:$0xff] }
 0xcb6   :  { %2540 = vmatprep.subr.bf16.mxu0 %v2844_v26  ;;  %2552 = vmatprep.subr.bf16.mxu1 %v2844_v26  ;;  %v2400_v8 = vld [vmem:[%s3609_s11] ss:$0 sm:$0xff] }
 0xcb7   :  { %2536 = vmatprep.mubr.msk.bf16.mxu1 %vm108_vm0, %v1921_v29  ;;  %2541 = vmatpush3.bf16.msra.mxu0 %v2804_v11 }
 0xcb8   :  { %2537 = vmatmul.mubr.msk.bf16.vlgmr.msra.gmra.mxu1 %vm108_vm0, %v1922_v32  ;;  %2542 = vmatprep.subr.bf16.mxu0 %v2844_v26 }
 0xcb9   :  { %2548 = vmatprep.mubr.msk.bf16.mxu0 %vm2845_vm9, %v2844_v26  ;;  %2556 = vmatprep.mubr.msk.bf16.mxu1 %vm2845_vm9, %v2844_v26 }
 0xcba   :  { %2553 = vmatpush3.bf16.msra.mxu1 %v2808_v27 }
 0xcbb   :  { %2543 = vmatpush3.bf16.msra.mxu0 %v2805_v22  ;;  %2554 = vmatprep.subr.bf16.mxu1 %v2844_v26 }
 0xcbc   :  { %2544 = vmatprep.subr.bf16.mxu0 %v2844_v26 }
 0xcbf   :  { %2545 = vmatpush3.bf16.msra.mxu0 %v2806_v21 }
 0xcc0   :  { %2546 = vmatprep.subr.bf16.mxu0 %v2844_v26 }
 0xcc3   :  { %2547 = vmatpush3.bf16.msra.mxu0 %v2807_v25 }
 0xd78   :  { %v2538_v1 = vpop.f32.mrf.mxu1 }
 0xd79   :  { %v2012_v37 = vmax.f32 %v2538_v1, 0.0 }
 0xd7a   :  { %v1995_v52 = vpop.f32.mrf.mxu1 }
 0xd7b   :  { %v2010_v35 = vmax.f32 %v1995_v52, 0.0  ;;  %v2019_v0 = vsel %vm108_vm0, %v2012_v37, 0.0 }
 0xd7c   :  { %v2539_v34 = vpop.f32.mrf.mxu1 }
 0xd7d   :  { %v2016_v47 = vsel %vm108_vm0, %v2010_v35, 0.0  ;;  %v2013_v61 = vmax.f32 %v2539_v34, 0.0 }
 0xd7e   :  { %v1998_v36 = vpop.f32.mrf.mxu1 }
 0xd7f   :  { %v2011_v46 = vmax.f32 %v1998_v36, 0.0  ;;  %v2021_v10 = vsel %vm108_vm0, %v2013_v61, 0.0 }
 0xd81   :  { %v2017_v62 = vsel %vm108_vm0, %v2011_v46, 0.0 }
 0xd82   :  { %v2018_v63 = vadd.f32 %v2017_v62, %v2016_v47 }
 0xd84   :  { %v2020_v9 = vadd.f32 %v2019_v0, %v2018_v63 }
 0xd86   :  { %v2022_v54 = vadd.f32 %v2021_v10, %v2020_v9 }
 0xd88   :  { %v2023_v55 = vrot.slane %v2022_v54, 4 }
 0xd8a   :  { %v2024_v56 = vadd.f32 %v2023_v55, %v2022_v54 }
 0xd8c   :  { %v2025_v57 = vrot.slane %v2024_v56, 2 }
 0xd8e   :  { %v2026_v16 = vadd.f32 %v2025_v57, %v2024_v56 }
 0xd90   :  { %v2027_v6 = vrot.slane %v2026_v16, 1 }
 0xd92   :  { %v2028_v15 = vadd.f32 %v2027_v6, %v2026_v16 }
 0xd94   :  { %v2029_v7 = vmul.f32 0.03125, %v2028_v15 }
 0xd96   :  { %v2030_v13 = vsub.f32 %v2010_v35, %v2029_v7  ;;  %v2031_v17 = vsub.f32 %v2011_v46, %v2029_v7  ;;  %v2032_v33 = vsub.f32 %v2012_v37, %v2029_v7  ;;  %v2033_v38 = vsub.f32 %v2013_v61, %v2029_v7 }
 0xd98   :  { %v2034_v41 = vmul.f32 %v2030_v13, %v2030_v13  ;;  %v2035_v42 = vmul.f32 %v2031_v17, %v2031_v17  ;;  %v2036_v43 = vmul.f32 %v2032_v33, %v2032_v33  ;;  %v2037_v45 = vmul.f32 %v2033_v38, %v2033_v38 }
 0xd9a   :  { %v2038_v49 = vsel %vm108_vm0, %v2034_v41, 0.0  ;;  %v2039_v48 = vsel %vm108_vm0, %v2035_v42, 0.0  ;;  %v2041_v40 = vsel %vm108_vm0, %v2036_v43, 0.0  ;;  %v2043_v59 = vsel %vm108_vm0, %v2037_v45, 0.0  ;;  %v2809_v41 = vld [vmem:[%s3607_s14] sm:$0xff]  }
 0xd9b   :  { %v2040_v28 = vadd.f32 %v2039_v48, %v2038_v49  ;;  %2555 = vmatpush3.bf16.msra.mxu1 %v2809_v41  ;;  %v2401_v42 = vld [vmem:[%s3610_s13] ss:$0 sm:$0xff] }
 0xd9d   :  { %v2042_v58 = vadd.f32 %v2041_v40, %v2040_v28 }
 0xd9f   :  { %v2044_v60 = vadd.f32 %v2043_v59, %v2042_v58  ;;  %v2407_v59 = vld [vmem:[%s3611_s15] ss:$0 sm:$0xff] }
 0xda1   :  { %v2045_v4 = vrot.slane %v2044_v60, 4 }
 0xda3   :  { %v2046_v5 = vadd.f32 %v2045_v4, %v2044_v60 }
 0xda5   :  { %v2047_v2 = vrot.slane %v2046_v5, 2 }
 0xda7   :  { %v2048_v12 = vadd.f32 %v2047_v2, %v2046_v5 }
 0xda9   :  { %v2049_v3 = vrot.slane %v2048_v12, 1 }
 0xdab   :  { %v2050_v18 = vadd.f32 %v2049_v3, %v2048_v12 }
 0xdad   :  { %v2051_v50 = vmul.f32 0.03125, %v2050_v18 }
 0xdaf   :  { %v2052_v51 = vadd.f32 1e-05, %v2051_v50 }
 0xdb1   :  { %2826 = vrsqrt.f32 %v2052_v51  ;;  %v2846_v51 = vmov 1966171168  }
 0xdbe   :  { %v2827_v19 = vpop.eup %2826 }
 0xdbf   :  { %v2054_v53 = vmul.f32 %v2827_v19, %v2030_v13  ;;  %v2055_v44 = vmul.f32 %v2827_v19, %v2031_v17  ;;  %v2056_v31 = vmul.f32 %v2827_v19, %v2032_v33  ;;  %v2057_v30 = vmul.f32 %v2827_v19, %v2033_v38 }
 0xdc0   :  { %v2266_v19 = vunpack.c.l.s4 %v2846_v51 }
 0xdc1   :  { %v2064_v32 = vmul.f32 %v2399_v39, %v2054_v53  ;;  %v2065_v29 = vmul.f32 %v2399_v39, %v2055_v44  ;;  %v2066_v11 = vmul.f32 %v2399_v39, %v2056_v31  ;;  %v2067_v26 = vmul.f32 %v2399_v39, %v2057_v30 }
 0xdc2   :  { %v2268_v39 = vlaneseq  ;;  %v2267_v53 = vunpack.c.0.s8 %v2266_v19 }
 0xdc3   :  { %v3545_v22 = vadd.f32 %v2400_v8, %v2064_v32  ;;  %v3547_v21 = vadd.f32 %v2400_v8, %v2065_v29  ;;  %v3549_v25 = vadd.f32 %v2400_v8, %v2066_v11  ;;  %v3551_v27 = vadd.f32 %v2400_v8, %v2067_v26 }
 0xdc4   :  { %v2269_v44 = vshrl.u32 %v2268_v39, 7 }
 0xdc5   :  { %v2078_v1 = vsel %vm108_vm0, %v3545_v22, 0.0  ;;  %v2079_v52 = vsel %vm108_vm0, %v3547_v21, 0.0  ;;  %v2087_v34 = vsel %vm108_vm0, %v3549_v25, 0.0  ;;  %v2088_v35 = vsel %vm108_vm0, %v3551_v27, 0.0 }
 0xdc6   :  { %v2080_v36 = vadd.f32 %v2079_v52, %v2078_v1  ;;  %v2089_v37 = vadd.f32 %v2088_v35, %v2087_v34  ;;  %v2270_v31 = vsub.s32 %v2267_v53, %v2269_v44  ;;  %v2289_v32 = vsub.s32 0, %v2269_v44 }
 0xdc8   :  { %v2081_v46 = vrot.slane %v2080_v36, 4  ;;  %v2090_v47 = vrot.slane %v2089_v37, 4 }
 0xdca   :  { %v2082_v61 = vadd.f32 %v2081_v46, %v2080_v36  ;;  %v2091_v62 = vadd.f32 %v2090_v47, %v2089_v37 }
 0xdcc   :  { %v2083_v63 = vrot.slane %v2082_v61, 2  ;;  %v2092_v0 = vrot.slane %v2091_v62, 2 }
 0xdce   :  { %v2084_v9 = vadd.f32 %v2083_v63, %v2082_v61  ;;  %v2093_v10 = vadd.f32 %v2092_v0, %v2091_v62 }
 0xdd0   :  { %v2085_v54 = vrot.slane %v2084_v9, 1  ;;  %v2094_v55 = vrot.slane %v2093_v10, 1 }
 0xdd2   :  { %v2086_v56 = vadd.f32 %v2085_v54, %v2084_v9  ;;  %v2095_v57 = vadd.f32 %v2094_v55, %v2093_v10 }
 0xdd4   :  { %v2097_v16 = vmul.f32 0.0625, %v2086_v56  ;;  %v2098_v6 = vmul.f32 0.0625, %v2095_v57 }
 0xdd6   :  { %v2099_v15 = vpack.c.bf16 %v2097_v16, %v2097_v16  ;;  %v2100_v7 = vpack.c.bf16 %v2098_v6, %v2098_v6 }
 0xdd8   :  { %v2118_v13 = vunpack.c.l.b16 %v2099_v15  ;;  %v2119_v17 = vunpack.c.l.b16 %v2100_v7 }
 0xdda   :  { %v2121_v33 = vsel %vm2120_vm10, %v2119_v17, %v2118_v13 }
 0xddb   :  { %v2122_v38 = vpack.c.b16 %v2121_v33, %v2121_v33 }
 0xddd   :  { %2549 = vmatmul.mubr.msk.bf16.vlgmr.msra.gmra.mxu0 %vm108_vm0, %v2122_v38 }
 0xe9d   :  { %v2184_v43 = vpop.f32.mrf.mxu0 }
 0xe9e   :  { %v2185_v45 = vadd.f32 %v2401_v42, %v2184_v43 }
 0xe9f   :  { %v2550_v49 = vpop.f32.mrf.mxu0 }
 0xea0   :  { %v2190_v48 = vmax.f32 %v2185_v45, 0.0 }
 0xea1   :  { %v2187_v28 = vpop.f32.mrf.mxu0 }
 0xea2   :  { %v2191_v40 = vpack.c.bf16 %v2190_v48, %v2190_v48 }
 0xea3   :  { %v2551_v58 = vpop.f32.mrf.mxu0 }
 0xea4   :  { %2557 = vmatmul.mubr.msk.bf16.vlgmr.msra.gmra.mxu1 %vm1901_vm5, %v2191_v40 }
 0xf64   :  { %v2252_v60 = vpop.f32.mrf.mxu1 }
 0xf65   :  { %v2253_v4 = vadd.f32 %v2407_v59, %v2252_v60 }
 0xf66   :  { %v2558_v5 = vpop.f32.mrf.mxu1 }
 0xf67   :  { %v2411_v2 = vmul.f32 -1.442695, %v2253_v4 }
 0xf68   :  { %v2255_v12 = vpop.f32.mrf.mxu1 }
 0xf69   :  { %2828 = vpow2.f32 %v2411_v2 }
 0xf6a   :  { %v2559_v3 = vpop.f32.mrf.mxu1 }
 0xf76   :  { %v2829_v18 = vpop.eup %2828 }
 0xf77   :  { %v2261_v50 = vadd.f32 1.0, %v2829_v18 }
 0xf79   :  { %2830 = vrcp.f32 %v2261_v50 }
 0xf86   :  { %v2831_v30 = vpop.eup %2830 }
 0xf87   :  { %v2271_v8 = vrot.slane %v2831_v30, %v2270_v31 }
 0xf89   :  { %v2272_v29 = vcombine.high %v2271_v8, %v2271_v8  ;;  %v2279_v11 = vrot.slane %v2271_v8, %v2270_v31 }
 0xf8b   :  { %v2286_v26 = vrot.slane %v2272_v29, %v2270_v31  ;;  %v2290_v1 = vrot.slane %v2279_v11, %v2289_v32 }
 0xf8d   :  { %v2294_v52 = vrot.slane %v2286_v26, %v2289_v32  ;;  %v2297_v34 = vmul.f32 %v2290_v1, %v3545_v22  ;;  %v2298_v35 = vmul.f32 %v2290_v1, %v3547_v21 }
 0xf8f   :  { %v2299_v36 = vmul.f32 %v2294_v52, %v3549_v25  ;;  %v2300_v37 = vmul.f32 %v2294_v52, %v3551_v27  ;;  %v2301_v46 = vadd.f32 %v2297_v34, %v2968_v14  ;;  %v2302_v47 = vadd.f32 %v2298_v35, %v2982_v20 }
 0xf91   :  { %v2303_v61 = vadd.f32 %v2299_v36, %v2986_v23  ;;  %v2304_v62 = vadd.f32 %v2300_v37, %v2988_v24  ;;  %2305 = vst.msk [vmem:[%s3612_s16] sm:$0xff] %vm108_vm0, %v2301_v46  ;;  %2306 = vst.msk [vmem:[%s3612_s16 + $0x8] sm:$0xff] %vm108_vm0, %v2302_v47 }
 0xf93   :  { %2307 = vst.msk [vmem:[%s3612_s16 + $0x10] sm:$0xff] %vm108_vm0, %v2303_v61  ;;  %2308 = vst.msk [vmem:[%s3612_s16 + $0x18] sm:$0xff] %vm108_vm0, %v2304_v62 }

// kernel: encode_forward.11
= control target key start
LH: loop header
LB: loop body
LE: loop exit
PB: predicated region body
PF: predicated region fallthrough
CT: control target
= control target key end

     0   :  { %12 = vsyncpa [#allocation6], 0  ;;  %s2205_s0 = inlined_call_operand.vmem [shape: f32[32,64], index: 0, kind: input, shape index: {}]   ;;  %s2206_s1 = inlined_call_operand.vmem [shape: f32[32,64], index: 1, kind: input, shape index: {}]   ;;  %s2207_s2 = inlined_call_operand.vmem [shape: f32[32,64], index: 2, kind: input, shape index: {}]   ;;  %s2208_s3 = inlined_call_operand.vmem [shape: bf16[64,1536], index: 3, kind: input, shape index: {}]   ;;  %s2209_s4 = inlined_call_operand.vmem [shape: bf16[64,1536], index: 4, kind: input, shape index: {}]   ;;  %s2210_s5 = inlined_call_operand.vmem [shape: bf16[64,1536], index: 5, kind: input, shape index: {}]   ;;  %s2211_s6 = inlined_call_operand.vmem [shape: f32[1,1536], index: 6, kind: input, shape index: {}]   ;;  %s2212_s7 = inlined_call_operand.hbm [shape: f32[32,1536], index: 7, kind: output, shape index: {}]  }
   0x1   :  { %14 = vsyncpa [#allocation6 + $0x1], 0  ;;  %s1832_s24 = smov 0   ;;  %s1834_s25 = smov 0  }
   0x2   :  { %s1836_s26 = smov 0   ;;  %s1838_s27 = smov 0  }
   0x3   :  { %s1840_s28 = smov 0   ;;  %s1842_s29 = smov 0  }
   0x4 LB: > { %s1487_s30 = sadd.s32 4294967295, %s1785_s29   ;;  %s1488_s8 = sadd.s32 4294967294, %s1785_s29   ;;  %s1785_s29 = sphi %s1842_s29, %s20_s29   ;;  %s1781_s28 = sphi %s1840_s28, %s2220_s28   ;;  %s1777_s27 = sphi %s1838_s27, %s2219_s27   ;;  %s1773_s26 = sphi %s1836_s26, %s2218_s26   ;;  %s1769_s25 = sphi %s1834_s25, %s2217_s25   ;;  %s1765_s24 = sphi %s1832_s24, %s2216_s24  }
   0x5   : > { %s29_s9 = sadd.s32 1, %s1781_s28  ;;  %s117_s10 = sadd.s32 1, %s1773_s26 }
   0x6   : > { %p30_p0 = scmp.ge.s32.totalorder %s29_s9, 3  ;;  %p124_p1 = scmp.ne.s32.totalorder %s1773_s26, %s1769_s25 }
   0x7   : > { %p125_p2 = scmp.eq.s32.totalorder %s1785_s29, 0  ;;  %p234_p3 = scmp.eq.s32.totalorder %s1487_s30, 2 }
   0x8   : > { %s2222_s9 = smov (%p30_p0, %s29_s9), 0  ;;  %p239_p6 = scmp.ne.s32.totalorder %s1769_s25, %s1765_s24 }
   0x9   : > { %p1871_p4 = por %p125_p2, %p124_p1  ;;  %p1875_p5 = por %p234_p3, %p124_p1 }
   0xa   : > { %s114_s13 = ssub.s32 %s1781_s28, %s2222_s9  ;;  %p240_p8 = scmp.eq.s32.totalorder %s1488_s8, 2 }
   0xb   : > { %p115_p7 = scmp.eq.s32.totalorder %s114_s13, 0  ;;  %p1493_p10 = scmp.ge.s32.totalorder %s1785_s29, 3 }
   0xc   : > { %p1886_p9 = por %p240_p8, %p239_p6 }
   0xd   : > { %s1884_s14 = scalar_select %p115_p7, %s1773_s26, %s117_s10  }
   0xe   : > { %283 = sbr.rel (%p1493_p10) target bundleno = 55 (0x37), region = 28 }
  0x13   : > { %286 = sbr.rel (!%p1871_p4) target bundleno = 31 (0x1f), region = 32  ;;  %s288_s16 = sand.u32 (%p1871_p4), 1, %s1773_s26  }
  0x14   : > { %s1574_s17 = sshll.u32 (%p1871_p4), %s1781_s28, 4  ;;  %s1494_s18 = sshll.u32 (%p1871_p4), %s288_s16, 7 }
  0x15   : > { %s1898_s21 = scalar_lea.vmem (%p1871_p4), %s2208_s3, %s1574_s17  ;;  %s290_s22 = scalar_lea.vmem (%p1871_p4), [#allocation2], %s1494_s18 }
  0x16   : > { %v306_v0 = vld [vmem:[%s1898_s21] sm:$0xff] (%p1871_p4)  ;;  %v308_v1 = vld [vmem:[%s1898_s21 + $0x8] sm:$0xff] (%p1871_p4)  ;;  %v310_v2 = vld [vmem:[%s1898_s21 + $0x30] sm:$0xff] (%p1871_p4) }
  0x17   : > { %307 = vst [vmem:[%s290_s22] sm:$0xff] (%p1871_p4), %v306_v0  ;;  %309 = vst [vmem:[%s290_s22 + $0x8] sm:$0xff] (%p1871_p4), %v308_v1  ;;  %v312_v3 = vld [vmem:[%s1898_s21 + $0x38] sm:$0xff] (%p1871_p4)  ;;  %v314_v4 = vld [vmem:[%s1898_s21 + $0x60] sm:$0xff] (%p1871_p4) }
  0x18   : > { %311 = vst [vmem:[%s290_s22 + $0x10] sm:$0xff] %v310_v2  ;;  %v316_v5 = vld [vmem:[%s1898_s21 + $0x68] sm:$0xff]  ;;  %313 = vst [vmem:[%s290_s22 + $0x18] sm:$0xff] %v312_v3  ;;  %v318_v6 = vld [vmem:[%s1898_s21 + $0x90] sm:$0xff] }
  0x19   : > { %315 = vst [vmem:[%s290_s22 + $0x20] sm:$0xff] %v314_v4  ;;  %317 = vst [vmem:[%s290_s22 + $0x28] sm:$0xff] %v316_v5  ;;  %v320_v7 = vld [vmem:[%s1898_s21 + $0x98] sm:$0xff]  ;;  %v322_v8 = vld [vmem:[%s1898_s21 + $0xc0] sm:$0xff] }
  0x1a   : > { %319 = vst [vmem:[%s290_s22 + $0x30] sm:$0xff] %v318_v6  ;;  %321 = vst [vmem:[%s290_s22 + $0x38] sm:$0xff] %v320_v7  ;;  %v324_v9 = vld [vmem:[%s1898_s21 + $0xc8] sm:$0xff]  ;;  %v326_v10 = vld [vmem:[%s1898_s21 + $0xf0] sm:$0xff] }
  0x1b   : > { %323 = vst [vmem:[%s290_s22 + $0x40] sm:$0xff] %v322_v8  ;;  %v328_v11 = vld [vmem:[%s1898_s21 + $0xf8] sm:$0xff]  ;;  %325 = vst [vmem:[%s290_s22 + $0x48] sm:$0xff] %v324_v9  ;;  %v330_v12 = vld [vmem:[%s1898_s21 + $0x120] sm:$0xff] }
  0x1c   : > { %327 = vst [vmem:[%s290_s22 + $0x50] sm:$0xff] %v326_v10  ;;  %329 = vst [vmem:[%s290_s22 + $0x58] sm:$0xff] %v328_v11  ;;  %v332_v13 = vld [vmem:[%s1898_s21 + $0x128] sm:$0xff]  ;;  %v334_v14 = vld [vmem:[%s1898_s21 + $0x150] sm:$0xff] }
  0x1d   : > { %331 = vst [vmem:[%s290_s22 + $0x60] sm:$0xff] %v330_v12  ;;  %333 = vst [vmem:[%s290_s22 + $0x68] sm:$0xff] %v332_v13  ;;  %v336_v15 = vld [vmem:[%s1898_s21 + $0x158] sm:$0xff] }
  0x1e   : > { %335 = vst [vmem:[%s290_s22 + $0x70] sm:$0xff] %v334_v14  ;;  %337 = vst [vmem:[%s290_s22 + $0x78] sm:$0xff] %v336_v15 }
  0x1f PF: > { %343 = sbr.rel (!%p1871_p4) target bundleno = 43 (0x2b), region = 55  ;;  %s345_s23 = sand.u32 (%p1871_p4), 1, %s1773_s26  }
  0x20   : > { %s1575_s30 = sshll.u32 (%p1871_p4), %s1781_s28, 4  ;;  %s1497_s8 = sshll.u32 (%p1871_p4), %s345_s23, 7 }
  0x21   : > { %s1923_s16 = scalar_lea.vmem (%p1871_p4), %s2209_s4, %s1575_s30  ;;  %s347_s17 = scalar_lea.vmem (%p1871_p4), [#allocation3], %s1497_s8 }
  0x22   : > { %v363_v16 = vld [vmem:[%s1923_s16] sm:$0xff] (%p1871_p4)  ;;  %v365_v17 = vld [vmem:[%s1923_s16 + $0x8] sm:$0xff] (%p1871_p4)  ;;  %v367_v18 = vld [vmem:[%s1923_s16 + $0x30] sm:$0xff] (%p1871_p4) }
  0x23   : > { %364 = vst [vmem:[%s347_s17] sm:$0xff] (%p1871_p4), %v363_v16  ;;  %366 = vst [vmem:[%s347_s17 + $0x8] sm:$0xff] (%p1871_p4), %v365_v17  ;;  %v369_v19 = vld [vmem:[%s1923_s16 + $0x38] sm:$0xff] (%p1871_p4)  ;;  %v371_v20 = vld [vmem:[%s1923_s16 + $0x60] sm:$0xff] (%p1871_p4) }
  0x24   : > { %368 = vst [vmem:[%s347_s17 + $0x10] sm:$0xff] %v367_v18  ;;  %v373_v21 = vld [vmem:[%s1923_s16 + $0x68] sm:$0xff]  ;;  %370 = vst [vmem:[%s347_s17 + $0x18] sm:$0xff] %v369_v19  ;;  %v375_v22 = vld [vmem:[%s1923_s16 + $0x90] sm:$0xff] }
  0x25   : > { %372 = vst [vmem:[%s347_s17 + $0x20] sm:$0xff] %v371_v20  ;;  %374 = vst [vmem:[%s347_s17 + $0x28] sm:$0xff] %v373_v21  ;;  %v377_v23 = vld [vmem:[%s1923_s16 + $0x98] sm:$0xff]  ;;  %v379_v24 = vld [vmem:[%s1923_s16 + $0xc0] sm:$0xff] }
  0x26   : > { %376 = vst [vmem:[%s347_s17 + $0x30] sm:$0xff] %v375_v22  ;;  %378 = vst [vmem:[%s347_s17 + $0x38] sm:$0xff] %v377_v23  ;;  %v381_v25 = vld [vmem:[%s1923_s16 + $0xc8] sm:$0xff]  ;;  %v383_v26 = vld [vmem:[%s1923_s16 + $0xf0] sm:$0xff] }
  0x27   : > { %380 = vst [vmem:[%s347_s17 + $0x40] sm:$0xff] %v379_v24  ;;  %v385_v27 = vld [vmem:[%s1923_s16 + $0xf8] sm:$0xff]  ;;  %382 = vst [vmem:[%s347_s17 + $0x48] sm:$0xff] %v381_v25  ;;  %v387_v28 = vld [vmem:[%s1923_s16 + $0x120] sm:$0xff] }
  0x28   : > { %384 = vst [vmem:[%s347_s17 + $0x50] sm:$0xff] %v383_v26  ;;  %386 = vst [vmem:[%s347_s17 + $0x58] sm:$0xff] %v385_v27  ;;  %v389_v29 = vld [vmem:[%s1923_s16 + $0x128] sm:$0xff]  ;;  %v391_v30 = vld [vmem:[%s1923_s16 + $0x150] sm:$0xff] }
  0x29   : > { %388 = vst [vmem:[%s347_s17 + $0x60] sm:$0xff] %v387_v28  ;;  %390 = vst [vmem:[%s347_s17 + $0x68] sm:$0xff] %v389_v29  ;;  %v393_v31 = vld [vmem:[%s1923_s16 + $0x158] sm:$0xff] }
  0x2a   : > { %392 = vst [vmem:[%s347_s17 + $0x70] sm:$0xff] %v391_v30  ;;  %394 = vst [vmem:[%s347_s17 + $0x78] sm:$0xff] %v393_v31 }
  0x2b PF: > { %400 = sbr.rel (!%p1871_p4) target bundleno = 55 (0x37), region = 78  ;;  %s402_s18 = sand.u32 (%p1871_p4), 1, %s1773_s26  }
  0x2c   : > { %s1576_s19 = sshll.u32 (%p1871_p4), %s1781_s28, 4  ;;  %s1500_s20 = sshll.u32 (%p1871_p4), %s402_s18, 7 }
  0x2d   : > { %s1948_s23 = scalar_lea.vmem (%p1871_p4), %s2210_s5, %s1576_s19  ;;  %s404_s11 = scalar_lea.vmem (%p1871_p4), [#allocation4], %s1500_s20 }
  0x2e   : > { %v420_v32 = vld [vmem:[%s1948_s23] sm:$0xff] (%p1871_p4)  ;;  %v422_v33 = vld [vmem:[%s1948_s23 + $0x8] sm:$0xff] (%p1871_p4)  ;;  %v424_v34 = vld [vmem:[%s1948_s23 + $0x30] sm:$0xff] (%p1871_p4) }
  0x2f   : > { %421 = vst [vmem:[%s404_s11] sm:$0xff] (%p1871_p4), %v420_v32  ;;  %423 = vst [vmem:[%s404_s11 + $0x8] sm:$0xff] (%p1871_p4), %v422_v33  ;;  %v426_v35 = vld [vmem:[%s1948_s23 + $0x38] sm:$0xff] (%p1871_p4)  ;;  %v428_v36 = vld [vmem:[%s1948_s23 + $0x60] sm:$0xff] (%p1871_p4) }
  0x30   : > { %425 = vst [vmem:[%s404_s11 + $0x10] sm:$0xff] %v424_v34  ;;  %v430_v37 = vld [vmem:[%s1948_s23 + $0x68] sm:$0xff]  ;;  %427 = vst [vmem:[%s404_s11 + $0x18] sm:$0xff] %v426_v35  ;;  %v432_v38 = vld [vmem:[%s1948_s23 + $0x90] sm:$0xff] }
  0x31   : > { %429 = vst [vmem:[%s404_s11 + $0x20] sm:$0xff] %v428_v36  ;;  %431 = vst [vmem:[%s404_s11 + $0x28] sm:$0xff] %v430_v37  ;;  %v434_v39 = vld [vmem:[%s1948_s23 + $0x98] sm:$0xff]  ;;  %v436_v40 = vld [vmem:[%s1948_s23 + $0xc0] sm:$0xff] }
  0x32   : > { %433 = vst [vmem:[%s404_s11 + $0x30] sm:$0xff] %v432_v38  ;;  %435 = vst [vmem:[%s404_s11 + $0x38] sm:$0xff] %v434_v39  ;;  %v438_v41 = vld [vmem:[%s1948_s23 + $0xc8] sm:$0xff]  ;;  %v440_v42 = vld [vmem:[%s1948_s23 + $0xf0] sm:$0xff] }
  0x33   : > { %437 = vst [vmem:[%s404_s11 + $0x40] sm:$0xff] %v436_v40  ;;  %v442_v43 = vld [vmem:[%s1948_s23 + $0xf8] sm:$0xff]  ;;  %439 = vst [vmem:[%s404_s11 + $0x48] sm:$0xff] %v438_v41  ;;  %v444_v44 = vld [vmem:[%s1948_s23 + $0x120] sm:$0xff] }
  0x34   : > { %441 = vst [vmem:[%s404_s11 + $0x50] sm:$0xff] %v440_v42  ;;  %443 = vst [vmem:[%s404_s11 + $0x58] sm:$0xff] %v442_v43  ;;  %v446_v45 = vld [vmem:[%s1948_s23 + $0x128] sm:$0xff]  ;;  %v448_v46 = vld [vmem:[%s1948_s23 + $0x150] sm:$0xff] }
  0x35   : > { %445 = vst [vmem:[%s404_s11 + $0x60] sm:$0xff] %v444_v44  ;;  %447 = vst [vmem:[%s404_s11 + $0x68] sm:$0xff] %v446_v45  ;;  %v450_v47 = vld [vmem:[%s1948_s23 + $0x158] sm:$0xff] }
  0x36   : > { %449 = vst [vmem:[%s404_s11 + $0x70] sm:$0xff] %v448_v46  ;;  %451 = vst [vmem:[%s404_s11 + $0x78] sm:$0xff] %v450_v47 }
  0x37 PF: > { %p1503_p11 = scmp.ge.s32.totalorder %s1785_s29, 1  ;;  %p464_p12 = scmp.lt.s32.totalorder %s1785_s29, 4 }
  0x39   : > { %p465_p13 = pnand %p1503_p11, %p464_p12 }
  0x3a   : > { %s471_s30 = sand.u32 (!%p465_p13), 1, %s1769_s25   ;;  %s1788_s18 = smov (!%p465_p13), [#allocation5]  }
  0x3b   : > { %468 = sbr.rel (%p465_p13) target bundleno = 342 (0x156), region = 105  ;;  %s1971_s8 = sshll.u32 (!%p465_p13), %s471_s30, 7 }
  0x3c   : > { %s480_s10 = scalar_lea.vmem (!%p465_p13), [#allocation3], %s1971_s8  ;;  %s1983_s19 = scalar_lea.vmem (!%p465_p13), [#allocation2], %s1971_s8 }
  0x3d   : > { %s2004_s11 = scalar_lea.vmem (!%p465_p13), [#allocation4], %s1971_s8  ;;  %s2111_s23 = scalar_lea.vmem (!%p465_p13), [#allocation5], %s1971_s8 }
  0x3e   : > { %s1577_s8 = sshll.u32 (!%p465_p13), %s1777_s27, 9  ;;  %s2160_s16 = scalar_lea.sflag (!%p465_p13), [#allocation6], %s471_s30 }
  0x40   : > { %v1787_v48 = vmov 0   ;;  %v1637_v49 = vld [vmem:[%s480_s10 + $0x64] ss:$16 sps:$4 sm:$0xff]   ;;  %v1639_v50 = vld [vmem:[%s480_s10 + $0x6c] ss:$16 sps:$4 sm:$0xff]   ;;  %vm696_vm0 = vcmask 523264  }
  0x41   : > { %735 = vmatprep.mubr.bf16.mxu0 %v1787_v48  ;;  %788 = vmatprep.mubr.bf16.mxu1 %v1787_v48  ;;  %v1641_v51 = vld [vmem:[%s480_s10 + $0x60] ss:$16 sps:$4 sm:$0xff]   ;;  %v1642_v52 = vld [vmem:[%s480_s10 + $0x68] ss:$16 sps:$4 sm:$0xff]   ;;  %v1643_v53 = vld [vmem:[%s480_s10 + $0x44] ss:$16 sps:$4 sm:$0xff]  }
  0x42   : > { %711 = vmatprep.subr.bf16.mxu0 %v1637_v49  ;;  %764 = vmatprep.subr.bf16.mxu1 %v1639_v50  ;;  %v1645_v54 = vld [vmem:[%s480_s10 + $0x4c] ss:$16 sps:$4 sm:$0xff]   ;;  %v1647_v55 = vld [vmem:[%s480_s10 + $0x40] ss:$16 sps:$4 sm:$0xff]   ;;  %v1648_v56 = vld [vmem:[%s480_s10 + $0x48] ss:$16 sps:$4 sm:$0xff]  }
  0x43   : > { %712 = vmatpush1.bf16.msra.mxu0 %v1641_v51  ;;  %765 = vmatpush1.bf16.msra.mxu1 %v1642_v52  ;;  %v1649_v57 = vld [vmem:[%s480_s10 + $0x24] ss:$16 sps:$4 sm:$0xff]   ;;  %v1651_v58 = vld [vmem:[%s480_s10 + $0x2c] ss:$16 sps:$4 sm:$0xff]   ;;  %v1653_v59 = vld [vmem:[%s480_s10 + $0x20] ss:$16 sps:$4 sm:$0xff]  }
  0x44   : > { %713 = vmatprep.subr.bf16.mxu0 %v1643_v53  ;;  %766 = vmatprep.subr.bf16.mxu1 %v1645_v54  ;;  %v1654_v60 = vld [vmem:[%s480_s10 + $0x28] ss:$16 sps:$4 sm:$0xff]   ;;  %v1655_v61 = vld [vmem:[%s480_s10 + $0x4] ss:$16 sps:$4 sm:$0xff]   ;;  %v1657_v62 = vld [vmem:[%s480_s10 + $0xc] ss:$16 sps:$4 sm:$0xff]  }
  0x45   : > { %v594_v63 = vld [vmem:[%s2206_s1] sm:$0xff]  ;;  %v595_v0 = vld [vmem:[%s2206_s1 + $0x8] sm:$0xff]  ;;  %v596_v10 = vld [vmem:[%s2206_s1 + $0x10] sm:$0xff] }
  0x46   : > { %v1659_v1 = vld [vmem:[%s480_s10] ss:$16 sps:$4 sm:$0xff]   ;;  %v1660_v2 = vld [vmem:[%s480_s10 + $0x8] ss:$16 sps:$4 sm:$0xff]   ;;  %v1663_v3 = vld [vmem:[%s1983_s19 + $0x64] ss:$16 sps:$4 sm:$0xff]   ;;  %v598_v5 = vpack.c.bf16 %v595_v0, %v594_v63 }
  0x47   : > { %714 = vmatpush1.bf16.msra.mxu0 %v1647_v55  ;;  %767 = vmatpush1.bf16.msra.mxu1 %v1648_v56  ;;  %v1666_v4 = vld [vmem:[%s1983_s19 + $0x6c] ss:$16 sps:$4 sm:$0xff]   ;;  %v1661_v6 = vld [vmem:[%s1983_s19 + $0x60] ss:$16 sps:$4 sm:$0xff]   ;;  %v1664_v7 = vld [vmem:[%s1983_s19 + $0x68] ss:$16 sps:$4 sm:$0xff]  }
  0x48   : > { %715 = vmatprep.subr.bf16.mxu0 %v1649_v57  ;;  %768 = vmatprep.subr.bf16.mxu1 %v1651_v58  ;;  %v1669_v8 = vld [vmem:[%s1983_s19 + $0x44] ss:$16 sps:$4 sm:$0xff]   ;;  %v1672_v9 = vld [vmem:[%s1983_s19 + $0x4c] ss:$16 sps:$4 sm:$0xff]   ;;  %v1667_v12 = vld [vmem:[%s1983_s19 + $0x40] ss:$16 sps:$4 sm:$0xff]  }
  0x49   : > { %v597_v11 = vld [vmem:[%s2206_s1 + $0x18] sm:$0xff]  ;;  %v1675_v14 = vld [vmem:[%s1983_s19 + $0x24] ss:$16 sps:$4 sm:$0xff]   ;;  %v1673_v17 = vld [vmem:[%s1983_s19 + $0x20] ss:$16 sps:$4 sm:$0xff]   ;;  %s1318_s10 = sshll.u32 %s2111_s23, 4  ;;  %s2152_s10 = int_to_ptr.vmem [resolvable:$true] %s1318_s10 }
  0x4a   : > { %v1670_v13 = vld [vmem:[%s1983_s19 + $0x48] ss:$16 sps:$4 sm:$0xff]   ;;  %v1678_v15 = vld [vmem:[%s1983_s19 + $0x2c] ss:$16 sps:$4 sm:$0xff]   ;;  %v599_v16 = vpack.c.bf16 %v597_v11, %v596_v10  ;;  %v1681_v19 = vld [vmem:[%s1983_s19 + $0x4] ss:$16 sps:$4 sm:$0xff]  }
  0x4b   : > { %716 = vmatpush1.bf16.msra.mxu0 %v1653_v59  ;;  %769 = vmatpush1.bf16.msra.mxu1 %v1654_v60  ;;  %v1676_v18 = vld [vmem:[%s1983_s19 + $0x28] ss:$16 sps:$4 sm:$0xff]   ;;  %v1684_v20 = vld [vmem:[%s1983_s19 + $0xc] ss:$16 sps:$4 sm:$0xff]   ;;  %v572_v21 = vld [vmem:[%s2205_s0] sm:$0xff]  ;;  %s1709_s17 = scalar_lea.vmem %s2152_s10, 2048 }
  0x4c   : > { %717 = vmatprep.subr.bf16.mxu0 %v1655_v61  ;;  %770 = vmatprep.subr.bf16.mxu1 %v1657_v62  ;;  %v573_v22 = vld [vmem:[%s2205_s0 + $0x8] sm:$0xff]  ;;  %v1679_v23 = vld [vmem:[%s1983_s19] ss:$16 sps:$4 sm:$0xff]   ;;  %v1687_v25 = vld [vmem:[%s2004_s11 + $0x64] ss:$16 sps:$4 sm:$0xff]   ;;  %p1710_p1 = scmp.ne.s32.totalorder %s2152_s10, %s1709_s17 }
  0x4d   : > { %v1682_v24 = vld [vmem:[%s1983_s19 + $0x8] ss:$16 sps:$4 sm:$0xff]   ;;  %v1690_v26 = vld [vmem:[%s2004_s11 + $0x6c] ss:$16 sps:$4 sm:$0xff]   ;;  %v576_v27 = vpack.c.bf16 %v573_v22, %v572_v21  ;;  %v1685_v28 = vld [vmem:[%s2004_s11 + $0x60] ss:$16 sps:$4 sm:$0xff]  }
  0x4e   : > { %v1688_v29 = vld [vmem:[%s2004_s11 + $0x68] ss:$16 sps:$4 sm:$0xff]   ;;  %v1693_v30 = vld [vmem:[%s2004_s11 + $0x44] ss:$16 sps:$4 sm:$0xff]   ;;  %v1696_v31 = vld [vmem:[%s2004_s11 + $0x4c] ss:$16 sps:$4 sm:$0xff]   ;;  %p1711_p2 = pnand %p1710_p1, %p1875_p5 }
  0x4f   : > { %718 = vmatpush1.bf16.msra.mxu0 %v1659_v1  ;;  %771 = vmatpush1.bf16.msra.mxu1 %v1660_v2  ;;  %v574_v32 = vld [vmem:[%s2205_s0 + $0x10] sm:$0xff]  ;;  %v1694_v34 = vld [vmem:[%s2004_s11 + $0x48] ss:$16 sps:$4 sm:$0xff]   ;;  %v1702_v37 = vld [vmem:[%s2004_s11 + $0x2c] ss:$16 sps:$4 sm:$0xff]   ;;  %s1508_s19 = sshll.u32 %s1777_s27, 2 }
  0x50   : > { %903 = vmatprep.subr.bf16.mxu0 %v1663_v3  ;;  %956 = vmatprep.subr.bf16.mxu1 %v1666_v4  ;;  %v1691_v33 = vld [vmem:[%s2004_s11 + $0x40] ss:$16 sps:$4 sm:$0xff]   ;;  %v575_v35 = vld [vmem:[%s2205_s0 + $0x18] sm:$0xff]  ;;  %v1699_v36 = vld [vmem:[%s2004_s11 + $0x24] ss:$16 sps:$4 sm:$0xff]   ;;  %p565_p0 = scmp.lt.s32.totalorder %s1508_s19, 11  ;;  %p1712_p3 = pneg %p1711_p2 }
  0x51   : > { %v577_v38 = vpack.c.bf16 %v575_v35, %v574_v32  ;;  %v1697_v39 = vld [vmem:[%s2004_s11 + $0x20] ss:$16 sps:$4 sm:$0xff]   ;;  %v1700_v40 = vld [vmem:[%s2004_s11 + $0x28] ss:$16 sps:$4 sm:$0xff]   ;;  %v1705_v41 = vld [vmem:[%s2004_s11 + $0x4] ss:$16 sps:$4 sm:$0xff]  }
  0x52   : > { %1525 = vmatmul.mubr.msk.bf16.vlgmr.msra.gmra.mxu0 %vm696_vm0, %v598_v5  ;;  %1527 = vmatmul.mubr.msk.bf16.vlgmr.msra.gmra.mxu1 %vm696_vm0, %v598_v5  ;;  %v1708_v42 = vld [vmem:[%s2004_s11 + $0xc] ss:$16 sps:$4 sm:$0xff]   ;;  %v1001_v43 = vld [vmem:[%s2207_s2] sm:$0xff]  ;;  %v1706_v45 = vld [vmem:[%s2004_s11 + $0x8] ss:$16 sps:$4 sm:$0xff]   ;;  %s2224_s19 = smov (!%p565_p0, %s1508_s19), 11 }
  0x53   : > { %904 = vmatpush1.bf16.msra.mxu0 %v1661_v6  ;;  %957 = vmatpush1.bf16.msra.mxu1 %v1664_v7  ;;  %v1703_v44 = vld [vmem:[%s2004_s11] ss:$16 sps:$4 sm:$0xff]   ;;  %v1002_v46 = vld [vmem:[%s2207_s2 + $0x8] sm:$0xff]  ;;  %v1004_v50 = vld [vmem:[%s2207_s2 + $0x18] sm:$0xff]  ;;  %v1233_v7 = vlaneseq  ;;  %s567_s22 = scalar_lea.vmem %s2211_s6, %s2224_s19  ;;  %s2148_s11 = scalar_lea.hbm %s2212_s7, %s1577_s8 }
  0x54   : > { %905 = vmatprep.subr.bf16.mxu0 %v1669_v8  ;;  %958 = vmatprep.subr.bf16.mxu1 %v1672_v9  ;;  %v1005_v47 = vpack.c.bf16 %v1002_v46, %v1001_v43  ;;  %v1003_v49 = vld [vmem:[%s2207_s2 + $0x10] sm:$0xff]  ;;  %v1231_v21 = vld [vmem:[%s567_s22] sm:$0xf]  ;;  %s1713_s19 = sshll.u32 %s1788_s18, 4  ;;  %s1714_s19 = int_to_ptr.vmem [resolvable:$false] %s1713_s19 }
  0x55   : > { %745 = vmatprep.mubr.bf16.mxu0 %v1787_v48  ;;  %798 = vmatprep.mubr.bf16.mxu1 %v1787_v48  ;;  %v1006_v51 = vpack.c.bf16 %v1004_v50, %v1003_v49  ;;  %s1715_s20 = scalar_lea.vmem %s1714_s19, 4096  ;;  %p1716_p4 = scmp.lt.s32.totalorder %s2152_s10, %s1714_s19 }
  0x56   : > { %p1717_p6 = scmp.lt.s32.totalorder %s1715_s20, %s1709_s17 }
  0x57   : > { %906 = vmatpush1.bf16.msra.mxu0 %v1667_v12  ;;  %959 = vmatpush1.bf16.msra.mxu1 %v1670_v13  ;;  %v1234_v12 = vshrl.u32 %v1233_v7, 7 }
  0x58   : > { %907 = vmatprep.subr.bf16.mxu0 %v1675_v14  ;;  %960 = vmatprep.subr.bf16.mxu1 %v1678_v15  ;;  %p1718_p7 = por %p1717_p6, %p1716_p4 }
  0x59   : > { %v1239_v22 = vsub.s32 1, %v1234_v12 }
  0x5a   : > { %1526 = vmatmul.mubr.msk.bf16.gmra.mxu0 %vm696_vm0, %v599_v16  ;;  %1528 = vmatmul.mubr.msk.bf16.gmra.mxu1 %vm696_vm0, %v599_v16  ;;  %p1719_p8 = pnand %p1718_p7, %p1712_p3 }
  0x5b   : > { %908 = vmatpush1.bf16.msra.mxu0 %v1673_v17  ;;  %961 = vmatpush1.bf16.msra.mxu1 %v1676_v18  ;;  %v1235_v17 = vsub.s32 0, %v1234_v12  ;;  %v1243_v18 = vsub.s32 2, %v1234_v12  ;;  %v2100_v32 = vrot.slane %v1231_v21, %v1239_v22 }
  0x5c   : > { %909 = vmatprep.subr.bf16.mxu0 %v1681_v19  ;;  %962 = vmatprep.subr.bf16.mxu1 %v1684_v20 }
  0x5d   : > { %927 = vmatprep.mubr.bf16.mxu0 %v1787_v48  ;;  %980 = vmatprep.mubr.bf16.mxu1 %v1787_v48 }
  0x5f   : > { %910 = vmatpush1.bf16.msra.mxu0 %v1679_v23  ;;  %963 = vmatpush1.bf16.msra.mxu1 %v1682_v24  ;;  %v1247_v23 = vsub.s32 3, %v1234_v12 }
  0x60   : > { %1117 = vmatprep.subr.bf16.mxu0 %v1687_v25  ;;  %1170 = vmatprep.subr.bf16.mxu1 %v1690_v26 }
  0x62   : > { %1545 = vmatmul.mubr.msk.bf16.vlgmr.msra.gmra.mxu0 %vm696_vm0, %v576_v27  ;;  %1547 = vmatmul.mubr.msk.bf16.vlgmr.msra.gmra.mxu1 %vm696_vm0, %v576_v27 }
  0x63   : > { %1118 = vmatpush1.bf16.msra.mxu0 %v1685_v28  ;;  %1171 = vmatpush1.bf16.msra.mxu1 %v1688_v29  ;;  %v2096_v28 = vrot.slane %v1231_v21, %v1235_v17  ;;  %v2098_v29 = vrot.slane %v1231_v21, %v1243_v18 }
  0x64   : > { %1119 = vmatprep.subr.bf16.mxu0 %v1693_v30  ;;  %1172 = vmatprep.subr.bf16.mxu1 %v1696_v31 }
  0x65   : > { %937 = vmatprep.mubr.bf16.mxu0 %v1787_v48  ;;  %990 = vmatprep.mubr.bf16.mxu1 %v1787_v48 }
  0x67   : > { %1120 = vmatpush1.bf16.msra.mxu0 %v1691_v33  ;;  %1173 = vmatpush1.bf16.msra.mxu1 %v1694_v34  ;;  %v2102_v33 = vrot.slane %v1231_v21, %v1247_v23 }
  0x68   : > { %1121 = vmatprep.subr.bf16.mxu0 %v1699_v36  ;;  %1174 = vmatprep.subr.bf16.mxu1 %v1702_v37 }
  0x6a   : > { %1546 = vmatmul.mubr.msk.bf16.gmra.mxu0 %vm696_vm0, %v577_v38  ;;  %1548 = vmatmul.mubr.msk.bf16.gmra.mxu1 %vm696_vm0, %v577_v38 }
  0x6b   : > { %1122 = vmatpush1.bf16.msra.mxu0 %v1697_v39  ;;  %1175 = vmatpush1.bf16.msra.mxu1 %v1700_v40 }
  0x6c   : > { %1123 = vmatprep.subr.bf16.mxu0 %v1705_v41  ;;  %1176 = vmatprep.subr.bf16.mxu1 %v1708_v42 }
  0x6d   : > { %1141 = vmatprep.mubr.bf16.mxu0 %v1787_v48  ;;  %1194 = vmatprep.mubr.bf16.mxu1 %v1787_v48 }
  0x6f   : > { %1124 = vmatpush1.bf16.msra.mxu0 %v1703_v44  ;;  %1177 = vmatpush1.bf16.msra.mxu1 %v1706_v45 }
  0x72   : > { %1565 = vmatmul.mubr.msk.bf16.vlgmr.msra.gmra.mxu0 %vm696_vm0, %v1005_v47  ;;  %1567 = vmatmul.mubr.msk.bf16.vlgmr.msra.gmra.mxu1 %vm696_vm0, %v1005_v47 }
  0x73   : > { %1151 = vmatprep.mubr.bf16.mxu0 %v1787_v48  ;;  %1204 = vmatprep.mubr.bf16.mxu1 %v1787_v48 }
  0x7a   : > { %1566 = vmatmul.mubr.msk.bf16.gmra.mxu0 %vm696_vm0, %v1006_v51  ;;  %1568 = vmatmul.mubr.msk.bf16.gmra.mxu1 %vm696_vm0, %v1006_v51 }
 0x112   : > { %v737_v52 = vpop.f32.mrf.mxu0  ;;  %v790_v53 = vpop.f32.mrf.mxu1 }
 0x114   : > { %v739_v54 = vpop.f32.mrf.mxu0  ;;  %v792_v55 = vpop.f32.mrf.mxu1 }
 0x116   : > { %v741_v56 = vpop.f32.mrf.mxu0  ;;  %v794_v48 = vpop.f32.mrf.mxu1 }
 0x118   : > { %v743_v57 = vpop.f32.mrf.mxu0  ;;  %v796_v58 = vpop.f32.mrf.mxu1 }
 0x11a   : > { %v2072_v59 = vpop.f32.mrf.mxu0  ;;  %v2074_v60 = vpop.f32.mrf.mxu1 }
 0x11c   : > { %v2076_v61 = vpop.f32.mrf.mxu0  ;;  %v2078_v62 = vpop.f32.mrf.mxu1 }
 0x11e   : > { %v2080_v63 = vpop.f32.mrf.mxu0  ;;  %v2082_v0 = vpop.f32.mrf.mxu1 }
 0x120   : > { %v2084_v1 = vpop.f32.mrf.mxu0  ;;  %v2086_v2 = vpop.f32.mrf.mxu1 }
 0x122   : > { %v929_v3 = vpop.f32.mrf.mxu0  ;;  %v982_v4 = vpop.f32.mrf.mxu1 }
 0x123   : > { %v930_v26 = vadd.f32 %v929_v3, %v737_v52  ;;  %v983_v27 = vadd.f32 %v982_v4, %v790_v53 }
 0x124   : > { %v931_v5 = vpop.f32.mrf.mxu0  ;;  %v984_v6 = vpop.f32.mrf.mxu1 }
 0x125   : > { %v932_v34 = vadd.f32 %v931_v5, %v739_v54  ;;  %v985_v35 = vadd.f32 %v984_v6, %v792_v55 }
 0x126   : > { %v933_v8 = vpop.f32.mrf.mxu0  ;;  %v986_v9 = vpop.f32.mrf.mxu1 }
 0x127   : > { %v934_v44 = vadd.f32 %v933_v8, %v741_v56  ;;  %v987_v45 = vadd.f32 %v986_v9, %v794_v48 }
 0x128   : > { %v935_v10 = vpop.f32.mrf.mxu0  ;;  %v988_v11 = vpop.f32.mrf.mxu1 }
 0x129   : > { %v936_v46 = vadd.f32 %v935_v10, %v743_v57  ;;  %v989_v47 = vadd.f32 %v988_v11, %v796_v58 }
 0x12a   : > { %v939_v13 = vpop.f32.mrf.mxu0  ;;  %v992_v14 = vpop.f32.mrf.mxu1 }
 0x12b   : > { %v940_v55 = vadd.f32 %v939_v13, %v2072_v59  ;;  %v993_v3 = vadd.f32 %v992_v14, %v2074_v60 }
 0x12c   : > { %v941_v15 = vpop.f32.mrf.mxu0  ;;  %v994_v16 = vpop.f32.mrf.mxu1 }
 0x12d   : > { %v942_v59 = vadd.f32 %v941_v15, %v2076_v61  ;;  %v995_v60 = vadd.f32 %v994_v16, %v2078_v62 }
 0x12e   : > { %v943_v19 = vpop.f32.mrf.mxu0  ;;  %v996_v20 = vpop.f32.mrf.mxu1 }
 0x12f   : > { %v944_v61 = vadd.f32 %v943_v19, %v2080_v63  ;;  %v997_v62 = vadd.f32 %v996_v20, %v2082_v0 }
 0x130   : > { %v2092_v24 = vpop.f32.mrf.mxu0  ;;  %v2094_v25 = vpop.f32.mrf.mxu1 }
 0x131   : > { %v999_v63 = vadd.f32 %v2094_v25, %v2086_v2 }
 0x132   : > { %v1143_v30 = vpop.f32.mrf.mxu0  ;;  %v1196_v31 = vpop.f32.mrf.mxu1 }
 0x133   : > { %v1215_v36 = vadd.f32 %v1143_v30, %v930_v26  ;;  %v1217_v37 = vadd.f32 %v1196_v31, %v983_v27  ;;  %v946_v30 = vadd.f32 %v2092_v24, %v2084_v1 }
 0x134   : > { %v1145_v38 = vpop.f32.mrf.mxu0  ;;  %v1198_v39 = vpop.f32.mrf.mxu1 }
 0x135   : > { %v1253_v40 = vadd.f32 %v2096_v28, %v1215_v36  ;;  %v1255_v41 = vadd.f32 %v2098_v29, %v1217_v37  ;;  %v1216_v42 = vadd.f32 %v1145_v38, %v932_v34  ;;  %v1218_v43 = vadd.f32 %v1198_v39, %v985_v35 }
 0x136   : > { %v1147_v49 = vpop.f32.mrf.mxu0  ;;  %v1200_v50 = vpop.f32.mrf.mxu1 }
 0x137   : > { %v1269_v51 = vmax.f32 %v1253_v40, 0.0  ;;  %v1271_v52 = vmax.f32 %v1255_v41, 0.0  ;;  %v1254_v53 = vadd.f32 %v2100_v32, %v1216_v42  ;;  %v1256_v54 = vadd.f32 %v2102_v33, %v1218_v43 }
 0x138   : > { %v1219_v4 = vadd.f32 %v1147_v49, %v934_v44  ;;  %v1221_v5 = vadd.f32 %v1200_v50, %v987_v45  ;;  %v1149_v6 = vpop.f32.mrf.mxu0  ;;  %v1202_v56 = vpop.f32.mrf.mxu1 }
 0x139   : > { %1285 = vst [vmem:[%s2111_s23] sm:$0xff] %v1269_v51  ;;  %1287 = vst [vmem:[%s2111_s23 + $0x10] sm:$0xff] %v1271_v52  ;;  %v1270_v48 = vmax.f32 %v1254_v53, 0.0  ;;  %v1272_v57 = vmax.f32 %v1256_v54, 0.0  ;;  %v1220_v58 = vadd.f32 %v1149_v6, %v936_v46  ;;  %v1222_v7 = vadd.f32 %v1202_v56, %v989_v47 }
 0x13a   : > { %v1257_v8 = vadd.f32 %v2096_v28, %v1219_v4  ;;  %v1259_v9 = vadd.f32 %v2098_v29, %v1221_v5  ;;  %v1153_v10 = vpop.f32.mrf.mxu0  ;;  %v1206_v11 = vpop.f32.mrf.mxu1 }
 0x13b   : > { %1286 = vst [vmem:[%s2111_s23 + $0x8] sm:$0xff] %v1270_v48  ;;  %1288 = vst [vmem:[%s2111_s23 + $0x18] sm:$0xff] %v1272_v57  ;;  %v1258_v12 = vadd.f32 %v2100_v32, %v1220_v58  ;;  %v1260_v13 = vadd.f32 %v2102_v33, %v1222_v7  ;;  %v1223_v14 = vadd.f32 %v1153_v10, %v940_v55 }
 0x13c   : > { %v1225_v17 = vadd.f32 %v1206_v11, %v993_v3  ;;  %v1273_v15 = vmax.f32 %v1257_v8, 0.0  ;;  %v1275_v16 = vmax.f32 %v1259_v9, 0.0  ;;  %v1155_v18 = vpop.f32.mrf.mxu0  ;;  %v1208_v21 = vpop.f32.mrf.mxu1 }
 0x13d   : > { %v1274_v22 = vmax.f32 %v1258_v12, 0.0  ;;  %v1276_v23 = vmax.f32 %v1260_v13, 0.0  ;;  %v1261_v26 = vadd.f32 %v2096_v28, %v1223_v14  ;;  %v1224_v0 = vadd.f32 %v1155_v18, %v942_v59 }
 0x13e   : > { %v1263_v27 = vadd.f32 %v2098_v29, %v1225_v17  ;;  %1289 = vst [vmem:[%s2111_s23 + $0x20] sm:$0xff] %v1273_v15  ;;  %1291 = vst [vmem:[%s2111_s23 + $0x30] sm:$0xff] %v1275_v16  ;;  %v1226_v19 = vadd.f32 %v1208_v21, %v995_v60  ;;  %v1157_v20 = vpop.f32.mrf.mxu0  ;;  %v1210_v31 = vpop.f32.mrf.mxu1 }
 0x13f   : > { %1290 = vst [vmem:[%s2111_s23 + $0x28] sm:$0xff] %v1274_v22  ;;  %1292 = vst [vmem:[%s2111_s23 + $0x38] sm:$0xff] %v1276_v23  ;;  %v1277_v34 = vmax.f32 %v1261_v26, 0.0  ;;  %v1227_v36 = vadd.f32 %v1157_v20, %v944_v61  ;;  %v1229_v37 = vadd.f32 %v1210_v31, %v997_v62  ;;  %v1262_v1 = vadd.f32 %v2100_v32, %v1224_v0 }
 0x140   : > { %v1279_v35 = vmax.f32 %v1263_v27, 0.0  ;;  %v1264_v2 = vadd.f32 %v2102_v33, %v1226_v19  ;;  %v1159_v24 = vpop.f32.mrf.mxu0  ;;  %v1212_v25 = vpop.f32.mrf.mxu1 }
 0x141   : > { %1293 = vst [vmem:[%s2111_s23 + $0x40] sm:$0xff] %v1277_v34  ;;  %v1265_v38 = vadd.f32 %v2096_v28, %v1227_v36  ;;  %v1267_v39 = vadd.f32 %v2098_v29, %v1229_v37  ;;  %v1228_v40 = vadd.f32 %v1159_v24, %v946_v30  ;;  %v1230_v41 = vadd.f32 %v1212_v25, %v999_v63 }
 0x142   : > { %1295 = vst [vmem:[%s2111_s23 + $0x50] sm:$0xff] %v1279_v35  ;;  %v1278_v42 = vmax.f32 %v1262_v1, 0.0  ;;  %v1280_v43 = vmax.f32 %v1264_v2, 0.0 }
 0x143   : > { %v1281_v44 = vmax.f32 %v1265_v38, 0.0  ;;  %v1283_v45 = vmax.f32 %v1267_v39, 0.0  ;;  %v1266_v46 = vadd.f32 %v2100_v32, %v1228_v40  ;;  %v1268_v47 = vadd.f32 %v2102_v33, %v1230_v41 }
 0x144   : > { %1294 = vst [vmem:[%s2111_s23 + $0x48] sm:$0xff] %v1278_v42  ;;  %1296 = vst [vmem:[%s2111_s23 + $0x58] sm:$0xff] %v1280_v43 }
 0x145   : > { %1297 = vst [vmem:[%s2111_s23 + $0x60] sm:$0xff] %v1281_v44  ;;  %1299 = vst [vmem:[%s2111_s23 + $0x70] sm:$0xff] %v1283_v45  ;;  %v1282_v28 = vmax.f32 %v1266_v46, 0.0  ;;  %v1284_v29 = vmax.f32 %v1268_v47, 0.0 }
 0x147   : > { %1298 = vst [vmem:[%s2111_s23 + $0x68] sm:$0xff] %v1282_v28  ;;  %1300 = vst [vmem:[%s2111_s23 + $0x78] sm:$0xff] %v1284_v29 }
 0x148   : > { %1722 = shalt.err (!%p1719_p8)
}
 0x149   : > { %s1723_s30 = scalar_lea.hbm %s2148_s11, 2048  ;;  %s1727_s23 = scalar_lea.hbm %s2212_s7, 6144 }
 0x14a   : > { %p1724_p10 = scmp.ne.s32.totalorder %s2148_s11, %s1723_s30  ;;  %p1728_p13 = scmp.lt.s32.totalorder %s2148_s11, %s2212_s7 }
 0x14b   : > { %p1729_p0 = scmp.lt.s32.totalorder %s1727_s23, %s1723_s30 }
 0x14c   : > { %p1725_p11 = pnand %p1724_p10, %p1875_p5 }
 0x14d   : > { %p1730_p1 = por %p1729_p0, %p1728_p13 }
 0x14e   : > { %p1726_p12 = pneg %p1725_p11 }
 0x150   : > { %p1731_p2 = pnand %p1730_p1, %p1726_p12 }
 0x152   : > { %1734 = shalt.err (!%p1731_p2)
}
 0x153   : > { %s1789_s13 = smov 512   ;;  %s1790_s17 = smov 1536  }
 0x154   : > { %s1791_s18 = smov 32  }
 0x155   : > { %1578 = dma.vmem_to_hbm [thread:$0]  (%p1875_p5), %s2152_s10, 2048, %s2148_s11, %s2160_s16, %s1789_s13, %s1790_s17, %s1791_s18  }
 0x156 PF: > { %p1584_p3 = scmp.ge.s32.totalorder %s1785_s29, 2  ;;  %s1333_s19 = sand.u32 1, %s1765_s24  }
 0x157   : > { %s1334_s20 = scalar_lea.sflag [#allocation6], %s1333_s19 }
 0x158   : > { %p1581_p4 = pnand %p1584_p3, %p1886_p9 }
 0x15a   : > { %p1582_p6 = pneg %p1581_p4 }
 0x15c   : > { %1760 = dma.done.wait (%p1582_p6), %s1334_s20, 2048  }
 0x15d   : > { %1762 = vsyncadd (%p1582_p6), %s1334_s20, 4294965248  ;;  %s20_s29 = sadd.s32 1, %s1785_s29   ;;  %s2216_s24 = smov %s1769_s25 }
 0x15e   : > { %p17_p7 = scmp.ge.s32.totalorder %s20_s29, 5   ;;  %s2217_s25 = smov %s1773_s26 }
 0x15f   : > { %s2218_s26 = smov %s1884_s14  ;;  %s2219_s27 = smov %s1781_s28 }
 0x160   : > { %s2220_s28 = smov %s2222_s9  ;;  %19 = sbr.rel (!%p17_p7) target bundleno = 4 (0x4), region = 185 }
 0x165   :  { %1339 = vsyncpa [#allocation6], 1 }
 0x166   :  { %1341 = vsyncpa [#allocation6 + $0x1], 1 }

</bundles_post_ra>
